<compile_context>
chip_gen: v7x
topology: tpu7x:2x2x1
jax: 0.10.0
libtpu: 0.0.40
codegen_flags: <defaults>
</compile_context>

<pallas_src>
import math

import jax
import jax.numpy as jnp
from jax import lax
from jax.experimental import pallas as pl
from jax.experimental.pallas import tpu as pltpu

_LN_EPS = 1e-5
_INV_SQRT2 = 1.0 / math.sqrt(2.0)


def _round_up(x, m):
    return ((x + m - 1) // m) * m


def _physical_vmem_bytes():
    """Physical VMEM per TensorCore; conservative 64 MiB fallback (v7x-sized)."""
    try:
        info = pltpu.get_tpu_info()
        v = int(getattr(info, "vmem_capacity_bytes", 0))
        if v > 0:
            return v
    except Exception:
        pass
    return 64 << 20


def _layernorm(x, gamma, beta):
    # var = E[x^2] - mu^2: the two lane reductions are independent, roughly
    # halving the XLU critical path vs. the dependent (x - mu)^2 two-pass form.
    mu = jnp.mean(x, axis=-1, keepdims=True)
    var = jnp.mean(x * x, axis=-1, keepdims=True) - mu * mu
    var = jnp.maximum(var, 0.0)
    return (x - mu) * lax.rsqrt(var + _LN_EPS) * gamma + beta


def _gelu_exact(x):
    # nn.GELU() default: exact erf-based GELU (erf goes to the EUP slot).
    # TODO(synk): switch to tanh-approx GELU only if the bundle dump shows the
    # single EUP slot is the binding unit at this shape.
    return 0.5 * x * (1.0 + lax.erf(x * _INV_SQRT2))


def _make_kernel(block_b, num_subtiles):
    sub = block_b // num_subtiles

    def kernel(shared_ref, task_ref,
               ln1_g_ref, ln1_b_ref, w1_ref, b1_ref, w2_ref, b2_ref,
               wr_ref, br_ref, ln2_g_ref, ln2_b_ref, out_ref):
        # Hoist parameter loads out of the sub-tile loop (no per-iter reloads).
        ln1_g = ln1_g_ref[...]; ln1_b = ln1_b_ref[...]
        ln2_g = ln2_g_ref[...]; ln2_b = ln2_b_ref[...]
        b1 = b1_ref[...]; b2 = b2_ref[...]; br = br_ref[...]
        w1 = w1_ref[...]; w2 = w2_ref[...]; wr = wr_ref[...]

        # Static row split -> independent chains the LLO scheduler can interleave
        # (MXU of one sub-tile under the LN/GELU/sigmoid of the other).
        for s in range(num_subtiles):
            rows = pl.ds(s * sub, sub)
            x = shared_ref[rows, :].astype(jnp.float32)
            t = task_ref[rows, :].astype(jnp.float32)

            # attention branch: LN -> Linear(F,H) -> GELU -> Dropout(eval: id)
            #                   -> Linear(H,F) -> Sigmoid
            xn = _layernorm(x, ln1_g, ln1_b)
            h = jnp.dot(xn.astype(jnp.bfloat16), w1,
                        preferred_element_type=jnp.float32) + b1
            h = _gelu_exact(h)
            a = jnp.dot(h.astype(jnp.bfloat16), w2,
                        preferred_element_type=jnp.float32) + b2
            attn = jax.nn.sigmoid(a)

            # gated mix: t + attn*(x - t) == x*attn + t*(1 - attn)
            gated = t + attn * (x - t)

            # residual branch: Linear(F,F) -> LayerNorm(F)
            r = jnp.dot(gated.astype(jnp.bfloat16), wr,
                        preferred_element_type=jnp.float32) + br
            r = _layernorm(r, ln2_g, ln2_b)

            out_ref[rows, :] = (gated + r).astype(out_ref.dtype)

    return kernel


def attention_gating_forward(shared, task, params, *, block_b=None,
                             single_buffer_weights=True, pad_batch=False):
    """shared, task: (B, F) float32. Returns (B, F) float32."""
    B, F = shared.shape
    assert task.shape == (B, F)
    assert F % 128 == 0, "feature_dim must be a multiple of 128 (lane-dense)"
    # TODO(synk): non-128-aligned feature_dim (pad F + masked LayerNorm stats).

    (ln1_g, ln1_b, w1, b1, w2, b2, wr, br, ln2_g, ln2_b) = params
    H = w1.shape[1]

    phys_vmem = _physical_vmem_bytes()
    vmem_cap = int(phys_vmem * 0.8)

    if B < 8:
        pad_batch = True  # too few rows for a sublane-aligned block

    # Per-generation batch tile:
    #  * small-VMEM chips (v7x-class, 2 TCs/chip): >= 4 blocks so each core gets
    #    >= 2 and the software pipeline has something to overlap.
    #  * big-VMEM chips (v5e/v6e, single TC): fewer, larger tiles amortize the
    #    ~0.35us/grid-step overhead.
    if block_b is None:
        if phys_vmem <= (80 << 20):
            block_b = max(64, min(256, _round_up(pl.cdiv(max(B, 32), 4), 8)))
        else:
            block_b = 256
    block_b = _round_up(max(8, block_b), 8)
    if not pad_batch:
        # never make the block taller than the (unpadded) array
        block_b = min(block_b, max(8, (B // 8) * 8))

    if pad_batch:
        B_run = _round_up(max(B, block_b), block_b)
        if B_run != B:
            shared_in = jnp.pad(shared, ((0, B_run - B), (0, 0)))
            task_in = jnp.pad(task, ((0, B_run - B), (0, 0)))
        else:
            shared_in, task_in = shared, task
    else:
        shared_in, task_in = shared, task
        B_run = B

    num_blocks = pl.cdiv(B_run, block_b)
    num_subtiles = 2 if (block_b % 16 == 0 and block_b >= 32) else 1

    row_spec = pl.BlockSpec((block_b, F), lambda i: (i, 0))

    if single_buffer_weights:
        def const2d(shape):
            # Constant block index across the grid -> fetched once, single buffer.
            return pl.BlockSpec(shape, lambda i: (0, 0),
                                pipeline_mode=pl.Buffered(1))
    else:
        def const2d(shape):
            return pl.BlockSpec(shape, lambda i: (0, 0))

    in_specs = [
        row_spec,               # shared
        row_spec,               # task
        const2d((1, F)),        # ln1 gamma
        const2d((1, F)),        # ln1 beta
        const2d((F, H)),        # W1 (in, out) bf16
        const2d((1, H)),        # b1
        const2d((H, F)),        # W2 (in, out) bf16
        const2d((1, F)),        # b2
        const2d((F, F)),        # Wr (in, out) bf16
        const2d((1, F)),        # br
        const2d((1, F)),        # ln2 gamma
        const2d((1, F)),        # ln2 beta
    ]

    # VMEM budget: resident bf16 weights + small params + double-buffered f32
    # I/O tiles + live f32 intermediates of the kernel body, capped at ~80% of
    # physical VMEM (so v7x gets <= ~52 MiB, never a 100 MiB request).
    weight_bufs = 1 if single_buffer_weights else 2
    weight_bytes = (w1.size + w2.size + wr.size) * w1.dtype.itemsize * weight_bufs
    small_bytes = (b1.size + b2.size + br.size + ln1_g.size + ln1_b.size
                   + ln2_g.size + ln2_b.size) * 4 * 2
    io_bytes = 3 * 2 * block_b * F * 4          # shared/task/out, double-buffered
    interm_bytes = 8 * block_b * F * 4          # x, t, xn, h, attn, gated, r, casts
    need = weight_bytes + small_bytes + io_bytes + interm_bytes + (4 << 20)
    vmem_limit = min(max(need, 24 << 20), vmem_cap)

    # All weights are VMEM-resident; guard for huge feature_dim.
    # TODO(synk): for feature_dim beyond ~2-3k, column-tile W2/Wr over an extra
    # "arbitrary" grid axis with an f32 accumulator instead of full residency.
    assert weight_bytes <= 0.6 * vmem_cap, "feature_dim too large for resident weights"

    flops = 2 * B_run * (F * H + H * F + F * F)
    transcendentals = B_run * (H + F)              # erf + sigmoid
    bytes_accessed = int(3 * B_run * F * 4
                         + (w1.size + w2.size + wr.size) * w1.dtype.itemsize
                         + small_bytes // 2)
    cost = pl.CostEstimate(flops=flops, transcendentals=transcendentals,
                           bytes_accessed=bytes_accessed)

    out = pl.pallas_call(
        _make_kernel(block_b, num_subtiles),
        out_shape=jax.ShapeDtypeStruct((B_run, F), shared.dtype),
        grid_spec=pltpu.PrefetchScalarGridSpec(
            num_scalar_prefetch=0,
            grid=(num_blocks,),
            in_specs=in_specs,
            out_specs=row_spec,
        ),
        compiler_params=pltpu.CompilerParams(
            dimension_semantics=("parallel",),
            vmem_limit_bytes=int(vmem_limit),
        ),
        cost_estimate=cost,
    )(shared_in, task_in, ln1_g, ln1_b, w1, b1, w2, b2, wr, br, ln2_g, ln2_b)

    return out[:B] if B_run != B else out


def make_params(key, feature_dim):
    F = feature_dim
    H = F // 2
    keys = jax.random.split(key, 6)
    scale = 0.1
    # Weights stored as (in, out) so the kernel does x @ W; bf16 for the MXU.
    w1 = (scale * jax.random.normal(keys[0], (F, H), jnp.float32)).astype(jnp.bfloat16)
    b1 = scale * jax.random.normal(keys[1], (1, H), jnp.float32)
    w2 = (scale * jax.random.normal(keys[2], (H, F), jnp.float32)).astype(jnp.bfloat16)
    b2 = scale * jax.random.normal(keys[3], (1, F), jnp.float32)
    wr = (scale * jax.random.normal(keys[4], (F, F), jnp.float32)).astype(jnp.bfloat16)
    br = scale * jax.random.normal(keys[5], (1, F), jnp.float32)
    # LayerNorm affine params init like PyTorch: gamma=1, beta=0.
    ln1_g = jnp.ones((1, F), jnp.float32)
    ln1_b = jnp.zeros((1, F), jnp.float32)
    ln2_g = jnp.ones((1, F), jnp.float32)
    ln2_b = jnp.zeros((1, F), jnp.float32)
    return (ln1_g, ln1_b, w1, b1, w2, b2, wr, br, ln2_g, ln2_b)


def reference_forward(shared, task, params):
    """Pure-JAX reference with the same bf16-matmul / f32-elementwise recipe."""
    (ln1_g, ln1_b, w1, b1, w2, b2, wr, br, ln2_g, ln2_b) = params

    def ln(x, g, b):
        mu = jnp.mean(x, axis=-1, keepdims=True)
        var = jnp.mean((x - mu) ** 2, axis=-1, keepdims=True)
        return (x - mu) / jnp.sqrt(var + _LN_EPS) * g + b

    def bdot(a, w):
        return jnp.dot(a.astype(jnp.bfloat16), w,
                       preferred_element_type=jnp.float32)

    xn = ln(shared, ln1_g, ln1_b)
    h = jax.nn.gelu(bdot(xn, w1) + b1, approximate=False)
    attn = jax.nn.sigmoid(bdot(h, w2) + b2)
    gated = shared * attn + task * (1.0 - attn)
    r = ln(bdot(gated, wr) + br, ln2_g, ln2_b)
    return gated + r


if __name__ == "__main__":
    # B deliberately not a multiple of the batch tile to exercise the
    # no-pad partial-block path; F lane-dense (multiple of 128), H = F // 2.
    B, F = 300, 256
    key = jax.random.PRNGKey(0)
    k_shared, k_task, k_params = jax.random.split(key, 3)

    shared = jax.random.normal(k_shared, (B, F), jnp.float32)
    task = jax.random.normal(k_task, (B, F), jnp.float32)
    params = make_params(k_params, F)

    try:
        # Preferred path: auto block_b, no wrapper padding, single-buffered
        # resident weights.
        out = attention_gating_forward(shared, task, params, block_b=None,
                                       single_buffer_weights=True,
                                       pad_batch=False)
        out = jax.block_until_ready(out)
    except Exception:
        # Conservative fallback: padded batch, default double-buffered specs
        # (in case this jax build rejects Buffered(1) or partial leading blocks).
        out = attention_gating_forward(shared, task, params, block_b=128,
                                       single_buffer_weights=False,
                                       pad_batch=True)
        out = jax.block_until_ready(out)

    ref = reference_forward(shared, task, params)
    assert out.shape == (B, F)
    max_err = float(jnp.max(jnp.abs(out - ref)))
    assert jnp.allclose(out, ref, atol=1e-2, rtol=1e-2), max_err

    print("KERNEL_OK")
</pallas_src>

<mosaic_0001>
module attributes {stable_mosaic.version = 11 : i64} {
  func.func @kernel(%arg0: i32, %arg1: memref<80x256xf32, #tpu.memory_space<vmem>>, %arg2: memref<80x256xf32, #tpu.memory_space<vmem>>, %arg3: memref<1x256xf32, #tpu.memory_space<vmem>>, %arg4: memref<1x256xf32, #tpu.memory_space<vmem>>, %arg5: memref<256x128xbf16, #tpu.memory_space<vmem>>, %arg6: memref<1x128xf32, #tpu.memory_space<vmem>>, %arg7: memref<128x256xbf16, #tpu.memory_space<vmem>>, %arg8: memref<1x256xf32, #tpu.memory_space<vmem>>, %arg9: memref<256x256xbf16, #tpu.memory_space<vmem>>, %arg10: memref<1x256xf32, #tpu.memory_space<vmem>>, %arg11: memref<1x256xf32, #tpu.memory_space<vmem>>, %arg12: memref<1x256xf32, #tpu.memory_space<vmem>>, %arg13: memref<80x256xf32, #tpu.memory_space<vmem>>) attributes {dimension_semantics = [#tpu.dimension_semantics<parallel>], iteration_bounds = array<i64: 4>, scalar_prefetch = 0 : i64, scratch_operands = 0 : i64, tpu.core_type = #tpu.core_type<tc>, window_params = [{transform_indices = @transform_0, window_bounds = array<i64: 80, 256>}, {transform_indices = @transform_1, window_bounds = array<i64: 80, 256>}, {pipeline_mode = #tpu.pipeline_mode<synchronous>, transform_indices = @transform_2, window_bounds = array<i64: 1, 256>}, {pipeline_mode = #tpu.pipeline_mode<synchronous>, transform_indices = @transform_3, window_bounds = array<i64: 1, 256>}, {pipeline_mode = #tpu.pipeline_mode<synchronous>, transform_indices = @transform_4, window_bounds = array<i64: 256, 128>}, {pipeline_mode = #tpu.pipeline_mode<synchronous>, transform_indices = @transform_5, window_bounds = array<i64: 1, 128>}, {pipeline_mode = #tpu.pipeline_mode<synchronous>, transform_indices = @transform_6, window_bounds = array<i64: 128, 256>}, {pipeline_mode = #tpu.pipeline_mode<synchronous>, transform_indices = @transform_7, window_bounds = array<i64: 1, 256>}, {pipeline_mode = #tpu.pipeline_mode<synchronous>, transform_indices = @transform_8, window_bounds = array<i64: 256, 256>}, {pipeline_mode = #tpu.pipeline_mode<synchronous>, transform_indices = @transform_9, window_bounds = array<i64: 1, 256>}, {pipeline_mode = #tpu.pipeline_mode<synchronous>, transform_indices = @transform_10, window_bounds = array<i64: 1, 256>}, {pipeline_mode = #tpu.pipeline_mode<synchronous>, transform_indices = @transform_11, window_bounds = array<i64: 1, 256>}, {transform_indices = @transform_12, window_bounds = array<i64: 80, 256>}]} {
    %c0 = arith.constant 0 : index
    %c0_0 = arith.constant 0 : index
    %0 = vector.load %arg3[%c0, %c0_0] : memref<1x256xf32, #tpu.memory_space<vmem>>, vector<1x256xf32>
    %c0_1 = arith.constant 0 : index
    %c0_2 = arith.constant 0 : index
    %1 = vector.load %arg4[%c0_1, %c0_2] : memref<1x256xf32, #tpu.memory_space<vmem>>, vector<1x256xf32>
    %c0_3 = arith.constant 0 : index
    %c0_4 = arith.constant 0 : index
    %2 = vector.load %arg11[%c0_3, %c0_4] : memref<1x256xf32, #tpu.memory_space<vmem>>, vector<1x256xf32>
    %c0_5 = arith.constant 0 : index
    %c0_6 = arith.constant 0 : index
    %3 = vector.load %arg12[%c0_5, %c0_6] : memref<1x256xf32, #tpu.memory_space<vmem>>, vector<1x256xf32>
    %c0_7 = arith.constant 0 : index
    %c0_8 = arith.constant 0 : index
    %4 = vector.load %arg6[%c0_7, %c0_8] : memref<1x128xf32, #tpu.memory_space<vmem>>, vector<1x128xf32>
    %c0_9 = arith.constant 0 : index
    %c0_10 = arith.constant 0 : index
    %5 = vector.load %arg8[%c0_9, %c0_10] : memref<1x256xf32, #tpu.memory_space<vmem>>, vector<1x256xf32>
    %c0_11 = arith.constant 0 : index
    %c0_12 = arith.constant 0 : index
    %6 = vector.load %arg10[%c0_11, %c0_12] : memref<1x256xf32, #tpu.memory_space<vmem>>, vector<1x256xf32>
    %c0_13 = arith.constant 0 : index
    %c0_14 = arith.constant 0 : index
    %7 = vector.load %arg5[%c0_13, %c0_14] : memref<256x128xbf16, #tpu.memory_space<vmem>>, vector<256x128xbf16>
    %c0_15 = arith.constant 0 : index
    %c0_16 = arith.constant 0 : index
    %8 = vector.load %arg7[%c0_15, %c0_16] : memref<128x256xbf16, #tpu.memory_space<vmem>>, vector<128x256xbf16>
    %c0_17 = arith.constant 0 : index
    %c0_18 = arith.constant 0 : index
    %9 = vector.load %arg9[%c0_17, %c0_18] : memref<256x256xbf16, #tpu.memory_space<vmem>>, vector<256x256xbf16>
    %c0_19 = arith.constant 0 : index
    %c0_20 = arith.constant 0 : index
    %10 = vector.load %arg1[%c0_19, %c0_20] : memref<80x256xf32, #tpu.memory_space<vmem>>, vector<40x256xf32>
    %c0_21 = arith.constant 0 : index
    %c0_22 = arith.constant 0 : index
    %11 = vector.load %arg2[%c0_21, %c0_22] : memref<80x256xf32, #tpu.memory_space<vmem>>, vector<40x256xf32>
    %cst = arith.constant dense<0.000000e+00> : vector<40xf32>
    %12 = vector.multi_reduction <add>, %10, %cst [1] : vector<40x256xf32> to vector<40xf32>
    %13 = vector.shape_cast %12 : vector<40xf32> to vector<40x1xf32>
    %cst_23 = arith.constant 2.560000e+02 : f32
    %14 = vector.broadcast %cst_23 : f32 to vector<40x1xf32>
    %15 = arith.divf %13, %14 : vector<40x1xf32>
    %16 = arith.mulf %10, %10 : vector<40x256xf32>
    %cst_24 = arith.constant dense<0.000000e+00> : vector<40xf32>
    %17 = vector.multi_reduction <add>, %16, %cst_24 [1] : vector<40x256xf32> to vector<40xf32>
    %18 = vector.shape_cast %17 : vector<40xf32> to vector<40x1xf32>
    %cst_25 = arith.constant 2.560000e+02 : f32
    %19 = vector.broadcast %cst_25 : f32 to vector<40x1xf32>
    %20 = arith.divf %18, %19 : vector<40x1xf32>
    %21 = arith.mulf %15, %15 : vector<40x1xf32>
    %22 = arith.subf %20, %21 : vector<40x1xf32>
    %cst_26 = arith.constant 0.000000e+00 : f32
    %23 = vector.broadcast %cst_26 : f32 to vector<40x1xf32>
    %24 = arith.maximumf %22, %23 : vector<40x1xf32>
    %25 = vector.broadcast %15 : vector<40x1xf32> to vector<40x256xf32>
    %26 = arith.subf %10, %25 : vector<40x256xf32>
    %cst_27 = arith.constant 9.99999974E-6 : f32
    %27 = vector.broadcast %cst_27 : f32 to vector<40x1xf32>
    %28 = arith.addf %24, %27 : vector<40x1xf32>
    %29 = math.rsqrt %28 : vector<40x1xf32>
    %30 = vector.broadcast %29 : vector<40x1xf32> to vector<40x256xf32>
    %31 = arith.mulf %26, %30 : vector<40x256xf32>
    %32 = vector.broadcast %0 : vector<1x256xf32> to vector<40x256xf32>
    %33 = arith.mulf %31, %32 : vector<40x256xf32>
    %34 = vector.broadcast %1 : vector<1x256xf32> to vector<40x256xf32>
    %35 = arith.addf %33, %34 : vector<40x256xf32>
    %36 = arith.truncf %35 : vector<40x256xf32> to vector<40x256xbf16>
    %cst_28 = arith.constant dense<0.000000e+00> : vector<40x128xf32>
    %37 = tpu.matmul %36, %7, %cst_28 {dimension_numbers = #tpu.dot_dimension_numbers<[1], [0], [0], [1], [0, 0, 1, 1], [], []>} : vector<40x256xbf16>, vector<256x128xbf16>, vector<40x128xf32> -> vector<40x128xf32>
    %38 = vector.broadcast %4 : vector<1x128xf32> to vector<40x128xf32>
    %39 = arith.addf %37, %38 : vector<40x128xf32>
    %cst_29 = arith.constant 5.000000e-01 : f32
    %40 = vector.broadcast %cst_29 : f32 to vector<40x128xf32>
    %41 = arith.mulf %40, %39 : vector<40x128xf32>
    %cst_30 = arith.constant 0.707106769 : f32
    %42 = vector.broadcast %cst_30 : f32 to vector<40x128xf32>
    %43 = arith.mulf %39, %42 : vector<40x128xf32>
    %44 = math.erf %43 : vector<40x128xf32>
    %cst_31 = arith.constant 1.000000e+00 : f32
    %45 = vector.broadcast %cst_31 : f32 to vector<40x128xf32>
    %46 = arith.addf %45, %44 : vector<40x128xf32>
    %47 = arith.mulf %41, %46 : vector<40x128xf32>
    %48 = arith.truncf %47 : vector<40x128xf32> to vector<40x128xbf16>
    %cst_32 = arith.constant dense<0.000000e+00> : vector<40x256xf32>
    %49 = tpu.matmul %48, %8, %cst_32 {dimension_numbers = #tpu.dot_dimension_numbers<[1], [0], [0], [1], [0, 0, 1, 1], [], []>} : vector<40x128xbf16>, vector<128x256xbf16>, vector<40x256xf32> -> vector<40x256xf32>
    %50 = vector.broadcast %5 : vector<1x256xf32> to vector<40x256xf32>
    %51 = arith.addf %49, %50 : vector<40x256xf32>
    %52 = arith.negf %51 : vector<40x256xf32>
    %53 = math.exp %52 : vector<40x256xf32>
    %cst_33 = arith.constant 1.000000e+00 : f32
    %54 = vector.broadcast %cst_33 : f32 to vector<40x256xf32>
    %55 = arith.addf %54, %53 : vector<40x256xf32>
    %56 = arith.divf %54, %55 : vector<40x256xf32>
    %57 = arith.subf %10, %11 : vector<40x256xf32>
    %58 = arith.mulf %56, %57 : vector<40x256xf32>
    %59 = arith.addf %11, %58 : vector<40x256xf32>
    %60 = arith.truncf %59 : vector<40x256xf32> to vector<40x256xbf16>
    %cst_34 = arith.constant dense<0.000000e+00> : vector<40x256xf32>
    %61 = tpu.matmul %60, %9, %cst_34 {dimension_numbers = #tpu.dot_dimension_numbers<[1], [0], [0], [1], [0, 0, 1, 1], [], []>} : vector<40x256xbf16>, vector<256x256xbf16>, vector<40x256xf32> -> vector<40x256xf32>
    %62 = vector.broadcast %6 : vector<1x256xf32> to vector<40x256xf32>
    %63 = arith.addf %61, %62 : vector<40x256xf32>
    %cst_35 = arith.constant dense<0.000000e+00> : vector<40xf32>
    %64 = vector.multi_reduction <add>, %63, %cst_35 [1] : vector<40x256xf32> to vector<40xf32>
    %65 = vector.shape_cast %64 : vector<40xf32> to vector<40x1xf32>
    %cst_36 = arith.constant 2.560000e+02 : f32
    %66 = vector.broadcast %cst_36 : f32 to vector<40x1xf32>
    %67 = arith.divf %65, %66 : vector<40x1xf32>
    %68 = arith.mulf %63, %63 : vector<40x256xf32>
    %cst_37 = arith.constant dense<0.000000e+00> : vector<40xf32>
    %69 = vector.multi_reduction <add>, %68, %cst_37 [1] : vector<40x256xf32> to vector<40xf32>
    %70 = vector.shape_cast %69 : vector<40xf32> to vector<40x1xf32>
    %cst_38 = arith.constant 2.560000e+02 : f32
    %71 = vector.broadcast %cst_38 : f32 to vector<40x1xf32>
    %72 = arith.divf %70, %71 : vector<40x1xf32>
    %73 = arith.mulf %67, %67 : vector<40x1xf32>
    %74 = arith.subf %72, %73 : vector<40x1xf32>
    %cst_39 = arith.constant 0.000000e+00 : f32
    %75 = vector.broadcast %cst_39 : f32 to vector<40x1xf32>
    %76 = arith.maximumf %74, %75 : vector<40x1xf32>
    %77 = vector.broadcast %67 : vector<40x1xf32> to vector<40x256xf32>
    %78 = arith.subf %63, %77 : vector<40x256xf32>
    %cst_40 = arith.constant 9.99999974E-6 : f32
    %79 = vector.broadcast %cst_40 : f32 to vector<40x1xf32>
    %80 = arith.addf %76, %79 : vector<40x1xf32>
    %81 = math.rsqrt %80 : vector<40x1xf32>
    %82 = vector.broadcast %81 : vector<40x1xf32> to vector<40x256xf32>
    %83 = arith.mulf %78, %82 : vector<40x256xf32>
    %84 = vector.broadcast %2 : vector<1x256xf32> to vector<40x256xf32>
    %85 = arith.mulf %83, %84 : vector<40x256xf32>
    %86 = vector.broadcast %3 : vector<1x256xf32> to vector<40x256xf32>
    %87 = arith.addf %85, %86 : vector<40x256xf32>
    %88 = arith.addf %59, %87 : vector<40x256xf32>
    %c0_41 = arith.constant 0 : index
    %c0_42 = arith.constant 0 : index
    %89 = vector.load %arg13[%c0_41, %c0_42] : memref<80x256xf32, #tpu.memory_space<vmem>>, vector<40x256xf32>
    tpu.vector_store %arg13[%c0_41, %c0_42], %88 {strides = array<i32>} : memref<80x256xf32, #tpu.memory_space<vmem>>, vector<40x256xf32>,
    %c40 = arith.constant 40 : index
    %c0_43 = arith.constant 0 : index
    %90 = vector.load %arg1[%c40, %c0_43] : memref<80x256xf32, #tpu.memory_space<vmem>>, vector<40x256xf32>
    %c40_44 = arith.constant 40 : index
    %c0_45 = arith.constant 0 : index
    %91 = vector.load %arg2[%c40_44, %c0_45] : memref<80x256xf32, #tpu.memory_space<vmem>>, vector<40x256xf32>
    %cst_46 = arith.constant dense<0.000000e+00> : vector<40xf32>
    %92 = vector.multi_reduction <add>, %90, %cst_46 [1] : vector<40x256xf32> to vector<40xf32>
    %93 = vector.shape_cast %92 : vector<40xf32> to vector<40x1xf32>
    %cst_47 = arith.constant 2.560000e+02 : f32
    %94 = vector.broadcast %cst_47 : f32 to vector<40x1xf32>
    %95 = arith.divf %93, %94 : vector<40x1xf32>
    %96 = arith.mulf %90, %90 : vector<40x256xf32>
    %cst_48 = arith.constant dense<0.000000e+00> : vector<40xf32>
    %97 = vector.multi_reduction <add>, %96, %cst_48 [1] : vector<40x256xf32> to vector<40xf32>
    %98 = vector.shape_cast %97 : vector<40xf32> to vector<40x1xf32>
    %cst_49 = arith.constant 2.560000e+02 : f32
    %99 = vector.broadcast %cst_49 : f32 to vector<40x1xf32>
    %100 = arith.divf %98, %99 : vector<40x1xf32>
    %101 = arith.mulf %95, %95 : vector<40x1xf32>
    %102 = arith.subf %100, %101 : vector<40x1xf32>
    %cst_50 = arith.constant 0.000000e+00 : f32
    %103 = vector.broadcast %cst_50 : f32 to vector<40x1xf32>
    %104 = arith.maximumf %102, %103 : vector<40x1xf32>
    %105 = vector.broadcast %95 : vector<40x1xf32> to vector<40x256xf32>
    %106 = arith.subf %90, %105 : vector<40x256xf32>
    %cst_51 = arith.constant 9.99999974E-6 : f32
    %107 = vector.broadcast %cst_51 : f32 to vector<40x1xf32>
    %108 = arith.addf %104, %107 : vector<40x1xf32>
    %109 = math.rsqrt %108 : vector<40x1xf32>
    %110 = vector.broadcast %109 : vector<40x1xf32> to vector<40x256xf32>
    %111 = arith.mulf %106, %110 : vector<40x256xf32>
    %112 = vector.broadcast %0 : vector<1x256xf32> to vector<40x256xf32>
    %113 = arith.mulf %111, %112 : vector<40x256xf32>
    %114 = vector.broadcast %1 : vector<1x256xf32> to vector<40x256xf32>
    %115 = arith.addf %113, %114 : vector<40x256xf32>
    %116 = arith.truncf %115 : vector<40x256xf32> to vector<40x256xbf16>
    %cst_52 = arith.constant dense<0.000000e+00> : vector<40x128xf32>
    %117 = tpu.matmul %116, %7, %cst_52 {dimension_numbers = #tpu.dot_dimension_numbers<[1], [0], [0], [1], [0, 0, 1, 1], [], []>} : vector<40x256xbf16>, vector<256x128xbf16>, vector<40x128xf32> -> vector<40x128xf32>
    %118 = vector.broadcast %4 : vector<1x128xf32> to vector<40x128xf32>
    %119 = arith.addf %117, %118 : vector<40x128xf32>
    %cst_53 = arith.constant 5.000000e-01 : f32
    %120 = vector.broadcast %cst_53 : f32 to vector<40x128xf32>
    %121 = arith.mulf %120, %119 : vector<40x128xf32>
    %cst_54 = arith.constant 0.707106769 : f32
    %122 = vector.broadcast %cst_54 : f32 to vector<40x128xf32>
    %123 = arith.mulf %119, %122 : vector<40x128xf32>
    %124 = math.erf %123 : vector<40x128xf32>
    %cst_55 = arith.constant 1.000000e+00 : f32
    %125 = vector.broadcast %cst_55 : f32 to vector<40x128xf32>
    %126 = arith.addf %125, %124 : vector<40x128xf32>
    %127 = arith.mulf %121, %126 : vector<40x128xf32>
    %128 = arith.truncf %127 : vector<40x128xf32> to vector<40x128xbf16>
    %cst_56 = arith.constant dense<0.000000e+00> : vector<40x256xf32>
    %129 = tpu.matmul %128, %8, %cst_56 {dimension_numbers = #tpu.dot_dimension_numbers<[1], [0], [0], [1], [0, 0, 1, 1], [], []>} : vector<40x128xbf16>, vector<128x256xbf16>, vector<40x256xf32> -> vector<40x256xf32>
    %130 = vector.broadcast %5 : vector<1x256xf32> to vector<40x256xf32>
    %131 = arith.addf %129, %130 : vector<40x256xf32>
    %132 = arith.negf %131 : vector<40x256xf32>
    %133 = math.exp %132 : vector<40x256xf32>
    %cst_57 = arith.constant 1.000000e+00 : f32
    %134 = vector.broadcast %cst_57 : f32 to vector<40x256xf32>
    %135 = arith.addf %134, %133 : vector<40x256xf32>
    %136 = arith.divf %134, %135 : vector<40x256xf32>
    %137 = arith.subf %90, %91 : vector<40x256xf32>
    %138 = arith.mulf %136, %137 : vector<40x256xf32>
    %139 = arith.addf %91, %138 : vector<40x256xf32>
    %140 = arith.truncf %139 : vector<40x256xf32> to vector<40x256xbf16>
    %cst_58 = arith.constant dense<0.000000e+00> : vector<40x256xf32>
    %141 = tpu.matmul %140, %9, %cst_58 {dimension_numbers = #tpu.dot_dimension_numbers<[1], [0], [0], [1], [0, 0, 1, 1], [], []>} : vector<40x256xbf16>, vector<256x256xbf16>, vector<40x256xf32> -> vector<40x256xf32>
    %142 = vector.broadcast %6 : vector<1x256xf32> to vector<40x256xf32>
    %143 = arith.addf %141, %142 : vector<40x256xf32>
    %cst_59 = arith.constant dense<0.000000e+00> : vector<40xf32>
    %144 = vector.multi_reduction <add>, %143, %cst_59 [1] : vector<40x256xf32> to vector<40xf32>
    %145 = vector.shape_cast %144 : vector<40xf32> to vector<40x1xf32>
    %cst_60 = arith.constant 2.560000e+02 : f32
    %146 = vector.broadcast %cst_60 : f32 to vector<40x1xf32>
    %147 = arith.divf %145, %146 : vector<40x1xf32>
    %148 = arith.mulf %143, %143 : vector<40x256xf32>
    %cst_61 = arith.constant dense<0.000000e+00> : vector<40xf32>
    %149 = vector.multi_reduction <add>, %148, %cst_61 [1] : vector<40x256xf32> to vector<40xf32>
    %150 = vector.shape_cast %149 : vector<40xf32> to vector<40x1xf32>
    %cst_62 = arith.constant 2.560000e+02 : f32
    %151 = vector.broadcast %cst_62 : f32 to vector<40x1xf32>
    %152 = arith.divf %150, %151 : vector<40x1xf32>
    %153 = arith.mulf %147, %147 : vector<40x1xf32>
    %154 = arith.subf %152, %153 : vector<40x1xf32>
    %cst_63 = arith.constant 0.000000e+00 : f32
    %155 = vector.broadcast %cst_63 : f32 to vector<40x1xf32>
    %156 = arith.maximumf %154, %155 : vector<40x1xf32>
    %157 = vector.broadcast %147 : vector<40x1xf32> to vector<40x256xf32>
    %158 = arith.subf %143, %157 : vector<40x256xf32>
    %cst_64 = arith.constant 9.99999974E-6 : f32
    %159 = vector.broadcast %cst_64 : f32 to vector<40x1xf32>
    %160 = arith.addf %156, %159 : vector<40x1xf32>
    %161 = math.rsqrt %160 : vector<40x1xf32>
    %162 = vector.broadcast %161 : vector<40x1xf32> to vector<40x256xf32>
    %163 = arith.mulf %158, %162 : vector<40x256xf32>
    %164 = vector.broadcast %2 : vector<1x256xf32> to vector<40x256xf32>
    %165 = arith.mulf %163, %164 : vector<40x256xf32>
    %166 = vector.broadcast %3 : vector<1x256xf32> to vector<40x256xf32>
    %167 = arith.addf %165, %166 : vector<40x256xf32>
    %168 = arith.addf %139, %167 : vector<40x256xf32>
    %c40_65 = arith.constant 40 : index
    %c0_66 = arith.constant 0 : index
    %169 = vector.load %arg13[%c40_65, %c0_66] : memref<80x256xf32, #tpu.memory_space<vmem>>, vector<40x256xf32>
    tpu.vector_store %arg13[%c40_65, %c0_66], %168 {strides = array<i32>} : memref<80x256xf32, #tpu.memory_space<vmem>>, vector<40x256xf32>,
    return
  }
  func.func @transform_0(%arg0: i32) -> (i32, i32) {
    %c0_i32 = arith.constant 0 : i32
    %c0_i32_0 = arith.constant 0 : i32
    return %arg0, %c0_i32 : i32, i32
  }
  func.func @transform_1(%arg0: i32) -> (i32, i32) {
    %c0_i32 = arith.constant 0 : i32
    %c0_i32_0 = arith.constant 0 : i32
    return %arg0, %c0_i32 : i32, i32
  }
  func.func @transform_2(%arg0: i32) -> (i32, i32) {
    %c0_i32 = arith.constant 0 : i32
    %c0_i32_0 = arith.constant 0 : i32
    %c0_i32_1 = arith.constant 0 : i32
    return %c0_i32, %c0_i32_0 : i32, i32
  }
  func.func @transform_3(%arg0: i32) -> (i32, i32) {
    %c0_i32 = arith.constant 0 : i32
    %c0_i32_0 = arith.constant 0 : i32
    %c0_i32_1 = arith.constant 0 : i32
    return %c0_i32, %c0_i32_0 : i32, i32
  }
  func.func @transform_4(%arg0: i32) -> (i32, i32) {
    %c0_i32 = arith.constant 0 : i32
    %c0_i32_0 = arith.constant 0 : i32
    %c0_i32_1 = arith.constant 0 : i32
    return %c0_i32, %c0_i32_0 : i32, i32
  }
  func.func @transform_5(%arg0: i32) -> (i32, i32) {
    %c0_i32 = arith.constant 0 : i32
    %c0_i32_0 = arith.constant 0 : i32
    %c0_i32_1 = arith.constant 0 : i32
    return %c0_i32, %c0_i32_0 : i32, i32
  }
  func.func @transform_6(%arg0: i32) -> (i32, i32) {
    %c0_i32 = arith.constant 0 : i32
    %c0_i32_0 = arith.constant 0 : i32
    %c0_i32_1 = arith.constant 0 : i32
    return %c0_i32, %c0_i32_0 : i32, i32
  }
  func.func @transform_7(%arg0: i32) -> (i32, i32) {
    %c0_i32 = arith.constant 0 : i32
    %c0_i32_0 = arith.constant 0 : i32
    %c0_i32_1 = arith.constant 0 : i32
    return %c0_i32, %c0_i32_0 : i32, i32
  }
  func.func @transform_8(%arg0: i32) -> (i32, i32) {
    %c0_i32 = arith.constant 0 : i32
    %c0_i32_0 = arith.constant 0 : i32
    %c0_i32_1 = arith.constant 0 : i32
    return %c0_i32, %c0_i32_0 : i32, i32
  }
  func.func @transform_9(%arg0: i32) -> (i32, i32) {
    %c0_i32 = arith.constant 0 : i32
    %c0_i32_0 = arith.constant 0 : i32
    %c0_i32_1 = arith.constant 0 : i32
    return %c0_i32, %c0_i32_0 : i32, i32
  }
  func.func @transform_10(%arg0: i32) -> (i32, i32) {
    %c0_i32 = arith.constant 0 : i32
    %c0_i32_0 = arith.constant 0 : i32
    %c0_i32_1 = arith.constant 0 : i32
    return %c0_i32, %c0_i32_0 : i32, i32
  }
  func.func @transform_11(%arg0: i32) -> (i32, i32) {
    %c0_i32 = arith.constant 0 : i32
    %c0_i32_0 = arith.constant 0 : i32
    %c0_i32_1 = arith.constant 0 : i32
    return %c0_i32, %c0_i32_0 : i32, i32
  }
  func.func @transform_12(%arg0: i32) -> (i32, i32) {
    %c0_i32 = arith.constant 0 : i32
    %c0_i32_0 = arith.constant 0 : i32
    return %arg0, %c0_i32 : i32, i32
  }
}

module attributes {stable_mosaic.version = 11 : i64} {
  func.func @kernel(%arg0: i32, %arg1: memref<128x256xf32, #tpu.memory_space<vmem>>, %arg2: memref<128x256xf32, #tpu.memory_space<vmem>>, %arg3: memref<1x256xf32, #tpu.memory_space<vmem>>, %arg4: memref<1x256xf32, #tpu.memory_space<vmem>>, %arg5: memref<256x128xbf16, #tpu.memory_space<vmem>>, %arg6: memref<1x128xf32, #tpu.memory_space<vmem>>, %arg7: memref<128x256xbf16, #tpu.memory_space<vmem>>, %arg8: memref<1x256xf32, #tpu.memory_space<vmem>>, %arg9: memref<256x256xbf16, #tpu.memory_space<vmem>>, %arg10: memref<1x256xf32, #tpu.memory_space<vmem>>, %arg11: memref<1x256xf32, #tpu.memory_space<vmem>>, %arg12: memref<1x256xf32, #tpu.memory_space<vmem>>, %arg13: memref<128x256xf32, #tpu.memory_space<vmem>>) attributes {dimension_semantics = [#tpu.dimension_semantics<parallel>], iteration_bounds = array<i64: 3>, scalar_prefetch = 0 : i64, scratch_operands = 0 : i64, tpu.core_type = #tpu.core_type<tc>, window_params = [{transform_indices = @transform_0, window_bounds = array<i64: 128, 256>}, {transform_indices = @transform_1, window_bounds = array<i64: 128, 256>}, {pipeline_mode = #tpu.pipeline_mode<synchronous>, transform_indices = @transform_2, window_bounds = array<i64: 1, 256>}, {pipeline_mode = #tpu.pipeline_mode<synchronous>, transform_indices = @transform_3, window_bounds = array<i64: 1, 256>}, {pipeline_mode = #tpu.pipeline_mode<synchronous>, transform_indices = @transform_4, window_bounds = array<i64: 256, 128>}, {pipeline_mode = #tpu.pipeline_mode<synchronous>, transform_indices = @transform_5, window_bounds = array<i64: 1, 128>}, {pipeline_mode = #tpu.pipeline_mode<synchronous>, transform_indices = @transform_6, window_bounds = array<i64: 128, 256>}, {pipeline_mode = #tpu.pipeline_mode<synchronous>, transform_indices = @transform_7, window_bounds = array<i64: 1, 256>}, {pipeline_mode = #tpu.pipeline_mode<synchronous>, transform_indices = @transform_8, window_bounds = array<i64: 256, 256>}, {pipeline_mode = #tpu.pipeline_mode<synchronous>, transform_indices = @transform_9, window_bounds = array<i64: 1, 256>}, {pipeline_mode = #tpu.pipeline_mode<synchronous>, transform_indices = @transform_10, window_bounds = array<i64: 1, 256>}, {pipeline_mode = #tpu.pipeline_mode<synchronous>, transform_indices = @transform_11, window_bounds = array<i64: 1, 256>}, {transform_indices = @transform_12, window_bounds = array<i64: 128, 256>}]} {
    %c0 = arith.constant 0 : index
    %c0_0 = arith.constant 0 : index
    %0 = vector.load %arg3[%c0, %c0_0] : memref<1x256xf32, #tpu.memory_space<vmem>>, vector<1x256xf32>
    %c0_1 = arith.constant 0 : index
    %c0_2 = arith.constant 0 : index
    %1 = vector.load %arg4[%c0_1, %c0_2] : memref<1x256xf32, #tpu.memory_space<vmem>>, vector<1x256xf32>
    %c0_3 = arith.constant 0 : index
    %c0_4 = arith.constant 0 : index
    %2 = vector.load %arg11[%c0_3, %c0_4] : memref<1x256xf32, #tpu.memory_space<vmem>>, vector<1x256xf32>
    %c0_5 = arith.constant 0 : index
    %c0_6 = arith.constant 0 : index
    %3 = vector.load %arg12[%c0_5, %c0_6] : memref<1x256xf32, #tpu.memory_space<vmem>>, vector<1x256xf32>
    %c0_7 = arith.constant 0 : index
    %c0_8 = arith.constant 0 : index
    %4 = vector.load %arg6[%c0_7, %c0_8] : memref<1x128xf32, #tpu.memory_space<vmem>>, vector<1x128xf32>
    %c0_9 = arith.constant 0 : index
    %c0_10 = arith.constant 0 : index
    %5 = vector.load %arg8[%c0_9, %c0_10] : memref<1x256xf32, #tpu.memory_space<vmem>>, vector<1x256xf32>
    %c0_11 = arith.constant 0 : index
    %c0_12 = arith.constant 0 : index
    %6 = vector.load %arg10[%c0_11, %c0_12] : memref<1x256xf32, #tpu.memory_space<vmem>>, vector<1x256xf32>
    %c0_13 = arith.constant 0 : index
    %c0_14 = arith.constant 0 : index
    %7 = vector.load %arg5[%c0_13, %c0_14] : memref<256x128xbf16, #tpu.memory_space<vmem>>, vector<256x128xbf16>
    %c0_15 = arith.constant 0 : index
    %c0_16 = arith.constant 0 : index
    %8 = vector.load %arg7[%c0_15, %c0_16] : memref<128x256xbf16, #tpu.memory_space<vmem>>, vector<128x256xbf16>
    %c0_17 = arith.constant 0 : index
    %c0_18 = arith.constant 0 : index
    %9 = vector.load %arg9[%c0_17, %c0_18] : memref<256x256xbf16, #tpu.memory_space<vmem>>, vector<256x256xbf16>
    %c0_19 = arith.constant 0 : index
    %c0_20 = arith.constant 0 : index
    %10 = vector.load %arg1[%c0_19, %c0_20] : memref<128x256xf32, #tpu.memory_space<vmem>>, vector<64x256xf32>
    %c0_21 = arith.constant 0 : index
    %c0_22 = arith.constant 0 : index
    %11 = vector.load %arg2[%c0_21, %c0_22] : memref<128x256xf32, #tpu.memory_space<vmem>>, vector<64x256xf32>
    %cst = arith.constant dense<0.000000e+00> : vector<64xf32>
    %12 = vector.multi_reduction <add>, %10, %cst [1] : vector<64x256xf32> to vector<64xf32>
    %13 = vector.shape_cast %12 : vector<64xf32> to vector<64x1xf32>
    %cst_23 = arith.constant 2.560000e+02 : f32
    %14 = vector.broadcast %cst_23 : f32 to vector<64x1xf32>
    %15 = arith.divf %13, %14 : vector<64x1xf32>
    %16 = arith.mulf %10, %10 : vector<64x256xf32>
    %cst_24 = arith.constant dense<0.000000e+00> : vector<64xf32>
    %17 = vector.multi_reduction <add>, %16, %cst_24 [1] : vector<64x256xf32> to vector<64xf32>
    %18 = vector.shape_cast %17 : vector<64xf32> to vector<64x1xf32>
    %cst_25 = arith.constant 2.560000e+02 : f32
    %19 = vector.broadcast %cst_25 : f32 to vector<64x1xf32>
    %20 = arith.divf %18, %19 : vector<64x1xf32>
    %21 = arith.mulf %15, %15 : vector<64x1xf32>
    %22 = arith.subf %20, %21 : vector<64x1xf32>
    %cst_26 = arith.constant 0.000000e+00 : f32
    %23 = vector.broadcast %cst_26 : f32 to vector<64x1xf32>
    %24 = arith.maximumf %22, %23 : vector<64x1xf32>
    %25 = vector.broadcast %15 : vector<64x1xf32> to vector<64x256xf32>
    %26 = arith.subf %10, %25 : vector<64x256xf32>
    %cst_27 = arith.constant 9.99999974E-6 : f32
    %27 = vector.broadcast %cst_27 : f32 to vector<64x1xf32>
    %28 = arith.addf %24, %27 : vector<64x1xf32>
    %29 = math.rsqrt %28 : vector<64x1xf32>
    %30 = vector.broadcast %29 : vector<64x1xf32> to vector<64x256xf32>
    %31 = arith.mulf %26, %30 : vector<64x256xf32>
    %32 = vector.broadcast %0 : vector<1x256xf32> to vector<64x256xf32>
    %33 = arith.mulf %31, %32 : vector<64x256xf32>
    %34 = vector.broadcast %1 : vector<1x256xf32> to vector<64x256xf32>
    %35 = arith.addf %33, %34 : vector<64x256xf32>
    %36 = arith.truncf %35 : vector<64x256xf32> to vector<64x256xbf16>
    %cst_28 = arith.constant dense<0.000000e+00> : vector<64x128xf32>
    %37 = tpu.matmul %36, %7, %cst_28 {dimension_numbers = #tpu.dot_dimension_numbers<[1], [0], [0], [1], [0, 0, 1, 1], [], []>} : vector<64x256xbf16>, vector<256x128xbf16>, vector<64x128xf32> -> vector<64x128xf32>
    %38 = vector.broadcast %4 : vector<1x128xf32> to vector<64x128xf32>
    %39 = arith.addf %37, %38 : vector<64x128xf32>
    %cst_29 = arith.constant 5.000000e-01 : f32
    %40 = vector.broadcast %cst_29 : f32 to vector<64x128xf32>
    %41 = arith.mulf %40, %39 : vector<64x128xf32>
    %cst_30 = arith.constant 0.707106769 : f32
    %42 = vector.broadcast %cst_30 : f32 to vector<64x128xf32>
    %43 = arith.mulf %39, %42 : vector<64x128xf32>
    %44 = math.erf %43 : vector<64x128xf32>
    %cst_31 = arith.constant 1.000000e+00 : f32
    %45 = vector.broadcast %cst_31 : f32 to vector<64x128xf32>
    %46 = arith.addf %45, %44 : vector<64x128xf32>
    %47 = arith.mulf %41, %46 : vector<64x128xf32>
    %48 = arith.truncf %47 : vector<64x128xf32> to vector<64x128xbf16>
    %cst_32 = arith.constant dense<0.000000e+00> : vector<64x256xf32>
    %49 = tpu.matmul %48, %8, %cst_32 {dimension_numbers = #tpu.dot_dimension_numbers<[1], [0], [0], [1], [0, 0, 1, 1], [], []>} : vector<64x128xbf16>, vector<128x256xbf16>, vector<64x256xf32> -> vector<64x256xf32>
    %50 = vector.broadcast %5 : vector<1x256xf32> to vector<64x256xf32>
    %51 = arith.addf %49, %50 : vector<64x256xf32>
    %52 = arith.negf %51 : vector<64x256xf32>
    %53 = math.exp %52 : vector<64x256xf32>
    %cst_33 = arith.constant 1.000000e+00 : f32
    %54 = vector.broadcast %cst_33 : f32 to vector<64x256xf32>
    %55 = arith.addf %54, %53 : vector<64x256xf32>
    %56 = arith.divf %54, %55 : vector<64x256xf32>
    %57 = arith.subf %10, %11 : vector<64x256xf32>
    %58 = arith.mulf %56, %57 : vector<64x256xf32>
    %59 = arith.addf %11, %58 : vector<64x256xf32>
    %60 = arith.truncf %59 : vector<64x256xf32> to vector<64x256xbf16>
    %cst_34 = arith.constant dense<0.000000e+00> : vector<64x256xf32>
    %61 = tpu.matmul %60, %9, %cst_34 {dimension_numbers = #tpu.dot_dimension_numbers<[1], [0], [0], [1], [0, 0, 1, 1], [], []>} : vector<64x256xbf16>, vector<256x256xbf16>, vector<64x256xf32> -> vector<64x256xf32>
    %62 = vector.broadcast %6 : vector<1x256xf32> to vector<64x256xf32>
    %63 = arith.addf %61, %62 : vector<64x256xf32>
    %cst_35 = arith.constant dense<0.000000e+00> : vector<64xf32>
    %64 = vector.multi_reduction <add>, %63, %cst_35 [1] : vector<64x256xf32> to vector<64xf32>
    %65 = vector.shape_cast %64 : vector<64xf32> to vector<64x1xf32>
    %cst_36 = arith.constant 2.560000e+02 : f32
    %66 = vector.broadcast %cst_36 : f32 to vector<64x1xf32>
    %67 = arith.divf %65, %66 : vector<64x1xf32>
    %68 = arith.mulf %63, %63 : vector<64x256xf32>
    %cst_37 = arith.constant dense<0.000000e+00> : vector<64xf32>
    %69 = vector.multi_reduction <add>, %68, %cst_37 [1] : vector<64x256xf32> to vector<64xf32>
    %70 = vector.shape_cast %69 : vector<64xf32> to vector<64x1xf32>
    %cst_38 = arith.constant 2.560000e+02 : f32
    %71 = vector.broadcast %cst_38 : f32 to vector<64x1xf32>
    %72 = arith.divf %70, %71 : vector<64x1xf32>
    %73 = arith.mulf %67, %67 : vector<64x1xf32>
    %74 = arith.subf %72, %73 : vector<64x1xf32>
    %cst_39 = arith.constant 0.000000e+00 : f32
    %75 = vector.broadcast %cst_39 : f32 to vector<64x1xf32>
    %76 = arith.maximumf %74, %75 : vector<64x1xf32>
    %77 = vector.broadcast %67 : vector<64x1xf32> to vector<64x256xf32>
    %78 = arith.subf %63, %77 : vector<64x256xf32>
    %cst_40 = arith.constant 9.99999974E-6 : f32
    %79 = vector.broadcast %cst_40 : f32 to vector<64x1xf32>
    %80 = arith.addf %76, %79 : vector<64x1xf32>
    %81 = math.rsqrt %80 : vector<64x1xf32>
    %82 = vector.broadcast %81 : vector<64x1xf32> to vector<64x256xf32>
    %83 = arith.mulf %78, %82 : vector<64x256xf32>
    %84 = vector.broadcast %2 : vector<1x256xf32> to vector<64x256xf32>
    %85 = arith.mulf %83, %84 : vector<64x256xf32>
    %86 = vector.broadcast %3 : vector<1x256xf32> to vector<64x256xf32>
    %87 = arith.addf %85, %86 : vector<64x256xf32>
    %88 = arith.addf %59, %87 : vector<64x256xf32>
    %c0_41 = arith.constant 0 : index
    %c0_42 = arith.constant 0 : index
    %89 = vector.load %arg13[%c0_41, %c0_42] : memref<128x256xf32, #tpu.memory_space<vmem>>, vector<64x256xf32>
    tpu.vector_store %arg13[%c0_41, %c0_42], %88 {strides = array<i32>} : memref<128x256xf32, #tpu.memory_space<vmem>>, vector<64x256xf32>,
    %c64 = arith.constant 64 : index
    %c0_43 = arith.constant 0 : index
    %90 = vector.load %arg1[%c64, %c0_43] : memref<128x256xf32, #tpu.memory_space<vmem>>, vector<64x256xf32>
    %c64_44 = arith.constant 64 : index
    %c0_45 = arith.constant 0 : index
    %91 = vector.load %arg2[%c64_44, %c0_45] : memref<128x256xf32, #tpu.memory_space<vmem>>, vector<64x256xf32>
    %cst_46 = arith.constant dense<0.000000e+00> : vector<64xf32>
    %92 = vector.multi_reduction <add>, %90, %cst_46 [1] : vector<64x256xf32> to vector<64xf32>
    %93 = vector.shape_cast %92 : vector<64xf32> to vector<64x1xf32>
    %cst_47 = arith.constant 2.560000e+02 : f32
    %94 = vector.broadcast %cst_47 : f32 to vector<64x1xf32>
    %95 = arith.divf %93, %94 : vector<64x1xf32>
    %96 = arith.mulf %90, %90 : vector<64x256xf32>
    %cst_48 = arith.constant dense<0.000000e+00> : vector<64xf32>
    %97 = vector.multi_reduction <add>, %96, %cst_48 [1] : vector<64x256xf32> to vector<64xf32>
    %98 = vector.shape_cast %97 : vector<64xf32> to vector<64x1xf32>
    %cst_49 = arith.constant 2.560000e+02 : f32
    %99 = vector.broadcast %cst_49 : f32 to vector<64x1xf32>
    %100 = arith.divf %98, %99 : vector<64x1xf32>
    %101 = arith.mulf %95, %95 : vector<64x1xf32>
    %102 = arith.subf %100, %101 : vector<64x1xf32>
    %cst_50 = arith.constant 0.000000e+00 : f32
    %103 = vector.broadcast %cst_50 : f32 to vector<64x1xf32>
    %104 = arith.maximumf %102, %103 : vector<64x1xf32>
    %105 = vector.broadcast %95 : vector<64x1xf32> to vector<64x256xf32>
    %106 = arith.subf %90, %105 : vector<64x256xf32>
    %cst_51 = arith.constant 9.99999974E-6 : f32
    %107 = vector.broadcast %cst_51 : f32 to vector<64x1xf32>
    %108 = arith.addf %104, %107 : vector<64x1xf32>
    %109 = math.rsqrt %108 : vector<64x1xf32>
    %110 = vector.broadcast %109 : vector<64x1xf32> to vector<64x256xf32>
    %111 = arith.mulf %106, %110 : vector<64x256xf32>
    %112 = vector.broadcast %0 : vector<1x256xf32> to vector<64x256xf32>
    %113 = arith.mulf %111, %112 : vector<64x256xf32>
    %114 = vector.broadcast %1 : vector<1x256xf32> to vector<64x256xf32>
    %115 = arith.addf %113, %114 : vector<64x256xf32>
    %116 = arith.truncf %115 : vector<64x256xf32> to vector<64x256xbf16>
    %cst_52 = arith.constant dense<0.000000e+00> : vector<64x128xf32>
    %117 = tpu.matmul %116, %7, %cst_52 {dimension_numbers = #tpu.dot_dimension_numbers<[1], [0], [0], [1], [0, 0, 1, 1], [], []>} : vector<64x256xbf16>, vector<256x128xbf16>, vector<64x128xf32> -> vector<64x128xf32>
    %118 = vector.broadcast %4 : vector<1x128xf32> to vector<64x128xf32>
    %119 = arith.addf %117, %118 : vector<64x128xf32>
    %cst_53 = arith.constant 5.000000e-01 : f32
    %120 = vector.broadcast %cst_53 : f32 to vector<64x128xf32>
    %121 = arith.mulf %120, %119 : vector<64x128xf32>
    %cst_54 = arith.constant 0.707106769 : f32
    %122 = vector.broadcast %cst_54 : f32 to vector<64x128xf32>
    %123 = arith.mulf %119, %122 : vector<64x128xf32>
    %124 = math.erf %123 : vector<64x128xf32>
    %cst_55 = arith.constant 1.000000e+00 : f32
    %125 = vector.broadcast %cst_55 : f32 to vector<64x128xf32>
    %126 = arith.addf %125, %124 : vector<64x128xf32>
    %127 = arith.mulf %121, %126 : vector<64x128xf32>
    %128 = arith.truncf %127 : vector<64x128xf32> to vector<64x128xbf16>
    %cst_56 = arith.constant dense<0.000000e+00> : vector<64x256xf32>
    %129 = tpu.matmul %128, %8, %cst_56 {dimension_numbers = #tpu.dot_dimension_numbers<[1], [0], [0], [1], [0, 0, 1, 1], [], []>} : vector<64x128xbf16>, vector<128x256xbf16>, vector<64x256xf32> -> vector<64x256xf32>
    %130 = vector.broadcast %5 : vector<1x256xf32> to vector<64x256xf32>
    %131 = arith.addf %129, %130 : vector<64x256xf32>
    %132 = arith.negf %131 : vector<64x256xf32>
    %133 = math.exp %132 : vector<64x256xf32>
    %cst_57 = arith.constant 1.000000e+00 : f32
    %134 = vector.broadcast %cst_57 : f32 to vector<64x256xf32>
    %135 = arith.addf %134, %133 : vector<64x256xf32>
    %136 = arith.divf %134, %135 : vector<64x256xf32>
    %137 = arith.subf %90, %91 : vector<64x256xf32>
    %138 = arith.mulf %136, %137 : vector<64x256xf32>
    %139 = arith.addf %91, %138 : vector<64x256xf32>
    %140 = arith.truncf %139 : vector<64x256xf32> to vector<64x256xbf16>
    %cst_58 = arith.constant dense<0.000000e+00> : vector<64x256xf32>
    %141 = tpu.matmul %140, %9, %cst_58 {dimension_numbers = #tpu.dot_dimension_numbers<[1], [0], [0], [1], [0, 0, 1, 1], [], []>} : vector<64x256xbf16>, vector<256x256xbf16>, vector<64x256xf32> -> vector<64x256xf32>
    %142 = vector.broadcast %6 : vector<1x256xf32> to vector<64x256xf32>
    %143 = arith.addf %141, %142 : vector<64x256xf32>
    %cst_59 = arith.constant dense<0.000000e+00> : vector<64xf32>
    %144 = vector.multi_reduction <add>, %143, %cst_59 [1] : vector<64x256xf32> to vector<64xf32>
    %145 = vector.shape_cast %144 : vector<64xf32> to vector<64x1xf32>
    %cst_60 = arith.constant 2.560000e+02 : f32
    %146 = vector.broadcast %cst_60 : f32 to vector<64x1xf32>
    %147 = arith.divf %145, %146 : vector<64x1xf32>
    %148 = arith.mulf %143, %143 : vector<64x256xf32>
    %cst_61 = arith.constant dense<0.000000e+00> : vector<64xf32>
    %149 = vector.multi_reduction <add>, %148, %cst_61 [1] : vector<64x256xf32> to vector<64xf32>
    %150 = vector.shape_cast %149 : vector<64xf32> to vector<64x1xf32>
    %cst_62 = arith.constant 2.560000e+02 : f32
    %151 = vector.broadcast %cst_62 : f32 to vector<64x1xf32>
    %152 = arith.divf %150, %151 : vector<64x1xf32>
    %153 = arith.mulf %147, %147 : vector<64x1xf32>
    %154 = arith.subf %152, %153 : vector<64x1xf32>
    %cst_63 = arith.constant 0.000000e+00 : f32
    %155 = vector.broadcast %cst_63 : f32 to vector<64x1xf32>
    %156 = arith.maximumf %154, %155 : vector<64x1xf32>
    %157 = vector.broadcast %147 : vector<64x1xf32> to vector<64x256xf32>
    %158 = arith.subf %143, %157 : vector<64x256xf32>
    %cst_64 = arith.constant 9.99999974E-6 : f32
    %159 = vector.broadcast %cst_64 : f32 to vector<64x1xf32>
    %160 = arith.addf %156, %159 : vector<64x1xf32>
    %161 = math.rsqrt %160 : vector<64x1xf32>
    %162 = vector.broadcast %161 : vector<64x1xf32> to vector<64x256xf32>
    %163 = arith.mulf %158, %162 : vector<64x256xf32>
    %164 = vector.broadcast %2 : vector<1x256xf32> to vector<64x256xf32>
    %165 = arith.mulf %163, %164 : vector<64x256xf32>
    %166 = vector.broadcast %3 : vector<1x256xf32> to vector<64x256xf32>
    %167 = arith.addf %165, %166 : vector<64x256xf32>
    %168 = arith.addf %139, %167 : vector<64x256xf32>
    %c64_65 = arith.constant 64 : index
    %c0_66 = arith.constant 0 : index
    %169 = vector.load %arg13[%c64_65, %c0_66] : memref<128x256xf32, #tpu.memory_space<vmem>>, vector<64x256xf32>
    tpu.vector_store %arg13[%c64_65, %c0_66], %168 {strides = array<i32>} : memref<128x256xf32, #tpu.memory_space<vmem>>, vector<64x256xf32>,
    return
  }
  func.func @transform_0(%arg0: i32) -> (i32, i32) {
    %c0_i32 = arith.constant 0 : i32
    %c0_i32_0 = arith.constant 0 : i32
    return %arg0, %c0_i32 : i32, i32
  }
  func.func @transform_1(%arg0: i32) -> (i32, i32) {
    %c0_i32 = arith.constant 0 : i32
    %c0_i32_0 = arith.constant 0 : i32
    return %arg0, %c0_i32 : i32, i32
  }
  func.func @transform_2(%arg0: i32) -> (i32, i32) {
    %c0_i32 = arith.constant 0 : i32
    %c0_i32_0 = arith.constant 0 : i32
    %c0_i32_1 = arith.constant 0 : i32
    return %c0_i32, %c0_i32_0 : i32, i32
  }
  func.func @transform_3(%arg0: i32) -> (i32, i32) {
    %c0_i32 = arith.constant 0 : i32
    %c0_i32_0 = arith.constant 0 : i32
    %c0_i32_1 = arith.constant 0 : i32
    return %c0_i32, %c0_i32_0 : i32, i32
  }
  func.func @transform_4(%arg0: i32) -> (i32, i32) {
    %c0_i32 = arith.constant 0 : i32
    %c0_i32_0 = arith.constant 0 : i32
    %c0_i32_1 = arith.constant 0 : i32
    return %c0_i32, %c0_i32_0 : i32, i32
  }
  func.func @transform_5(%arg0: i32) -> (i32, i32) {
    %c0_i32 = arith.constant 0 : i32
    %c0_i32_0 = arith.constant 0 : i32
    %c0_i32_1 = arith.constant 0 : i32
    return %c0_i32, %c0_i32_0 : i32, i32
  }
  func.func @transform_6(%arg0: i32) -> (i32, i32) {
    %c0_i32 = arith.constant 0 : i32
    %c0_i32_0 = arith.constant 0 : i32
    %c0_i32_1 = arith.constant 0 : i32
    return %c0_i32, %c0_i32_0 : i32, i32
  }
  func.func @transform_7(%arg0: i32) -> (i32, i32) {
    %c0_i32 = arith.constant 0 : i32
    %c0_i32_0 = arith.constant 0 : i32
    %c0_i32_1 = arith.constant 0 : i32
    return %c0_i32, %c0_i32_0 : i32, i32
  }
  func.func @transform_8(%arg0: i32) -> (i32, i32) {
    %c0_i32 = arith.constant 0 : i32
    %c0_i32_0 = arith.constant 0 : i32
    %c0_i32_1 = arith.constant 0 : i32
    return %c0_i32, %c0_i32_0 : i32, i32
  }
  func.func @transform_9(%arg0: i32) -> (i32, i32) {
    %c0_i32 = arith.constant 0 : i32
    %c0_i32_0 = arith.constant 0 : i32
    %c0_i32_1 = arith.constant 0 : i32
    return %c0_i32, %c0_i32_0 : i32, i32
  }
  func.func @transform_10(%arg0: i32) -> (i32, i32) {
    %c0_i32 = arith.constant 0 : i32
    %c0_i32_0 = arith.constant 0 : i32
    %c0_i32_1 = arith.constant 0 : i32
    return %c0_i32, %c0_i32_0 : i32, i32
  }
  func.func @transform_11(%arg0: i32) -> (i32, i32) {
    %c0_i32 = arith.constant 0 : i32
    %c0_i32_0 = arith.constant 0 : i32
    %c0_i32_1 = arith.constant 0 : i32
    return %c0_i32, %c0_i32_0 : i32, i32
  }
  func.func @transform_12(%arg0: i32) -> (i32, i32) {
    %c0_i32 = arith.constant 0 : i32
    %c0_i32_0 = arith.constant 0 : i32
    return %arg0, %c0_i32 : i32, i32
  }
}

</mosaic_0001>

<bundles_post_ra>
// kernel: tpu_custom_call.1
= control target key start
LH: loop header
LB: loop body
LE: loop exit
PB: predicated region body
PF: predicated region fallthrough
CT: control target
= control target key end

     0   :  { %s4458_s0 = inlined_call_operand.hbm [shape: f32[300,256], index: 0, kind: input, shape index: {}]   ;;  %s4459_s1 = inlined_call_operand.hbm [shape: f32[300,256], index: 1, kind: input, shape index: {}]   ;;  %s4460_s2 = inlined_call_operand.vmem [shape: f32[1,256], index: 2, kind: input, shape index: {}]   ;;  %s4461_s3 = inlined_call_operand.vmem [shape: f32[1,256], index: 3, kind: input, shape index: {}]   ;;  %s4462_s4 = inlined_call_operand.hbm [shape: bf16[256,128], index: 4, kind: input, shape index: {}]   ;;  %s4463_s5 = inlined_call_operand.vmem [shape: f32[1,128], index: 5, kind: input, shape index: {}]   ;;  %s4464_s6 = inlined_call_operand.hbm [shape: bf16[128,256], index: 6, kind: input, shape index: {}]   ;;  %s4465_s7 = inlined_call_operand.vmem [shape: f32[1,256], index: 7, kind: input, shape index: {}]   ;;  %s4466_s8 = inlined_call_operand.hbm [shape: bf16[256,256], index: 8, kind: input, shape index: {}]   ;;  %s4467_s9 = inlined_call_operand.vmem [shape: f32[1,256], index: 9, kind: input, shape index: {}]   ;;  %s4468_s10 = inlined_call_operand.vmem [shape: f32[1,256], index: 10, kind: input, shape index: {}]   ;;  %s4469_s11 = inlined_call_operand.vmem [shape: f32[1,256], index: 11, kind: input, shape index: {}]   ;;  %s4470_s12 = inlined_call_operand.hbm [shape: f32[300,256], index: 12, kind: output, shape index: {}]  }
   0x1   :  { %4516 = sst [smem:[#allocation52_spill]] %s4464_s6 }
   0x2   :  { %4517 = sst [smem:[#allocation53_spill]] %s4467_s9 }
   0x3   :  { %4518 = sst [smem:[#allocation54_spill]] %s4468_s10 }
   0x4   :  { %4519 = sst [smem:[#allocation55_spill]] %s4469_s11 }
   0x5   :  { %4520 = sst [smem:[#allocation56_spill]] %s4470_s12 }
   0x6   :  { %17 = vsyncpa [#allocation3], 0 }
   0x7   :  { %19 = vsyncpa [#allocation3 + $0x1], 0 }
   0x8   :  { %20 = vsyncpa [#allocation6], 0 }
   0x9   :  { %22 = vsyncpa [#allocation6 + $0x1], 0 }
   0xa   :  { %23 = vsyncpa [#allocation9], 0 }
   0xb   :  { %24 = vsyncpa [#allocation4], 0 }
   0xc   :  { %26 = vsyncpa [#allocation4 + $0x1], 0  ;;  %s3181_s21 = smov 0   ;;  %s3183_s22 = smov 0  }
   0xd   :  { %s3185_s23 = smov 0   ;;  %s3187_s24 = smov 0  }
   0xe LB: > { %4521 = sst [smem:[#allocation17_spill]] %s3085_s21  ;;  %s3202_s25 = sadd.s32 4294967295, %s3097_s24   ;;  %s3097_s24 = sphi %s3187_s24, %s4614_s24   ;;  %s3093_s23 = sphi %s3185_s23, %s4618_s23   ;;  %s3089_s22 = sphi %s3183_s22, %s4617_s22   ;;  %s3085_s21 = sphi %s3181_s21, %s4616_s21  }
   0xf   : > { %s2348_s26 = sadd.s32 4294967294, %s3097_s24   ;;  %s3206_s27 = sadd.s32 1, %s3097_s24  }
  0x10   : > { %4522 = sst [smem:[#allocation18_spill]] %s3206_s27  ;;  %s39_s28 = sadd.s32 1, %s3093_s23 }
  0x11   : > { %s36_s29 = ssub.s32 %s3097_s24, %s3206_s27  ;;  %p46_p0 = scmp.ne.s32.totalorder %s3093_s23, %s3089_s22 }
  0x12   : > { %p37_p1 = scmp.eq.s32.totalorder %s36_s29, 0  ;;  %p47_p2 = scmp.eq.s32.totalorder %s3097_s24, 0 }
  0x13   : > { %p52_p3 = scmp.ne.s32.totalorder %s3089_s22, %s3085_s21  ;;  %p4476_p4 = scmp.eq.s32.totalorder %s3202_s25, 0 }
  0x14   : > { %s3218_s30 = scalar_select %p37_p1, %s3093_s23, %s39_s28  }
  0x15   : > { %p3220_p5 = por %p47_p2, %p46_p0  ;;  %p3226_p6 = por %p4476_p4, %p52_p3 }
  0x16   : > { %4523 = sst [smem:[#allocation19_spill]] %s3218_s30  ;;  %p312_p7 = scmp.eq.s32.totalorder %s3202_s25, 3 }
  0x17   : > { %s4524_s13 = scalar_select %p3220_p5, 1, 0 }
  0x18   : > { %s4525_s14 = scalar_select %p3226_p6, 1, 0 }
  0x19   : > { %p318_p8 = scmp.eq.s32.totalorder %s2348_s26, 3  ;;  %p2349_p9 = scmp.ge.s32.totalorder %s3097_s24, 1 }
  0x1a   : > { %p325_p10 = scmp.lt.s32.totalorder %s3097_s24, 5  ;;  %p3233_p11 = por %p312_p7, %p46_p0 }
  0x1b   : > { %p3237_p12 = por %p318_p8, %p52_p3  ;;  %s3099_s18 = smov [#allocation8]  }
  0x1c   : > { %s4526_s15 = scalar_select %p3233_p11, 1, 0 }
  0x1d   : > { %s4528_s16 = scalar_select %p3237_p12, 1, 0 }
  0x1e   : > { %4527 = sst [smem:[#allocation20_spill]] %s4526_s15  ;;  %p3241_p13 = pnand %p2349_p9, %p325_p10 }
  0x1f   : > { %4529 = sst [smem:[#allocation21_spill]] %s4528_s16  ;;  %s359_s19 = sshll.u32 %s3099_s18, 4  ;;  %s360_s19 = int_to_ptr.vmem [resolvable:$true] %s359_s19 }
  0x20   : > { %s4530_s17 = scalar_select %p3241_p13, 1, 0 }
  0x21   : > { %p2564_p1 = pneg %p3241_p13  ;;  %s3100_s26 = smov [#allocation7]  }
  0x22   : > { %s343_s28 = sshll.u32 %s3100_s26, 4  ;;  %s4532_s6 = sld [smem:[#allocation52_spill]]  ;;  %s3253_s28 = int_to_ptr.vmem [resolvable:$true] %s343_s28 }
  0x23   : > { %p3249_p2 = pnand %p2564_p1, %p4476_p4 }
  0x25   : > { %p3263_p3 = pneg %p3249_p2 }
  0x28   : > { %s2879_s27 = scalar_lea.hbm %s4532_s6, 2048 }
  0x29   : > { %p2880_p0 = scmp.ne.s32.totalorder %s4532_s6, %s2879_s27  ;;  %p2886_p9 = scmp.lt.u32.totalorder %s2879_s27, %s4532_s6 }
  0x2b   : > { %p2882_p7 = pnand %p3263_p3, %p2880_p0 }
  0x2d   : > { %p2883_p8 = pneg %p2882_p7 }
  0x2f   : > { %p2888_p10 = pnand %p2886_p9, %p2883_p8 }
  0x31   : > { %2891 = shalt.err (!%p2888_p10)
}
  0x32   : > { %s2892_s30 = scalar_lea.vmem %s360_s19, 2048  ;;  %p2900_p11 = scmp.lt.s32.totalorder %s360_s19, %s360_s19 }
  0x33   : > { %p2893_p1 = scmp.ne.s32.totalorder %s360_s19, %s2892_s30  ;;  %p2901_p6 = scmp.lt.s32.totalorder %s2892_s30, %s2892_s30 }
  0x35   : > { %p2895_p4 = pnand %p2893_p1, %p3263_p3  ;;  %p2902_p13 = por %p2901_p6, %p2900_p11 }
  0x37   : > { %p2896_p12 = pneg %p2895_p4 }
  0x39   : > { %p2903_p5 = pnand %p2902_p13, %p2896_p12 }
  0x3b   : > { %2906 = shalt.err (!%p2903_p5)
}
  0x3c   : > { %s4480_s21 = smov 128   ;;  %s4481_s16 = smov 8  }
  0x3d   : > { %2570 = dma.hbm_to_vmem [thread:$0]  (!%p3249_p2), %s4532_s6, 2048, %s360_s19, [#allocation9], %s4480_s21, %s4480_s21, %s4481_s16  }
  0x3e   : > { %s2907_s15 = scalar_lea.hbm %s4462_s4, 2048 }
  0x3f   : > { %p2908_p4 = scmp.ne.s32.totalorder %s4462_s4, %s2907_s15  ;;  %p2914_p11 = scmp.lt.u32.totalorder %s2907_s15, %s4462_s4 }
  0x41   : > { %p2910_p5 = pnand %p2908_p4, %p3263_p3 }
  0x43   : > { %p2911_p6 = pneg %p2910_p5 }
  0x45   : > { %p2916_p12 = pnand %p2914_p11, %p2911_p6 }
  0x47   : > { %2919 = shalt.err (!%p2916_p12)
}
  0x48   : > { %s2920_s19 = scalar_lea.vmem %s3253_s28, 2048  ;;  %p2928_p8 = scmp.lt.s32.totalorder %s3253_s28, %s3253_s28 }
  0x49   : > { %p2921_p13 = scmp.ne.s32.totalorder %s3253_s28, %s2920_s19  ;;  %p2929_p9 = scmp.lt.s32.totalorder %s2920_s19, %s2920_s19 }
  0x4b   : > { %p2923_p0 = pnand %p2921_p13, %p3263_p3  ;;  %p2930_p10 = por %p2929_p9, %p2928_p8 }
  0x4d   : > { %p2924_p7 = pneg %p2923_p0 }
  0x4f   : > { %p2931_p1 = pnand %p2930_p10, %p2924_p7 }
  0x51   : > { %2934 = shalt.err (!%p2931_p1)
}
  0x52   : > { %s3103_s11 = smov 64   ;;  %s3104_s9 = smov 4  }
  0x53   : > { %2567 = dma.hbm_to_vmem [thread:$0]  (!%p3249_p2), %s4462_s4, 2048, %s3253_s28, [#allocation6], %s3103_s11, %s3103_s11, %s3104_s9  }
  0x54   : > { %s3105_s12 = smov [#allocation10]   ;;  %s2935_s30 = scalar_lea.hbm %s4466_s8, 4096 }
  0x55   : > { %s375_s27 = sshll.u32 %s3105_s12, 4  ;;  %p2936_p4 = scmp.ne.s32.totalorder %s4466_s8, %s2935_s30  ;;  %s376_s27 = int_to_ptr.vmem [resolvable:$true] %s375_s27 }
  0x56   : > { %p2942_p11 = scmp.lt.u32.totalorder %s2935_s30, %s4466_s8 }
  0x57   : > { %p2938_p5 = pnand %p2936_p4, %p3263_p3 }
  0x59   : > { %p2939_p6 = pneg %p2938_p5 }
  0x5b   : > { %p2944_p12 = pnand %p2942_p11, %p2939_p6 }
  0x5d   : > { %2947 = shalt.err (!%p2944_p12)
}
  0x5e   : > { %s2948_s28 = scalar_lea.vmem %s376_s27, 4096  ;;  %p2956_p8 = scmp.lt.s32.totalorder %s376_s27, %s376_s27 }
  0x5f   : > { %p2949_p13 = scmp.ne.s32.totalorder %s376_s27, %s2948_s28  ;;  %p2957_p9 = scmp.lt.s32.totalorder %s2948_s28, %s2948_s28 }
  0x61   : > { %p2951_p0 = pnand %p2949_p13, %p3263_p3  ;;  %p2958_p10 = por %p2957_p9, %p2956_p8 }
  0x63   : > { %p2952_p7 = pneg %p2951_p0 }
  0x65   : > { %p2959_p1 = pnand %p2958_p10, %p2952_p7 }
  0x67   : > { %2962 = shalt.err (!%p2959_p1)
}
  0x68   : > { %s4534_s21 = smov 8   ;;  %s4535_s11 = smov 128  }
  0x69   : > { %2573 = dma.hbm_to_vmem [thread:$0]  (!%p3249_p2), %s4466_s8, 4096, %s376_s27, [#allocation9], %s4535_s11, %s4535_s11, %s4534_s21  }
  0x6a   : > { %p2353_p4 = scmp.ge.s32.totalorder %s3097_s24, 4 }
  0x6b   : > { %p4536_p3 = scmp.ne.s32.totalorder (!%p2353_p4), %s4524_s13, 0 }
  0x6c   : > { %394 = sbr.rel (%p2353_p4) target bundleno = 187 (0xbb), region = 56 }
  0x73   : > { %397 = sbr.rel (!%p4536_p3) target bundleno = 150 (0x96), region = 60  ;;  %s398_s18 = sand.u32 (%p4536_p3), 1, %s3093_s23  }
  0x74   : > { %s403_s9 = smul.u32 (%p4536_p3), 10, %s3097_s24  ;;  %s3334_s29 = scalar_lea.sflag (%p4536_p3), [#allocation3], %s398_s18 }
  0x75   : > { %s2546_s10 = smul.u32 (%p4536_p3), 160, %s398_s18 }
  0x76   : > { %s404_s15 = ssub.s32 (%p4536_p3), 38, %s403_s9 }
  0x77   : > { %p405_p5 = scmp.lt.s32.totalorder (%p4536_p3), %s404_s15, 10  ;;  %s402_s27 = scalar_lea.vmem (%p4536_p3), [#allocation2], %s2546_s10 }
  0x7a   : > { %s4620_s15 = smov (!%p405_p5, %s404_s15), 10 }
  0x7b   : > { %s3331_s20 = sshll.u32 %s4620_s15, 8 }
  0x7c   : > { %s410_s12 = ssub.s32 2560, %s3331_s20 }
  0x7d   : > { %411 = vsyncadd %s3334_s29, %s410_s12  ;;  %p2356_p2 = scmp.ne.s32.totalorder %s3331_s20, 0  ;;  %s2475_s26 = smul.u32 2560, %s3097_s24 }
  0x7e   : > { %s417_s30 = sshll.u32 %s402_s27, 4  ;;  %s2967_s18 = scalar_lea.hbm %s4458_s0, 9728  ;;  %s3344_s30 = int_to_ptr.vmem [resolvable:$true] %s417_s30 }
  0x7f   : > { %s3342_s21 = scalar_lea.hbm %s4458_s0, %s2475_s26 }
  0x80   : > { %s2963_s11 = scalar_lea.hbm %s3342_s21, %s3331_s20  ;;  %p2968_p13 = scmp.lt.u32.totalorder %s3342_s21, %s4458_s0 }
  0x81   : > { %p2964_p6 = scmp.ne.s32.totalorder %s3342_s21, %s2963_s11  ;;  %p2969_p0 = scmp.lt.u32.totalorder %s2967_s18, %s2963_s11 }
  0x82   : > { %p2971_p8 = scmp.lt.u32.totalorder %s2963_s11, %s3342_s21 }
  0x83   : > { %p2965_p11 = pnand %p2964_p6, %p2356_p2  ;;  %p2970_p7 = por %p2969_p0, %p2968_p13 }
  0x85   : > { %p2966_p12 = pneg %p2965_p11  ;;  %p2972_p9 = por %p2971_p8, %p2970_p7 }
  0x87   : > { %p2973_p10 = pnand %p2972_p9, %p2966_p12 }
  0x89   : > { %2976 = shalt.err (!%p2973_p10)
}
  0x8a   : > { %s2977_s15 = scalar_lea.vmem %s3344_s30, %s3331_s20  ;;  %s3106_s12 = smov [#allocation2]  }
  0x8b   : > { %p2978_p1 = scmp.ne.s32.totalorder %s3344_s30, %s2977_s15  ;;  %s2981_s27 = sshll.u32 %s3106_s12, 4  ;;  %s2982_s27 = int_to_ptr.vmem [resolvable:$false] %s2981_s27 }
  0x8c   : > { %s2983_s26 = scalar_lea.vmem %s2982_s27, 5120  ;;  %p2984_p5 = scmp.lt.s32.totalorder %s3344_s30, %s2982_s27 }
  0x8d   : > { %p2979_p4 = pnand %p2978_p1, %p2356_p2  ;;  %p2985_p6 = scmp.lt.s32.totalorder %s2983_s26, %s2977_s15 }
  0x8f   : > { %p2980_p3 = pneg %p2979_p4  ;;  %p2986_p11 = por %p2985_p6, %p2984_p5 }
  0x91   : > { %p2987_p13 = pnand %p2986_p11, %p2980_p3 }
  0x93   : > { %2990 = shalt.err (!%p2987_p13)
}
  0x94   : > { %s3107_s19 = smov 256   ;;  %s3108_s28 = smov 16  }
  0x95   : > { %423 = dma.hbm_to_vmem [thread:$0]  (%p2356_p2), %s3342_s21, %s3331_s20, %s3344_s30, %s3334_s29, %s3107_s19, %s3107_s19, %s3108_s28  }
  0x96 PF: > { %p4537_p12 = scmp.ne.s32.totalorder %s4524_s13, 0 }
  0x97   : > { %s427_s11 = sand.u32 (%p4537_p12), 1, %s3097_s24   ;;  %s429_s6 = sand.u32 (%p4537_p12), 1, %s3093_s23  }
  0x98   : > { %426 = sbr.rel (!%p4537_p12) target bundleno = 187 (0xbb), region = 64  ;;  %s3379_s12 = scalar_lea.sflag (%p4537_p12), [#allocation6], %s427_s11 }
  0x99   : > { %s2547_s16 = smul.u32 (%p4537_p12), 160, %s429_s6 }
  0x9a   : > { %s432_s18 = smul.u32 (%p4537_p12), 10, %s3097_s24 }
  0x9b   : > { %s431_s20 = scalar_lea.vmem (%p4537_p12), [#allocation5], %s2547_s16 }
  0x9c   : > { %s433_s9 = ssub.s32 (%p4537_p12), 38, %s432_s18 }
  0x9d   : > { %p434_p0 = scmp.lt.s32.totalorder (%p4537_p12), %s433_s9, 10 }
  0x9f   : > { %s4622_s9 = smov (!%p434_p0, %s433_s9), 10 }
  0xa0   : > { %s3376_s10 = sshll.u32 %s4622_s9, 8 }
  0xa1   : > { %s439_s15 = ssub.s32 2560, %s3376_s10 }
  0xa2   : > { %440 = vsyncadd %s3379_s12, %s439_s15  ;;  %p2363_p2 = scmp.ne.s32.totalorder %s3376_s10, 0  ;;  %s2476_s13 = smul.u32 2560, %s3097_s24 }
  0xa3   : > { %s446_s29 = sshll.u32 %s431_s20, 4  ;;  %s2995_s11 = scalar_lea.hbm %s4459_s1, 9728  ;;  %s3389_s29 = int_to_ptr.vmem [resolvable:$true] %s446_s29 }
  0xa4   : > { %s3387_s27 = scalar_lea.hbm %s4459_s1, %s2476_s13 }
  0xa5   : > { %s2991_s26 = scalar_lea.hbm %s3387_s27, %s3376_s10  ;;  %p2996_p10 = scmp.lt.u32.totalorder %s3387_s27, %s4459_s1 }
  0xa6   : > { %p2992_p7 = scmp.ne.s32.totalorder %s3387_s27, %s2991_s26  ;;  %p2997_p1 = scmp.lt.u32.totalorder %s2995_s11, %s2991_s26 }
  0xa7   : > { %p2999_p3 = scmp.lt.u32.totalorder %s2991_s26, %s3387_s27 }
  0xa8   : > { %p2993_p8 = pnand %p2992_p7, %p2363_p2  ;;  %p2998_p4 = por %p2997_p1, %p2996_p10 }
  0xaa   : > { %p2994_p9 = pneg %p2993_p8  ;;  %p3000_p5 = por %p2999_p3, %p2998_p4 }
  0xac   : > { %p3001_p6 = pnand %p3000_p5, %p2994_p9 }
  0xae   : > { %3004 = shalt.err (!%p3001_p6)
}
  0xaf   : > { %s3005_s18 = scalar_lea.vmem %s3389_s29, %s3376_s10  ;;  %s3109_s9 = smov [#allocation5]  }
  0xb0   : > { %p3006_p11 = scmp.ne.s32.totalorder %s3389_s29, %s3005_s18  ;;  %s3009_s15 = sshll.u32 %s3109_s9, 4  ;;  %s3010_s15 = int_to_ptr.vmem [resolvable:$false] %s3009_s15 }
  0xb1   : > { %s3011_s20 = scalar_lea.vmem %s3010_s15, 5120  ;;  %p3012_p0 = scmp.lt.s32.totalorder %s3389_s29, %s3010_s15 }
  0xb2   : > { %p3007_p13 = pnand %p3006_p11, %p2363_p2  ;;  %p3013_p7 = scmp.lt.s32.totalorder %s3011_s20, %s3005_s18 }
  0xb4   : > { %p3008_p12 = pneg %p3007_p13  ;;  %p3014_p8 = por %p3013_p7, %p3012_p0 }
  0xb6   : > { %p3015_p10 = pnand %p3014_p8, %p3008_p12 }
  0xb8   : > { %3018 = shalt.err (!%p3015_p10)
}
  0xb9   : > { %s3110_s13 = smov 256   ;;  %s3111_s30 = smov 16  }
  0xba   : > { %452 = dma.hbm_to_vmem [thread:$0]  (%p2363_p2), %s3387_s27, %s3376_s10, %s3389_s29, %s3379_s12, %s3110_s13, %s3110_s13, %s3111_s30  }
  0xbb PF: > { %p4538_p9 = scmp.ne.s32.totalorder %s4530_s17, 0 }
  0xbd   : > { %458 = sbr.rel (%p4538_p9) target bundleno = 1583 (0x62f), region = 68 }
  0xc4   : > { %s3419_s21 = sand.u32 1, %s3089_s22   ;;  %p4539_p1 = scmp.ne.s32.totalorder %s4525_s14, 0 }
  0xc5   : > { %s3422_s26 = smul.u32 160, %s3419_s21  ;;  %s461_s19 = scalar_lea.sflag [#allocation3], %s3419_s21 }
  0xc7   : > { %s3426_s28 = scalar_lea.vmem [#allocation2], %s3422_s26 }
  0xc8   : > { %3064 = dma.done.wait (%p4539_p1), %s461_s19, 2560  }
  0xc9   : > { %3066 = vsyncadd (%p4539_p1), %s461_s19, 4294964736  ;;  %s469_s17 = sand.u32 1, %s3202_s25   ;;  %s3434_s12 = scalar_lea.vmem [#allocation5], %s3422_s26 }
  0xca   : > { %s470_s10 = scalar_lea.sflag [#allocation6], %s469_s17 }
  0xcb   : > { %3068 = dma.done.wait (%p4539_p1), %s470_s10, 2560  }
  0xcc   : > { %3070 = vsyncadd (%p4539_p1), %s470_s10, 4294964736  ;;  %p4540_p2 = scmp.eq.s32.totalorder %s3202_s25, 0 }
  0xce   : > { %3072 = dma.done.wait (%p4540_p2), [#allocation6], 2048   ;;  %p4541_p4 = pmov %p4540_p2 }
  0xcf   : > { %p4542_p3 = pmov %p4540_p2 }
  0xd0   : > { %3074 = vsyncadd (%p4541_p4), [#allocation6], 4294965248 }
  0xd1   : > { %3076 = dma.done.wait (%p4542_p3), [#allocation9], 6144   ;;  %p4543_p5 = pmov %p4540_p2 }
  0xd2   : > { %v3449_v0 = vld [vmem:[%s3426_s28] sm:$0xff]  ;;  %v3452_v1 = vld [vmem:[%s3426_s28 + $0x8] sm:$0xff]  ;;  %v3455_v2 = vld [vmem:[%s3426_s28 + $0x10] sm:$0xff]  ;;  %s4605_s13 = sld [smem:[#allocation53_spill]]  ;;  %s4238_s14 = scalar_lea.vmem [#allocation11], %s3422_s26 }
  0xd3   : > { %3078 = vsyncadd (%p4543_p5), [#allocation9], 4294961152  ;;  %v657_v3 = vadd.f32 %v3452_v1, %v3449_v0  ;;  %v678_v4 = vmul.f32 %v3449_v0, %v3449_v0  ;;  %v679_v5 = vmul.f32 %v3452_v1, %v3452_v1  ;;  %v3464_v6 = vld [vmem:[%s3426_s28 + $0x18] sm:$0xff]  ;;  %v680_v7 = vmul.f32 %v3455_v2, %v3455_v2  ;;  %v3471_v9 = vld [vmem:[%s3426_s28 + $0x20] sm:$0xff]  ;;  %s2203_s26 = scalar_lea.sflag [#allocation4], %s3419_s21  ;;  %s4608_s29 = sld [smem:[#allocation20_spill]] }
  0xd4   : > { %v681_v8 = vmul.f32 %v3464_v6, %v3464_v6  ;;  %v660_v11 = vadd.f32 %v3464_v6, %v3455_v2  ;;  %v3476_v12 = vld [vmem:[%s3426_s28 + $0x28] sm:$0xff]  ;;  %v3479_v13 = vld [vmem:[%s3426_s28 + $0x30] sm:$0xff]  ;;  %v3482_v14 = vld [vmem:[%s3426_s28 + $0x38] sm:$0xff]  ;;  %v682_v17 = vmul.f32 %v3471_v9, %v3471_v9 }
  0xd5   : > { %658 = vadd.xlane.f32.xlu0 %v657_v3  ;;  %v688_v10 = vadd.f32 %v679_v5, %v678_v4  ;;  %v663_v16 = vadd.f32 %v3476_v12, %v3471_v9  ;;  %v683_v18 = vmul.f32 %v3476_v12, %v3476_v12  ;;  %v3491_v19 = vld [vmem:[%s3426_s28 + $0x40] sm:$0xff]  ;;  %v3494_v20 = vld [vmem:[%s3426_s28 + $0x48] sm:$0xff]  ;;  %v666_v21 = vadd.f32 %v3482_v14, %v3479_v13  ;;  %v3520_v34 = vld [vmem:[#allocation7 + $0x50] sm:$0xff]  }
  0xd6   : > { %v691_v15 = vadd.f32 %v681_v8, %v680_v7  ;;  %v684_v22 = vmul.f32 %v3479_v13, %v3479_v13  ;;  %v685_v23 = vmul.f32 %v3482_v14, %v3482_v14  ;;  %v686_v26 = vmul.f32 %v3491_v19, %v3491_v19  ;;  %v3508_v30 = vld [vmem:[#allocation7 + $0x40] sm:$0xff]   ;;  %v3514_v32 = vld [vmem:[#allocation7 + $0x48] sm:$0xff]   ;;  %v3522_v35 = vld [vmem:[#allocation7 + $0x10] sm:$0xff]  }
  0xd7   : > { %689 = vadd.xlane.f32.xlu1 %v688_v10  ;;  %v694_v24 = vadd.f32 %v683_v18, %v682_v17  ;;  %v687_v27 = vmul.f32 %v3494_v20, %v3494_v20  ;;  %v669_v28 = vadd.f32 %v3494_v20, %v3491_v19  ;;  %v3510_v31 = vld [vmem:[#allocation7] sm:$0xff]   ;;  %2478 = vmatprep.subr.bf16.mxu1 %v3508_v30  ;;  %v3516_v33 = vld [vmem:[#allocation7 + $0x8] sm:$0xff]   ;;  %v3526_v36 = vld [vmem:[#allocation7 + $0x58] sm:$0xff]  }
  0xd8   : > { %v697_v25 = vadd.f32 %v685_v23, %v684_v22  ;;  %2479 = vmatpush3.bf16.msra.mxu1 %v3510_v31  ;;  %v3528_v37 = vld [vmem:[#allocation7 + $0x18] sm:$0xff]   ;;  %v3532_v38 = vld [vmem:[#allocation7 + $0x60] sm:$0xff]   ;;  %v3538_v40 = vld [vmem:[#allocation7 + $0x68] sm:$0xff]  }
  0xd9   : > { %661 = vadd.xlane.f32.xlu0 %v660_v11  ;;  %v700_v29 = vadd.f32 %v687_v27, %v686_v26  ;;  %2480 = vmatprep.subr.bf16.mxu1 %v3514_v32  ;;  %v3534_v39 = vld [vmem:[#allocation7 + $0x20] sm:$0xff]   ;;  %v3540_v41 = vld [vmem:[#allocation7 + $0x28] sm:$0xff]   ;;  %v3544_v42 = vld [vmem:[#allocation7 + $0x70] sm:$0xff]   ;;  %p4609_p6 = scmp.ne.s32.totalorder %s4608_s29, 0 }
  0xda   : > { %v3546_v43 = vld [vmem:[#allocation7 + $0x30] sm:$0xff]   ;;  %v3549_v44 = vld [vmem:[#allocation7 + $0x78] sm:$0xff]   ;;  %v3557_v46 = vld [vmem:[%s3426_s28 + $0x60] sm:$0xff]  ;;  %s2210_s27 = smul.u32 (%p4609_p6), 10, %s3202_s25 }
  0xdb   : > { %692 = vadd.xlane.f32.xlu1 %v691_v15  ;;  %v3552_v45 = vld [vmem:[#allocation7 + $0x38] sm:$0xff]   ;;  %v3560_v47 = vld [vmem:[%s3426_s28 + $0x68] sm:$0xff]  ;;  %v3565_v49 = vld [vmem:[%s3426_s28 + $0x50] sm:$0xff]  ;;  %v1666_v51 = vmul.f32 %v3557_v46, %v3557_v46 }
  0xdc   : > { %2481 = vmatpush3.bf16.msra.mxu1 %v3516_v33  ;;  %v1647_v48 = vadd.f32 %v3560_v47, %v3557_v46  ;;  %v3568_v50 = vld [vmem:[%s3426_s28 + $0x58] sm:$0xff]  ;;  %v1667_v52 = vmul.f32 %v3560_v47, %v3560_v47  ;;  %v1664_v54 = vmul.f32 %v3565_v49, %v3565_v49  ;;  %v3581_v58 = vld [vmem:[%s3426_s28 + $0x80] sm:$0xff]  ;;  %v3584_v59 = vld [vmem:[%s3426_s28 + $0x88] sm:$0xff]  ;;  %s2211_s11 = ssub.s32 (%p4609_p6), 38, %s2210_s27 }
  0xdd   : > { %664 = vadd.xlane.f32.xlu0 %v663_v16  ;;  %2482 = vmatprep.subr.bf16.mxu1 %v3520_v34  ;;  %v1644_v53 = vadd.f32 %v3568_v50, %v3565_v49  ;;  %v1665_v55 = vmul.f32 %v3568_v50, %v3568_v50  ;;  %v3586_v60 = vld [vmem:[#allocation8 + $0x4] ss:$8 sps:$4 sm:$0xff]   ;;  %v3589_v61 = vld [vmem:[%s3426_s28 + $0x70] sm:$0xff]  ;;  %v3592_v62 = vld [vmem:[%s3426_s28 + $0x78] sm:$0xff]  ;;  %v1653_v63 = vadd.f32 %v3584_v59, %v3581_v58  ;;  %p2212_p11 = scmp.lt.s32.totalorder (%p4609_p6), %s2211_s11, 10 }
  0xde   : > { %v1677_v56 = vadd.f32 %v1667_v52, %v1666_v51  ;;  %v1670_v3 = vmul.f32 %v3581_v58, %v3581_v58  ;;  %v1671_v4 = vmul.f32 %v3584_v59, %v3584_v59  ;;  %v1650_v5 = vadd.f32 %v3592_v62, %v3589_v61  ;;  %v3608_v10 = vld [vmem:[%s3426_s28 + $0x90] sm:$0xff]  ;;  %v3611_v11 = vld [vmem:[%s3426_s28 + $0x98] sm:$0xff] }
  0xdf   : > { %667 = vadd.xlane.f32.xlu1 %v666_v21  ;;  %v1674_v57 = vadd.f32 %v1665_v55, %v1664_v54  ;;  %v1668_v7 = vmul.f32 %v3589_v61, %v3589_v61  ;;  %v1669_v8 = vmul.f32 %v3592_v62, %v3592_v62  ;;  %v1672_v16 = vmul.f32 %v3608_v10, %v3608_v10 }
  0xe0   : > { %2483 = vmatpush3.bf16.msra.mxu1 %v3522_v35  ;;  %v1683_v15 = vadd.f32 %v1671_v4, %v1670_v3  ;;  %v1673_v17 = vmul.f32 %v3611_v11, %v3611_v11  ;;  %v1656_v22 = vadd.f32 %v3611_v11, %v3608_v10  ;;  %v754_v4 = vlaneseq }
  0xe1   : > { %695 = vadd.xlane.f32.xlu0 %v694_v24  ;;  %2484 = vmatprep.subr.bf16.mxu1 %v3526_v36  ;;  %v1680_v18 = vadd.f32 %v1669_v8, %v1668_v7 }
  0xe2   : > { %v1686_v21 = vadd.f32 %v1673_v17, %v1672_v16 }
  0xe3   : > { %698 = vadd.xlane.f32.xlu1 %v697_v25 }
  0xe4   : > { %2485 = vmatpush3.bf16.msra.mxu1 %v3528_v37 }
  0xe5   : > { %670 = vadd.xlane.f32.xlu0 %v669_v28  ;;  %2486 = vmatprep.subr.bf16.mxu1 %v3532_v38 }
  0xe7   : > { %701 = vadd.xlane.f32.xlu1 %v700_v29 }
  0xe8   : > { %2487 = vmatpush3.bf16.msra.mxu1 %v3534_v39 }
  0xe9   : > { %2488 = vmatprep.subr.bf16.mxu1 %v3538_v40  ;;  %1645 = vadd.xlane.f32.xlu0 %v1644_v53 }
  0xeb   : > { %1648 = vadd.xlane.f32.xlu1 %v1647_v48 }
  0xec   : > { %2489 = vmatpush3.bf16.msra.mxu1 %v3540_v41 }
  0xed   : > { %2490 = vmatprep.subr.bf16.mxu1 %v3544_v42  ;;  %1675 = vadd.xlane.f32.xlu0 %v1674_v57 }
  0xef   : > { %1678 = vadd.xlane.f32.xlu1 %v1677_v56 }
  0xf0   : > { %2491 = vmatpush3.bf16.msra.mxu1 %v3546_v43 }
  0xf1   : > { %2492 = vmatprep.subr.bf16.mxu1 %v3549_v44  ;;  %1651 = vadd.xlane.f32.xlu0 %v1650_v5 }
  0xf3   : > { %1654 = vadd.xlane.f32.xlu1 %v1653_v63 }
  0xf4   : > { %2493 = vmatpush3.bf16.msra.mxu1 %v3552_v45 }
  0xf5   : > { %1078 = vmatprep.subr.bf16.mxu1 %v3586_v60  ;;  %1681 = vadd.xlane.f32.xlu0 %v1680_v18 }
  0xf7   : > { %1684 = vadd.xlane.f32.xlu1 %v1683_v15 }
  0xf9   : > { %1657 = vadd.xlane.f32.xlu0 %v1656_v22  ;;  %v755_v22 = vshrl.u32 %v754_v4, 7 }
  0xfb   : > { %1687 = vadd.xlane.f32.xlu1 %v1686_v21 }
 0x162   : > { %v659_v23 = vpop.xlane.xlu0 %658 }
 0x163   : > { %v673_v24 = vmul.f32 0.00390625, %v659_v23 }
 0x164   : > { %v690_v25 = vpop.xlane.xlu1 %689 }
 0x165   : > { %v703_v26 = vmul.f32 0.00390625, %v690_v25  ;;  %v708_v27 = vmul.f32 %v673_v24, %v673_v24 }
 0x166   : > { %v662_v28 = vpop.xlane.xlu0 %661 }
 0x167   : > { %v713_v29 = vsub.f32 %v703_v26, %v708_v27  ;;  %v674_v48 = vmul.f32 0.00390625, %v662_v28 }
 0x168   : > { %v693_v51 = vpop.xlane.xlu1 %692 }
 0x169   : > { %v718_v52 = vmax.f32 %v713_v29, 0.0  ;;  %v704_v53 = vmul.f32 0.00390625, %v693_v51  ;;  %v709_v54 = vmul.f32 %v674_v48, %v674_v48 }
 0x16a   : > { %v665_v55 = vpop.xlane.xlu0 %664 }
 0x16b   : > { %v733_v56 = vadd.f32 1e-05, %v718_v52  ;;  %v3619_v57 = vmul.f32 0.00390625, %v665_v55  ;;  %v714_v63 = vsub.f32 %v704_v53, %v709_v54  ;;  %v3629_v52 = vsub.s32 0, %v755_v22  ;;  %v550_v55 = vld [vmem:[%s4460_s2] sm:$0x3] }
 0x16c   : > { %v668_v3 = vpop.xlane.xlu1 %667 }
 0x16d   : > { %2719 = vrsqrt.f32 %v733_v56  ;;  %v3621_v5 = vmul.f32 0.00390625, %v668_v3  ;;  %v719_v7 = vmax.f32 %v714_v63, 0.0  ;;  %v710_v8 = vmul.f32 %v3619_v57, %v3619_v57  ;;  %4544 = vst [vmem:[#allocation22_spill] sm:$0xff] %v3629_v52 }
 0x16e   : > { %v696_v15 = vpop.xlane.xlu0 %695  ;;  %v3634_v56 = vsub.s32 1, %v755_v22 }
 0x16f   : > { %v705_v16 = vmul.f32 0.00390625, %v696_v15  ;;  %v711_v17 = vmul.f32 %v3621_v5, %v3621_v5  ;;  %v734_v18 = vadd.f32 1e-05, %v719_v7  ;;  %v723_v7 = vsub.f32 %v3449_v0, %v673_v24 }
 0x170   : > { %v699_v21 = vpop.xlane.xlu1 %698  ;;  %4545 = vst [vmem:[#allocation23_spill] sm:$0xff] %v3634_v56  ;;  %v3647_v22 = vrot.slane %v550_v55, %v3634_v56  ;;  %v725_v0 = vsub.f32 %v3455_v2, %v674_v48 }
 0x171   : > { %v715_v23 = vsub.f32 %v705_v16, %v710_v8  ;;  %v706_v25 = vmul.f32 0.00390625, %v699_v21  ;;  %2721 = vrsqrt.f32 %v734_v18  ;;  %v724_v8 = vsub.f32 %v3452_v1, %v673_v24  ;;  %v551_v18 = vld [vmem:[%s4461_s3] sm:$0x3] }
 0x172   : > { %v671_v26 = vpop.xlane.xlu0 %670  ;;  %v726_v1 = vsub.f32 %v3464_v6, %v674_v48  ;;  %v727_v6 = vsub.f32 %v3471_v9, %v3619_v57  ;;  %v728_v48 = vsub.f32 %v3476_v12, %v3619_v57  ;;  %v3673_v57 = vld [vmem:[#allocation8] ss:$8 sps:$4 sm:$0xff]  }
 0x173   : > { %v720_v27 = vmax.f32 %v715_v23, 0.0  ;;  %v716_v28 = vsub.f32 %v706_v25, %v711_v17  ;;  %v3627_v29 = vmul.f32 0.00390625, %v671_v26  ;;  %v3641_v17 = vrot.slane %v550_v55, %v3629_v52  ;;  %4546 = vst [vmem:[#allocation24_spill] sm:$0xff] %v3673_v57 }
 0x174   : > { %v702_v51 = vpop.xlane.xlu1 %701 }
 0x175   : > { %v735_v53 = vadd.f32 1e-05, %v720_v27  ;;  %v721_v54 = vmax.f32 %v716_v28, 0.0  ;;  %v707_v63 = vmul.f32 0.00390625, %v702_v51  ;;  %v712_v3 = vmul.f32 %v3627_v29, %v3627_v29 }
 0x176   : > { %v3652_v27 = vrot.slane %v551_v18, %v3629_v52  ;;  %v3655_v28 = vrot.slane %v551_v18, %v3634_v56  ;;  %v730_v18 = vsub.f32 %v3482_v14, %v3621_v5 }
 0x177   : > { %v2720_v4 = vpop.eup %2719  ;;  %2723 = vrsqrt.f32 %v735_v53  ;;  %v736_v15 = vadd.f32 1e-05, %v721_v54  ;;  %v717_v16 = vsub.f32 %v707_v63, %v712_v3 }
 0x178   : > { %v744_v21 = vmul.f32 %v2720_v4, %v724_v8  ;;  %v743_v23 = vmul.f32 %v2720_v4, %v723_v7 }
 0x179   : > { %2725 = vrsqrt.f32 %v736_v15  ;;  %v722_v25 = vmax.f32 %v717_v16, 0.0  ;;  %v729_v16 = vsub.f32 %v3479_v13, %v3621_v5  ;;  %v731_v5 = vsub.f32 %v3491_v19, %v3627_v29 }
 0x17a   : > { %v765_v53 = vmul.f32 %v3647_v22, %v744_v21  ;;  %v764_v55 = vmul.f32 %v3641_v17, %v743_v23 }
 0x17b   : > { %v2722_v24 = vpop.eup %2721  ;;  %v737_v26 = vadd.f32 1e-05, %v722_v25 }
 0x17c   : > { %v746_v51 = vmul.f32 %v2722_v24, %v726_v1  ;;  %v745_v54 = vmul.f32 %v2722_v24, %v725_v0  ;;  %v786_v4 = vadd.f32 %v3655_v28, %v765_v53  ;;  %v785_v8 = vadd.f32 %v3652_v27, %v764_v55 }
 0x17d   : > { %2727 = vrsqrt.f32 %v737_v26  ;;  %v732_v53 = vsub.f32 %v3494_v20, %v3627_v29 }
 0x17e   : > { %v767_v63 = vmul.f32 %v3647_v22, %v746_v51  ;;  %v766_v2 = vmul.f32 %v3641_v17, %v745_v54  ;;  %v3677_v51 = vld [vmem:[#allocation8 + $0x14] ss:$8 sps:$4 sm:$0xff]   ;;  %v3686_v54 = vld [vmem:[#allocation8 + $0x10] ss:$8 sps:$4 sm:$0xff]  }
 0x17f   : > { %4547 = vst [vmem:[#allocation25_spill] sm:$0xff] %v3677_v51  ;;  %4548 = vst [vmem:[#allocation26_spill] sm:$0xff] %v3686_v54 }
 0x180   : > { %v788_v7 = vadd.f32 %v3655_v28, %v767_v63  ;;  %v787_v15 = vadd.f32 %v3652_v27, %v766_v2 }
 0x181   : > { %v2724_v3 = vpop.eup %2723 }
 0x182   : > { %v748_v21 = vmul.f32 %v2724_v3, %v728_v48  ;;  %v747_v9 = vmul.f32 %v2724_v3, %v727_v6  ;;  %v796_v25 = vpack.c.bf16 %v788_v7, %v786_v4  ;;  %v795_v12 = vpack.c.bf16 %v787_v15, %v785_v8 }
 0x183   : > { %v2726_v23 = vpop.eup %2725 }
 0x184   : > { %v750_v0 = vmul.f32 %v2726_v23, %v730_v18  ;;  %v769_v1 = vmul.f32 %v3647_v22, %v748_v21  ;;  %v749_v24 = vmul.f32 %v2726_v23, %v729_v16  ;;  %v768_v26 = vmul.f32 %v3641_v17, %v747_v9  ;;  %935 = vmatprep.mubr.bf16.mxu1 %v796_v25  ;;  %v3698_v21 = vld [vmem:[#allocation8 + $0x24] ss:$8 sps:$4 sm:$0xff]   ;;  %v3700_v9 = vld [vmem:[#allocation8 + $0x20] ss:$8 sps:$4 sm:$0xff]   ;;  %v3704_v23 = vld [vmem:[#allocation8 + $0x34] ss:$8 sps:$4 sm:$0xff]  }
 0x185   : > { %936 = vmatmul.mubr.bf16.vlgmr.msra.gmra.mrb[0].mxu1 %v795_v12  ;;  %4549 = vst [vmem:[#allocation27_spill] sm:$0xff] %v3698_v21  ;;  %4550 = vst [vmem:[#allocation28_spill] sm:$0xff] %v3700_v9  ;;  %v3706_v25 = vld [vmem:[#allocation8 + $0x30] ss:$8 sps:$4 sm:$0xff]   ;;  %v3710_v12 = vld [vmem:[#allocation8 + $0x44] ss:$8 sps:$4 sm:$0xff]  }
 0x186   : > { %v771_v13 = vmul.f32 %v3647_v22, %v750_v0  ;;  %v770_v14 = vmul.f32 %v3641_v17, %v749_v24  ;;  %1079 = vmatpush1.bf16.msra.mxu1 %v3673_v57  ;;  %v790_v63 = vadd.f32 %v3655_v28, %v769_v1  ;;  %v789_v6 = vadd.f32 %v3652_v27, %v768_v26  ;;  %v3712_v0 = vld [vmem:[#allocation8 + $0x40] ss:$8 sps:$4 sm:$0xff]   ;;  %v3716_v1 = vld [vmem:[#allocation8 + $0x54] ss:$8 sps:$4 sm:$0xff]   ;;  %v3718_v24 = vld [vmem:[#allocation8 + $0x50] ss:$8 sps:$4 sm:$0xff]  }
 0x187   : > { %v2728_v55 = vpop.eup %2727  ;;  %1080 = vmatprep.subr.bf16.mxu1 %v3677_v51  ;;  %4551 = vst [vmem:[#allocation29_spill] sm:$0xff] %v3704_v23  ;;  %4552 = vst [vmem:[#allocation30_spill] sm:$0xff] %v3706_v25  ;;  %v3722_v26 = vld [vmem:[#allocation8 + $0x64] ss:$8 sps:$4 sm:$0xff]  }
 0x188   : > { %v792_v2 = vadd.f32 %v3655_v28, %v771_v13  ;;  %v791_v48 = vadd.f32 %v3652_v27, %v770_v14  ;;  %v752_v3 = vmul.f32 %v2728_v55, %v732_v53  ;;  %v751_v19 = vmul.f32 %v2728_v55, %v731_v5  ;;  %4553 = vst [vmem:[#allocation31_spill] sm:$0xff] %v3710_v12  ;;  %v3724_v13 = vld [vmem:[#allocation8 + $0x60] ss:$8 sps:$4 sm:$0xff]   ;;  %v3728_v14 = vld [vmem:[#allocation8 + $0x74] ss:$8 sps:$4 sm:$0xff]  }
 0x189   : > { %4554 = vst [vmem:[#allocation32_spill] sm:$0xff] %v3712_v0  ;;  %4555 = vst [vmem:[#allocation33_spill] sm:$0xff] %v3716_v1  ;;  %v3730_v5 = vld [vmem:[#allocation8 + $0x70] ss:$8 sps:$4 sm:$0xff]   ;;  %v4482_v53 = vmov 0  }
 0x18a   : > { %v798_v4 = vpack.c.bf16 %v792_v2, %v790_v63  ;;  %v797_v7 = vpack.c.bf16 %v791_v48, %v789_v6  ;;  %v773_v20 = vmul.f32 %v3647_v22, %v752_v3  ;;  %1081 = vmatpush1.bf16.msra.mxu1 %v3686_v54  ;;  %v772_v29 = vmul.f32 %v3641_v17, %v751_v19  ;;  %v3736_v55 = vld [vmem:[#allocation10 + $0x4] ss:$8 sps:$4 sm:$0xff]   ;;  %v3738_v63 = vld [vmem:[#allocation10] ss:$8 sps:$4 sm:$0xff]   ;;  %v3740_v2 = vld [vmem:[#allocation10 + $0x14] ss:$8 sps:$4 sm:$0xff]  }
 0x18b   : > { %1082 = vmatprep.subr.bf16.mxu1 %v3698_v21  ;;  %4556 = vst [vmem:[#allocation34_spill] sm:$0xff] %v3718_v24  ;;  %4557 = vst [vmem:[#allocation35_spill] sm:$0xff] %v3722_v26  ;;  %1406 = vmatprep.subr.bf16.mxu0 %v3736_v55  ;;  %v3744_v6 = vld [vmem:[#allocation10 + $0x10] ss:$8 sps:$4 sm:$0xff]   ;;  %v3747_v48 = vld [vmem:[#allocation10 + $0x24] ss:$8 sps:$4 sm:$0xff]  }
 0x18c   : > { %943 = vmatprep.mubr.bf16.mxu1 %v798_v4  ;;  %v794_v8 = vadd.f32 %v3655_v28, %v773_v20  ;;  %v793_v16 = vadd.f32 %v3652_v27, %v772_v29  ;;  %4558 = vst [vmem:[#allocation36_spill] sm:$0xff] %v3724_v13  ;;  %4559 = vst [vmem:[#allocation37_spill] sm:$0xff] %v3728_v14  ;;  %1407 = vmatpush1.bf16.msra.mxu0 %v3738_v63  ;;  %v3753_v3 = vld [vmem:[#allocation10 + $0x34] ss:$8 sps:$4 sm:$0xff]   ;;  %v3756_v19 = vld [vmem:[#allocation10 + $0x30] ss:$8 sps:$4 sm:$0xff]  }
 0x18d   : > { %944 = vmatmul.mubr.bf16.gmra.mrb[4].mxu1 %v797_v7  ;;  %4560 = vst [vmem:[#allocation38_spill] sm:$0xff] %v3730_v5  ;;  %4561 = vst [vmem:[#allocation39_spill] sm:$0xff] %v3736_v55  ;;  %1408 = vmatprep.subr.bf16.mxu0 %v3740_v2  ;;  %v3759_v4 = vld [vmem:[#allocation10 + $0x44] ss:$8 sps:$4 sm:$0xff]   ;;  %v3762_v7 = vld [vmem:[#allocation10 + $0x40] ss:$8 sps:$4 sm:$0xff]  }
 0x18e   : > { %v800_v15 = vpack.c.bf16 %v794_v8, %v794_v8  ;;  %v799_v18 = vpack.c.bf16 %v793_v16, %v793_v16  ;;  %1083 = vmatpush1.bf16.msra.mxu1 %v3700_v9  ;;  %4562 = vst [vmem:[#allocation40_spill] sm:$0xff] %v3738_v63  ;;  %4563 = vst [vmem:[#allocation41_spill] sm:$0xff] %v3740_v2  ;;  %v3765_v20 = vld [vmem:[#allocation10 + $0x54] ss:$8 sps:$4 sm:$0xff]   ;;  %v3768_v29 = vld [vmem:[#allocation10 + $0x50] ss:$8 sps:$4 sm:$0xff]   ;;  %v1646_v16 = vpop.xlane.xlu0 %1645 }
 0x18f   : > { %1084 = vmatprep.subr.bf16.mxu1 %v3704_v23  ;;  %4564 = vst [vmem:[#allocation42_spill] sm:$0xff] %v3744_v6  ;;  %4565 = vst [vmem:[#allocation43_spill] sm:$0xff] %v3747_v48  ;;  %v3771_v8 = vld [vmem:[#allocation10 + $0x64] ss:$8 sps:$4 sm:$0xff]  }
 0x190   : > { %951 = vmatprep.mubr.bf16.mxu1 %v800_v15  ;;  %1409 = vmatpush1.bf16.msra.mxu0 %v3744_v6  ;;  %4567 = vst [vmem:[#allocation45_spill] sm:$0xff] %v3753_v3  ;;  %4568 = vst [vmem:[#allocation46_spill] sm:$0xff] %v3756_v19  ;;  %v1649_v15 = vpop.xlane.xlu1 %1648 }
 0x191   : > { %1410 = vmatprep.subr.bf16.mxu0 %v3747_v48  ;;  %4569 = vst [vmem:[#allocation47_spill] sm:$0xff] %v3759_v4  ;;  %4570 = vst [vmem:[#allocation48_spill] sm:$0xff] %v3762_v7 }
 0x192   : > { %1085 = vmatpush1.bf16.msra.mxu1 %v3706_v25  ;;  %4571 = vst [vmem:[#allocation49_spill] sm:$0xff] %v3765_v20  ;;  %4572 = vst [vmem:[#allocation50_spill] sm:$0xff] %v3768_v29 }
 0x193   : > { %1086 = vmatprep.subr.bf16.mxu1 %v3710_v12  ;;  %4573 = vst [vmem:[#allocation51_spill] sm:$0xff] %v3771_v8 }
 0x195   : > { %952 = vmatmul.mubr.bf16.gmra.mrb[8].mxu1 %v799_v18  ;;  %v3775_v18 = vmul.f32 0.00390625, %v1649_v15 }
 0x196   : > { %1087 = vmatpush1.bf16.msra.mxu1 %v3712_v0  ;;  %1110 = vmatprep.mubr.bf16.mxu1 %v4482_v53  ;;  %v1679_v53 = vpop.xlane.xlu1 %1678 }
 0x197   : > { %1088 = vmatprep.subr.bf16.mxu1 %v3716_v1 }
 0x19a   : > { %1089 = vmatpush1.bf16.msra.mxu1 %v3718_v24 }
 0x19b   : > { %1090 = vmatprep.subr.bf16.mxu1 %v3722_v26 }
 0x19e   : > { %1091 = vmatpush1.bf16.msra.mxu1 %v3724_v13 }
 0x19f   : > { %1092 = vmatprep.subr.bf16.mxu1 %v3728_v14 }
 0x1a2   : > { %1093 = vmatpush1.bf16.msra.mxu1 %v3730_v5  ;;  %v1655_v5 = vpop.xlane.xlu1 %1654 }
 0x1a3   : > { %2512 = vmatprep.subr.bf16.mxu1 %v3508_v30  ;;  %v3750_v30 = vld [vmem:[#allocation10 + $0x20] ss:$8 sps:$4 sm:$0xff]  }
 0x1a4   : > { %4566 = vst [vmem:[#allocation44_spill] sm:$0xff] %v3750_v30  ;;  %1411 = vmatpush1.bf16.msra.mxu0 %v3750_v30 }
 0x1a5   : > { %1412 = vmatprep.subr.bf16.mxu0 %v3753_v3  ;;  %v1690_v3 = vmul.f32 0.00390625, %v1679_v53 }
 0x1a8   : > { %1413 = vmatpush1.bf16.msra.mxu0 %v3756_v19  ;;  %v1676_v19 = vpop.xlane.xlu0 %1675 }
 0x1a9   : > { %1414 = vmatprep.subr.bf16.mxu0 %v3759_v4  ;;  %v3777_v4 = vmul.f32 0.00390625, %v1646_v16  ;;  %v1689_v15 = vmul.f32 0.00390625, %v1676_v19 }
 0x1ac   : > { %1415 = vmatpush1.bf16.msra.mxu0 %v3762_v7  ;;  %v1695_v7 = vmul.f32 %v3775_v18, %v3775_v18  ;;  %v1652_v13 = vpop.xlane.xlu0 %1651 }
 0x1ad   : > { %1416 = vmatprep.subr.bf16.mxu0 %v3765_v20  ;;  %v3784_v20 = vld [vmem:[%s4463_s5] ss:$0 sm:$0xff] }
 0x1ae   : > { %v1700_v2 = vsub.f32 %v1690_v3, %v1695_v7  ;;  %v3790_v7 = vmul.f32 0.00390625, %v1655_v5 }
 0x1b0   : > { %1417 = vmatpush1.bf16.msra.mxu0 %v3768_v29  ;;  %v1705_v14 = vmax.f32 %v1700_v2, 0.0 }
 0x1b1   : > { %1418 = vmatprep.subr.bf16.mxu0 %v3771_v8  ;;  %v1694_v8 = vmul.f32 %v3777_v4, %v3777_v4 }
 0x1b3   : > { %v1699_v52 = vsub.f32 %v1689_v15, %v1694_v8  ;;  %v3793_v8 = vmul.f32 0.00390625, %v1652_v13  ;;  %v1682_v15 = vpop.xlane.xlu0 %1681 }
 0x1b4   : > { %v1691_v5 = vmul.f32 0.00390625, %v1682_v15 }
 0x1b5   : > { %v1704_v0 = vmax.f32 %v1699_v52, 0.0  ;;  %v1697_v52 = vmul.f32 %v3790_v7, %v3790_v7 }
 0x1b7   : > { %v1719_v2 = vadd.f32 1e-05, %v1704_v0 }
 0x258   : > { %v2494_v30 = vpop.f32.mrb[0].mxu1 }
 0x259   : > { %v2495_v29 = vpop.f32.mrb[1].mxu1 }
 0x25a   : > { %v2496_v48 = vadd.f32 %v2495_v29, %v2494_v30  ;;  %v2497_v6 = vpop.f32.mrb[2].mxu1  ;;  %v1720_v29 = vadd.f32 1e-05, %v1705_v14  ;;  %v1696_v14 = vmul.f32 %v3793_v8, %v3793_v8 }
 0x25b   : > { %v2498_v16 = vpop.f32.mrb[3].mxu1 }
 0x25c   : > { %v938_v63 = vadd.f32 %v2496_v48, %v3784_v20  ;;  %v2499_v56 = vadd.f32 %v2498_v16, %v2497_v6 }
 0x25e   : > { %v964_v53 = vmul.f32 0.70710677, %v938_v63  ;;  %v941_v55 = vadd.f32 %v2499_v56, %v3784_v20  ;;  %v1685_v56 = vpop.xlane.xlu1 %1684  ;;  %v959_v23 = vmul.f32 0.5, %v938_v63 }
 0x260   : > { %2729 = verf.f32 %v964_v53  ;;  %v965_v26 = vmul.f32 0.70710677, %v941_v55  ;;  %v2500_v24 = vpop.f32.mrb[4].mxu1  ;;  %v960_v9 = vmul.f32 0.5, %v941_v55  ;;  %v1712_v55 = vsub.f32 %v3560_v47, %v3775_v18 }
 0x261   : > { %v2501_v1 = vpop.f32.mrb[5].mxu1 }
 0x262   : > { %2731 = verf.f32 %v965_v26  ;;  %v2502_v30 = vadd.f32 %v2501_v1, %v2500_v24  ;;  %v2503_v19 = vpop.f32.mrb[6].mxu1  ;;  %v1692_v1 = vmul.f32 0.00390625, %v1685_v56 }
 0x263   : > { %v2504_v3 = vpop.f32.mrb[7].mxu1  ;;  %2733 = vrsqrt.f32 %v1720_v29 }
 0x264   : > { %v946_v6 = vadd.f32 %v2502_v30, %v3784_v20  ;;  %v2505_v48 = vadd.f32 %v2504_v3, %v2503_v19  ;;  %v1658_v3 = vpop.xlane.xlu0 %1657  ;;  %v1702_v56 = vsub.f32 %v1692_v1, %v1697_v52 }
 0x265   : > { %v3801_v54 = vmul.f32 0.00390625, %v1658_v3 }
 0x266   : > { %v966_v16 = vmul.f32 0.70710677, %v946_v6  ;;  %v949_v53 = vadd.f32 %v2505_v48, %v3784_v20 }
 0x268   : > { %2735 = verf.f32 %v966_v16  ;;  %v967_v24 = vmul.f32 0.70710677, %v949_v53  ;;  %v2506_v26 = vpop.f32.mrb[8].mxu1  ;;  %v1701_v16 = vsub.f32 %v1691_v5, %v1696_v14  ;;  %v962_v14 = vmul.f32 0.5, %v949_v53 }
 0x269   : > { %2737 = vrsqrt.f32 %v1719_v2  ;;  %v2507_v13 = vpop.f32.mrb[9].mxu1  ;;  %v1688_v2 = vpop.xlane.xlu1 %1687 }
 0x26a   : > { %v2730_v30 = vpop.eup %2729  ;;  %2739 = verf.f32 %v967_v24  ;;  %v2508_v0 = vadd.f32 %v2507_v13, %v2506_v26  ;;  %v2509_v19 = vpop.f32.mrb[10].mxu1  ;;  %v1707_v24 = vmax.f32 %v1702_v56, 0.0  ;;  %v1706_v26 = vmax.f32 %v1701_v16, 0.0 }
 0x26b   : > { %v974_v48 = vadd.f32 1.0, %v2730_v30  ;;  %v2510_v29 = vpop.f32.mrb[11].mxu1  ;;  %v1693_v19 = vmul.f32 0.00390625, %v1688_v2 }
 0x26c   : > { %v2732_v12 = vpop.eup %2731  ;;  %v954_v25 = vadd.f32 %v2508_v0, %v3784_v20  ;;  %v1698_v0 = vmul.f32 %v3801_v54, %v3801_v54 }
 0x26d   : > { %v975_v21 = vadd.f32 1.0, %v2732_v12  ;;  %v979_v51 = vmul.f32 %v974_v48, %v959_v23  ;;  %v2734_v13 = vpop.eup %2733  ;;  %v1710_v12 = vsub.f32 %v3568_v50, %v3777_v4  ;;  %v1721_v23 = vadd.f32 1e-05, %v1706_v26 }
 0x26e   : > { %v968_v15 = vmul.f32 0.70710677, %v954_v25  ;;  %v1703_v3 = vsub.f32 %v1693_v19, %v1698_v0  ;;  %v1732_v48 = vmul.f32 %v2734_v13, %v1712_v55  ;;  %v1711_v26 = vsub.f32 %v3557_v46, %v3775_v18 }
 0x26f   : > { %v980_v57 = vmul.f32 %v975_v21, %v960_v9  ;;  %v1722_v9 = vadd.f32 1e-05, %v1707_v24  ;;  %v1714_v19 = vsub.f32 %v3592_v62, %v3793_v8  ;;  %v1713_v62 = vsub.f32 %v3589_v61, %v3793_v8 }
 0x270   : > { %2741 = verf.f32 %v968_v15  ;;  %v1708_v56 = vmax.f32 %v1703_v3, 0.0  ;;  %v1742_v53 = vmul.f32 %v1732_v48, %v3647_v22  ;;  %v963_v15 = vmul.f32 0.5, %v954_v25  ;;  %v4578_v3 = vld [vmem:[#allocation27_spill] sm:$0xff] }
 0x271   : > { %v984_v30 = vpack.c.bf16 %v980_v57, %v979_v51  ;;  %v4574_v57 = vmov 0   ;;  %v961_v51 = vmul.f32 0.5, %v946_v6  ;;  %2743 = vrsqrt.f32 %v1722_v9  ;;  %v4575_v9 = vld [vmem:[#allocation24_spill] sm:$0xff] }
 0x272   : > { %v2736_v52 = vpop.eup %2735  ;;  %2745 = vrsqrt.f32 %v1721_v23  ;;  %v1723_v2 = vadd.f32 1e-05, %v1708_v56  ;;  %v1709_v25 = vsub.f32 %v3565_v49, %v3777_v4  ;;  %v1718_v18 = vsub.f32 %v3611_v11, %v3801_v54 }
 0x273   : > { %v2738_v63 = vpop.eup %2737  ;;  %v976_v1 = vadd.f32 1.0, %v2736_v52  ;;  %1111 = vmatmul.mubr.bf16.vlgmr.msra.gmra.mrb[12].mxu1 %v984_v30 }
 0x274   : > { %v2740_v21 = vpop.eup %2739  ;;  %2513 = vmatpush3.bf16.msra.mxu1 %v3510_v31  ;;  %1120 = vmatprep.mubr.bf16.mxu1 %v4574_v57  ;;  %v1730_v47 = vmul.f32 %v2738_v63, %v1710_v12  ;;  %2747 = vrsqrt.f32 %v1723_v2  ;;  %v1729_v46 = vmul.f32 %v2738_v63, %v1709_v25  ;;  %v1717_v12 = vsub.f32 %v3608_v10, %v3801_v54  ;;  %v4576_v10 = vld [vmem:[#allocation25_spill] sm:$0xff] }
 0x275   : > { %v977_v5 = vadd.f32 1.0, %v2740_v21  ;;  %2514 = vmatprep.subr.bf16.mxu1 %v3514_v32  ;;  %v981_v29 = vmul.f32 %v976_v1, %v961_v51  ;;  %v3882_v2 = vld [vmem:[#allocation10 + $0x74] ss:$8 sps:$4 sm:$0xff]   ;;  %v3896_v25 = vld [vmem:[#allocation10 + $0x90] ss:$8 sps:$4 sm:$0xff]  }
 0x276   : > { %v1740_v6 = vmul.f32 %v1730_v47, %v3647_v22  ;;  %v1739_v4 = vmul.f32 %v1729_v46, %v3641_v17  ;;  %v4579_v47 = vld [vmem:[#allocation28_spill] sm:$0xff] }
 0x277   : > { %v982_v50 = vmul.f32 %v977_v5, %v962_v14  ;;  %v4577_v14 = vld [vmem:[#allocation26_spill] sm:$0xff]  ;;  %v3920_v46 = vld [vmem:[#allocation10 + $0xd0] ss:$8 sps:$4 sm:$0xff]  }
 0x278   : > { %2515 = vmatpush3.bf16.msra.mxu1 %v3516_v33  ;;  %v1750_v24 = vadd.f32 %v1740_v6, %v3655_v28  ;;  %v4586_v6 = vld [vmem:[#allocation35_spill] sm:$0xff] }
 0x279   : > { %2516 = vmatprep.subr.bf16.mxu1 %v3520_v34  ;;  %v985_v31 = vpack.c.bf16 %v982_v50, %v981_v29  ;;  %v1752_v34 = vadd.f32 %v1742_v53, %v3655_v28  ;;  %v4580_v29 = vld [vmem:[#allocation29_spill] sm:$0xff]  ;;  %v4581_v50 = vld [vmem:[#allocation30_spill] sm:$0xff]  ;;  %v4587_v53 = vld [vmem:[#allocation36_spill] sm:$0xff] }
 0x27a   : > { %v2742_v16 = vpop.eup %2741 }
 0x27b   : > { %1121 = vmatmul.mubr.bf16.gmra.mrb[16].mxu1 %v985_v31  ;;  %v978_v32 = vadd.f32 1.0, %v2742_v16  ;;  %v2744_v30 = vpop.eup %2743  ;;  %v1760_v0 = vpack.c.bf16 %v1752_v34, %v1750_v24  ;;  %v4583_v31 = vld [vmem:[#allocation32_spill] sm:$0xff]  ;;  %v4585_v16 = vld [vmem:[#allocation34_spill] sm:$0xff] }
 0x27c   : > { %2517 = vmatpush3.bf16.msra.mxu1 %v3522_v35  ;;  %1130 = vmatprep.mubr.bf16.mxu1 %v4574_v57  ;;  %v2746_v52 = vpop.eup %2745  ;;  %v3888_v24 = vld [vmem:[#allocation10 + $0x84] ss:$8 sps:$4 sm:$0xff]   ;;  %v3890_v34 = vld [vmem:[#allocation10 + $0x80] ss:$8 sps:$4 sm:$0xff]  }
 0x27d   : > { %2518 = vmatprep.subr.bf16.mxu1 %v3526_v36  ;;  %v983_v33 = vmul.f32 %v978_v32, %v963_v15  ;;  %v1716_v36 = vsub.f32 %v3584_v59, %v3790_v7  ;;  %v1734_v49 = vmul.f32 %v2746_v52, %v1714_v19  ;;  %v1715_v59 = vsub.f32 %v3581_v58, %v3790_v7  ;;  %v4589_v15 = vld [vmem:[#allocation38_spill] sm:$0xff]  ;;  %v3908_v19 = vld [vmem:[#allocation10 + $0xb0] ss:$8 sps:$4 sm:$0xff]  }
 0x27e   : > { %v1749_v58 = vadd.f32 %v1739_v4, %v3652_v27  ;;  %v1733_v61 = vmul.f32 %v2746_v52, %v1713_v62  ;;  %v3879_v32 = vld [vmem:[#allocation10 + $0x60] ss:$8 sps:$4 sm:$0xff]   ;;  %v3932_v62 = vld [vmem:[#allocation10 + $0xf0] ss:$8 sps:$4 sm:$0xff]  }
 0x27f   : > { %v986_v35 = vpack.c.bf16 %v983_v33, %v983_v33  ;;  %v1735_v7 = vmul.f32 %v2744_v30, %v1715_v59  ;;  %1419 = vmatpush1.bf16.msra.mxu0 %v3879_v32  ;;  %v3884_v33 = vld [vmem:[#allocation10 + $0x70] ss:$8 sps:$4 sm:$0xff]   ;;  %v3914_v52 = vld [vmem:[#allocation10 + $0xc0] ss:$8 sps:$4 sm:$0xff]   ;;  %v3930_v59 = vld [vmem:[#allocation10 + $0xf4] ss:$8 sps:$4 sm:$0xff]  }
 0x280   : > { %2519 = vmatpush3.bf16.msra.mxu1 %v3528_v37  ;;  %v1731_v37 = vmul.f32 %v2734_v13, %v1711_v26  ;;  %1420 = vmatprep.subr.bf16.mxu0 %v3882_v2  ;;  %v3894_v26 = vld [vmem:[#allocation10 + $0x94] ss:$8 sps:$4 sm:$0xff]   ;;  %v4590_v4 = vld [vmem:[#allocation39_spill] sm:$0xff] }
 0x281   : > { %2520 = vmatprep.subr.bf16.mxu1 %v3532_v38  ;;  %v1736_v38 = vmul.f32 %v2744_v30, %v1716_v36  ;;  %v3902_v30 = vld [vmem:[#allocation10 + $0xa0] ss:$8 sps:$4 sm:$0xff]   ;;  %v3906_v36 = vld [vmem:[#allocation10 + $0xb4] ss:$8 sps:$4 sm:$0xff]  }
 0x283   : > { %1131 = vmatmul.mubr.bf16.gmra.mrb[20].mxu1 %v986_v35  ;;  %v1746_v13 = vmul.f32 %v1736_v38, %v3647_v22  ;;  %1421 = vmatpush1.bf16.msra.mxu0 %v3884_v33  ;;  %v3900_v35 = vld [vmem:[#allocation10 + $0xa4] ss:$8 sps:$4 sm:$0xff]   ;;  %v3926_v38 = vld [vmem:[#allocation10 + $0xe0] ss:$8 sps:$4 sm:$0xff]  }
 0x284   : > { %2521 = vmatpush3.bf16.msra.mxu1 %v3534_v39  ;;  %1797 = vmatprep.mubr.bf16.mxu1 %v1760_v0  ;;  %v1741_v39 = vmul.f32 %v1731_v37, %v3641_v17  ;;  %v3912_v0 = vld [vmem:[#allocation10 + $0xc4] ss:$8 sps:$4 sm:$0xff]   ;;  %v3918_v37 = vld [vmem:[#allocation10 + $0xd4] ss:$8 sps:$4 sm:$0xff]  }
 0x285   : > { %2522 = vmatprep.subr.bf16.mxu1 %v3538_v40  ;;  %v1744_v40 = vmul.f32 %v1734_v49, %v3647_v22  ;;  %v1756_v55 = vadd.f32 %v1746_v13, %v3655_v28  ;;  %1422 = vmatprep.subr.bf16.mxu0 %v3888_v24  ;;  %v3924_v49 = vld [vmem:[#allocation10 + $0xe4] ss:$8 sps:$4 sm:$0xff]  }
 0x286   : > { %v4592_v13 = vld [vmem:[#allocation23_spill] sm:$0xff] }
 0x287   : > { %v1754_v8 = vadd.f32 %v1744_v40, %v3655_v28  ;;  %1423 = vmatpush1.bf16.msra.mxu0 %v3890_v34 }
 0x288   : > { %2523 = vmatpush3.bf16.msra.mxu1 %v3540_v41  ;;  %v2748_v41 = vpop.eup %2747  ;;  %1424 = vmatprep.subr.bf16.mxu0 %v3894_v26 }
 0x289   : > { %2524 = vmatprep.subr.bf16.mxu1 %v3544_v42  ;;  %v1751_v42 = vadd.f32 %v1741_v39, %v3652_v27  ;;  %v1738_v11 = vmul.f32 %v2748_v41, %v1718_v18  ;;  %v1762_v1 = vpack.c.bf16 %v1756_v55, %v1754_v8  ;;  %v1737_v51 = vmul.f32 %v2748_v41, %v1717_v12  ;;  %v555_v39 = vld [vmem:[%s4465_s7] sm:$0x3] }
 0x28a   : > { %v4591_v18 = vld [vmem:[#allocation22_spill] sm:$0xff]  ;;  %v3944_v41 = vrot.slane %v555_v39, %v4592_v13 }
 0x28b   : > { %v1759_v63 = vpack.c.bf16 %v1751_v42, %v1749_v58  ;;  %v1748_v21 = vmul.f32 %v1738_v11, %v3647_v22  ;;  %1425 = vmatpush1.bf16.msra.mxu0 %v3896_v25  ;;  %v3941_v40 = vrot.slane %v555_v39, %v4591_v18 }
 0x28c   : > { %2525 = vmatpush3.bf16.msra.mxu1 %v3546_v43  ;;  %v1743_v43 = vmul.f32 %v1733_v61, %v3641_v17  ;;  %1426 = vmatprep.subr.bf16.mxu0 %v3900_v35 }
 0x28d   : > { %2526 = vmatprep.subr.bf16.mxu1 %v3549_v44  ;;  %v1745_v44 = vmul.f32 %v1735_v7, %v3641_v17  ;;  %v1758_v54 = vadd.f32 %v1748_v21, %v3655_v28  ;;  %v4582_v28 = vld [vmem:[#allocation31_spill] sm:$0xff] }
 0x28e   : > { %v1753_v23 = vadd.f32 %v1743_v43, %v3652_v27 }
 0x28f   : > { %v1764_v22 = vpack.c.bf16 %v1758_v54, %v1758_v54  ;;  %1427 = vmatpush1.bf16.msra.mxu0 %v3902_v30 }
 0x290   : > { %2527 = vmatpush3.bf16.msra.mxu1 %v3552_v45  ;;  %v1755_v45 = vadd.f32 %v1745_v44, %v3652_v27  ;;  %1428 = vmatprep.subr.bf16.mxu0 %v3906_v36 }
 0x291   : > { %1849 = vmatprep.subr.bf16.mxu1 %v3586_v60  ;;  %v1747_v60 = vmul.f32 %v1737_v51, %v3641_v17  ;;  %v4584_v17 = vld [vmem:[#allocation33_spill] sm:$0xff] }
 0x292   : > { %v1761_v5 = vpack.c.bf16 %v1755_v45, %v1753_v23 }
 0x293   : > { %1798 = vmatmul.mubr.bf16.vlgmr.msra.gmra.mrb[24].mxu1 %v1759_v63  ;;  %v1757_v48 = vadd.f32 %v1747_v60, %v3652_v27  ;;  %v4588_v27 = vld [vmem:[#allocation37_spill] sm:$0xff]  ;;  %1429 = vmatpush1.bf16.msra.mxu0 %v3908_v19 }
 0x294   : > { %1805 = vmatprep.mubr.bf16.mxu1 %v1762_v1  ;;  %1850 = vmatpush1.bf16.msra.mxu1 %v4575_v9 }
 0x295   : > { %1851 = vmatprep.subr.bf16.mxu1 %v4576_v10  ;;  %v1763_v56 = vpack.c.bf16 %v1757_v48, %v1757_v48  ;;  %1430 = vmatprep.subr.bf16.mxu0 %v3912_v0 }
 0x297   : > { %1431 = vmatpush1.bf16.msra.mxu0 %v3914_v52 }
 0x298   : > { %1852 = vmatpush1.bf16.msra.mxu1 %v4577_v14  ;;  %1432 = vmatprep.subr.bf16.mxu0 %v3918_v37 }
 0x299   : > { %1853 = vmatprep.subr.bf16.mxu1 %v4578_v3 }
 0x29b   : > { %1806 = vmatmul.mubr.bf16.gmra.mrb[28].mxu1 %v1761_v5  ;;  %1433 = vmatpush1.bf16.msra.mxu0 %v3920_v46 }
 0x29c   : > { %1813 = vmatprep.mubr.bf16.mxu1 %v1764_v22  ;;  %1854 = vmatpush1.bf16.msra.mxu1 %v4579_v47 }
 0x29d   : > { %1855 = vmatprep.subr.bf16.mxu1 %v4580_v29  ;;  %1434 = vmatprep.subr.bf16.mxu0 %v3924_v49 }
 0x29f   : > { %1435 = vmatpush1.bf16.msra.mxu0 %v3926_v38 }
 0x2a0   : > { %1856 = vmatpush1.bf16.msra.mxu1 %v4581_v50  ;;  %1436 = vmatprep.subr.bf16.mxu0 %v3930_v59 }
 0x2a1   : > { %1857 = vmatprep.subr.bf16.mxu1 %v4582_v28 }
 0x2a3   : > { %1814 = vmatmul.mubr.bf16.gmra.mrb[32].mxu1 %v1763_v56  ;;  %1437 = vmatpush1.bf16.msra.mxu0 %v3932_v62 }
 0x2a4   : > { %1858 = vmatpush1.bf16.msra.mxu1 %v4583_v31  ;;  %1881 = vmatprep.mubr.bf16.mxu1 %v4574_v57 }
 0x2a5   : > { %1859 = vmatprep.subr.bf16.mxu1 %v4584_v17  ;;  %2006 = vmatprep.subr.bf16.mxu0 %v4590_v4 }
 0x2a8   : > { %1860 = vmatpush1.bf16.msra.mxu1 %v4585_v16 }
 0x2a9   : > { %1861 = vmatprep.subr.bf16.mxu1 %v4586_v6 }
 0x2ac   : > { %1862 = vmatpush1.bf16.msra.mxu1 %v4587_v53 }
 0x2ad   : > { %1863 = vmatprep.subr.bf16.mxu1 %v4588_v27 }
 0x2b0   : > { %1864 = vmatpush1.bf16.msra.mxu1 %v4589_v15 }
 0x346   : > { %v1112_v58 = vpop.f32.mrb[12].mxu1 }
 0x347   : > { %v1113_v42 = vadd.f32 %v1112_v58, %v3941_v40  ;;  %v1114_v61 = vpop.f32.mrb[13].mxu1 }
 0x348   : > { %v1115_v7 = vadd.f32 %v1114_v61, %v3944_v41  ;;  %v1116_v8 = vpop.f32.mrb[14].mxu1  ;;  %v648_v61 = vld [vmem:[%s3434_s12 + $0x8] sm:$0xff] }
 0x349   : > { %v2405_v55 = vmul.f32 -1.442695, %v1113_v42  ;;  %v1117_v11 = vadd.f32 %v1116_v8, %v3941_v40  ;;  %v1118_v12 = vpop.f32.mrb[15].mxu1 }
 0x34a   : > { %v2406_v63 = vmul.f32 -1.442695, %v1115_v7  ;;  %v1119_v43 = vadd.f32 %v1118_v12, %v3944_v41 }
 0x34b   : > { %2749 = vpow2.f32 %v2405_v55  ;;  %v2407_v44 = vmul.f32 -1.442695, %v1117_v11  ;;  %v647_v55 = vld [vmem:[%s3434_s12] sm:$0xff]  ;;  %v649_v11 = vld [vmem:[%s3434_s12 + $0x10] sm:$0xff] }
 0x34c   : > { %2751 = vpow2.f32 %v2406_v63  ;;  %v2408_v1 = vmul.f32 -1.442695, %v1119_v43  ;;  %v650_v43 = vld [vmem:[%s3434_s12 + $0x18] sm:$0xff] }
 0x34d   : > { %2753 = vpow2.f32 %v2407_v44 }
 0x34e   : > { %2755 = vpow2.f32 %v2408_v1  ;;  %v1122_v21 = vpop.f32.mrb[16].mxu1 }
 0x34f   : > { %v1123_v9 = vadd.f32 %v1122_v21, %v3941_v40  ;;  %v1124_v23 = vpop.f32.mrb[17].mxu1  ;;  %v2859_v21 = vld [vmem:[%s3426_s28 + $0x8] sm:$0xff] }
 0x350   : > { %v1125_v45 = vadd.f32 %v1124_v23, %v3944_v41  ;;  %v1126_v51 = vpop.f32.mrb[18].mxu1 }
 0x351   : > { %v2409_v10 = vmul.f32 -1.442695, %v1123_v9  ;;  %v1127_v54 = vadd.f32 %v1126_v51, %v3941_v40  ;;  %v1128_v14 = vpop.f32.mrb[19].mxu1  ;;  %v1200_v9 = vsub.f32 %v2859_v21, %v648_v61 }
 0x352   : > { %v2410_v5 = vmul.f32 -1.442695, %v1125_v45  ;;  %v1129_v60 = vadd.f32 %v1128_v14, %v3944_v41  ;;  %v2860_v45 = vld [vmem:[%s3426_s28] sm:$0xff] }
 0x353   : > { %2757 = vpow2.f32 %v2409_v10  ;;  %v2411_v3 = vmul.f32 -1.442695, %v1127_v54  ;;  %v1199_v51 = vsub.f32 %v2860_v45, %v647_v55  ;;  %v2861_v10 = vld [vmem:[%s3426_s28 + $0x10] sm:$0xff]  ;;  %v2865_v45 = vld [vmem:[%s3426_s28 + $0x38] sm:$0xff] }
 0x354   : > { %2759 = vpow2.f32 %v2410_v5  ;;  %v2412_v22 = vmul.f32 -1.442695, %v1129_v60  ;;  %v1201_v54 = vsub.f32 %v2861_v10, %v649_v11  ;;  %v2862_v5 = vld [vmem:[%s3426_s28 + $0x18] sm:$0xff] }
 0x355   : > { %v2750_v47 = vpop.eup %2749  ;;  %2761 = vpow2.f32 %v2411_v3  ;;  %v1202_v60 = vsub.f32 %v2862_v5, %v650_v43 }
 0x356   : > { %v2752_v48 = vpop.eup %2751  ;;  %v1169_v29 = vadd.f32 1.0, %v2750_v47  ;;  %2763 = vpow2.f32 %v2412_v22  ;;  %v1132_v50 = vpop.f32.mrb[20].mxu1 }
 0x357   : > { %v2754_v56 = vpop.eup %2753  ;;  %v1170_v28 = vadd.f32 1.0, %v2752_v48  ;;  %v1133_v31 = vadd.f32 %v1132_v50, %v3941_v40  ;;  %v1134_v17 = vpop.f32.mrb[21].mxu1  ;;  %v652_v48 = vld [vmem:[%s3434_s12 + $0x28] sm:$0xff] }
 0x358   : > { %v2756_v16 = vpop.eup %2755  ;;  %2765 = vrcp.f32 %v1169_v29  ;;  %v1171_v6 = vadd.f32 1.0, %v2754_v56  ;;  %v1135_v53 = vadd.f32 %v1134_v17, %v3944_v41  ;;  %v1136_v27 = vpop.f32.mrb[22].mxu1  ;;  %v3966_v29 = vld [vmem:[%s3434_s12 + $0x20] sm:$0xff] }
 0x359   : > { %2767 = vrcp.f32 %v1170_v28  ;;  %v1172_v15 = vadd.f32 1.0, %v2756_v16  ;;  %v2413_v4 = vmul.f32 -1.442695, %v1133_v31  ;;  %v1137_v39 = vpop.f32.mrb[23].mxu1 }
 0x35a   : > { %2769 = vrcp.f32 %v1171_v6  ;;  %v2414_v58 = vmul.f32 -1.442695, %v1135_v53  ;;  %v654_v6 = vld [vmem:[%s3434_s12 + $0x38] sm:$0xff]  ;;  %v653_v53 = vld [vmem:[%s3434_s12 + $0x30] sm:$0xff] }
 0x35b   : > { %2771 = vrcp.f32 %v1172_v15 }
 0x35c   : > { %2773 = vpow2.f32 %v2413_v4 }
 0x35d   : > { %v2758_v42 = vpop.eup %2757  ;;  %2775 = vpow2.f32 %v2414_v58  ;;  %v2863_v58 = vld [vmem:[%s3426_s28 + $0x28] sm:$0xff] }
 0x35e   : > { %v2760_v7 = vpop.eup %2759  ;;  %v1173_v8 = vadd.f32 1.0, %v2758_v42  ;;  %v1204_v42 = vsub.f32 %v2863_v58, %v652_v48 }
 0x35f   : > { %v2762_v12 = vpop.eup %2761  ;;  %v1174_v63 = vadd.f32 1.0, %v2760_v7  ;;  %v2864_v7 = vld [vmem:[%s3426_s28 + $0x20] sm:$0xff] }
 0x360   : > { %v2764_v44 = vpop.eup %2763  ;;  %2777 = vrcp.f32 %v1173_v8  ;;  %v1175_v1 = vadd.f32 1.0, %v2762_v12  ;;  %v1203_v8 = vsub.f32 %v2864_v7, %v3966_v29 }
 0x361   : > { %2779 = vrcp.f32 %v1174_v63  ;;  %v1176_v23 = vadd.f32 1.0, %v2764_v44 }
 0x362   : > { %v2766_v14 = vpop.eup %2765  ;;  %2781 = vrcp.f32 %v1175_v1 }
 0x363   : > { %v2768_v3 = vpop.eup %2767  ;;  %2783 = vrcp.f32 %v1176_v23  ;;  %v1209_v56 = vmul.f32 %v2766_v14, %v1199_v51  ;;  %v2866_v51 = vld [vmem:[%s3426_s28 + $0x30] sm:$0xff] }
 0x364   : > { %v2770_v22 = vpop.eup %2769  ;;  %v1210_v47 = vmul.f32 %v2768_v3, %v1200_v9  ;;  %v1205_v10 = vsub.f32 %v2866_v51, %v653_v53 }
 0x365   : > { %v2772_v50 = vpop.eup %2771  ;;  %v1211_v28 = vmul.f32 %v2770_v22, %v1201_v54  ;;  %v3979_v23 = vadd.f32 %v1209_v56, %v647_v55 }
 0x366   : > { %v2774_v31 = vpop.eup %2773  ;;  %v2528_v17 = vpop.f32.mrb[24].mxu1  ;;  %v1212_v16 = vmul.f32 %v2772_v50, %v1202_v60  ;;  %v3975_v1 = vadd.f32 %v1210_v47, %v648_v61  ;;  %v655_v50 = vld [vmem:[%s3434_s12 + $0x40] sm:$0xff] }
 0x367   : > { %v2776_v27 = vpop.eup %2775  ;;  %v1177_v15 = vadd.f32 1.0, %v2774_v31  ;;  %v2529_v4 = vpop.f32.mrb[25].mxu1  ;;  %v3970_v39 = vadd.f32 %v1211_v28, %v649_v11  ;;  %v1206_v11 = vsub.f32 %v2865_v45, %v654_v6 }
 0x368   : > { %v1178_v12 = vadd.f32 1.0, %v2776_v27  ;;  %v2530_v63 = vadd.f32 %v2529_v4, %v2528_v17  ;;  %v2531_v44 = vpop.f32.mrb[26].mxu1  ;;  %v3977_v21 = vadd.f32 %v1212_v16, %v650_v43  ;;  %v4593_v4 = vld [vmem:[#allocation40_spill] sm:$0xff] }
 0x369   : > { %2785 = vrcp.f32 %v1177_v15  ;;  %v2532_v9 = vpop.f32.mrb[27].mxu1  ;;  %v1229_v55 = vpack.c.bf16 %v3970_v39, %v3979_v23  ;;  %v656_v15 = vld [vmem:[%s3434_s12 + $0x48] sm:$0xff] }
 0x36a   : > { %v2778_v54 = vpop.eup %2777  ;;  %2787 = vrcp.f32 %v1178_v12  ;;  %v3984_v14 = vadd.f32 %v2530_v63, %v3784_v20  ;;  %v2533_v5 = vadd.f32 %v2532_v9, %v2531_v44  ;;  %v1230_v61 = vpack.c.bf16 %v3977_v21, %v3975_v1  ;;  %v2867_v12 = vld [vmem:[%s3426_s28 + $0x40] sm:$0xff]  ;;  %v4594_v44 = vld [vmem:[#allocation41_spill] sm:$0xff] }
 0x36b   : > { %v2780_v43 = vpop.eup %2779  ;;  %v1213_v28 = vmul.f32 %v2778_v54, %v1203_v8  ;;  %v1207_v63 = vsub.f32 %v2867_v12, %v655_v50 }
 0x36c   : > { %v2782_v60 = vpop.eup %2781  ;;  %v1826_v3 = vmul.f32 0.70710677, %v3984_v14  ;;  %v1803_v22 = vadd.f32 %v2533_v5, %v3784_v20  ;;  %1438 = vmatprep.mubr.bf16.mxu0 %v1230_v61  ;;  %v1214_v47 = vmul.f32 %v2780_v43, %v1204_v42  ;;  %v4595_v43 = vld [vmem:[#allocation42_spill] sm:$0xff] }
 0x36d   : > { %v2784_v56 = vpop.eup %2783  ;;  %1439 = vmatmul.mubr.bf16.vlgmr.msra.gmra.mrb[0].mxu0 %v1229_v55  ;;  %v1215_v31 = vmul.f32 %v2782_v60, %v1205_v10  ;;  %v2868_v10 = vld [vmem:[%s3426_s28 + $0x48] sm:$0xff] }
 0x36e   : > { %2789 = verf.f32 %v1826_v3  ;;  %v1827_v17 = vmul.f32 0.70710677, %v1803_v22  ;;  %v2534_v16 = vpop.f32.mrb[28].mxu1  ;;  %v1216_v27 = vmul.f32 %v2784_v56, %v1206_v11  ;;  %2007 = vmatpush1.bf16.msra.mxu0 %v4593_v4  ;;  %v3999_v8 = vadd.f32 %v1214_v47, %v652_v48 }
 0x36f   : > { %v2535_v58 = vpop.f32.mrb[29].mxu1  ;;  %v3995_v7 = vadd.f32 %v1215_v31, %v653_v53  ;;  %2008 = vmatprep.subr.bf16.mxu0 %v4594_v44  ;;  %v4004_v11 = vadd.f32 %v1213_v28, %v3966_v29  ;;  %v1208_v54 = vsub.f32 %v2868_v10, %v656_v15 }
 0x370   : > { %2791 = verf.f32 %v1827_v17  ;;  %v2536_v42 = vadd.f32 %v2535_v58, %v2534_v16  ;;  %v2537_v9 = vpop.f32.mrb[30].mxu1  ;;  %v4001_v45 = vadd.f32 %v1216_v27, %v654_v6  ;;  %v4596_v6 = vld [vmem:[#allocation43_spill] sm:$0xff]  ;;  %v4597_v17 = vld [vmem:[#allocation44_spill] sm:$0xff]  ;;  %v4598_v58 = vld [vmem:[#allocation45_spill] sm:$0xff] }
 0x371   : > { %v2538_v51 = vpop.f32.mrb[31].mxu1  ;;  %v1231_v48 = vpack.c.bf16 %v3995_v7, %v4004_v11 }
 0x372   : > { %v1808_v53 = vadd.f32 %v2536_v42, %v3784_v20  ;;  %v2539_v5 = vadd.f32 %v2538_v51, %v2537_v9  ;;  %v1232_v61 = vpack.c.bf16 %v4001_v45, %v3999_v8  ;;  %2009 = vmatpush1.bf16.msra.mxu0 %v4595_v43 }
 0x373   : > { %v2786_v55 = vpop.eup %2785  ;;  %2010 = vmatprep.subr.bf16.mxu0 %v4596_v6 }
 0x374   : > { %v2788_v60 = vpop.eup %2787  ;;  %v1828_v3 = vmul.f32 0.70710677, %v1808_v53  ;;  %v1811_v29 = vadd.f32 %v2539_v5, %v3784_v20  ;;  %1448 = vmatprep.mubr.bf16.mxu0 %v1232_v61  ;;  %v1217_v47 = vmul.f32 %v2786_v55, %v1207_v63  ;;  %v4599_v5 = vld [vmem:[#allocation46_spill] sm:$0xff]  ;;  %v4600_v55 = vld [vmem:[#allocation47_spill] sm:$0xff] }
 0x375   : > { %1449 = vmatmul.mubr.bf16.gmra.mrb[4].mxu0 %v1231_v48  ;;  %v1218_v56 = vmul.f32 %v2788_v60, %v1208_v54 }
 0x376   : > { %2793 = verf.f32 %v1828_v3  ;;  %v1829_v28 = vmul.f32 0.70710677, %v1811_v29  ;;  %v2540_v31 = vpop.f32.mrb[32].mxu1  ;;  %2011 = vmatpush1.bf16.msra.mxu0 %v4597_v17  ;;  %v4018_v4 = vadd.f32 %v1217_v47, %v655_v50  ;;  %v1822_v50 = vmul.f32 0.5, %v1803_v22  ;;  %v4601_v3 = vld [vmem:[#allocation48_spill] sm:$0xff]  ;;  %v4602_v47 = vld [vmem:[#allocation49_spill] sm:$0xff] }
 0x377   : > { %v2541_v16 = vpop.f32.mrb[33].mxu1  ;;  %v4016_v27 = vadd.f32 %v1218_v56, %v656_v15  ;;  %2012 = vmatprep.subr.bf16.mxu0 %v4598_v58  ;;  %v1821_v15 = vmul.f32 0.5, %v3984_v14  ;;  %v1824_v17 = vmul.f32 0.5, %v1811_v29  ;;  %v4604_v58 = vld [vmem:[#allocation51_spill] sm:$0xff] }
 0x378   : > { %v2790_v12 = vpop.eup %2789  ;;  %2795 = verf.f32 %v1829_v28  ;;  %v2542_v44 = vadd.f32 %v2541_v16, %v2540_v31  ;;  %v2543_v42 = vpop.f32.mrb[34].mxu1  ;;  %v1233_v43 = vpack.c.bf16 %v4018_v4, %v4018_v4  ;;  %v4603_v28 = vld [vmem:[#allocation50_spill] sm:$0xff]  ;;  %v1823_v31 = vmul.f32 0.5, %v1808_v53 }
 0x379   : > { %v1836_v9 = vadd.f32 1.0, %v2790_v12  ;;  %v2544_v63 = vpop.f32.mrb[35].mxu1  ;;  %v1234_v51 = vpack.c.bf16 %v4016_v27, %v4016_v27 }
 0x37a   : > { %v2792_v10 = vpop.eup %2791  ;;  %v1816_v54 = vadd.f32 %v2542_v44, %v3784_v20  ;;  %2013 = vmatpush1.bf16.msra.mxu0 %v4599_v5 }
 0x37b   : > { %v1837_v61 = vadd.f32 1.0, %v2792_v10  ;;  %1458 = vmatprep.mubr.bf16.mxu0 %v1234_v51  ;;  %2014 = vmatprep.subr.bf16.mxu0 %v4600_v55  ;;  %v1841_v6 = vmul.f32 %v1836_v9, %v1821_v15 }
 0x37c   : > { %v1830_v48 = vmul.f32 0.70710677, %v1816_v54  ;;  %v1825_v63 = vmul.f32 0.5, %v1816_v54 }
 0x37d   : > { %v1842_v60 = vmul.f32 %v1837_v61, %v1822_v50  ;;  %1459 = vmatmul.mubr.bf16.gmra.mrb[8].mxu0 %v1233_v43 }
 0x37e   : > { %2797 = verf.f32 %v1830_v48  ;;  %2015 = vmatpush1.bf16.msra.mxu0 %v4601_v3 }
 0x37f   : > { %v1846_v20 = vpack.c.bf16 %v1842_v60, %v1841_v6  ;;  %2016 = vmatprep.subr.bf16.mxu0 %v4602_v47 }
 0x380   : > { %v2794_v56 = vpop.eup %2793 }
 0x381   : > { %v1838_v14 = vadd.f32 1.0, %v2794_v56  ;;  %1882 = vmatmul.mubr.bf16.vlgmr.msra.gmra.mrb[36].mxu1 %v1846_v20 }
 0x382   : > { %v2796_v22 = vpop.eup %2795  ;;  %1891 = vmatprep.mubr.bf16.mxu1 %v4574_v57  ;;  %2017 = vmatpush1.bf16.msra.mxu0 %v4603_v28 }
 0x383   : > { %v1839_v16 = vadd.f32 1.0, %v2796_v22  ;;  %2018 = vmatprep.subr.bf16.mxu0 %v4604_v58  ;;  %v1843_v12 = vmul.f32 %v1838_v14, %v1823_v31 }
 0x385   : > { %v1844_v44 = vmul.f32 %v1839_v16, %v1824_v17 }
 0x386   : > { %2019 = vmatpush1.bf16.msra.mxu0 %v3879_v32 }
 0x387   : > { %v1847_v42 = vpack.c.bf16 %v1844_v44, %v1843_v12  ;;  %2020 = vmatprep.subr.bf16.mxu0 %v3882_v2 }
 0x388   : > { %v2798_v9 = vpop.eup %2797 }
 0x389   : > { %1892 = vmatmul.mubr.bf16.gmra.mrb[40].mxu1 %v1847_v42  ;;  %v1840_v51 = vadd.f32 1.0, %v2798_v9 }
 0x38a   : > { %1901 = vmatprep.mubr.bf16.mxu1 %v4574_v57  ;;  %2021 = vmatpush1.bf16.msra.mxu0 %v3884_v33  ;;  %v556_v57 = vld [vmem:[%s4605_s13] sm:$0x3] }
 0x38b   : > { %v1845_v53 = vmul.f32 %v1840_v51, %v1825_v63  ;;  %2022 = vmatprep.subr.bf16.mxu0 %v3888_v24  ;;  %v4058_v32 = vrot.slane %v556_v57, %v4591_v18  ;;  %v4061_v2 = vrot.slane %v556_v57, %v4592_v13 }
 0x38d   : > { %v1848_v29 = vpack.c.bf16 %v1845_v53, %v1845_v53 }
 0x38e   : > { %2023 = vmatpush1.bf16.msra.mxu0 %v3890_v34 }
 0x38f   : > { %2024 = vmatprep.subr.bf16.mxu0 %v3894_v26 }
 0x391   : > { %1902 = vmatmul.mubr.bf16.gmra.mrb[44].mxu1 %v1848_v29 }
 0x392   : > { %2025 = vmatpush1.bf16.msra.mxu0 %v3896_v25 }
 0x393   : > { %2026 = vmatprep.subr.bf16.mxu0 %v3900_v35 }
 0x396   : > { %2027 = vmatpush1.bf16.msra.mxu0 %v3902_v30 }
 0x397   : > { %2028 = vmatprep.subr.bf16.mxu0 %v3906_v36 }
 0x39a   : > { %2029 = vmatpush1.bf16.msra.mxu0 %v3908_v19 }
 0x39b   : > { %2030 = vmatprep.subr.bf16.mxu0 %v3912_v0 }
 0x39e   : > { %2031 = vmatpush1.bf16.msra.mxu0 %v3914_v52 }
 0x39f   : > { %2032 = vmatprep.subr.bf16.mxu0 %v3918_v37 }
 0x3a2   : > { %2033 = vmatpush1.bf16.msra.mxu0 %v3920_v46 }
 0x3a3   : > { %2034 = vmatprep.subr.bf16.mxu0 %v3924_v49 }
 0x3a6   : > { %2035 = vmatpush1.bf16.msra.mxu0 %v3926_v38 }
 0x3a7   : > { %2036 = vmatprep.subr.bf16.mxu0 %v3930_v59 }
 0x3aa   : > { %2037 = vmatpush1.bf16.msra.mxu0 %v3932_v62 }
 0x440   : > { %v1440_v33 = vpop.f32.mrb[0].mxu0 }
 0x441   : > { %v4064_v24 = vadd.f32 %v1440_v33, %v4058_v32  ;;  %v1442_v34 = vpop.f32.mrb[1].mxu0 }
 0x442   : > { %v4067_v26 = vadd.f32 %v1442_v34, %v4061_v2  ;;  %v1444_v25 = vpop.f32.mrb[2].mxu0 }
 0x443   : > { %v4070_v35 = vadd.f32 %v1444_v25, %v4058_v32  ;;  %v1446_v30 = vpop.f32.mrb[3].mxu0  ;;  %v1487_v0 = vmul.f32 %v4064_v24, %v4064_v24 }
 0x444   : > { %v4073_v36 = vadd.f32 %v1446_v30, %v4061_v2  ;;  %v1467_v19 = vadd.f32 %v4067_v26, %v4064_v24  ;;  %v1488_v52 = vmul.f32 %v4067_v26, %v4067_v26 }
 0x445   : > { %v1489_v46 = vmul.f32 %v4070_v35, %v4070_v35 }
 0x446   : > { %1468 = vadd.xlane.f32.xlu0 %v1467_v19  ;;  %v1470_v37 = vadd.f32 %v4073_v36, %v4070_v35  ;;  %v1490_v49 = vmul.f32 %v4073_v36, %v4073_v36  ;;  %v1497_v59 = vadd.f32 %v1488_v52, %v1487_v0 }
 0x448   : > { %v1450_v38 = vpop.f32.mrb[4].mxu0  ;;  %1471 = vadd.xlane.f32.xlu1 %v1470_v37  ;;  %v1500_v15 = vadd.f32 %v1490_v49, %v1489_v46 }
 0x449   : > { %v4088_v62 = vadd.f32 %v1450_v38, %v4058_v32  ;;  %v1452_v10 = vpop.f32.mrb[5].mxu0 }
 0x44a   : > { %v4091_v54 = vadd.f32 %v1452_v10, %v4061_v2  ;;  %v1454_v5 = vpop.f32.mrb[6].mxu0  ;;  %1498 = vadd.xlane.f32.xlu0 %v1497_v59 }
 0x44b   : > { %v4094_v50 = vadd.f32 %v1454_v5, %v4058_v32  ;;  %v1456_v61 = vpop.f32.mrb[7].mxu0  ;;  %v1491_v48 = vmul.f32 %v4088_v62, %v4088_v62 }
 0x44c   : > { %v4097_v43 = vadd.f32 %v1456_v61, %v4061_v2  ;;  %1501 = vadd.xlane.f32.xlu1 %v1500_v15  ;;  %v1473_v55 = vadd.f32 %v4091_v54, %v4088_v62  ;;  %v1492_v6 = vmul.f32 %v4091_v54, %v4091_v54 }
 0x44d   : > { %v1493_v3 = vmul.f32 %v4094_v50, %v4094_v50 }
 0x44e   : > { %1474 = vadd.xlane.f32.xlu0 %v1473_v55  ;;  %v1476_v60 = vadd.f32 %v4097_v43, %v4094_v50  ;;  %v1494_v20 = vmul.f32 %v4097_v43, %v4097_v43  ;;  %v1503_v56 = vadd.f32 %v1492_v6, %v1491_v48 }
 0x450   : > { %v1460_v47 = vpop.f32.mrb[8].mxu0  ;;  %1477 = vadd.xlane.f32.xlu1 %v1476_v60  ;;  %v1506_v17 = vadd.f32 %v1494_v20, %v1493_v3 }
 0x451   : > { %v4112_v14 = vadd.f32 %v1460_v47, %v4058_v32  ;;  %v1462_v22 = vpop.f32.mrb[9].mxu0 }
 0x452   : > { %v4115_v28 = vadd.f32 %v1462_v22, %v4061_v2  ;;  %v1464_v31 = vpop.f32.mrb[10].mxu0  ;;  %1504 = vadd.xlane.f32.xlu0 %v1503_v56 }
 0x453   : > { %v1465_v16 = vpop.f32.mrb[11].mxu0  ;;  %v1495_v44 = vmul.f32 %v4112_v14, %v4112_v14 }
 0x454   : > { %v1883_v58 = vpop.f32.mrb[36].mxu1  ;;  %1507 = vadd.xlane.f32.xlu1 %v1506_v17  ;;  %v1479_v12 = vadd.f32 %v4115_v28, %v4112_v14  ;;  %v1496_v42 = vmul.f32 %v4115_v28, %v4115_v28 }
 0x455   : > { %v1884_v9 = vadd.f32 %v1883_v58, %v3941_v40  ;;  %v1885_v63 = vpop.f32.mrb[37].mxu1 }
 0x456   : > { %v1886_v51 = vadd.f32 %v1885_v63, %v3944_v41  ;;  %v1887_v53 = vpop.f32.mrb[38].mxu1  ;;  %1480 = vadd.xlane.f32.xlu0 %v1479_v12  ;;  %v1509_v30 = vadd.f32 %v1496_v42, %v1495_v44 }
 0x457   : > { %v2447_v29 = vmul.f32 -1.442695, %v1884_v9  ;;  %v1888_v57 = vadd.f32 %v1887_v53, %v3941_v40  ;;  %v1889_v33 = vpop.f32.mrb[39].mxu1 }
 0x458   : > { %v2448_v34 = vmul.f32 -1.442695, %v1886_v51  ;;  %v1890_v25 = vadd.f32 %v1889_v33, %v3944_v41  ;;  %v1635_v51 = vld [vmem:[%s3434_s12 + $0x58] sm:$0xff] }
 0x459   : > { %2799 = vpow2.f32 %v2447_v29  ;;  %v2449_v19 = vmul.f32 -1.442695, %v1888_v57  ;;  %v1636_v29 = vld [vmem:[%s3434_s12 + $0x60] sm:$0xff]  ;;  %v1634_v57 = vld [vmem:[%s3434_s12 + $0x50] sm:$0xff] }
 0x45a   : > { %2801 = vpow2.f32 %v2448_v34  ;;  %v2450_v0 = vmul.f32 -1.442695, %v1890_v25  ;;  %1510 = vadd.xlane.f32.xlu0 %v1509_v30  ;;  %v1637_v25 = vld [vmem:[%s3434_s12 + $0x68] sm:$0xff] }
 0x45b   : > { %2803 = vpow2.f32 %v2449_v19 }
 0x45c   : > { %2805 = vpow2.f32 %v2450_v0  ;;  %v1893_v52 = vpop.f32.mrb[40].mxu1  ;;  %v2869_v0 = vld [vmem:[%s3426_s28 + $0x58] sm:$0xff] }
 0x45d   : > { %v1894_v37 = vadd.f32 %v1893_v52, %v3941_v40  ;;  %v1895_v46 = vpop.f32.mrb[41].mxu1  ;;  %v1971_v52 = vsub.f32 %v2869_v0, %v1635_v51 }
 0x45e   : > { %v1896_v49 = vadd.f32 %v1895_v46, %v3944_v41  ;;  %v1897_v38 = vpop.f32.mrb[42].mxu1 }
 0x45f   : > { %v2451_v59 = vmul.f32 -1.442695, %v1894_v37  ;;  %v1898_v10 = vadd.f32 %v1897_v38, %v3941_v40  ;;  %v1899_v5 = vpop.f32.mrb[43].mxu1  ;;  %v2870_v37 = vld [vmem:[%s3426_s28 + $0x60] sm:$0xff] }
 0x460   : > { %v2452_v15 = vmul.f32 -1.442695, %v1896_v49  ;;  %v1900_v61 = vadd.f32 %v1899_v5, %v3944_v41  ;;  %v1972_v46 = vsub.f32 %v2870_v37, %v1636_v29  ;;  %v2871_v49 = vld [vmem:[%s3426_s28 + $0x50] sm:$0xff]  ;;  %v2872_v5 = vld [vmem:[%s3426_s28 + $0x68] sm:$0xff] }
 0x461   : > { %2807 = vpow2.f32 %v2451_v59  ;;  %v2453_v55 = vmul.f32 -1.442695, %v1898_v10  ;;  %v1970_v38 = vsub.f32 %v2871_v49, %v1634_v57 }
 0x462   : > { %2809 = vpow2.f32 %v2452_v15  ;;  %v2454_v48 = vmul.f32 -1.442695, %v1900_v61  ;;  %v1973_v15 = vsub.f32 %v2872_v5, %v1637_v25  ;;  %v1643_v5 = vld [vmem:[%s3434_s12 + $0x98] sm:$0xff] }
 0x463   : > { %v2800_v6 = vpop.eup %2799  ;;  %2811 = vpow2.f32 %v2453_v55 }
 0x464   : > { %v2802_v60 = vpop.eup %2801  ;;  %v1940_v3 = vadd.f32 1.0, %v2800_v6  ;;  %2813 = vpow2.f32 %v2454_v48  ;;  %v1903_v20 = vpop.f32.mrb[44].mxu1 }
 0x465   : > { %v2804_v47 = vpop.eup %2803  ;;  %v1941_v56 = vadd.f32 1.0, %v2802_v60  ;;  %v1904_v22 = vadd.f32 %v1903_v20, %v3941_v40  ;;  %v1905_v31 = vpop.f32.mrb[45].mxu1  ;;  %v1639_v20 = vld [vmem:[%s3434_s12 + $0x78] sm:$0xff] }
 0x466   : > { %v2806_v17 = vpop.eup %2805  ;;  %2815 = vrcp.f32 %v1940_v3  ;;  %v1942_v16 = vadd.f32 1.0, %v2804_v47  ;;  %v1906_v58 = vadd.f32 %v1905_v31, %v3944_v41  ;;  %v1907_v12 = vpop.f32.mrb[46].mxu1  ;;  %v1640_v31 = vld [vmem:[%s3434_s12 + $0x80] sm:$0xff] }
 0x467   : > { %2817 = vrcp.f32 %v1941_v56  ;;  %v1943_v44 = vadd.f32 1.0, %v2806_v17  ;;  %v2455_v42 = vmul.f32 -1.442695, %v1904_v22  ;;  %v1908_v9 = vpop.f32.mrb[47].mxu1  ;;  %v1638_v22 = vld [vmem:[%s3434_s12 + $0x70] sm:$0xff]  ;;  %v1641_v12 = vld [vmem:[%s3434_s12 + $0x88] sm:$0xff] }
 0x468   : > { %2819 = vrcp.f32 %v1942_v16  ;;  %v2456_v63 = vmul.f32 -1.442695, %v1906_v58 }
 0x469   : > { %2821 = vrcp.f32 %v1943_v44 }
 0x46a   : > { %2823 = vpow2.f32 %v2455_v42 }
 0x46b   : > { %v2808_v40 = vpop.eup %2807  ;;  %2825 = vpow2.f32 %v2456_v63  ;;  %v2873_v63 = vld [vmem:[%s3426_s28 + $0x78] sm:$0xff] }
 0x46c   : > { %v2810_v53 = vpop.eup %2809  ;;  %v1944_v41 = vadd.f32 1.0, %v2808_v40  ;;  %v1975_v40 = vsub.f32 %v2873_v63, %v1639_v20 }
 0x46d   : > { %v2812_v33 = vpop.eup %2811  ;;  %v1945_v34 = vadd.f32 1.0, %v2810_v53 }
 0x46e   : > { %v2814_v30 = vpop.eup %2813  ;;  %2827 = vrcp.f32 %v1944_v41  ;;  %v1946_v19 = vadd.f32 1.0, %v2812_v33  ;;  %v2874_v41 = vld [vmem:[%s3426_s28 + $0x70] sm:$0xff] }
 0x46f   : > { %2829 = vrcp.f32 %v1945_v34  ;;  %v1947_v59 = vadd.f32 1.0, %v2814_v30  ;;  %v1974_v33 = vsub.f32 %v2874_v41, %v1638_v22  ;;  %v2875_v34 = vld [vmem:[%s3426_s28 + $0x80] sm:$0xff] }
 0x470   : > { %v2816_v10 = vpop.eup %2815  ;;  %2831 = vrcp.f32 %v1946_v19  ;;  %v1976_v30 = vsub.f32 %v2875_v34, %v1640_v31 }
 0x471   : > { %v2818_v61 = vpop.eup %2817  ;;  %2833 = vrcp.f32 %v1947_v59  ;;  %v1980_v60 = vmul.f32 %v2816_v10, %v1970_v38  ;;  %v1642_v59 = vld [vmem:[%s3434_s12 + $0x90] sm:$0xff]  ;;  %s4607_s12 = sld [smem:[#allocation55_spill]] }
 0x472   : > { %v2820_v55 = vpop.eup %2819  ;;  %v1981_v48 = vmul.f32 %v2818_v61, %v1971_v52 }
 0x473   : > { %v2822_v6 = vpop.eup %2821  ;;  %v1982_v3 = vmul.f32 %v2820_v55, %v1972_v46  ;;  %v4152_v53 = vadd.f32 %v1980_v60, %v1634_v57 }
 0x474   : > { %v2824_v47 = vpop.eup %2823  ;;  %v1983_v56 = vmul.f32 %v2822_v6, %v1973_v15  ;;  %v4147_v42 = vadd.f32 %v1981_v48, %v1635_v51  ;;  %v2876_v51 = vld [vmem:[%s3426_s28 + $0x88] sm:$0xff]  ;;  %v2877_v48 = vld [vmem:[%s3426_s28 + $0x90] sm:$0xff] }
 0x475   : > { %v2826_v17 = vpop.eup %2825  ;;  %v1948_v16 = vadd.f32 1.0, %v2824_v47  ;;  %v4144_v58 = vadd.f32 %v1982_v3, %v1636_v29  ;;  %v1977_v0 = vsub.f32 %v2876_v51, %v1641_v12  ;;  %v1978_v6 = vsub.f32 %v2877_v48, %v1642_v59  ;;  %v2878_v3 = vld [vmem:[%s3426_s28 + $0x98] sm:$0xff]  ;;  %s4606_s28 = sld [smem:[#allocation54_spill]] }
 0x476   : > { %v1949_v44 = vadd.f32 1.0, %v2826_v17  ;;  %v4149_v9 = vadd.f32 %v1983_v56, %v1637_v25  ;;  %v1979_v47 = vsub.f32 %v2878_v3, %v1643_v5 }
 0x477   : > { %2835 = vrcp.f32 %v1948_v16  ;;  %v2000_v52 = vpack.c.bf16 %v4144_v58, %v4152_v53 }
 0x478   : > { %v2828_v19 = vpop.eup %2827  ;;  %2837 = vrcp.f32 %v1949_v44  ;;  %v2001_v29 = vpack.c.bf16 %v4149_v9, %v4147_v42 }
 0x479   : > { %v2830_v25 = vpop.eup %2829  ;;  %v1984_v49 = vmul.f32 %v2828_v19, %v1974_v33 }
 0x47a   : > { %v2832_v57 = vpop.eup %2831  ;;  %2038 = vmatprep.mubr.bf16.mxu0 %v2001_v29  ;;  %v1985_v37 = vmul.f32 %v2830_v25, %v1975_v40 }
 0x47b   : > { %v2834_v46 = vpop.eup %2833  ;;  %2039 = vmatmul.mubr.bf16.vlgmr.msra.gmra.mrb[12].mxu0 %v2000_v52  ;;  %v1986_v38 = vmul.f32 %v2832_v57, %v1976_v30  ;;  %v4170_v60 = vadd.f32 %v1984_v49, %v1638_v22 }
 0x47c   : > { %v1987_v10 = vmul.f32 %v2834_v46, %v1977_v0  ;;  %v4165_v61 = vadd.f32 %v1985_v37, %v1639_v20 }
 0x47d   : > { %v4163_v15 = vadd.f32 %v1986_v38, %v1640_v31 }
 0x47e   : > { %v4167_v55 = vadd.f32 %v1987_v10, %v1641_v12 }
 0x47f   : > { %v2002_v16 = vpack.c.bf16 %v4163_v15, %v4170_v60 }
 0x480   : > { %v2003_v56 = vpack.c.bf16 %v4167_v55, %v4165_v61 }
 0x481   : > { %v2836_v17 = vpop.eup %2835 }
 0x482   : > { %v2838_v44 = vpop.eup %2837  ;;  %2048 = vmatprep.mubr.bf16.mxu0 %v2003_v56  ;;  %v1988_v31 = vmul.f32 %v2836_v17, %v1978_v6 }
 0x483   : > { %2049 = vmatmul.mubr.bf16.gmra.mrb[16].mxu0 %v2002_v16  ;;  %v1989_v20 = vmul.f32 %v2838_v44, %v1979_v47 }
 0x484   : > { %v4179_v63 = vadd.f32 %v1988_v31, %v1642_v59 }
 0x485   : > { %v4177_v12 = vadd.f32 %v1989_v20, %v1643_v5 }
 0x486   : > { %v2004_v40 = vpack.c.bf16 %v4179_v63, %v4179_v63 }
 0x487   : > { %v2005_v22 = vpack.c.bf16 %v4177_v12, %v4177_v12 }
 0x489   : > { %2058 = vmatprep.mubr.bf16.mxu0 %v2005_v22 }
 0x48b   : > { %2059 = vmatmul.mubr.bf16.gmra.mrb[20].mxu0 %v2004_v40 }
 0x4d3   : > { %v1469_v41 = vpop.xlane.xlu0 %1468 }
 0x4d4   : > { %v1482_v33 = vmul.f32 0.00390625, %v1469_v41 }
 0x4d5   : > { %v1472_v34 = vpop.xlane.xlu1 %1471 }
 0x4d6   : > { %v1483_v30 = vmul.f32 0.00390625, %v1472_v34  ;;  %v1517_v29 = vmul.f32 %v1482_v33, %v1482_v33  ;;  %v552_v34 = vld [vmem:[%s4606_s28] sm:$0x3] }
 0x4d7   : > { %v1499_v19 = vpop.xlane.xlu0 %1498 }
 0x4d8   : > { %v1512_v51 = vmul.f32 0.00390625, %v1499_v19  ;;  %v1518_v52 = vmul.f32 %v1483_v30, %v1483_v30 }
 0x4d9   : > { %v1502_v0 = vpop.xlane.xlu1 %1501 }
 0x4da   : > { %v1522_v25 = vsub.f32 %v1512_v51, %v1517_v29  ;;  %v1513_v57 = vmul.f32 0.00390625, %v1502_v0  ;;  %v553_v51 = vld [vmem:[%s4607_s12] sm:$0x3] }
 0x4db   : > { %v1475_v37 = vpop.xlane.xlu0 %1474 }
 0x4dc   : > { %v1527_v46 = vmax.f32 %v1522_v25, 0.0  ;;  %v1523_v49 = vsub.f32 %v1513_v57, %v1518_v52  ;;  %v4185_v38 = vmul.f32 0.00390625, %v1475_v37  ;;  %v1532_v37 = vsub.f32 %v4064_v24, %v1482_v33 }
 0x4dd   : > { %v1478_v59 = vpop.xlane.xlu1 %1477  ;;  %v1535_v24 = vsub.f32 %v4073_v36, %v1483_v30 }
 0x4de   : > { %v1542_v10 = vadd.f32 1e-05, %v1527_v46  ;;  %v1528_v5 = vmax.f32 %v1523_v49, 0.0  ;;  %v4187_v48 = vmul.f32 0.00390625, %v1478_v59  ;;  %v1519_v47 = vmul.f32 %v4185_v38, %v4185_v38 }
 0x4df   : > { %v1505_v6 = vpop.xlane.xlu0 %1504  ;;  %v1533_v46 = vsub.f32 %v4067_v26, %v1482_v33  ;;  %v4206_v49 = vrot.slane %v552_v34, %v4591_v18  ;;  %v4209_v59 = vrot.slane %v552_v34, %v4592_v13 }
 0x4e0   : > { %2839 = vrsqrt.f32 %v1542_v10  ;;  %v1543_v3 = vadd.f32 1e-05, %v1528_v5  ;;  %v1514_v56 = vmul.f32 0.00390625, %v1505_v6  ;;  %v1520_v44 = vmul.f32 %v4187_v48, %v4187_v48 }
 0x4e1   : > { %v1508_v17 = vpop.xlane.xlu1 %1507  ;;  %v4212_v5 = vrot.slane %v553_v51, %v4591_v18  ;;  %v4215_v6 = vrot.slane %v553_v51, %v4592_v13 }
 0x4e2   : > { %2841 = vrsqrt.f32 %v1543_v3  ;;  %v1524_v16 = vsub.f32 %v1514_v56, %v1519_v47  ;;  %v1515_v31 = vmul.f32 0.00390625, %v1508_v17  ;;  %v1534_v47 = vsub.f32 %v4070_v35, %v1483_v30 }
 0x4e3   : > { %v1481_v20 = vpop.xlane.xlu0 %1480  ;;  %v1536_v30 = vsub.f32 %v4088_v62, %v4185_v38 }
 0x4e4   : > { %v1529_v22 = vmax.f32 %v1524_v16, 0.0  ;;  %v1525_v40 = vsub.f32 %v1515_v31, %v1520_v44  ;;  %v4193_v41 = vmul.f32 0.00390625, %v1481_v20 }
 0x4e6   : > { %v1544_v19 = vadd.f32 1e-05, %v1529_v22  ;;  %v1530_v29 = vmax.f32 %v1525_v40, 0.0  ;;  %v1521_v52 = vmul.f32 %v4193_v41, %v4193_v41  ;;  %v1537_v40 = vsub.f32 %v4091_v54, %v4185_v38 }
 0x4e7   : > { %v1511_v0 = vpop.xlane.xlu0 %1510 }
 0x4e8   : > { %2843 = vrsqrt.f32 %v1544_v19  ;;  %v1545_v25 = vadd.f32 1e-05, %v1530_v29  ;;  %v1516_v57 = vmul.f32 0.00390625, %v1511_v0 }
 0x4ea   : > { %v2840_v10 = vpop.eup %2839  ;;  %2845 = vrsqrt.f32 %v1545_v25  ;;  %v1526_v3 = vsub.f32 %v1516_v57, %v1521_v52  ;;  %v1538_v25 = vsub.f32 %v4094_v50, %v4187_v48  ;;  %v1539_v52 = vsub.f32 %v4097_v43, %v4187_v48 }
 0x4eb   : > { %v1552_v26 = vmul.f32 %v2840_v10, %v1532_v37  ;;  %v1553_v33 = vmul.f32 %v2840_v10, %v1533_v46  ;;  %v1540_v10 = vsub.f32 %v4112_v14, %v4193_v41 }
 0x4ec   : > { %v2842_v56 = vpop.eup %2841  ;;  %v1531_v17 = vmax.f32 %v1526_v3, 0.0  ;;  %v1541_v3 = vsub.f32 %v4115_v28, %v4193_v41 }
 0x4ed   : > { %v1573_v16 = vmul.f32 %v4206_v49, %v1552_v26  ;;  %v1574_v44 = vmul.f32 %v4209_v59, %v1553_v33  ;;  %v1554_v31 = vmul.f32 %v2842_v56, %v1534_v47  ;;  %v1555_v18 = vmul.f32 %v2842_v56, %v1535_v24 }
 0x4ee   : > { %v1546_v20 = vadd.f32 1e-05, %v1531_v17 }
 0x4ef   : > { %v1594_v13 = vadd.f32 %v4212_v5, %v1573_v16  ;;  %v1595_v22 = vadd.f32 %v4215_v6, %v1574_v44  ;;  %v1575_v35 = vmul.f32 %v4206_v49, %v1554_v31  ;;  %v1576_v36 = vmul.f32 %v4209_v59, %v1555_v18 }
 0x4f0   : > { %2847 = vrsqrt.f32 %v1546_v20 }
 0x4f1   : > { %v1604_v34 = vadd.f32 %v1594_v13, %v3979_v23  ;;  %v1605_v19 = vadd.f32 %v1595_v22, %v3975_v1  ;;  %v1596_v29 = vadd.f32 %v4212_v5, %v1575_v35  ;;  %v1597_v51 = vadd.f32 %v4215_v6, %v1576_v36 }
 0x4f2   : > { %v2844_v0 = vpop.eup %2843 }
 0x4f3   : > { %1614 = vst [vmem:[%s4238_s14] sm:$0xff] %v1604_v34  ;;  %1615 = vst [vmem:[%s4238_s14 + $0x8] sm:$0xff] %v1605_v19  ;;  %v1606_v1 = vadd.f32 %v1596_v29, %v3970_v39  ;;  %v1607_v23 = vadd.f32 %v1597_v51, %v3977_v21  ;;  %v1556_v62 = vmul.f32 %v2844_v0, %v1536_v30 }
 0x4f4   : > { %v1557_v54 = vmul.f32 %v2844_v0, %v1537_v40  ;;  %v2846_v38 = vpop.eup %2845 }
 0x4f5   : > { %1616 = vst [vmem:[%s4238_s14 + $0x10] sm:$0xff] %v1606_v1  ;;  %1617 = vst [vmem:[%s4238_s14 + $0x18] sm:$0xff] %v1607_v23  ;;  %v1577_v50 = vmul.f32 %v4206_v49, %v1556_v62  ;;  %v1558_v48 = vmul.f32 %v2846_v38, %v1538_v25  ;;  %v1559_v57 = vmul.f32 %v2846_v38, %v1539_v52 }
 0x4f6   : > { %v1578_v43 = vmul.f32 %v4209_v59, %v1557_v54 }
 0x4f7   : > { %v1598_v37 = vadd.f32 %v4212_v5, %v1577_v50  ;;  %v1579_v39 = vmul.f32 %v4206_v49, %v1558_v48  ;;  %v1580_v21 = vmul.f32 %v4209_v59, %v1559_v57 }
 0x4f8   : > { %v1599_v46 = vadd.f32 %v4215_v6, %v1578_v43 }
 0x4f9   : > { %v1608_v47 = vadd.f32 %v1598_v37, %v4004_v11  ;;  %v1600_v26 = vadd.f32 %v4212_v5, %v1579_v39  ;;  %v1601_v33 = vadd.f32 %v4215_v6, %v1580_v21 }
 0x4fa   : > { %v1609_v24 = vadd.f32 %v1599_v46, %v3999_v8  ;;  %v2848_v56 = vpop.eup %2847 }
 0x4fb   : > { %1618 = vst [vmem:[%s4238_s14 + $0x20] sm:$0xff] %v1608_v47  ;;  %v1610_v17 = vadd.f32 %v1600_v26, %v3995_v7  ;;  %v1611_v14 = vadd.f32 %v1601_v33, %v4001_v45  ;;  %v1560_v16 = vmul.f32 %v2848_v56, %v1540_v10  ;;  %v1561_v44 = vmul.f32 %v2848_v56, %v1541_v3 }
 0x4fc   : > { %1619 = vst [vmem:[%s4238_s14 + $0x28] sm:$0xff] %v1609_v24 }
 0x4fd   : > { %1620 = vst [vmem:[%s4238_s14 + $0x30] sm:$0xff] %v1610_v17  ;;  %1621 = vst [vmem:[%s4238_s14 + $0x38] sm:$0xff] %v1611_v14  ;;  %v1581_v11 = vmul.f32 %v4206_v49, %v1560_v16  ;;  %v1582_v8 = vmul.f32 %v4209_v59, %v1561_v44 }
 0x4ff   : > { %v1602_v28 = vadd.f32 %v4212_v5, %v1581_v11  ;;  %v1603_v41 = vadd.f32 %v4215_v6, %v1582_v8 }
 0x501   : > { %v1612_v31 = vadd.f32 %v1602_v28, %v4018_v4  ;;  %v1613_v18 = vadd.f32 %v1603_v41, %v4016_v27 }
 0x503   : > { %1622 = vst [vmem:[%s4238_s14 + $0x40] sm:$0xff] %v1612_v31  ;;  %1623 = vst [vmem:[%s4238_s14 + $0x48] sm:$0xff] %v1613_v18 }
 0x54e   : > { %v2040_v7 = vpop.f32.mrb[12].mxu0 }
 0x54f   : > { %v4275_v45 = vadd.f32 %v2040_v7, %v4058_v32  ;;  %v2042_v20 = vpop.f32.mrb[13].mxu0 }
 0x550   : > { %v4278_v13 = vadd.f32 %v2042_v20, %v4061_v2  ;;  %v2044_v22 = vpop.f32.mrb[14].mxu0 }
 0x551   : > { %v4281_v35 = vadd.f32 %v2044_v22, %v4058_v32  ;;  %v2046_v36 = vpop.f32.mrb[15].mxu0  ;;  %v2087_v4 = vmul.f32 %v4275_v45, %v4275_v45 }
 0x552   : > { %v4284_v30 = vadd.f32 %v2046_v36, %v4061_v2  ;;  %v2067_v27 = vadd.f32 %v4278_v13, %v4275_v45  ;;  %v2088_v40 = vmul.f32 %v4278_v13, %v4278_v13 }
 0x553   : > { %v2089_v19 = vmul.f32 %v4281_v35, %v4281_v35 }
 0x554   : > { %2068 = vadd.xlane.f32.xlu1 %v2067_v27  ;;  %v2070_v34 = vadd.f32 %v4284_v30, %v4281_v35  ;;  %v2090_v29 = vmul.f32 %v4284_v30, %v4284_v30  ;;  %v2097_v0 = vadd.f32 %v2088_v40, %v2087_v4 }
 0x556   : > { %v2050_v51 = vpop.f32.mrb[16].mxu0  ;;  %2071 = vadd.xlane.f32.xlu0 %v2070_v34  ;;  %v2100_v62 = vadd.f32 %v2090_v29, %v2089_v19 }
 0x557   : > { %v4299_v25 = vadd.f32 %v2050_v51, %v4058_v32  ;;  %v2052_v52 = vpop.f32.mrb[17].mxu0 }
 0x558   : > { %v4302_v1 = vadd.f32 %v2052_v52, %v4061_v2  ;;  %v2054_v23 = vpop.f32.mrb[18].mxu0  ;;  %2098 = vadd.xlane.f32.xlu1 %v2097_v0 }
 0x559   : > { %v4305_v54 = vadd.f32 %v2054_v23, %v4058_v32  ;;  %v2056_v38 = vpop.f32.mrb[19].mxu0  ;;  %v2091_v48 = vmul.f32 %v4299_v25, %v4299_v25 }
 0x55a   : > { %v4308_v50 = vadd.f32 %v2056_v38, %v4061_v2  ;;  %2101 = vadd.xlane.f32.xlu0 %v2100_v62  ;;  %v2073_v43 = vadd.f32 %v4302_v1, %v4299_v25  ;;  %v2092_v57 = vmul.f32 %v4302_v1, %v4302_v1 }
 0x55b   : > { %v2093_v46 = vmul.f32 %v4305_v54, %v4305_v54 }
 0x55c   : > { %2074 = vadd.xlane.f32.xlu1 %v2073_v43  ;;  %v2076_v37 = vadd.f32 %v4308_v50, %v4305_v54  ;;  %v2094_v39 = vmul.f32 %v4308_v50, %v4308_v50  ;;  %v2103_v10 = vadd.f32 %v2092_v57, %v2091_v48 }
 0x55e   : > { %v2060_v21 = vpop.f32.mrb[20].mxu0  ;;  %2077 = vadd.xlane.f32.xlu0 %v2076_v37  ;;  %v2106_v33 = vadd.f32 %v2094_v39, %v2093_v46 }
 0x55f   : > { %v4323_v3 = vadd.f32 %v2060_v21, %v4058_v32  ;;  %v2062_v47 = vpop.f32.mrb[21].mxu0 }
 0x560   : > { %v4326_v24 = vadd.f32 %v2062_v47, %v4061_v2  ;;  %v2064_v26 = vpop.f32.mrb[22].mxu0  ;;  %2104 = vadd.xlane.f32.xlu1 %v2103_v10 }
 0x561   : > { %v2065_v56 = vpop.f32.mrb[23].mxu0  ;;  %v2095_v14 = vmul.f32 %v4323_v3, %v4323_v3 }
 0x562   : > { %2107 = vadd.xlane.f32.xlu0 %v2106_v33  ;;  %v2079_v17 = vadd.f32 %v4326_v24, %v4323_v3  ;;  %v2096_v16 = vmul.f32 %v4326_v24, %v4326_v24 }
 0x564   : > { %2080 = vadd.xlane.f32.xlu1 %v2079_v17  ;;  %v2109_v32 = vadd.f32 %v2096_v16, %v2095_v14 }
 0x568   : > { %2110 = vadd.xlane.f32.xlu1 %v2109_v32 }
 0x5e1   : > { %v2069_v44 = vpop.xlane.xlu1 %2068 }
 0x5e2   : > { %v2082_v2 = vmul.f32 0.00390625, %v2069_v44 }
 0x5e3   : > { %v2072_v11 = vpop.xlane.xlu0 %2071 }
 0x5e4   : > { %v2083_v8 = vmul.f32 0.00390625, %v2072_v11  ;;  %v2117_v41 = vmul.f32 %v2082_v2, %v2082_v2  ;;  %v2132_v14 = vsub.f32 %v4275_v45, %v2082_v2  ;;  %v2133_v16 = vsub.f32 %v4278_v13, %v2082_v2 }
 0x5e5   : > { %v2099_v28 = vpop.xlane.xlu1 %2098 }
 0x5e6   : > { %v2112_v31 = vmul.f32 0.00390625, %v2099_v28  ;;  %v2118_v20 = vmul.f32 %v2083_v8, %v2083_v8  ;;  %v2134_v11 = vsub.f32 %v4281_v35, %v2083_v8  ;;  %v2135_v28 = vsub.f32 %v4284_v30, %v2083_v8 }
 0x5e7   : > { %v2102_v18 = vpop.xlane.xlu0 %2101 }
 0x5e8   : > { %v2122_v7 = vsub.f32 %v2112_v31, %v2117_v41  ;;  %v2113_v22 = vmul.f32 0.00390625, %v2102_v18 }
 0x5e9   : > { %v2075_v36 = vpop.xlane.xlu1 %2074 }
 0x5ea   : > { %v2127_v27 = vmax.f32 %v2122_v7, 0.0  ;;  %v2123_v4 = vsub.f32 %v2113_v22, %v2118_v20  ;;  %v2084_v40 = vmul.f32 0.00390625, %v2075_v36 }
 0x5eb   : > { %v2078_v34 = vpop.xlane.xlu0 %2077 }
 0x5ec   : > { %v2142_v19 = vadd.f32 1e-05, %v2127_v27  ;;  %v2128_v29 = vmax.f32 %v2123_v4, 0.0  ;;  %v4334_v51 = vmul.f32 0.00390625, %v2078_v34  ;;  %v2119_v23 = vmul.f32 %v2084_v40, %v2084_v40 }
 0x5ed   : > { %v2105_v0 = vpop.xlane.xlu1 %2104  ;;  %v2136_v8 = vsub.f32 %v4299_v25, %v2084_v40  ;;  %v2137_v4 = vsub.f32 %v4302_v1, %v2084_v40 }
 0x5ee   : > { %2849 = vrsqrt.f32 %v2142_v19  ;;  %v2143_v52 = vadd.f32 1e-05, %v2128_v29  ;;  %v2114_v62 = vmul.f32 0.00390625, %v2105_v0  ;;  %v2120_v48 = vmul.f32 %v4334_v51, %v4334_v51 }
 0x5ef   : > { %v2108_v38 = vpop.xlane.xlu0 %2107  ;;  %v2139_v25 = vsub.f32 %v4308_v50, %v4334_v51 }
 0x5f0   : > { %2851 = vrsqrt.f32 %v2143_v52  ;;  %v2124_v43 = vsub.f32 %v2114_v62, %v2119_v23  ;;  %v2115_v57 = vmul.f32 0.00390625, %v2108_v38  ;;  %v2138_v23 = vsub.f32 %v4305_v54, %v4334_v51 }
 0x5f1   : > { %v2081_v37 = vpop.xlane.xlu1 %2080 }
 0x5f2   : > { %v2129_v46 = vmax.f32 %v2124_v43, 0.0  ;;  %v2125_v39 = vsub.f32 %v2115_v57, %v2120_v48  ;;  %v4338_v21 = vmul.f32 0.00390625, %v2081_v37 }
 0x5f4   : > { %v2144_v10 = vadd.f32 1e-05, %v2129_v46  ;;  %v2130_v47 = vmax.f32 %v2125_v39, 0.0  ;;  %v2121_v56 = vmul.f32 %v4338_v21, %v4338_v21  ;;  %v2140_v57 = vsub.f32 %v4323_v3, %v4338_v21 }
 0x5f5   : > { %v2111_v26 = vpop.xlane.xlu1 %2110  ;;  %v2141_v37 = vsub.f32 %v4326_v24, %v4338_v21 }
 0x5f6   : > { %2853 = vrsqrt.f32 %v2144_v10  ;;  %v2145_v33 = vadd.f32 1e-05, %v2130_v47  ;;  %v2116_v17 = vmul.f32 0.00390625, %v2111_v26 }
 0x5f8   : > { %v2850_v32 = vpop.eup %2849  ;;  %2855 = vrsqrt.f32 %v2145_v33  ;;  %v2126_v44 = vsub.f32 %v2116_v17, %v2121_v56 }
 0x5f9   : > { %v2152_v41 = vmul.f32 %v2850_v32, %v2132_v14  ;;  %v2153_v31 = vmul.f32 %v2850_v32, %v2133_v16 }
 0x5fa   : > { %v2852_v18 = vpop.eup %2851  ;;  %v2131_v7 = vmax.f32 %v2126_v44, 0.0 }
 0x5fb   : > { %v2162_v20 = vmul.f32 %v2152_v41, %v4206_v49  ;;  %v2163_v22 = vmul.f32 %v2153_v31, %v4209_v59  ;;  %v2154_v36 = vmul.f32 %v2852_v18, %v2134_v11  ;;  %v2155_v27 = vmul.f32 %v2852_v18, %v2135_v28 }
 0x5fc   : > { %v2146_v45 = vadd.f32 1e-05, %v2131_v7 }
 0x5fd   : > { %v2172_v13 = vadd.f32 %v2162_v20, %v4212_v5  ;;  %v2173_v2 = vadd.f32 %v2163_v22, %v4215_v6  ;;  %v2164_v35 = vmul.f32 %v2154_v36, %v4206_v49  ;;  %v2165_v30 = vmul.f32 %v2155_v27, %v4209_v59 }
 0x5fe   : > { %2857 = vrsqrt.f32 %v2146_v45 }
 0x5ff   : > { %v2182_v34 = vadd.f32 %v2172_v13, %v4152_v53  ;;  %v2183_v19 = vadd.f32 %v2173_v2, %v4147_v42  ;;  %v2174_v29 = vadd.f32 %v2164_v35, %v4212_v5  ;;  %v2175_v0 = vadd.f32 %v2165_v30, %v4215_v6 }
 0x600   : > { %v2854_v52 = vpop.eup %2853 }
 0x601   : > { %2192 = vst [vmem:[%s4238_s14 + $0x50] sm:$0xff] %v2182_v34  ;;  %2193 = vst [vmem:[%s4238_s14 + $0x58] sm:$0xff] %v2183_v19  ;;  %v2184_v1 = vadd.f32 %v2174_v29, %v4144_v58  ;;  %v2185_v40 = vadd.f32 %v2175_v0, %v4149_v9  ;;  %v2156_v53 = vmul.f32 %v2854_v52, %v2136_v8 }
 0x602   : > { %v2157_v62 = vmul.f32 %v2854_v52, %v2137_v4  ;;  %v2856_v42 = vpop.eup %2855 }
 0x603   : > { %2194 = vst [vmem:[%s4238_s14 + $0x60] sm:$0xff] %v2184_v1  ;;  %2195 = vst [vmem:[%s4238_s14 + $0x68] sm:$0xff] %v2185_v40  ;;  %v2166_v38 = vmul.f32 %v2156_v53, %v4206_v49  ;;  %v2158_v43 = vmul.f32 %v2856_v42, %v2138_v23  ;;  %v2159_v48 = vmul.f32 %v2856_v42, %v2139_v25 }
 0x604   : > { %v2167_v54 = vmul.f32 %v2157_v62, %v4209_v59 }
 0x605   : > { %v2176_v50 = vadd.f32 %v2166_v38, %v4212_v5  ;;  %v2168_v58 = vmul.f32 %v2158_v43, %v4206_v49  ;;  %v2169_v9 = vmul.f32 %v2159_v48, %v4209_v59 }
 0x606   : > { %v2177_v51 = vadd.f32 %v2167_v54, %v4215_v6 }
 0x607   : > { %v2186_v46 = vadd.f32 %v2176_v50, %v4170_v60  ;;  %v2178_v10 = vadd.f32 %v2168_v58, %v4212_v5  ;;  %v2179_v47 = vadd.f32 %v2169_v9, %v4215_v6 }
 0x608   : > { %v2187_v39 = vadd.f32 %v2177_v51, %v4165_v61  ;;  %v2858_v26 = vpop.eup %2857 }
 0x609   : > { %2196 = vst [vmem:[%s4238_s14 + $0x70] sm:$0xff] %v2186_v46  ;;  %v2188_v33 = vadd.f32 %v2178_v10, %v4163_v15  ;;  %v2189_v3 = vadd.f32 %v2179_v47, %v4167_v55  ;;  %v2160_v56 = vmul.f32 %v2858_v26, %v2140_v57  ;;  %v2161_v24 = vmul.f32 %v2858_v26, %v2141_v37 }
 0x60a   : > { %2197 = vst [vmem:[%s4238_s14 + $0x78] sm:$0xff] %v2187_v39 }
 0x60b   : > { %2198 = vst [vmem:[%s4238_s14 + $0x80] sm:$0xff] %v2188_v33  ;;  %2199 = vst [vmem:[%s4238_s14 + $0x88] sm:$0xff] %v2189_v3  ;;  %v2170_v61 = vmul.f32 %v2160_v56, %v4206_v49  ;;  %v2171_v60 = vmul.f32 %v2161_v24, %v4209_v59  ;;  %2209 = sbr.rel (!%p4609_p6) target bundleno = 1583 (0x62f), region = 92 }
 0x60d   : > { %v2180_v21 = vadd.f32 %v2170_v61, %v4212_v5  ;;  %v2181_v17 = vadd.f32 %v2171_v60, %v4215_v6 }
 0x60f   : > { %v2190_v14 = vadd.f32 %v2180_v21, %v4179_v63  ;;  %v2191_v16 = vadd.f32 %v2181_v17, %v4177_v12 }
 0x611   : > { %2200 = vst [vmem:[%s4238_s14 + $0x90] sm:$0xff] %v2190_v14  ;;  %2201 = vst [vmem:[%s4238_s14 + $0x98] sm:$0xff] %v2191_v16 }
 0x612   : > { %s4624_s11 = smov (!%p2212_p11, %s2211_s11), 10 }
 0x613   : > { %s4400_s6 = sshll.u32 %s4624_s11, 8 }
 0x614   : > { %s2217_s16 = ssub.s32 2560, %s4400_s6 }
 0x615   : > { %2218 = vsyncadd %s2203_s26, %s2217_s16  ;;  %p2459_p13 = scmp.ne.s32.totalorder %s4400_s6, 0  ;;  %s2477_s18 = smul.u32 2560, %s3202_s25 }
 0x616   : > { %s2224_s9 = sshll.u32 %s4238_s14, 4  ;;  %s4610_s13 = sld [smem:[#allocation56_spill]]  ;;  %s4413_s9 = int_to_ptr.vmem [resolvable:$true] %s2224_s9 }
 0x617   : > { %s3019_s19 = scalar_lea.vmem %s4413_s9, %s4400_s6  ;;  %s3113_s28 = smov [#allocation11]  }
 0x618   : > { %p3020_p12 = scmp.ne.s32.totalorder %s4413_s9, %s3019_s19  ;;  %s3023_s17 = sshll.u32 %s3113_s28, 4  ;;  %s3024_s17 = int_to_ptr.vmem [resolvable:$false] %s3023_s17 }
 0x619   : > { %s3025_s25 = scalar_lea.vmem %s3024_s17, 5120  ;;  %p3026_p8 = scmp.lt.s32.totalorder %s4413_s9, %s3024_s17 }
 0x61a   : > { %p3021_p0 = pnand %p3020_p12, %p2459_p13  ;;  %p3027_p10 = scmp.lt.s32.totalorder %s3025_s25, %s3019_s19 }
 0x61c   : > { %s4411_s30 = scalar_lea.hbm %s4610_s13, %s2477_s18  ;;  %p3022_p7 = pneg %p3021_p0 }
 0x61d   : > { %p3028_p9 = por %p3027_p10, %p3026_p8 }
 0x61f   : > { %p3029_p1 = pnand %p3028_p9, %p3022_p7 }
 0x621   : > { %3032 = shalt.err (!%p3029_p1)
}
 0x622   : > { %s3033_s10 = scalar_lea.hbm %s4411_s30, %s4400_s6  ;;  %s3037_s29 = scalar_lea.hbm %s4610_s13, 9728 }
 0x623   : > { %p3034_p2 = scmp.ne.s32.totalorder %s4411_s30, %s3033_s10  ;;  %p3038_p5 = scmp.lt.u32.totalorder %s4411_s30, %s4610_s13 }
 0x624   : > { %p3039_p6 = scmp.lt.u32.totalorder %s3037_s29, %s3033_s10  ;;  %p3041_p12 = scmp.lt.u32.totalorder %s3033_s10, %s4411_s30 }
 0x625   : > { %p3035_p4 = pnand %p3034_p2, %p2459_p13 }
 0x626   : > { %p3040_p11 = por %p3039_p6, %p3038_p5 }
 0x627   : > { %p3036_p3 = pneg %p3035_p4 }
 0x628   : > { %p3042_p0 = por %p3041_p12, %p3040_p11 }
 0x62a   : > { %p3043_p7 = pnand %p3042_p0, %p3036_p3 }
 0x62c   : > { %3046 = shalt.err (!%p3043_p7)
}
 0x62d   : > { %s3114_s16 = smov 256   ;;  %s3115_s18 = smov 16  }
 0x62e   : > { %2230 = dma.vmem_to_hbm [thread:$0]  (%p2459_p13), %s4413_s9, %s4400_s6, %s4411_s30, %s2203_s26, %s3114_s16, %s3114_s16, %s3115_s18  }
 0x62f PF: > { %s4611_s15 = sld [smem:[#allocation17_spill]]  ;;  %s4612_s20 = sld [smem:[#allocation21_spill]] }
 0x630   : > { %p2584_p8 = scmp.ge.s32.totalorder %s3097_s24, 2 }
 0x635   : > { %s2239_s19 = sand.u32 1, %s4611_s15   ;;  %p4613_p10 = scmp.ne.s32.totalorder %s4612_s20, 0 }
 0x636   : > { %s2240_s28 = scalar_lea.sflag [#allocation4], %s2239_s19 }
 0x637   : > { %p2575_p9 = pnand %p2584_p8, %p4613_p10 }
 0x639   : > { %3080 = dma.done.wait (!%p2575_p9), %s2240_s28, 2560  }
 0x63a   : > { %3082 = vsyncadd (!%p2575_p9), %s2240_s28, 4294964736  ;;  %s4614_s24 = sld [smem:[#allocation18_spill]]  ;;  %s4615_s17 = sld [smem:[#allocation19_spill]] }
 0x63b   : > { %s4616_s21 = smov %s3089_s22  ;;  %s4617_s22 = smov %s3093_s23 }
 0x640   : > { %p29_p1 = scmp.ge.s32.totalorder %s4614_s24, 6   ;;  %s4618_s23 = smov %s4615_s17 }
 0x642   :  { %31 = sbr.rel (!%p29_p1) target bundleno = 14 (0xe), region = 138 }
 0x649   :  { %2245 = vsyncpa [#allocation3], 1 }
 0x64a   :  { %2247 = vsyncpa [#allocation3 + $0x1], 1 }
 0x64b   :  { %2248 = vsyncpa [#allocation6], 1 }
 0x64c   :  { %2250 = vsyncpa [#allocation6 + $0x1], 1 }
 0x64d   :  { %2251 = vsyncpa [#allocation9], 1 }
 0x64e   :  { %2252 = vsyncpa [#allocation4], 1 }
 0x64f   :  { %2254 = vsyncpa [#allocation4 + $0x1], 1 }

// kernel: tpu_custom_call.1
= control target key start
LH: loop header
LB: loop body
LE: loop exit
PB: predicated region body
PF: predicated region fallthrough
CT: control target
= control target key end

     0   :  { %s5529_s0 = inlined_call_operand.hbm [shape: f32[384,256], index: 0, kind: input, shape index: {}]   ;;  %s5530_s1 = inlined_call_operand.hbm [shape: f32[384,256], index: 1, kind: input, shape index: {}]   ;;  %s5531_s2 = inlined_call_operand.vmem [shape: f32[1,256], index: 2, kind: input, shape index: {}]   ;;  %s5532_s3 = inlined_call_operand.vmem [shape: f32[1,256], index: 3, kind: input, shape index: {}]   ;;  %s5533_s4 = inlined_call_operand.hbm [shape: bf16[256,128], index: 4, kind: input, shape index: {}]   ;;  %s5534_s5 = inlined_call_operand.vmem [shape: f32[1,128], index: 5, kind: input, shape index: {}]   ;;  %s5535_s6 = inlined_call_operand.hbm [shape: bf16[128,256], index: 6, kind: input, shape index: {}]   ;;  %s5536_s7 = inlined_call_operand.vmem [shape: f32[1,256], index: 7, kind: input, shape index: {}]   ;;  %s5537_s8 = inlined_call_operand.hbm [shape: bf16[256,256], index: 8, kind: input, shape index: {}]   ;;  %s5538_s9 = inlined_call_operand.vmem [shape: f32[1,256], index: 9, kind: input, shape index: {}]   ;;  %s5539_s10 = inlined_call_operand.vmem [shape: f32[1,256], index: 10, kind: input, shape index: {}]   ;;  %s5540_s11 = inlined_call_operand.vmem [shape: f32[1,256], index: 11, kind: input, shape index: {}]   ;;  %s5541_s12 = inlined_call_operand.hbm [shape: f32[384,256], index: 12, kind: output, shape index: {}]  }
   0x1   :  { %5592 = sst [smem:[#allocation46_spill]] %s5529_s0 }
   0x2   :  { %5593 = sst [smem:[#allocation47_spill]] %s5533_s4 }
   0x3   :  { %5594 = sst [smem:[#allocation48_spill]] %s5535_s6 }
   0x4   :  { %5595 = sst [smem:[#allocation49_spill]] %s5538_s9 }
   0x5   :  { %5596 = sst [smem:[#allocation50_spill]] %s5539_s10 }
   0x6   :  { %5597 = sst [smem:[#allocation51_spill]] %s5540_s11 }
   0x7   :  { %5598 = sst [smem:[#allocation52_spill]] %s5541_s12 }
   0x8   :  { %17 = vsyncpa [#allocation3], 0 }
   0x9   :  { %19 = vsyncpa [#allocation3 + $0x1], 0 }
   0xa   :  { %20 = vsyncpa [#allocation6], 0 }
   0xb   :  { %22 = vsyncpa [#allocation6 + $0x1], 0 }
   0xc   :  { %23 = vsyncpa [#allocation9], 0 }
   0xd   :  { %24 = vsyncpa [#allocation4], 0 }
   0xe   :  { %26 = vsyncpa [#allocation4 + $0x1], 0  ;;  %s3813_s21 = smov 0   ;;  %s3815_s22 = smov 0  }
   0xf   :  { %s3817_s23 = smov 0   ;;  %s3819_s24 = smov 0  }
  0x10 LB: > { %5599 = sst [smem:[#allocation17_spill]] %s3719_s21  ;;  %s3834_s25 = sadd.s32 4294967295, %s3731_s24   ;;  %s3731_s24 = sphi %s3819_s24, %s5709_s24   ;;  %s3727_s23 = sphi %s3817_s23, %s5708_s23   ;;  %s3723_s22 = sphi %s3815_s22, %s5707_s22   ;;  %s3719_s21 = sphi %s3813_s21, %s5706_s21  }
  0x11   : > { %s2850_s26 = sadd.s32 4294967294, %s3731_s24   ;;  %p52_p0 = scmp.ne.s32.totalorder %s3723_s22, %s3719_s21 }
  0x12   : > { %p5543_p1 = scmp.eq.s32.totalorder %s3834_s25, 0  ;;  %p318_p3 = scmp.eq.s32.totalorder %s2850_s26, 2 }
  0x13   : > { %p2851_p5 = scmp.ge.s32.totalorder %s3731_s24, 1  ;;  %p325_p7 = scmp.lt.s32.totalorder %s3731_s24, 4 }
  0x14   : > { %p3843_p4 = por %p5543_p1, %p52_p0  ;;  %p3848_p6 = por %p318_p3, %p52_p0 }
  0x15   : > { %p3853_p8 = pnand %p2851_p5, %p325_p7  ;;  %s3733_s30 = smov [#allocation7]  }
  0x16   : > { %s5600_s27 = scalar_select %p3843_p4, 1, 0 }
  0x17   : > { %s5601_s28 = scalar_select %p3848_p6, 1, 0 }
  0x18   : > { %s5603_s29 = scalar_select %p3853_p8, 1, 0 }
  0x19   : > { %5602 = sst [smem:[#allocation18_spill]] %s5601_s28  ;;  %s343_s13 = sshll.u32 %s3733_s30, 4  ;;  %s344_s13 = int_to_ptr.vmem [resolvable:$true] %s343_s13 }
  0x1a   : > { %p3078_p9 = pneg %p3853_p8  ;;  %s3734_s15 = smov [#allocation8]  }
  0x1b   : > { %s359_s16 = sshll.u32 %s3734_s15, 4  ;;  %s5605_s4 = sld [smem:[#allocation47_spill]]  ;;  %s3865_s16 = int_to_ptr.vmem [resolvable:$true] %s359_s16 }
  0x1c   : > { %p3861_p10 = pnand %p3078_p9, %p5543_p1 }
  0x1e   : > { %p3875_p12 = pneg %p3861_p10 }
  0x21   : > { %s3509_s19 = scalar_lea.hbm %s5605_s4, 2048 }
  0x22   : > { %p3510_p11 = scmp.ne.s32.totalorder %s5605_s4, %s3509_s19  ;;  %p3516_p3 = scmp.lt.u32.totalorder %s3509_s19, %s5605_s4 }
  0x24   : > { %p3512_p13 = pnand %p3875_p12, %p3510_p11 }
  0x26   : > { %p3513_p0 = pneg %p3512_p13 }
  0x28   : > { %p3518_p5 = pnand %p3516_p3, %p3513_p0 }
  0x2a   : > { %3521 = shalt.err (!%p3518_p5)
}
  0x2b   : > { %s3522_s17 = scalar_lea.vmem %s344_s13, 2048  ;;  %p3530_p2 = scmp.lt.s32.totalorder %s344_s13, %s344_s13 }
  0x2c   : > { %p3523_p7 = scmp.ne.s32.totalorder %s344_s13, %s3522_s17  ;;  %p3531_p6 = scmp.lt.s32.totalorder %s3522_s17, %s3522_s17 }
  0x2e   : > { %p3525_p9 = pnand %p3523_p7, %p3875_p12  ;;  %p3532_p4 = por %p3531_p6, %p3530_p2 }
  0x30   : > { %p3526_p1 = pneg %p3525_p9 }
  0x32   : > { %p3533_p8 = pnand %p3532_p4, %p3526_p1 }
  0x34   : > { %3536 = shalt.err (!%p3533_p8)
}
  0x35   : > { %s3735_s18 = smov 64   ;;  %s3736_s20 = smov 4  }
  0x36   : > { %3081 = dma.hbm_to_vmem [thread:$0]  (!%p3861_p10), %s5605_s4, 2048, %s344_s13, [#allocation6], %s3735_s18, %s3735_s18, %s3736_s20  }
  0x37   : > { %s5607_s6 = sld [smem:[#allocation48_spill]] }
  0x3d   : > { %s3537_s21 = scalar_lea.hbm %s5607_s6, 2048 }
  0x3e   : > { %p3538_p11 = scmp.ne.s32.totalorder %s5607_s6, %s3537_s21  ;;  %p3544_p4 = scmp.lt.u32.totalorder %s3537_s21, %s5607_s6 }
  0x40   : > { %p3540_p1 = pnand %p3538_p11, %p3875_p12 }
  0x42   : > { %p3541_p2 = pneg %p3540_p1 }
  0x44   : > { %p3546_p6 = pnand %p3544_p4, %p3541_p2 }
  0x46   : > { %3549 = shalt.err (!%p3546_p6)
}
  0x47   : > { %s3550_s13 = scalar_lea.vmem %s3865_s16, 2048  ;;  %p3558_p3 = scmp.lt.s32.totalorder %s3865_s16, %s3865_s16 }
  0x48   : > { %p3551_p8 = scmp.ne.s32.totalorder %s3865_s16, %s3550_s13  ;;  %p3559_p5 = scmp.lt.s32.totalorder %s3550_s13, %s3550_s13 }
  0x4a   : > { %p3553_p13 = pnand %p3551_p8, %p3875_p12  ;;  %p3560_p7 = por %p3559_p5, %p3558_p3 }
  0x4c   : > { %p3554_p0 = pneg %p3553_p13 }
  0x4e   : > { %p3561_p9 = pnand %p3560_p7, %p3554_p0 }
  0x50   : > { %3564 = shalt.err (!%p3561_p9)
}
  0x51   : > { %s3737_s11 = smov 128   ;;  %s3738_s10 = smov 8  }
  0x52   : > { %3084 = dma.hbm_to_vmem [thread:$0]  (!%p3861_p10), %s5607_s6, 2048, %s3865_s16, [#allocation9], %s3737_s11, %s3737_s11, %s3738_s10  }
  0x53   : > { %s3739_s18 = smov [#allocation10]   ;;  %s3915_s28 = sadd.s32 1, %s3731_s24  }
  0x54   : > { %s375_s20 = sshll.u32 %s3739_s18, 4  ;;  %s3565_s15 = scalar_lea.hbm %s5537_s8, 4096  ;;  %s376_s20 = int_to_ptr.vmem [resolvable:$true] %s375_s20 }
  0x55   : > { %p3566_p11 = scmp.ne.s32.totalorder %s5537_s8, %s3565_s15  ;;  %p3572_p4 = scmp.lt.u32.totalorder %s3565_s15, %s5537_s8 }
  0x57   : > { %p3568_p1 = pnand %p3566_p11, %p3875_p12 }
  0x59   : > { %p3569_p2 = pneg %p3568_p1 }
  0x5b   : > { %p3574_p6 = pnand %p3572_p4, %p3569_p2 }
  0x5d   : > { %3577 = shalt.err (!%p3574_p6)
}
  0x5e   : > { %s3578_s16 = scalar_lea.vmem %s376_s20, 4096  ;;  %p3586_p3 = scmp.lt.s32.totalorder %s376_s20, %s376_s20 }
  0x5f   : > { %p3579_p8 = scmp.ne.s32.totalorder %s376_s20, %s3578_s16  ;;  %p3587_p5 = scmp.lt.s32.totalorder %s3578_s16, %s3578_s16 }
  0x61   : > { %p3581_p13 = pnand %p3579_p8, %p3875_p12  ;;  %p3588_p7 = por %p3587_p5, %p3586_p3 }
  0x63   : > { %p3582_p0 = pneg %p3581_p13 }
  0x65   : > { %p3589_p9 = pnand %p3588_p7, %p3582_p0 }
  0x67   : > { %3592 = shalt.err (!%p3589_p9)
}
  0x68   : > { %3087 = dma.hbm_to_vmem [thread:$0]  (!%p3861_p10), %s5537_s8, 4096, %s376_s20, [#allocation9], %s3737_s11, %s3737_s11, %s3738_s10  }
  0x69   : > { %s36_s4 = ssub.s32 %s3731_s24, %s3915_s28  ;;  %s39_s9 = sadd.s32 1, %s3727_s23 }
  0x6a   : > { %p37_p12 = scmp.eq.s32.totalorder %s36_s4, 0  ;;  %p46_p11 = scmp.ne.s32.totalorder %s3727_s23, %s3723_s22 }
  0x6b   : > { %p47_p1 = scmp.eq.s32.totalorder %s3731_s24, 0  ;;  %p3102_p2 = scmp.lt.s32.totalorder %s3731_s24, 3 }
  0x6c   : > { %s3943_s14 = scalar_select %p37_p12, %s3727_s23, %s39_s9  }
  0x6d   : > { %p48_p4 = por %p47_p1, %p46_p11  ;;  %p5608_p6 = scmp.eq.s32.totalorder %s3834_s25, 2 }
  0x6e   : > { %s398_s18 = sand.u32 1, %s3727_s23   ;;  %s2975_s19 = sshll.u32 %s3731_s24, 12 }
  0x6f   : > { %p3947_p8 = por %p5608_p6, %p46_p11  ;;  %s3953_s26 = sshll.u32 %s398_s18, 8 }
  0x70   : > { %s5610_s0 = sld [smem:[#allocation46_spill]]  ;;  %s402_s15 = scalar_lea.vmem [#allocation2], %s3953_s26 }
  0x71   : > { %s410_s17 = sshll.u32 %s402_s15, 4  ;;  %p3963_p10 = pnand %p3102_p2, %p48_p4  ;;  %s3967_s17 = int_to_ptr.vmem [resolvable:$true] %s410_s17 }
  0x72   : > { %s3969_s16 = scalar_lea.sflag [#allocation3], %s398_s18 }
  0x73   : > { %p3595_p0 = pneg %p3963_p10 }
  0x76   : > { %s3960_s20 = scalar_lea.hbm %s5610_s0, %s2975_s19  ;;  %s3598_s9 = scalar_lea.hbm %s5610_s0, 12288 }
  0x77   : > { %s3593_s12 = scalar_lea.hbm %s3960_s20, 4096  ;;  %p3599_p7 = scmp.lt.u32.totalorder %s3960_s20, %s5610_s0 }
  0x78   : > { %p3594_p13 = scmp.ne.s32.totalorder %s3960_s20, %s3593_s12  ;;  %p3600_p9 = scmp.lt.u32.totalorder %s3598_s9, %s3593_s12 }
  0x79   : > { %p3602_p11 = scmp.lt.u32.totalorder %s3593_s12, %s3960_s20 }
  0x7a   : > { %p3596_p3 = pnand %p3595_p0, %p3594_p13  ;;  %p3601_p12 = por %p3600_p9, %p3599_p7 }
  0x7c   : > { %p3597_p5 = pneg %p3596_p3  ;;  %p3603_p1 = por %p3602_p11, %p3601_p12 }
  0x7e   : > { %p3604_p2 = pnand %p3603_p1, %p3597_p5 }
  0x80   : > { %3607 = shalt.err (!%p3604_p2)
}
  0x81   : > { %s3608_s18 = scalar_lea.vmem %s3967_s17, 4096  ;;  %s3740_s15 = smov [#allocation2]  }
  0x82   : > { %p3609_p4 = scmp.ne.s32.totalorder %s3967_s17, %s3608_s18  ;;  %s3613_s21 = sshll.u32 %s3740_s15, 4  ;;  %s3614_s21 = int_to_ptr.vmem [resolvable:$false] %s3613_s21 }
  0x83   : > { %s3615_s4 = scalar_lea.vmem %s3614_s21, 8192  ;;  %p3616_p3 = scmp.lt.s32.totalorder %s3967_s17, %s3614_s21 }
  0x84   : > { %p3611_p6 = pnand %p3609_p4, %p3595_p0  ;;  %p3617_p7 = scmp.lt.s32.totalorder %s3615_s4, %s3608_s18 }
  0x86   : > { %p3612_p13 = pneg %p3611_p6  ;;  %p3618_p9 = por %p3617_p7, %p3616_p3 }
  0x88   : > { %p3619_p12 = pnand %p3618_p9, %p3612_p13 }
  0x8a   : > { %3622 = shalt.err (!%p3619_p12)
}
  0x8b   : > { %s3741_s12 = smov 256   ;;  %s3742_s9 = smov 16  }
  0x8c   : > { %3091 = dma.hbm_to_vmem [thread:$0]  (!%p3963_p10), %s3960_s20, 4096, %s3967_s17, %s3969_s16, %s3741_s12, %s3741_s12, %s3742_s9  }
  0x8d   : > { %s4005_s18 = scalar_lea.hbm %s5530_s1, %s2975_s19  ;;  %s424_s15 = scalar_lea.vmem [#allocation5], %s3953_s26 }
  0x8e   : > { %s432_s21 = sshll.u32 %s424_s15, 4  ;;  %s420_s4 = sand.u32 1, %s3731_s24   ;;  %s4009_s21 = int_to_ptr.vmem [resolvable:$true] %s432_s21 }
  0x8f   : > { %s4011_s0 = scalar_lea.sflag [#allocation6], %s420_s4  ;;  %s3623_s6 = scalar_lea.hbm %s4005_s18, 4096 }
  0x90   : > { %p3624_p5 = scmp.ne.s32.totalorder %s4005_s18, %s3623_s6  ;;  %s3628_s17 = scalar_lea.hbm %s5530_s1, 12288 }
  0x91   : > { %p3629_p2 = scmp.lt.u32.totalorder %s4005_s18, %s5530_s1  ;;  %p3630_p4 = scmp.lt.u32.totalorder %s3628_s17, %s3623_s6 }
  0x92   : > { %p3626_p11 = pnand %p3624_p5, %p3595_p0  ;;  %p3632_p13 = scmp.lt.u32.totalorder %s3623_s6, %s4005_s18 }
  0x93   : > { %p3631_p6 = por %p3630_p4, %p3629_p2 }
  0x94   : > { %p3627_p1 = pneg %p3626_p11 }
  0x95   : > { %p3633_p3 = por %p3632_p13, %p3631_p6 }
  0x97   : > { %p3634_p7 = pnand %p3633_p3, %p3627_p1 }
  0x99   : > { %3637 = shalt.err (!%p3634_p7)
}
  0x9a   : > { %s3638_s26 = scalar_lea.vmem %s4009_s21, 4096  ;;  %s3743_s10 = smov [#allocation5]  }
  0x9b   : > { %p3639_p9 = scmp.ne.s32.totalorder %s4009_s21, %s3638_s26  ;;  %s3643_s15 = sshll.u32 %s3743_s10, 4  ;;  %s3644_s15 = int_to_ptr.vmem [resolvable:$false] %s3643_s15 }
  0x9c   : > { %s3645_s4 = scalar_lea.vmem %s3644_s15, 8192  ;;  %p3646_p11 = scmp.lt.s32.totalorder %s4009_s21, %s3644_s15 }
  0x9d   : > { %p3641_p12 = pnand %p3639_p9, %p3595_p0  ;;  %p3647_p2 = scmp.lt.s32.totalorder %s3645_s4, %s3638_s26 }
  0x9f   : > { %p3642_p5 = pneg %p3641_p12  ;;  %p3648_p4 = por %p3647_p2, %p3646_p11 }
  0xa1   : > { %p3649_p6 = pnand %p3648_p4, %p3642_p5 }
  0xa3   : > { %3652 = shalt.err (!%p3649_p6)
}
  0xa4   : > { %3094 = dma.hbm_to_vmem [thread:$0]  (!%p3963_p10), %s4005_s18, 4096, %s4009_s21, %s4011_s0, %s3741_s12, %s3741_s12, %s3742_s9  }
  0xa5   : > { %p5612_p0 = scmp.ne.s32.totalorder %s5603_s29, 0 }
  0xa7   : > { %444 = sbr.rel (%p5612_p0) target bundleno = 1557 (0x615), region = 68 }
  0xae   : > { %s4043_s6 = sand.u32 1, %s3723_s22   ;;  %p5613_p1 = scmp.ne.s32.totalorder %s5600_s27, 0 }
  0xaf   : > { %s4046_s20 = sshll.u32 %s4043_s6, 8  ;;  %s447_s13 = scalar_lea.sflag [#allocation3], %s4043_s6 }
  0xb0   : > { %s4050_s19 = scalar_lea.vmem [#allocation2], %s4046_s20 }
  0xb1   : > { %3698 = dma.done.wait (%p5613_p1), %s447_s13, 4096  }
  0xb2   : > { %3700 = vsyncadd (%p5613_p1), %s447_s13, 4294963200  ;;  %s455_s0 = sand.u32 1, %s3834_s25   ;;  %s4058_s12 = scalar_lea.vmem [#allocation5], %s4046_s20 }
  0xb3   : > { %s456_s29 = scalar_lea.sflag [#allocation6], %s455_s0 }
  0xb4   : > { %3702 = dma.done.wait (%p5613_p1), %s456_s29, 4096  }
  0xb5   : > { %3704 = vsyncadd (%p5613_p1), %s456_s29, 4294963200  ;;  %p5614_p10 = scmp.eq.s32.totalorder %s3834_s25, 0 }
  0xb7   : > { %3706 = dma.done.wait (%p5614_p10), [#allocation6], 2048   ;;  %p5615_p13 = pmov %p5614_p10 }
  0xb8   : > { %p5616_p3 = pmov %p5614_p10 }
  0xb9   : > { %3708 = vsyncadd (%p5615_p13), [#allocation6], 4294965248 }
  0xba   : > { %3710 = dma.done.wait (%p5616_p3), [#allocation9], 6144   ;;  %p5617_p7 = pmov %p5616_p3 }
  0xbb   : > { %v4073_v0 = vld [vmem:[%s4050_s19] sm:$0xff]  ;;  %v4076_v1 = vld [vmem:[%s4050_s19 + $0x8] sm:$0xff]  ;;  %v4079_v2 = vld [vmem:[%s4050_s19 + $0x10] sm:$0xff]  ;;  %s5682_s0 = sld [smem:[#allocation49_spill]]  ;;  %s5688_s18 = sld [smem:[#allocation51_spill]] }
  0xbc   : > { %3712 = vsyncadd (%p5617_p7), [#allocation9], 4294961152  ;;  %v640_v3 = vadd.f32 %v4076_v1, %v4073_v0  ;;  %v673_v4 = vmul.f32 %v4073_v0, %v4073_v0  ;;  %v674_v5 = vmul.f32 %v4076_v1, %v4076_v1  ;;  %v4088_v6 = vld [vmem:[%s4050_s19 + $0x18] sm:$0xff]  ;;  %v675_v7 = vmul.f32 %v4079_v2, %v4079_v2  ;;  %v4097_v11 = vld [vmem:[%s4050_s19 + $0x20] sm:$0xff]  ;;  %s5193_s21 = scalar_lea.vmem [#allocation11], %s4046_s20  ;;  %s2979_s20 = sshll.u32 %s3834_s25, 12 }
  0xbd   : > { %v676_v8 = vmul.f32 %v4088_v6, %v4088_v6  ;;  %v643_v10 = vadd.f32 %v4088_v6, %v4079_v2  ;;  %v4100_v12 = vld [vmem:[%s4050_s19 + $0x28] sm:$0xff]  ;;  %v4103_v13 = vld [vmem:[%s4050_s19 + $0x30] sm:$0xff]  ;;  %v4106_v15 = vld [vmem:[%s4050_s19 + $0x38] sm:$0xff]  ;;  %v677_v17 = vmul.f32 %v4097_v11, %v4097_v11  ;;  %s2726_s17 = sshll.u32 %s5193_s21, 4  ;;  %s5700_s26 = sld [smem:[#allocation52_spill]]  ;;  %s5480_s17 = int_to_ptr.vmem [resolvable:$true] %s2726_s17 }
  0xbe   : > { %641 = vadd.xlane.f32.xlu0 %v640_v3  ;;  %v689_v9 = vadd.f32 %v674_v5, %v673_v4  ;;  %v646_v16 = vadd.f32 %v4100_v12, %v4097_v11  ;;  %v678_v18 = vmul.f32 %v4100_v12, %v4100_v12  ;;  %v649_v19 = vadd.f32 %v4106_v15, %v4103_v13  ;;  %v4121_v22 = vld [vmem:[%s4050_s19 + $0x40] sm:$0xff]  ;;  %v4124_v23 = vld [vmem:[%s4050_s19 + $0x48] sm:$0xff]  ;;  %v4127_v25 = vld [vmem:[%s4050_s19 + $0x50] sm:$0xff]  ;;  %s2712_s25 = scalar_lea.sflag [#allocation4], %s4043_s6  ;;  %s3653_s15 = scalar_lea.vmem %s5480_s17, 4096 }
  0xbf   : > { %v692_v14 = vadd.f32 %v676_v8, %v675_v7  ;;  %v679_v20 = vmul.f32 %v4103_v13, %v4103_v13  ;;  %v680_v21 = vmul.f32 %v4106_v15, %v4106_v15  ;;  %v4130_v26 = vld [vmem:[%s4050_s19 + $0x58] sm:$0xff]  ;;  %v652_v28 = vadd.f32 %v4124_v23, %v4121_v22  ;;  %v4144_v34 = vld [vmem:[#allocation7 + $0x40] sm:$0xff]   ;;  %v4150_v36 = vld [vmem:[%s4050_s19 + $0x68] sm:$0xff]  ;;  %p3654_p9 = scmp.ne.s32.totalorder %s5480_s17, %s3653_s15  ;;  %s3745_s4 = smov [#allocation11]  }
  0xc0   : > { %690 = vadd.xlane.f32.xlu1 %v689_v9  ;;  %v695_v24 = vadd.f32 %v678_v18, %v677_v17  ;;  %v681_v29 = vmul.f32 %v4121_v22, %v4121_v22  ;;  %v682_v30 = vmul.f32 %v4124_v23, %v4124_v23  ;;  %v655_v31 = vadd.f32 %v4130_v26, %v4127_v25  ;;  %v4147_v35 = vld [vmem:[%s4050_s19 + $0x60] sm:$0xff]  ;;  %v4156_v39 = vld [vmem:[%s4050_s19 + $0x70] sm:$0xff]  ;;  %v4159_v40 = vld [vmem:[%s4050_s19 + $0x78] sm:$0xff]  ;;  %s3657_s13 = sshll.u32 %s3745_s4, 4  ;;  %s3658_s13 = int_to_ptr.vmem [resolvable:$false] %s3657_s13 }
  0xc1   : > { %v698_v27 = vadd.f32 %v680_v21, %v679_v20  ;;  %v683_v32 = vmul.f32 %v4127_v25, %v4127_v25  ;;  %v684_v33 = vmul.f32 %v4130_v26, %v4130_v26  ;;  %v4152_v37 = vld [vmem:[#allocation7] sm:$0xff]   ;;  %2980 = vmatprep.subr.bf16.mxu1 %v4144_v34  ;;  %v4162_v42 = vld [vmem:[#allocation7 + $0x48] sm:$0xff]   ;;  %v658_v43 = vadd.f32 %v4150_v36, %v4147_v35  ;;  %v4180_v50 = vld [vmem:[#allocation7 + $0x50] sm:$0xff]   ;;  %p3655_p12 = pnand %p3654_p9, %p3947_p8  ;;  %p3660_p11 = scmp.lt.s32.totalorder %s5480_s17, %s3658_s13 }
  0xc2   : > { %644 = vadd.xlane.f32.xlu0 %v643_v10  ;;  %v701_v38 = vadd.f32 %v682_v30, %v681_v29  ;;  %2981 = vmatpush3.bf16.msra.mxu1 %v4152_v37  ;;  %v685_v44 = vmul.f32 %v4147_v35, %v4147_v35  ;;  %v686_v45 = vmul.f32 %v4150_v36, %v4150_v36  ;;  %v4170_v46 = vld [vmem:[#allocation7 + $0x8] sm:$0xff]   ;;  %v4182_v52 = vld [vmem:[#allocation7 + $0x10] sm:$0xff]   ;;  %v4186_v54 = vld [vmem:[#allocation7 + $0x58] sm:$0xff]  }
  0xc3   : > { %v704_v41 = vadd.f32 %v684_v33, %v683_v32  ;;  %2982 = vmatprep.subr.bf16.mxu1 %v4162_v42  ;;  %v661_v47 = vadd.f32 %v4159_v40, %v4156_v39  ;;  %v687_v48 = vmul.f32 %v4156_v39, %v4156_v39  ;;  %v688_v49 = vmul.f32 %v4159_v40, %v4159_v40  ;;  %v4188_v55 = vld [vmem:[#allocation7 + $0x18] sm:$0xff]   ;;  %v4192_v56 = vld [vmem:[#allocation7 + $0x60] sm:$0xff]   ;;  %v4198_v58 = vld [vmem:[#allocation7 + $0x68] sm:$0xff]   ;;  %s5478_s10 = scalar_lea.hbm %s5700_s26, %s2979_s20  ;;  %p3656_p5 = pneg %p3655_p12 }
  0xc4   : > { %693 = vadd.xlane.f32.xlu1 %v692_v14  ;;  %v707_v51 = vadd.f32 %v686_v45, %v685_v44  ;;  %v4194_v57 = vld [vmem:[#allocation7 + $0x20] sm:$0xff]   ;;  %v4200_v59 = vld [vmem:[#allocation7 + $0x28] sm:$0xff]   ;;  %v4204_v60 = vld [vmem:[#allocation7 + $0x70] sm:$0xff]  }
  0xc5   : > { %v710_v53 = vadd.f32 %v688_v49, %v687_v48  ;;  %5618 = vst [vmem:[#allocation19_spill] sm:$0xff] %v4204_v60  ;;  %v4206_v61 = vld [vmem:[#allocation7 + $0x30] sm:$0xff]   ;;  %v4210_v62 = vld [vmem:[#allocation7 + $0x78] sm:$0xff]   ;;  %v4222_v7 = vld [vmem:[%s4050_s19 + $0x80] sm:$0xff] }
  0xc6   : > { %647 = vadd.xlane.f32.xlu0 %v646_v16  ;;  %2983 = vmatpush3.bf16.msra.mxu1 %v4170_v46  ;;  %5619 = vst [vmem:[#allocation20_spill] sm:$0xff] %v4206_v61  ;;  %5620 = vst [vmem:[#allocation21_spill] sm:$0xff] %v4210_v62  ;;  %v3166_v63 = vld [vmem:[#allocation7 + $0x38] sm:$0xff]   ;;  %v4214_v3 = vld [vmem:[%s4050_s19 + $0x90] sm:$0xff]  ;;  %v1928_v16 = vmul.f32 %v4222_v7, %v4222_v7 }
  0xc7   : > { %2984 = vmatprep.subr.bf16.mxu1 %v4180_v50  ;;  %v4217_v4 = vld [vmem:[%s4050_s19 + $0x98] sm:$0xff]  ;;  %v4225_v8 = vld [vmem:[%s4050_s19 + $0x88] sm:$0xff]  ;;  %v1930_v9 = vmul.f32 %v4214_v3, %v4214_v3  ;;  %v4238_v20 = vld [vmem:[%s4050_s19 + $0xb0] sm:$0xff] }
  0xc8   : > { %650 = vadd.xlane.f32.xlu1 %v649_v19  ;;  %v1899_v5 = vadd.f32 %v4217_v4, %v4214_v3  ;;  %v1931_v10 = vmul.f32 %v4217_v4, %v4217_v4  ;;  %v1896_v14 = vadd.f32 %v4225_v8, %v4222_v7  ;;  %v1929_v17 = vmul.f32 %v4225_v8, %v4225_v8  ;;  %v4241_v21 = vld [vmem:[%s4050_s19 + $0xb8] sm:$0xff]  ;;  %v4265_v44 = vld [vmem:[%s4050_s19 + $0xd0] sm:$0xff]  ;;  %v4274_v48 = vld [vmem:[%s4050_s19 + $0xc8] sm:$0xff] }
  0xc9   : > { %v1905_v29 = vadd.f32 %v4241_v21, %v4238_v20  ;;  %v1934_v30 = vmul.f32 %v4238_v20, %v4238_v20  ;;  %5622 = vst [vmem:[#allocation23_spill] sm:$0xff] %v4265_v44  ;;  %v4268_v45 = vld [vmem:[%s4050_s19 + $0xd8] sm:$0xff]  ;;  %5625 = vst [vmem:[#allocation26_spill] sm:$0xff] %v4274_v48 }
  0xca   : > { %696 = vadd.xlane.f32.xlu0 %v695_v24  ;;  %2985 = vmatpush3.bf16.msra.mxu1 %v4182_v52  ;;  %v1947_v18 = vadd.f32 %v1931_v10, %v1930_v9  ;;  %v1944_v19 = vadd.f32 %v1929_v17, %v1928_v16  ;;  %v4244_v24 = vld [vmem:[%s4050_s19 + $0xa0] sm:$0xff]  ;;  %5623 = vst [vmem:[#allocation24_spill] sm:$0xff] %v4268_v45  ;;  %v4289_v16 = vld [vmem:[%s4050_s19 + $0xf0] sm:$0xff]  ;;  %v4292_v17 = vld [vmem:[%s4050_s19 + $0xf8] sm:$0xff] }
  0xcb   : > { %2986 = vmatprep.subr.bf16.mxu1 %v4186_v54  ;;  %v1932_v33 = vmul.f32 %v4244_v24, %v4244_v24  ;;  %v1911_v49 = vadd.f32 %v4268_v45, %v4265_v44  ;;  %v1937_v9 = vmul.f32 %v4274_v48, %v4274_v48  ;;  %5626 = vst [vmem:[#allocation27_spill] sm:$0xff] %v4289_v16  ;;  %5627 = vst [vmem:[#allocation28_spill] sm:$0xff] %v4292_v17 }
  0xcc   : > { %699 = vadd.xlane.f32.xlu1 %v698_v27  ;;  %v4247_v27 = vld [vmem:[%s4050_s19 + $0xa8] sm:$0xff] }
  0xcd   : > { %v1902_v32 = vadd.f32 %v4247_v27, %v4244_v24 }
  0xce   : > { %653 = vadd.xlane.f32.xlu0 %v652_v28  ;;  %2987 = vmatpush3.bf16.msra.mxu1 %v4188_v55  ;;  %v4249_v28 = vld [vmem:[#allocation8 + $0x4] ss:$8 sps:$4 sm:$0xff]  }
  0xcf   : > { %2988 = vmatprep.subr.bf16.mxu1 %v4192_v56  ;;  %5621 = vst [vmem:[#allocation22_spill] sm:$0xff] %v4249_v28 }
  0xd0   : > { %656 = vadd.xlane.f32.xlu1 %v655_v31  ;;  %v1935_v31 = vmul.f32 %v4241_v21, %v4241_v21 }
  0xd2   : > { %702 = vadd.xlane.f32.xlu0 %v701_v38  ;;  %2989 = vmatpush3.bf16.msra.mxu1 %v4194_v57  ;;  %v1933_v38 = vmul.f32 %v4247_v27, %v4247_v27 }
  0xd3   : > { %2990 = vmatprep.subr.bf16.mxu1 %v4198_v58 }
  0xd4   : > { %705 = vadd.xlane.f32.xlu1 %v704_v41  ;;  %v1953_v41 = vadd.f32 %v1935_v31, %v1934_v30  ;;  %v1942_v30 = vmul.f32 %v4289_v16, %v4289_v16  ;;  %v1943_v31 = vmul.f32 %v4292_v17, %v4292_v17 }
  0xd6   : > { %659 = vadd.xlane.f32.xlu0 %v658_v43  ;;  %2991 = vmatpush3.bf16.msra.mxu1 %v4200_v59  ;;  %v1950_v43 = vadd.f32 %v1933_v38, %v1932_v33 }
  0xd7   : > { %2992 = vmatprep.subr.bf16.mxu1 %v4204_v60 }
  0xd8   : > { %662 = vadd.xlane.f32.xlu1 %v661_v47  ;;  %v4271_v47 = vld [vmem:[%s4050_s19 + $0xc0] sm:$0xff] }
  0xd9   : > { %5624 = vst [vmem:[#allocation25_spill] sm:$0xff] %v4271_v47 }
  0xda   : > { %708 = vadd.xlane.f32.xlu0 %v707_v51  ;;  %2993 = vmatpush3.bf16.msra.mxu1 %v4206_v61  ;;  %v1938_v51 = vmul.f32 %v4265_v44, %v4265_v44 }
  0xdb   : > { %2994 = vmatprep.subr.bf16.mxu1 %v4210_v62 }
  0xdc   : > { %711 = vadd.xlane.f32.xlu1 %v710_v53  ;;  %v1939_v53 = vmul.f32 %v4268_v45, %v4268_v45 }
  0xde   : > { %2995 = vmatpush3.bf16.msra.mxu1 %v3166_v63  ;;  %1897 = vadd.xlane.f32.xlu0 %v1896_v14  ;;  %v1908_v63 = vadd.f32 %v4274_v48, %v4271_v47  ;;  %v1959_v10 = vadd.f32 %v1939_v53, %v1938_v51 }
  0xdf   : > { %1157 = vmatprep.subr.bf16.mxu1 %v4249_v28 }
  0xe0   : > { %1900 = vadd.xlane.f32.xlu1 %v1899_v5  ;;  %v1936_v5 = vmul.f32 %v4271_v47, %v4271_v47 }
  0xe2   : > { %1945 = vadd.xlane.f32.xlu0 %v1944_v19  ;;  %v1956_v14 = vadd.f32 %v1937_v9, %v1936_v5  ;;  %v4298_v19 = vld [vmem:[%s4050_s19 + $0xe8] sm:$0xff] }
  0xe3   : > { %5629 = vst [vmem:[#allocation30_spill] sm:$0xff] %v4298_v19  ;;  %v1941_v38 = vmul.f32 %v4298_v19, %v4298_v19 }
  0xe4   : > { %1948 = vadd.xlane.f32.xlu1 %v1947_v18  ;;  %v4295_v18 = vld [vmem:[%s4050_s19 + $0xe0] sm:$0xff] }
  0xe5   : > { %5628 = vst [vmem:[#allocation29_spill] sm:$0xff] %v4295_v18  ;;  %v1940_v33 = vmul.f32 %v4295_v18, %v4295_v18 }
  0xe6   : > { %1903 = vadd.xlane.f32.xlu0 %v1902_v32  ;;  %v1914_v32 = vadd.f32 %v4298_v19, %v4295_v18 }
  0xe8   : > { %1906 = vadd.xlane.f32.xlu1 %v1905_v29  ;;  %v1917_v29 = vadd.f32 %v4292_v17, %v4289_v16 }
  0xea   : > { %1951 = vadd.xlane.f32.xlu0 %v1950_v43  ;;  %v1962_v43 = vadd.f32 %v1941_v38, %v1940_v33 }
  0xec   : > { %1954 = vadd.xlane.f32.xlu1 %v1953_v41  ;;  %v1965_v41 = vadd.f32 %v1943_v31, %v1942_v30 }
  0xee   : > { %1909 = vadd.xlane.f32.xlu0 %v1908_v63 }
  0xf0   : > { %1912 = vadd.xlane.f32.xlu1 %v1911_v49 }
  0xf2   : > { %1957 = vadd.xlane.f32.xlu0 %v1956_v14 }
  0xf4   : > { %1960 = vadd.xlane.f32.xlu1 %v1959_v10 }
  0xf6   : > { %1915 = vadd.xlane.f32.xlu0 %v1914_v32 }
  0xf8   : > { %1918 = vadd.xlane.f32.xlu1 %v1917_v29 }
  0xfa   : > { %1963 = vadd.xlane.f32.xlu0 %v1962_v43  ;;  %v794_v43 = vlaneseq }
  0xfc   : > { %1966 = vadd.xlane.f32.xlu1 %v1965_v41  ;;  %v795_v19 = vshrl.u32 %v794_v43, 7  ;;  %v521_v43 = vld [vmem:[%s5531_s2] sm:$0x3] }
  0xfe   : > { %v4330_v17 = vsub.s32 1, %v795_v19 }
 0x100   : > { %5630 = vst [vmem:[#allocation31_spill] sm:$0xff] %v4330_v17 }
 0x14b   : > { %v642_v49 = vpop.xlane.xlu0 %641 }
 0x14c   : > { %v4312_v51 = vmul.f32 0.00390625, %v642_v49 }
 0x14d   : > { %v691_v53 = vpop.xlane.xlu1 %690 }
 0x14e   : > { %v713_v63 = vmul.f32 0.00390625, %v691_v53  ;;  %v721_v5 = vmul.f32 %v4312_v51, %v4312_v51 }
 0x14f   : > { %v645_v9 = vpop.xlane.xlu0 %644 }
 0x150   : > { %v729_v10 = vsub.f32 %v713_v63, %v721_v5  ;;  %v4316_v14 = vmul.f32 0.00390625, %v645_v9 }
 0x151   : > { %v694_v18 = vpop.xlane.xlu1 %693 }
 0x152   : > { %v737_v16 = vmax.f32 %v729_v10, 0.0  ;;  %v714_v29 = vmul.f32 0.00390625, %v694_v18  ;;  %v722_v30 = vmul.f32 %v4316_v14, %v4316_v14  ;;  %v747_v45 = vsub.f32 %v4079_v2, %v4316_v14 }
 0x153   : > { %v648_v31 = vpop.xlane.xlu0 %647 }
 0x154   : > { %v761_v32 = vadd.f32 1e-05, %v737_v16  ;;  %v4320_v33 = vmul.f32 0.00390625, %v648_v31  ;;  %v730_v38 = vsub.f32 %v714_v29, %v722_v30 }
 0x155   : > { %v651_v41 = vpop.xlane.xlu1 %650 }
 0x156   : > { %3239 = vrsqrt.f32 %v761_v32  ;;  %v4322_v49 = vmul.f32 0.00390625, %v651_v41  ;;  %v738_v53 = vmax.f32 %v730_v38, 0.0  ;;  %v723_v63 = vmul.f32 %v4320_v33, %v4320_v33 }
 0x157   : > { %v697_v5 = vpop.xlane.xlu0 %696 }
 0x158   : > { %v715_v9 = vmul.f32 0.00390625, %v697_v5  ;;  %v762_v18 = vadd.f32 1e-05, %v738_v53  ;;  %v724_v16 = vmul.f32 %v4322_v49, %v4322_v49 }
 0x159   : > { %v700_v10 = vpop.xlane.xlu1 %699 }
 0x15a   : > { %v731_v28 = vsub.f32 %v715_v9, %v723_v63  ;;  %v716_v31 = vmul.f32 0.00390625, %v700_v10  ;;  %3241 = vrsqrt.f32 %v762_v18  ;;  %v4339_v9 = vsub.s32 0, %v795_v19 }
 0x15b   : > { %v654_v29 = vpop.xlane.xlu0 %653  ;;  %v746_v18 = vsub.f32 %v4076_v1, %v4312_v51  ;;  %v4351_v19 = vrot.slane %v521_v43, %v4330_v17 }
 0x15c   : > { %v739_v30 = vmax.f32 %v731_v28, 0.0  ;;  %v732_v32 = vsub.f32 %v716_v31, %v724_v16  ;;  %v4328_v41 = vmul.f32 0.00390625, %v654_v29  ;;  %5631 = vst [vmem:[#allocation32_spill] sm:$0xff] %v4339_v9  ;;  %v522_v31 = vld [vmem:[%s5532_s3] sm:$0x3]  ;;  %v745_v29 = vsub.f32 %v4073_v0, %v4312_v51 }
 0x15d   : > { %v657_v38 = vpop.xlane.xlu1 %656  ;;  %v4357_v62 = vrot.slane %v522_v31, %v4339_v9 }
 0x15e   : > { %v763_v47 = vadd.f32 1e-05, %v739_v30  ;;  %v740_v44 = vmax.f32 %v732_v32, 0.0  ;;  %v4335_v53 = vmul.f32 0.00390625, %v657_v38  ;;  %v725_v63 = vmul.f32 %v4328_v41, %v4328_v41 }
 0x15f   : > { %v703_v5 = vpop.xlane.xlu0 %702 }
 0x160   : > { %v3240_v28 = vpop.eup %3239  ;;  %3243 = vrsqrt.f32 %v763_v47  ;;  %v764_v10 = vadd.f32 1e-05, %v740_v44  ;;  %v717_v16 = vmul.f32 0.00390625, %v703_v5  ;;  %v726_v30 = vmul.f32 %v4335_v53, %v4335_v53 }
 0x161   : > { %v706_v32 = vpop.xlane.xlu1 %705  ;;  %v778_v47 = vmul.f32 %v3240_v28, %v746_v18  ;;  %v4354_v5 = vrot.slane %v521_v43, %v4339_v9  ;;  %v777_v48 = vmul.f32 %v3240_v28, %v745_v29  ;;  %v749_v18 = vsub.f32 %v4097_v11, %v4320_v33 }
 0x162   : > { %3245 = vrsqrt.f32 %v764_v10  ;;  %v733_v38 = vsub.f32 %v717_v16, %v725_v63  ;;  %v718_v1 = vmul.f32 0.00390625, %v706_v32  ;;  %v748_v63 = vsub.f32 %v4088_v6, %v4316_v14 }
 0x163   : > { %v660_v44 = vpop.xlane.xlu0 %659  ;;  %v4368_v10 = vrot.slane %v522_v31, %v4330_v17  ;;  %v750_v16 = vsub.f32 %v4100_v12, %v4320_v33  ;;  %v805_v28 = vmul.f32 %v4351_v19, %v778_v47  ;;  %v804_v31 = vmul.f32 %v4354_v5, %v777_v48 }
 0x164   : > { %v741_v61 = vmax.f32 %v733_v38, 0.0  ;;  %v734_v0 = vsub.f32 %v718_v1, %v726_v30  ;;  %v4359_v51 = vmul.f32 0.00390625, %v660_v44  ;;  %v3242_v60 = vpop.eup %3241  ;;  %v751_v12 = vsub.f32 %v4103_v13, %v4322_v49 }
 0x165   : > { %v663_v43 = vpop.xlane.xlu1 %662  ;;  %v780_v14 = vmul.f32 %v3242_v60, %v748_v63  ;;  %v779_v38 = vmul.f32 %v3242_v60, %v747_v45  ;;  %v832_v48 = vadd.f32 %v4368_v10, %v805_v28 }
 0x166   : > { %v765_v30 = vadd.f32 1e-05, %v741_v61  ;;  %v742_v32 = vmax.f32 %v734_v0, 0.0  ;;  %v4373_v29 = vmul.f32 0.00390625, %v663_v43  ;;  %v727_v2 = vmul.f32 %v4359_v51, %v4359_v51 }
 0x167   : > { %v709_v6 = vpop.xlane.xlu0 %708  ;;  %v752_v61 = vsub.f32 %v4106_v15, %v4322_v49  ;;  %v807_v44 = vmul.f32 %v4351_v19, %v780_v14  ;;  %v806_v63 = vmul.f32 %v4354_v5, %v779_v38 }
 0x168   : > { %3247 = vrsqrt.f32 %v765_v30  ;;  %v766_v11 = vadd.f32 1e-05, %v742_v32  ;;  %v719_v1 = vmul.f32 0.00390625, %v709_v6  ;;  %v728_v33 = vmul.f32 %v4373_v29, %v4373_v29 }
 0x169   : > { %v712_v47 = vpop.xlane.xlu1 %711  ;;  %v834_v43 = vadd.f32 %v4368_v10, %v807_v44  ;;  %v831_v6 = vadd.f32 %v4357_v62, %v804_v31  ;;  %v833_v17 = vadd.f32 %v4357_v62, %v806_v63  ;;  %v4409_v63 = vld [vmem:[#allocation8 + $0x10] ss:$8 sps:$4 sm:$0xff]  }
 0x16a   : > { %v3244_v0 = vpop.eup %3243  ;;  %3249 = vrsqrt.f32 %v766_v11  ;;  %v735_v60 = vsub.f32 %v719_v1, %v727_v2  ;;  %v720_v45 = vmul.f32 0.00390625, %v712_v47  ;;  %v4391_v1 = vld [vmem:[#allocation8] ss:$8 sps:$4 sm:$0xff]  }
 0x16b   : > { %v782_v13 = vmul.f32 %v3244_v0, %v750_v16  ;;  %v781_v30 = vmul.f32 %v3244_v0, %v749_v18  ;;  %v848_v14 = vpack.c.bf16 %v834_v43, %v832_v48  ;;  %v847_v47 = vpack.c.bf16 %v833_v17, %v831_v6  ;;  %v4394_v18 = vld [vmem:[#allocation8 + $0x14] ss:$8 sps:$4 sm:$0xff]  }
 0x16c   : > { %v3246_v32 = vpop.eup %3245  ;;  %v743_v15 = vmax.f32 %v735_v60, 0.0  ;;  %v736_v49 = vsub.f32 %v720_v45, %v728_v33  ;;  %v755_v45 = vsub.f32 %v4127_v25, %v4335_v53 }
 0x16d   : > { %v784_v9 = vmul.f32 %v3246_v32, %v752_v61  ;;  %v809_v2 = vmul.f32 %v4351_v19, %v782_v13  ;;  %v783_v11 = vmul.f32 %v3246_v32, %v751_v12  ;;  %v808_v16 = vmul.f32 %v4354_v5, %v781_v30  ;;  %989 = vmatprep.mubr.bf16.mxu1 %v848_v14 }
 0x16e   : > { %v767_v38 = vadd.f32 1e-05, %v743_v15  ;;  %v744_v28 = vmax.f32 %v736_v49, 0.0  ;;  %v753_v61 = vsub.f32 %v4121_v22, %v4328_v41  ;;  %990 = vmatmul.mubr.bf16.vlgmr.msra.gmra.mrb[0].mxu1 %v847_v47  ;;  %v754_v12 = vsub.f32 %v4124_v23, %v4328_v41 }
 0x16f   : > { %v811_v33 = vmul.f32 %v4351_v19, %v784_v9  ;;  %v810_v31 = vmul.f32 %v4354_v5, %v783_v11  ;;  %v836_v17 = vadd.f32 %v4368_v10, %v809_v2  ;;  %1158 = vmatpush1.bf16.msra.mxu1 %v4391_v1  ;;  %v835_v22 = vadd.f32 %v4357_v62, %v808_v16 }
 0x170   : > { %3251 = vrsqrt.f32 %v767_v38  ;;  %v768_v44 = vadd.f32 1e-05, %v744_v28  ;;  %1159 = vmatprep.subr.bf16.mxu1 %v4394_v18  ;;  %v756_v23 = vsub.f32 %v4130_v26, %v4335_v53  ;;  %v757_v26 = vsub.f32 %v4147_v35, %v4359_v51 }
 0x171   : > { %v838_v0 = vadd.f32 %v4368_v10, %v811_v33  ;;  %v837_v60 = vadd.f32 %v4357_v62, %v810_v31  ;;  %v758_v53 = vsub.f32 %v4150_v36, %v4359_v51  ;;  %v759_v47 = vsub.f32 %v4156_v39, %v4373_v29 }
 0x172   : > { %v3248_v9 = vpop.eup %3247  ;;  %3253 = vrsqrt.f32 %v768_v44  ;;  %v760_v33 = vsub.f32 %v4159_v40, %v4373_v29 }
 0x173   : > { %v850_v41 = vpack.c.bf16 %v838_v0, %v836_v17  ;;  %v786_v48 = vmul.f32 %v3248_v9, %v754_v12  ;;  %v785_v43 = vmul.f32 %v3248_v9, %v753_v61  ;;  %v849_v30 = vpack.c.bf16 %v837_v60, %v835_v22  ;;  %1160 = vmatpush1.bf16.msra.mxu1 %v4409_v63 }
 0x174   : > { %v3250_v13 = vpop.eup %3249 }
 0x175   : > { %997 = vmatprep.mubr.bf16.mxu1 %v850_v41  ;;  %v788_v32 = vmul.f32 %v3250_v13, %v756_v23  ;;  %v813_v15 = vmul.f32 %v4351_v19, %v786_v48  ;;  %v787_v25 = vmul.f32 %v3250_v13, %v755_v45  ;;  %v812_v49 = vmul.f32 %v4354_v5, %v785_v43  ;;  %v4439_v41 = vld [vmem:[#allocation8 + $0x24] ss:$8 sps:$4 sm:$0xff]   ;;  %v4441_v48 = vld [vmem:[#allocation8 + $0x20] ss:$8 sps:$4 sm:$0xff]   ;;  %v4445_v43 = vld [vmem:[#allocation8 + $0x34] ss:$8 sps:$4 sm:$0xff]  }
 0x176   : > { %998 = vmatmul.mubr.bf16.gmra.mrb[4].mxu1 %v849_v30  ;;  %5632 = vst [vmem:[#allocation33_spill] sm:$0xff] %v4439_v41  ;;  %5633 = vst [vmem:[#allocation34_spill] sm:$0xff] %v4441_v48  ;;  %1161 = vmatprep.subr.bf16.mxu1 %v4439_v41  ;;  %v4447_v13 = vld [vmem:[#allocation8 + $0x30] ss:$8 sps:$4 sm:$0xff]   ;;  %v4451_v30 = vld [vmem:[#allocation8 + $0x44] ss:$8 sps:$4 sm:$0xff]  }
 0x177   : > { %v815_v6 = vmul.f32 %v4351_v19, %v788_v32  ;;  %v814_v14 = vmul.f32 %v4354_v5, %v787_v25  ;;  %v840_v2 = vadd.f32 %v4368_v10, %v813_v15  ;;  %v839_v16 = vadd.f32 %v4357_v62, %v812_v49  ;;  %1162 = vmatpush1.bf16.msra.mxu1 %v4441_v48  ;;  %v4453_v32 = vld [vmem:[#allocation8 + $0x40] ss:$8 sps:$4 sm:$0xff]   ;;  %v4457_v15 = vld [vmem:[#allocation8 + $0x54] ss:$8 sps:$4 sm:$0xff]   ;;  %v4459_v25 = vld [vmem:[#allocation8 + $0x50] ss:$8 sps:$4 sm:$0xff]  }
 0x178   : > { %5634 = vst [vmem:[#allocation35_spill] sm:$0xff] %v4445_v43  ;;  %5635 = vst [vmem:[#allocation36_spill] sm:$0xff] %v4447_v13  ;;  %1163 = vmatprep.subr.bf16.mxu1 %v4445_v43  ;;  %v4463_v49 = vld [vmem:[#allocation8 + $0x64] ss:$8 sps:$4 sm:$0xff]  }
 0x179   : > { %v842_v11 = vadd.f32 %v4368_v10, %v815_v6  ;;  %v841_v38 = vadd.f32 %v4357_v62, %v814_v14  ;;  %5636 = vst [vmem:[#allocation37_spill] sm:$0xff] %v4451_v30  ;;  %5637 = vst [vmem:[#allocation38_spill] sm:$0xff] %v4453_v32  ;;  %v4465_v6 = vld [vmem:[#allocation8 + $0x60] ss:$8 sps:$4 sm:$0xff]   ;;  %v4469_v14 = vld [vmem:[#allocation8 + $0x74] ss:$8 sps:$4 sm:$0xff]  }
 0x17a   : > { %v3252_v28 = vpop.eup %3251  ;;  %5638 = vst [vmem:[#allocation39_spill] sm:$0xff] %v4457_v15  ;;  %5639 = vst [vmem:[#allocation40_spill] sm:$0xff] %v4459_v25 }
 0x17b   : > { %v852_v35 = vpack.c.bf16 %v842_v11, %v840_v2  ;;  %v790_v31 = vmul.f32 %v3252_v28, %v758_v53  ;;  %v789_v61 = vmul.f32 %v3252_v28, %v757_v26  ;;  %v851_v36 = vpack.c.bf16 %v841_v38, %v839_v16  ;;  %1164 = vmatpush1.bf16.msra.mxu1 %v4447_v13  ;;  %v4471_v26 = vld [vmem:[#allocation8 + $0x70] ss:$8 sps:$4 sm:$0xff]   ;;  %v4477_v2 = vld [vmem:[#allocation10 + $0x4] ss:$8 sps:$4 sm:$0xff]   ;;  %v3193_v11 = vld [vmem:[#allocation10] ss:$8 sps:$4 sm:$0xff]  }
 0x17c   : > { %v3254_v44 = vpop.eup %3253  ;;  %1165 = vmatprep.subr.bf16.mxu1 %v4451_v30  ;;  %5640 = vst [vmem:[#allocation41_spill] sm:$0xff] %v4463_v49  ;;  %5641 = vst [vmem:[#allocation42_spill] sm:$0xff] %v4465_v6  ;;  %v5564_v53 = vmov 0   ;;  %v3194_v38 = vld [vmem:[#allocation10 + $0x14] ss:$8 sps:$4 sm:$0xff]   ;;  %1553 = vmatprep.subr.bf16.mxu0 %v4477_v2 }
 0x17d   : > { %1005 = vmatprep.mubr.bf16.mxu1 %v852_v35  ;;  %v792_v51 = vmul.f32 %v3254_v44, %v760_v33  ;;  %v817_v12 = vmul.f32 %v4351_v19, %v790_v31  ;;  %v791_v17 = vmul.f32 %v3254_v44, %v759_v47  ;;  %v816_v0 = vmul.f32 %v4354_v5, %v789_v61  ;;  %v3196_v28 = vld [vmem:[#allocation10 + $0x10] ss:$8 sps:$4 sm:$0xff]   ;;  %v3197_v47 = vld [vmem:[#allocation10 + $0x24] ss:$8 sps:$4 sm:$0xff]   ;;  %v3199_v16 = vld [vmem:[#allocation10 + $0x20] ss:$8 sps:$4 sm:$0xff]  }
 0x17e   : > { %1006 = vmatmul.mubr.bf16.gmra.mrb[8].mxu1 %v851_v36  ;;  %5642 = vst [vmem:[#allocation43_spill] sm:$0xff] %v4469_v14  ;;  %5643 = vst [vmem:[#allocation44_spill] sm:$0xff] %v4471_v26  ;;  %1554 = vmatpush1.bf16.msra.mxu0 %v3193_v11  ;;  %v3200_v33 = vld [vmem:[#allocation10 + $0x34] ss:$8 sps:$4 sm:$0xff]   ;;  %v3202_v35 = vld [vmem:[#allocation10 + $0x30] ss:$8 sps:$4 sm:$0xff]  }
 0x17f   : > { %v819_v60 = vmul.f32 %v4351_v19, %v792_v51  ;;  %v818_v39 = vmul.f32 %v4354_v5, %v791_v17  ;;  %v844_v9 = vadd.f32 %v4368_v10, %v817_v12  ;;  %v843_v45 = vadd.f32 %v4357_v62, %v816_v0  ;;  %1166 = vmatpush1.bf16.msra.mxu1 %v4453_v32  ;;  %v3203_v31 = vld [vmem:[#allocation10 + $0x44] ss:$8 sps:$4 sm:$0xff]   ;;  %v3206_v61 = vld [vmem:[#allocation10 + $0x54] ss:$8 sps:$4 sm:$0xff]   ;;  %v3208_v44 = vld [vmem:[#allocation10 + $0x50] ss:$8 sps:$4 sm:$0xff]   ;;  %v1901_v51 = vpop.xlane.xlu1 %1900  ;;  %v1898_v12 = vpop.xlane.xlu0 %1897 }
 0x180   : > { %1167 = vmatprep.subr.bf16.mxu1 %v4457_v15  ;;  %5644 = vst [vmem:[#allocation45_spill] sm:$0xff] %v4477_v2  ;;  %1555 = vmatprep.subr.bf16.mxu0 %v3194_v38  ;;  %v3209_v36 = vld [vmem:[#allocation10 + $0x64] ss:$8 sps:$4 sm:$0xff]   ;;  %v4487_v38 = vmul.f32 0.00390625, %v1898_v12 }
 0x181   : > { %v846_v40 = vadd.f32 %v4368_v10, %v819_v60  ;;  %v845_v29 = vadd.f32 %v4357_v62, %v818_v39  ;;  %v4480_v60 = vmul.f32 0.00390625, %v1901_v51 }
 0x182   : > { %1556 = vmatpush1.bf16.msra.mxu0 %v3196_v28 }
 0x183   : > { %v854_v22 = vpack.c.bf16 %v846_v40, %v844_v9  ;;  %v853_v23 = vpack.c.bf16 %v845_v29, %v843_v45  ;;  %1168 = vmatpush1.bf16.msra.mxu1 %v4459_v25  ;;  %1557 = vmatprep.subr.bf16.mxu0 %v3197_v47  ;;  %v1949_v17 = vpop.xlane.xlu1 %1948  ;;  %v1946_v0 = vpop.xlane.xlu0 %1945  ;;  %v4485_v29 = vld [vmem:[%s5534_s5] ss:$0 sm:$0xff]  ;;  %v1977_v28 = vmul.f32 %v4480_v60, %v4480_v60 }
 0x184   : > { %1169 = vmatprep.subr.bf16.mxu1 %v4463_v49  ;;  %v1969_v47 = vmul.f32 0.00390625, %v1949_v17  ;;  %v1968_v51 = vmul.f32 0.00390625, %v1946_v0 }
 0x185   : > { %1013 = vmatprep.mubr.bf16.mxu1 %v854_v22 }
 0x186   : > { %1014 = vmatmul.mubr.bf16.gmra.mrb[12].mxu1 %v853_v23  ;;  %1558 = vmatpush1.bf16.msra.mxu0 %v3199_v16 }
 0x187   : > { %1170 = vmatpush1.bf16.msra.mxu1 %v4465_v6  ;;  %1189 = vmatprep.mubr.bf16.mxu1 %v5564_v53  ;;  %v1907_v39 = vpop.xlane.xlu1 %1906  ;;  %v1904_v40 = vpop.xlane.xlu0 %1903 }
 0x188   : > { %1171 = vmatprep.subr.bf16.mxu1 %v4469_v14  ;;  %1559 = vmatprep.subr.bf16.mxu0 %v3200_v33  ;;  %v4495_v53 = vmul.f32 0.00390625, %v1907_v39 }
 0x18a   : > { %1560 = vmatpush1.bf16.msra.mxu0 %v3202_v35 }
 0x18b   : > { %1172 = vmatpush1.bf16.msra.mxu1 %v4471_v26  ;;  %1561 = vmatprep.subr.bf16.mxu0 %v3203_v31  ;;  %v1955_v35 = vpop.xlane.xlu1 %1954 }
 0x18c   : > { %3020 = vmatprep.subr.bf16.mxu1 %v4144_v34  ;;  %v3205_v34 = vld [vmem:[#allocation10 + $0x40] ss:$8 sps:$4 sm:$0xff]   ;;  %v1971_v14 = vmul.f32 0.00390625, %v1955_v35 }
 0x18e   : > { %1562 = vmatpush1.bf16.msra.mxu0 %v3205_v34 }
 0x18f   : > { %1563 = vmatprep.subr.bf16.mxu0 %v3206_v61  ;;  %v1952_v61 = vpop.xlane.xlu0 %1951  ;;  %v1913_v26 = vpop.xlane.xlu1 %1912 }
 0x190   : > { %v4511_v25 = vmul.f32 0.00390625, %v1913_v26 }
 0x192   : > { %1564 = vmatpush1.bf16.msra.mxu0 %v3208_v44  ;;  %v1985_v44 = vsub.f32 %v1969_v47, %v1977_v28  ;;  %v4500_v47 = vmul.f32 0.00390625, %v1904_v40  ;;  %v1970_v40 = vmul.f32 0.00390625, %v1952_v61 }
 0x193   : > { %1565 = vmatprep.subr.bf16.mxu0 %v3209_v36  ;;  %v1976_v36 = vmul.f32 %v4487_v38, %v4487_v38  ;;  %v1910_v0 = vpop.xlane.xlu0 %1909 }
 0x194   : > { %v4513_v15 = vmul.f32 0.00390625, %v1910_v0 }
 0x241   : > { %v2996_v9 = vpop.f32.mrb[0].mxu1 }
 0x242   : > { %v2997_v45 = vpop.f32.mrb[1].mxu1 }
 0x243   : > { %v2998_v22 = vadd.f32 %v2997_v45, %v2996_v9  ;;  %v2999_v23 = vpop.f32.mrb[2].mxu1 }
 0x244   : > { %v3000_v11 = vpop.f32.mrb[3].mxu1 }
 0x245   : > { %v992_v16 = vadd.f32 %v2998_v22, %v4485_v29  ;;  %v3001_v33 = vadd.f32 %v3000_v11, %v2999_v23  ;;  %v1993_v23 = vmax.f32 %v1985_v44, 0.0  ;;  %v1984_v11 = vsub.f32 %v1968_v51, %v1976_v36 }
 0x247   : > { %v1030_v31 = vmul.f32 0.70710677, %v992_v16  ;;  %v995_v34 = vadd.f32 %v3001_v33, %v4485_v29  ;;  %v2017_v44 = vadd.f32 1e-05, %v1993_v23  ;;  %v1992_v36 = vmax.f32 %v1984_v11, 0.0 }
 0x249   : > { %3255 = verf.f32 %v1030_v31  ;;  %v1031_v12 = vmul.f32 0.70710677, %v995_v34  ;;  %v3002_v9 = vpop.f32.mrb[4].mxu1  ;;  %v1979_v31 = vmul.f32 %v4495_v53, %v4495_v53  ;;  %v2016_v11 = vadd.f32 1e-05, %v1992_v36 }
 0x24a   : > { %v3003_v45 = vpop.f32.mrb[5].mxu1  ;;  %v1023_v13 = vmul.f32 0.5, %v995_v34 }
 0x24b   : > { %3257 = verf.f32 %v1031_v12  ;;  %v3004_v17 = vadd.f32 %v3003_v45, %v3002_v9  ;;  %v3005_v22 = vpop.f32.mrb[6].mxu1 }
 0x24c   : > { %v3006_v2 = vpop.f32.mrb[7].mxu1 }
 0x24d   : > { %v4498_v33 = vadd.f32 %v3004_v17, %v4485_v29  ;;  %v3007_v28 = vadd.f32 %v3006_v2, %v3005_v22  ;;  %v1978_v2 = vmul.f32 %v4500_v47, %v4500_v47  ;;  %v1987_v17 = vsub.f32 %v1971_v14, %v1979_v31  ;;  %v1961_v22 = vpop.xlane.xlu1 %1960 }
 0x24e   : > { %v1022_v31 = vmul.f32 0.5, %v992_v16  ;;  %v1973_v0 = vmul.f32 0.00390625, %v1961_v22 }
 0x24f   : > { %v1032_v39 = vmul.f32 0.70710677, %v4498_v33  ;;  %v4506_v12 = vadd.f32 %v3007_v28, %v4485_v29  ;;  %v1958_v28 = vpop.xlane.xlu0 %1957  ;;  %v1986_v61 = vsub.f32 %v1970_v40, %v1978_v2 }
 0x250   : > { %v1972_v2 = vmul.f32 0.00390625, %v1958_v28 }
 0x251   : > { %3259 = verf.f32 %v1032_v39  ;;  %v1033_v51 = vmul.f32 0.70710677, %v4506_v12  ;;  %v3008_v9 = vpop.f32.mrb[8].mxu1  ;;  %v1994_v16 = vmax.f32 %v1986_v61, 0.0 }
 0x252   : > { %v3009_v45 = vpop.f32.mrb[9].mxu1 }
 0x253   : > { %v3256_v6 = vpop.eup %3255  ;;  %3261 = verf.f32 %v1033_v51  ;;  %v3010_v35 = vadd.f32 %v3009_v45, %v3008_v9  ;;  %v3011_v49 = vpop.f32.mrb[10].mxu1  ;;  %v1995_v9 = vmax.f32 %v1987_v17, 0.0 }
 0x254   : > { %v1046_v23 = vadd.f32 1.0, %v3256_v6  ;;  %v3012_v39 = vpop.f32.mrb[11].mxu1  ;;  %3263 = vrsqrt.f32 %v2017_v44  ;;  %v1981_v6 = vmul.f32 %v4511_v25, %v4511_v25  ;;  %v1916_v40 = vpop.xlane.xlu0 %1915 }
 0x255   : > { %v3258_v32 = vpop.eup %3257  ;;  %v4516_v30 = vadd.f32 %v3010_v35, %v4485_v29  ;;  %v3013_v14 = vadd.f32 %v3012_v39, %v3011_v49  ;;  %v1980_v35 = vmul.f32 %v4513_v15, %v4513_v15  ;;  %v1919_v49 = vpop.xlane.xlu1 %1918  ;;  %v2019_v43 = vadd.f32 1e-05, %v1995_v9 }
 0x256   : > { %v1047_v51 = vadd.f32 1.0, %v3258_v32  ;;  %v1054_v36 = vmul.f32 %v1046_v23, %v1022_v31  ;;  %v1989_v31 = vsub.f32 %v1973_v0, %v1981_v6  ;;  %v1024_v9 = vmul.f32 0.5, %v4498_v33 }
 0x257   : > { %v1034_v26 = vmul.f32 0.70710677, %v4516_v30  ;;  %v4520_v45 = vadd.f32 %v3013_v14, %v4485_v29  ;;  %v4537_v0 = vmul.f32 0.00390625, %v1916_v40 }
 0x258   : > { %v1055_v44 = vmul.f32 %v1047_v51, %v1023_v13  ;;  %v1988_v51 = vsub.f32 %v1972_v2, %v1980_v35 }
 0x259   : > { %3265 = verf.f32 %v1034_v26  ;;  %v1035_v32 = vmul.f32 0.70710677, %v4520_v45  ;;  %v3014_v34 = vpop.f32.mrb[12].mxu1  ;;  %v2018_v26 = vadd.f32 1e-05, %v1994_v16  ;;  %v1967_v35 = vpop.xlane.xlu1 %1966  ;;  %v1997_v16 = vmax.f32 %v1989_v31, 0.0 }
 0x25a   : > { %v1062_v17 = vpack.c.bf16 %v1055_v44, %v1054_v36  ;;  %3267 = vrsqrt.f32 %v2016_v11  ;;  %v3015_v39 = vpop.f32.mrb[13].mxu1  ;;  %v4531_v11 = vmul.f32 0.00390625, %v1919_v49  ;;  %v5645_v36 = vmov 0   ;;  %v1964_v49 = vpop.xlane.xlu0 %1963 }
 0x25b   : > { %v3260_v14 = vpop.eup %3259  ;;  %3269 = verf.f32 %v1035_v32  ;;  %v3016_v22 = vadd.f32 %v3015_v39, %v3014_v34  ;;  %v3017_v23 = vpop.f32.mrb[14].mxu1  ;;  %v1025_v44 = vmul.f32 0.5, %v4506_v12  ;;  %v1996_v32 = vmax.f32 %v1988_v51, 0.0 }
 0x25c   : > { %v1048_v13 = vadd.f32 1.0, %v3260_v14  ;;  %v3018_v48 = vpop.f32.mrb[15].mxu1  ;;  %1190 = vmatmul.mubr.bf16.vlgmr.msra.gmra.mrb[16].mxu1 %v1062_v17  ;;  %3271 = vrsqrt.f32 %v2019_v43  ;;  %v1975_v12 = vmul.f32 0.00390625, %v1967_v35  ;;  %v1982_v43 = vmul.f32 %v4537_v0, %v4537_v0 }
 0x25d   : > { %v3262_v28 = vpop.eup %3261  ;;  %v4528_v61 = vadd.f32 %v3016_v22, %v4485_v29  ;;  %v3019_v41 = vadd.f32 %v3018_v48, %v3017_v23  ;;  %3021 = vmatpush3.bf16.msra.mxu1 %v4152_v37  ;;  %1199 = vmatprep.mubr.bf16.mxu1 %v5645_v36  ;;  %v2003_v14 = vsub.f32 %v4217_v4, %v4480_v60  ;;  %v2021_v31 = vadd.f32 1e-05, %v1997_v16 }
 0x25e   : > { %v1049_v6 = vadd.f32 1.0, %v3262_v28  ;;  %3022 = vmatprep.subr.bf16.mxu1 %v4162_v42  ;;  %v3264_v2 = vpop.eup %3263  ;;  %v1056_v34 = vmul.f32 %v1048_v13, %v1024_v9  ;;  %v1983_v42 = vmul.f32 %v4531_v11, %v4531_v11  ;;  %v2001_v22 = vsub.f32 %v4225_v8, %v4487_v38 }
 0x25f   : > { %v1036_v48 = vmul.f32 0.70710677, %v4528_v61  ;;  %v1019_v37 = vadd.f32 %v3019_v41, %v4485_v29  ;;  %v1974_v41 = vmul.f32 0.00390625, %v1964_v49  ;;  %v2020_v51 = vadd.f32 1e-05, %v1996_v32 }
 0x260   : > { %v1057_v17 = vmul.f32 %v1049_v6, %v1025_v44  ;;  %v1026_v28 = vmul.f32 0.5, %v4516_v30  ;;  %v2035_v44 = vmul.f32 %v3264_v2, %v2003_v14  ;;  %v2002_v49 = vsub.f32 %v4214_v3, %v4480_v60 }
 0x261   : > { %3273 = verf.f32 %v1036_v48  ;;  %v1037_v33 = vmul.f32 0.70710677, %v1019_v37  ;;  %3023 = vmatpush3.bf16.msra.mxu1 %v4170_v46  ;;  %v1990_v9 = vsub.f32 %v1974_v41, %v1982_v43  ;;  %v2007_v32 = vsub.f32 %v4241_v21, %v4495_v53 }
 0x262   : > { %3275 = vrsqrt.f32 %v2018_v26  ;;  %3024 = vmatprep.subr.bf16.mxu1 %v4180_v50  ;;  %v1063_v40 = vpack.c.bf16 %v1057_v17, %v1056_v34  ;;  %v1991_v50 = vsub.f32 %v1975_v12, %v1983_v42  ;;  %v1027_v26 = vmul.f32 0.5, %v4520_v45 }
 0x263   : > { %v3266_v39 = vpop.eup %3265  ;;  %3277 = verf.f32 %v1037_v33  ;;  %v1998_v30 = vmax.f32 %v1990_v9, 0.0  ;;  %v2005_v34 = vsub.f32 %v4247_v27, %v4500_v47  ;;  %v2034_v17 = vmul.f32 %v3264_v2, %v2002_v49 }
 0x264   : > { %v3268_v46 = vpop.eup %3267  ;;  %v1050_v23 = vadd.f32 1.0, %v3266_v39  ;;  %1200 = vmatmul.mubr.bf16.gmra.mrb[20].mxu1 %v1063_v40  ;;  %3279 = vrsqrt.f32 %v2021_v31  ;;  %v1999_v16 = vmax.f32 %v1991_v50, 0.0  ;;  %v1029_v21 = vmul.f32 0.5, %v1019_v37  ;;  %v5649_v50 = vld [vmem:[#allocation20_spill] sm:$0xff] }
 0x265   : > { %v3270_v13 = vpop.eup %3269  ;;  %3025 = vmatpush3.bf16.msra.mxu1 %v4182_v52  ;;  %1209 = vmatprep.mubr.bf16.mxu1 %v5645_v36  ;;  %v2033_v8 = vmul.f32 %v3268_v46, %v2001_v22  ;;  %v2000_v52 = vsub.f32 %v4222_v7, %v4487_v38  ;;  %3281 = vrsqrt.f32 %v2020_v51  ;;  %v2051_v7 = vmul.f32 %v2035_v44, %v4351_v19 }
 0x266   : > { %v1051_v4 = vadd.f32 1.0, %v3270_v13  ;;  %3026 = vmatprep.subr.bf16.mxu1 %v4186_v54  ;;  %v1058_v6 = vmul.f32 %v1050_v23, %v1026_v28  ;;  %v3272_v48 = vpop.eup %3271  ;;  %v2023_v42 = vadd.f32 1e-05, %v1999_v16  ;;  %v2022_v27 = vadd.f32 1e-05, %v1998_v30  ;;  %v5650_v28 = vld [vmem:[#allocation21_spill] sm:$0xff] }
 0x267   : > { %v2049_v3 = vmul.f32 %v2033_v8, %v4351_v19  ;;  %v2032_v33 = vmul.f32 %v3268_v46, %v2000_v52  ;;  %v2067_v41 = vadd.f32 %v2051_v7, %v4368_v10  ;;  %v2039_v39 = vmul.f32 %v3272_v48, %v2007_v32  ;;  %v5647_v46 = vld [vmem:[#allocation19_spill] sm:$0xff]  ;;  %v5652_v30 = vld [vmem:[#allocation25_spill] sm:$0xff]  ;;  %v5653_v32 = vld [vmem:[#allocation28_spill] sm:$0xff] }
 0x268   : > { %v1059_v35 = vmul.f32 %v1051_v4, %v1027_v26  ;;  %v2004_v22 = vsub.f32 %v4244_v24, %v4500_v47  ;;  %3283 = vrsqrt.f32 %v2023_v42  ;;  %v5651_v52 = vld [vmem:[#allocation23_spill] sm:$0xff] }
 0x269   : > { %3027 = vmatpush3.bf16.msra.mxu1 %v4188_v55  ;;  %v2065_v43 = vadd.f32 %v2049_v3, %v4368_v10  ;;  %3285 = vrsqrt.f32 %v2022_v27  ;;  %v2048_v13 = vmul.f32 %v2032_v33, %v4354_v5  ;;  %v2010_v16 = vsub.f32 %v5651_v52, %v4511_v25  ;;  %v4643_v52 = vld [vmem:[#allocation10 + $0x60] ss:$8 sps:$4 sm:$0xff]  }
 0x26a   : > { %3028 = vmatprep.subr.bf16.mxu1 %v4192_v56  ;;  %v1064_v54 = vpack.c.bf16 %v1059_v35, %v1058_v6  ;;  %v1028_v56 = vmul.f32 0.5, %v4528_v61  ;;  %v2050_v61 = vmul.f32 %v2034_v17, %v4354_v5  ;;  %1566 = vmatpush1.bf16.msra.mxu0 %v4643_v52 }
 0x26b   : > { %v3274_v45 = vpop.eup %3273  ;;  %v2081_v51 = vpack.c.bf16 %v2067_v41, %v2065_v43  ;;  %v2064_v26 = vadd.f32 %v2048_v13, %v4357_v62 }
 0x26c   : > { %v3276_v60 = vpop.eup %3275  ;;  %v1052_v38 = vadd.f32 1.0, %v3274_v45  ;;  %1210 = vmatmul.mubr.bf16.gmra.mrb[24].mxu1 %v1064_v54  ;;  %v2066_v4 = vadd.f32 %v2050_v61, %v4357_v62  ;;  %v2008_v54 = vsub.f32 %v5652_v30, %v4513_v15  ;;  %v3463_v45 = vld [vmem:[#allocation7 + $0x38] sm:$0xff]   ;;  %v4652_v30 = vld [vmem:[#allocation10 + $0x84] ss:$8 sps:$4 sm:$0xff]  }
 0x26d   : > { %v3278_v55 = vpop.eup %3277  ;;  %3029 = vmatpush3.bf16.msra.mxu1 %v4194_v57  ;;  %1219 = vmatprep.mubr.bf16.mxu1 %v5645_v36  ;;  %v2037_v40 = vmul.f32 %v3276_v60, %v2005_v34  ;;  %v2006_v57 = vsub.f32 %v4238_v20, %v4495_v53  ;;  %v5648_v20 = vld [vmem:[#allocation26_spill] sm:$0xff]  ;;  %v2036_v9 = vmul.f32 %v3276_v60, %v2004_v22 }
 0x26e   : > { %v1053_v12 = vadd.f32 1.0, %v3278_v55  ;;  %3030 = vmatprep.subr.bf16.mxu1 %v4198_v58  ;;  %v1060_v2 = vmul.f32 %v1052_v38, %v1028_v56  ;;  %v5646_v58 = vld [vmem:[#allocation24_spill] sm:$0xff]  ;;  %v3280_v31 = vpop.eup %3279  ;;  %v2009_v53 = vsub.f32 %v5648_v20, %v4513_v15  ;;  %v2015_v34 = vsub.f32 %v5653_v32, %v4531_v11  ;;  %v5654_v60 = vld [vmem:[#allocation22_spill] sm:$0xff]  ;;  %v5660_v20 = vld [vmem:[#allocation35_spill] sm:$0xff] }
 0x26f   : > { %v2011_v37 = vsub.f32 %v5646_v58, %v4511_v25  ;;  %v2053_v24 = vmul.f32 %v2037_v40, %v4351_v19  ;;  %v3282_v47 = vpop.eup %3281  ;;  %v2038_v8 = vmul.f32 %v3272_v48, %v2006_v57  ;;  %v2080_v3 = vpack.c.bf16 %v2066_v4, %v2064_v26  ;;  %v5655_v55 = vld [vmem:[#allocation30_spill] sm:$0xff] }
 0x270   : > { %v1061_v14 = vmul.f32 %v1053_v12, %v1029_v21  ;;  %v2041_v35 = vmul.f32 %v3282_v47, %v2009_v53  ;;  %v2052_v48 = vmul.f32 %v2036_v9, %v4354_v5  ;;  %v2013_v17 = vsub.f32 %v5655_v55, %v4537_v0  ;;  %v5663_v26 = vld [vmem:[#allocation38_spill] sm:$0xff] }
 0x271   : > { %3031 = vmatpush3.bf16.msra.mxu1 %v4200_v59  ;;  %v2055_v59 = vmul.f32 %v2039_v39, %v4351_v19  ;;  %v2069_v44 = vadd.f32 %v2053_v24, %v4368_v10  ;;  %v2043_v49 = vmul.f32 %v3280_v31, %v2011_v37  ;;  %v2054_v7 = vmul.f32 %v2038_v8, %v4354_v5  ;;  %v5661_v24 = vld [vmem:[#allocation36_spill] sm:$0xff]  ;;  %v5664_v8 = vld [vmem:[#allocation39_spill] sm:$0xff]  ;;  %v4660_v32 = vld [vmem:[#allocation10 + $0x90] ss:$8 sps:$4 sm:$0xff]  }
 0x272   : > { %3032 = vmatprep.subr.bf16.mxu1 %v5647_v46  ;;  %v1065_v23 = vpack.c.bf16 %v1061_v14, %v1060_v2  ;;  %v3284_v38 = vpop.eup %3283  ;;  %v2057_v33 = vmul.f32 %v2041_v35, %v4351_v19  ;;  %v2068_v56 = vadd.f32 %v2052_v48, %v4357_v62  ;;  %v2040_v12 = vmul.f32 %v3282_v47, %v2008_v54  ;;  %v5656_v2 = vld [vmem:[#allocation27_spill] sm:$0xff]  ;;  %v4670_v48 = vld [vmem:[#allocation10 + $0xb4] ss:$8 sps:$4 sm:$0xff]  }
 0x273   : > { %v2071_v6 = vadd.f32 %v2055_v59, %v4368_v10  ;;  %v2059_v15 = vmul.f32 %v2043_v49, %v4351_v19  ;;  %v3286_v42 = vpop.eup %3285  ;;  %v2070_v21 = vadd.f32 %v2054_v7, %v4357_v62  ;;  %v2042_v27 = vmul.f32 %v3280_v31, %v2010_v16  ;;  %v5668_v35 = vld [vmem:[#allocation43_spill] sm:$0xff]  ;;  %v5669_v49 = vld [vmem:[#allocation44_spill] sm:$0xff]  ;;  %v4648_v16 = vld [vmem:[#allocation10 + $0x70] ss:$8 sps:$4 sm:$0xff]  }
 0x274   : > { %1220 = vmatmul.mubr.bf16.gmra.mrb[28].mxu1 %v1065_v23  ;;  %v2073_v43 = vadd.f32 %v2057_v33, %v4368_v10  ;;  %v2045_v40 = vmul.f32 %v3286_v42, %v2013_v17  ;;  %v2047_v39 = vmul.f32 %v3284_v38, %v2015_v34  ;;  %v2014_v14 = vsub.f32 %v5656_v2, %v4531_v11  ;;  %v5659_v11 = vld [vmem:[#allocation34_spill] sm:$0xff]  ;;  %v4654_v54 = vld [vmem:[#allocation10 + $0x80] ss:$8 sps:$4 sm:$0xff]   ;;  %v4664_v34 = vld [vmem:[#allocation10 + $0xa4] ss:$8 sps:$4 sm:$0xff]  }
 0x275   : > { %3033 = vmatpush3.bf16.msra.mxu1 %v5649_v50  ;;  %2120 = vmatprep.mubr.bf16.mxu1 %v2081_v51  ;;  %v2083_v25 = vpack.c.bf16 %v2071_v6, %v2069_v44  ;;  %v2075_v41 = vadd.f32 %v2059_v15, %v4368_v10  ;;  %v2082_v22 = vpack.c.bf16 %v2070_v21, %v2068_v56  ;;  %v5662_v50 = vld [vmem:[#allocation37_spill] sm:$0xff]  ;;  %v4690_v33 = vld [vmem:[#allocation10 + $0xe0] ss:$8 sps:$4 sm:$0xff]  }
 0x276   : > { %3034 = vmatprep.subr.bf16.mxu1 %v5650_v28  ;;  %v2056_v61 = vmul.f32 %v2040_v12, %v4354_v5  ;;  %v2058_v58 = vmul.f32 %v2042_v27, %v4354_v5  ;;  %v2061_v46 = vmul.f32 %v2045_v40, %v4351_v19  ;;  %v2063_v23 = vmul.f32 %v2047_v39, %v4351_v19  ;;  %v5666_v6 = vld [vmem:[#allocation41_spill] sm:$0xff]  ;;  %v526_v21 = vld [vmem:[%s5536_s7] sm:$0x3]  ;;  %v5671_v12 = vld [vmem:[#allocation32_spill] sm:$0xff] }
 0x277   : > { %v2085_v37 = vpack.c.bf16 %v2075_v41, %v2073_v43  ;;  %v2046_v31 = vmul.f32 %v3284_v38, %v2014_v14  ;;  %v4672_v7 = vld [vmem:[#allocation10 + $0xb0] ss:$8 sps:$4 sm:$0xff]   ;;  %v4678_v38 = vld [vmem:[#allocation10 + $0xc0] ss:$8 sps:$4 sm:$0xff]   ;;  %v4682_v55 = vld [vmem:[#allocation10 + $0xd4] ss:$8 sps:$4 sm:$0xff]   ;;  %v4705_v27 = vrot.slane %v526_v21, %v5671_v12 }
 0x278   : > { %v2077_v53 = vadd.f32 %v2061_v46, %v4368_v10  ;;  %v2079_v51 = vadd.f32 %v2063_v23, %v4368_v10  ;;  %v5665_v10 = vld [vmem:[#allocation40_spill] sm:$0xff]  ;;  %v4684_v17 = vld [vmem:[#allocation10 + $0xd0] ss:$8 sps:$4 sm:$0xff]   ;;  %v4694_v15 = vld [vmem:[#allocation10 + $0xf4] ss:$8 sps:$4 sm:$0xff]  }
 0x279   : > { %3035 = vmatpush3.bf16.msra.mxu1 %v3463_v45  ;;  %v2062_v47 = vmul.f32 %v2046_v31, %v4354_v5  ;;  %v4658_v45 = vld [vmem:[#allocation10 + $0x94] ss:$8 sps:$4 sm:$0xff]   ;;  %v5672_v43 = vld [vmem:[#allocation31_spill] sm:$0xff] }
 0x27a   : > { %2197 = vmatprep.subr.bf16.mxu1 %v5654_v60  ;;  %v2087_v28 = vpack.c.bf16 %v2079_v51, %v2077_v53  ;;  %v4676_v60 = vld [vmem:[#allocation10 + $0xc4] ss:$8 sps:$4 sm:$0xff]   ;;  %v5670_v56 = vld [vmem:[#allocation45_spill] sm:$0xff]  ;;  %v4708_v41 = vrot.slane %v526_v21, %v5672_v43 }
 0x27b   : > { %v2078_v9 = vadd.f32 %v2062_v47, %v4357_v62 }
 0x27c   : > { %2121 = vmatmul.mubr.bf16.vlgmr.msra.gmra.mrb[32].mxu1 %v2080_v3  ;;  %v4666_v3 = vld [vmem:[#allocation10 + $0xa0] ss:$8 sps:$4 sm:$0xff]  }
 0x27d   : > { %2128 = vmatprep.mubr.bf16.mxu1 %v2083_v25  ;;  %2198 = vmatpush1.bf16.msra.mxu1 %v4391_v1  ;;  %v5657_v1 = vld [vmem:[#allocation29_spill] sm:$0xff]  ;;  %v4688_v25 = vld [vmem:[#allocation10 + $0xe4] ss:$8 sps:$4 sm:$0xff]  }
 0x27e   : > { %2199 = vmatprep.subr.bf16.mxu1 %v4394_v18  ;;  %v2012_v57 = vsub.f32 %v5657_v1, %v4537_v0  ;;  %v5658_v18 = vld [vmem:[#allocation33_spill] sm:$0xff]  ;;  %v2074_v0 = vadd.f32 %v2058_v58, %v4357_v62 }
 0x280   : > { %v2044_v13 = vmul.f32 %v3286_v42, %v2012_v57  ;;  %v4696_v42 = vld [vmem:[#allocation10 + $0xf0] ss:$8 sps:$4 sm:$0xff]  }
 0x281   : > { %2200 = vmatpush1.bf16.msra.mxu1 %v4409_v63  ;;  %v2072_v63 = vadd.f32 %v2056_v61, %v4357_v62 }
 0x282   : > { %2201 = vmatprep.subr.bf16.mxu1 %v5658_v18  ;;  %v2060_v19 = vmul.f32 %v2044_v13, %v4354_v5  ;;  %v5667_v5 = vld [vmem:[#allocation42_spill] sm:$0xff] }
 0x283   : > { %v2084_v59 = vpack.c.bf16 %v2074_v0, %v2072_v63 }
 0x284   : > { %2129 = vmatmul.mubr.bf16.gmra.mrb[36].mxu1 %v2082_v22  ;;  %v2076_v4 = vadd.f32 %v2060_v19, %v4357_v62  ;;  %v4646_v62 = vld [vmem:[#allocation10 + $0x74] ss:$8 sps:$4 sm:$0xff]  }
 0x285   : > { %2136 = vmatprep.mubr.bf16.mxu1 %v2085_v37  ;;  %2202 = vmatpush1.bf16.msra.mxu1 %v5659_v11 }
 0x286   : > { %2203 = vmatprep.subr.bf16.mxu1 %v5660_v20  ;;  %v2086_v44 = vpack.c.bf16 %v2078_v9, %v2076_v4  ;;  %1567 = vmatprep.subr.bf16.mxu0 %v4646_v62 }
 0x287   : > { %1568 = vmatpush1.bf16.msra.mxu0 %v4648_v16 }
 0x288   : > { %1569 = vmatprep.subr.bf16.mxu0 %v4652_v30 }
 0x289   : > { %2204 = vmatpush1.bf16.msra.mxu1 %v5661_v24 }
 0x28a   : > { %2205 = vmatprep.subr.bf16.mxu1 %v5662_v50 }
 0x28b   : > { %1570 = vmatpush1.bf16.msra.mxu0 %v4654_v54 }
 0x28c   : > { %2137 = vmatmul.mubr.bf16.gmra.mrb[40].mxu1 %v2084_v59  ;;  %1571 = vmatprep.subr.bf16.mxu0 %v4658_v45 }
 0x28d   : > { %2144 = vmatprep.mubr.bf16.mxu1 %v2087_v28  ;;  %2206 = vmatpush1.bf16.msra.mxu1 %v5663_v26 }
 0x28e   : > { %2207 = vmatprep.subr.bf16.mxu1 %v5664_v8 }
 0x28f   : > { %1572 = vmatpush1.bf16.msra.mxu0 %v4660_v32 }
 0x290   : > { %1573 = vmatprep.subr.bf16.mxu0 %v4664_v34 }
 0x291   : > { %2208 = vmatpush1.bf16.msra.mxu1 %v5665_v10 }
 0x292   : > { %2209 = vmatprep.subr.bf16.mxu1 %v5666_v6 }
 0x293   : > { %1574 = vmatpush1.bf16.msra.mxu0 %v4666_v3 }
 0x294   : > { %2145 = vmatmul.mubr.bf16.gmra.mrb[44].mxu1 %v2086_v44  ;;  %1575 = vmatprep.subr.bf16.mxu0 %v4670_v48 }
 0x295   : > { %2210 = vmatpush1.bf16.msra.mxu1 %v5667_v5  ;;  %2229 = vmatprep.mubr.bf16.mxu1 %v5645_v36 }
 0x296   : > { %2211 = vmatprep.subr.bf16.mxu1 %v5668_v35 }
 0x297   : > { %1576 = vmatpush1.bf16.msra.mxu0 %v4672_v7 }
 0x298   : > { %1577 = vmatprep.subr.bf16.mxu0 %v4676_v60 }
 0x299   : > { %2212 = vmatpush1.bf16.msra.mxu1 %v5669_v49 }
 0x29b   : > { %1578 = vmatpush1.bf16.msra.mxu0 %v4678_v38 }
 0x29c   : > { %1579 = vmatprep.subr.bf16.mxu0 %v4682_v55 }
 0x29f   : > { %1580 = vmatpush1.bf16.msra.mxu0 %v4684_v17 }
 0x2a0   : > { %1581 = vmatprep.subr.bf16.mxu0 %v4688_v25 }
 0x2a3   : > { %1582 = vmatpush1.bf16.msra.mxu0 %v4690_v33 }
 0x2a4   : > { %1583 = vmatprep.subr.bf16.mxu0 %v4694_v15 }
 0x2a7   : > { %1584 = vmatpush1.bf16.msra.mxu0 %v4696_v42 }
 0x2a8   : > { %2422 = vmatprep.subr.bf16.mxu0 %v5670_v56 }
 0x32f   : > { %v1191_v40 = vpop.f32.mrb[16].mxu1 }
 0x330   : > { %v1192_v39 = vadd.f32 %v1191_v40, %v4705_v27  ;;  %v1193_v2 = vpop.f32.mrb[17].mxu1 }
 0x331   : > { %v1194_v14 = vadd.f32 %v1193_v2, %v4708_v41  ;;  %v1195_v1 = vpop.f32.mrb[18].mxu1 }
 0x332   : > { %v2904_v57 = vmul.f32 -1.442695, %v1192_v39  ;;  %v1196_v22 = vadd.f32 %v1195_v1, %v4705_v27  ;;  %v1197_v61 = vpop.f32.mrb[19].mxu1  ;;  %v4723_v1 = vld [vmem:[%s4058_s12] sm:$0xff] }
 0x333   : > { %v2905_v58 = vmul.f32 -1.442695, %v1194_v14  ;;  %v1198_v18 = vadd.f32 %v1197_v61, %v4708_v41 }
 0x334   : > { %3287 = vpow2.f32 %v2904_v57  ;;  %v2906_v37 = vmul.f32 -1.442695, %v1196_v22  ;;  %v4726_v22 = vld [vmem:[%s4058_s12 + $0x8] sm:$0xff] }
 0x335   : > { %3289 = vpow2.f32 %v2905_v58  ;;  %v2907_v46 = vmul.f32 -1.442695, %v1198_v18  ;;  %v4729_v58 = vld [vmem:[%s4058_s12 + $0x10] sm:$0xff] }
 0x336   : > { %3291 = vpow2.f32 %v2906_v37 }
 0x337   : > { %3293 = vpow2.f32 %v2907_v46  ;;  %v1201_v23 = vpop.f32.mrb[20].mxu1 }
 0x338   : > { %v1202_v11 = vadd.f32 %v1201_v23, %v4705_v27  ;;  %v1203_v63 = vpop.f32.mrb[21].mxu1  ;;  %v3464_v23 = vld [vmem:[%s4050_s19] sm:$0xff] }
 0x339   : > { %v1204_v0 = vadd.f32 %v1203_v63, %v4708_v41  ;;  %v1205_v13 = vpop.f32.mrb[22].mxu1 }
 0x33a   : > { %v2908_v31 = vmul.f32 -1.442695, %v1202_v11  ;;  %v1206_v20 = vadd.f32 %v1205_v13, %v4705_v27  ;;  %v1207_v53 = vpop.f32.mrb[23].mxu1  ;;  %v1326_v11 = vsub.f32 %v3464_v23, %v4723_v1 }
 0x33b   : > { %v2909_v51 = vmul.f32 -1.442695, %v1204_v0  ;;  %v1208_v24 = vadd.f32 %v1207_v53, %v4708_v41  ;;  %v3465_v53 = vld [vmem:[%s4050_s19 + $0x8] sm:$0xff] }
 0x33c   : > { %3295 = vpow2.f32 %v2908_v31  ;;  %v2910_v59 = vmul.f32 -1.442695, %v1206_v20  ;;  %v627_v20 = vld [vmem:[%s4058_s12 + $0x18] sm:$0xff] }
 0x33d   : > { %3297 = vpow2.f32 %v2909_v51  ;;  %v2911_v19 = vmul.f32 -1.442695, %v1208_v24  ;;  %v1327_v51 = vsub.f32 %v3465_v53, %v4726_v22  ;;  %v3469_v53 = vld [vmem:[%s4050_s19 + $0x20] sm:$0xff] }
 0x33e   : > { %v3288_v47 = vpop.eup %3287  ;;  %3299 = vpow2.f32 %v2910_v59 }
 0x33f   : > { %v3290_v50 = vpop.eup %3289  ;;  %v1278_v28 = vadd.f32 1.0, %v3288_v47  ;;  %3301 = vpow2.f32 %v2911_v19  ;;  %v1211_v26 = vpop.f32.mrb[24].mxu1 }
 0x340   : > { %v3292_v4 = vpop.eup %3291  ;;  %v1279_v9 = vadd.f32 1.0, %v3290_v50  ;;  %v1212_v8 = vadd.f32 %v1211_v26, %v4705_v27  ;;  %v1213_v10 = vpop.f32.mrb[25].mxu1  ;;  %v3466_v50 = vld [vmem:[%s4050_s19 + $0x10] sm:$0xff] }
 0x341   : > { %v3294_v44 = vpop.eup %3293  ;;  %3303 = vrcp.f32 %v1278_v28  ;;  %v1280_v6 = vadd.f32 1.0, %v3292_v4  ;;  %v1214_v5 = vadd.f32 %v1213_v10, %v4708_v41  ;;  %v1215_v35 = vpop.f32.mrb[26].mxu1  ;;  %v1328_v28 = vsub.f32 %v3466_v50, %v4729_v58  ;;  %v3470_v50 = vld [vmem:[%s4050_s19 + $0x38] sm:$0xff] }
 0x342   : > { %3305 = vrcp.f32 %v1279_v9  ;;  %v1281_v49 = vadd.f32 1.0, %v3294_v44  ;;  %v2912_v56 = vmul.f32 -1.442695, %v1212_v8  ;;  %v1216_v21 = vadd.f32 %v1215_v35, %v4705_v27  ;;  %v1217_v40 = vpop.f32.mrb[27].mxu1 }
 0x343   : > { %3307 = vrcp.f32 %v1280_v6  ;;  %v2913_v39 = vmul.f32 -1.442695, %v1214_v5  ;;  %v1218_v2 = vadd.f32 %v1217_v40, %v4708_v41  ;;  %v3467_v5 = vld [vmem:[%s4050_s19 + $0x18] sm:$0xff]  ;;  %v4747_v40 = vld [vmem:[%s4058_s12 + $0x20] sm:$0xff] }
 0x344   : > { %3309 = vrcp.f32 %v1281_v49  ;;  %v2914_v14 = vmul.f32 -1.442695, %v1216_v21  ;;  %v1329_v35 = vsub.f32 %v3467_v5, %v627_v20  ;;  %v4744_v21 = vld [vmem:[%s4058_s12 + $0x28] sm:$0xff] }
 0x345   : > { %3311 = vpow2.f32 %v2912_v56  ;;  %v2915_v57 = vmul.f32 -1.442695, %v1218_v2 }
 0x346   : > { %v3296_v61 = vpop.eup %3295  ;;  %3313 = vpow2.f32 %v2913_v39 }
 0x347   : > { %v3298_v18 = vpop.eup %3297  ;;  %v1282_v37 = vadd.f32 1.0, %v3296_v61  ;;  %3315 = vpow2.f32 %v2914_v14  ;;  %v1221_v46 = vpop.f32.mrb[28].mxu1  ;;  %v4750_v14 = vld [vmem:[%s4058_s12 + $0x38] sm:$0xff] }
 0x348   : > { %v3300_v63 = vpop.eup %3299  ;;  %v1283_v0 = vadd.f32 1.0, %v3298_v18  ;;  %3317 = vpow2.f32 %v2915_v57  ;;  %v1222_v13 = vadd.f32 %v1221_v46, %v4705_v27  ;;  %v1223_v31 = vpop.f32.mrb[29].mxu1  ;;  %v4753_v57 = vld [vmem:[%s4058_s12 + $0x30] sm:$0xff] }
 0x349   : > { %v3302_v24 = vpop.eup %3301  ;;  %3319 = vrcp.f32 %v1282_v37  ;;  %v1284_v59 = vadd.f32 1.0, %v3300_v63  ;;  %v1224_v19 = vadd.f32 %v1223_v31, %v4708_v41  ;;  %v1225_v47 = vpop.f32.mrb[30].mxu1 }
 0x34a   : > { %3321 = vrcp.f32 %v1283_v0  ;;  %v1285_v26 = vadd.f32 1.0, %v3302_v24  ;;  %v2916_v4 = vmul.f32 -1.442695, %v1222_v13  ;;  %v1226_v9 = vadd.f32 %v1225_v47, %v4705_v27  ;;  %v1227_v8 = vpop.f32.mrb[31].mxu1  ;;  %v3468_v13 = vld [vmem:[%s4050_s19 + $0x28] sm:$0xff] }
 0x34b   : > { %v3304_v10 = vpop.eup %3303  ;;  %3323 = vrcp.f32 %v1284_v59  ;;  %v2917_v44 = vmul.f32 -1.442695, %v1224_v19  ;;  %v1228_v6 = vadd.f32 %v1227_v8, %v4708_v41  ;;  %v1331_v31 = vsub.f32 %v3468_v13, %v4744_v21 }
 0x34c   : > { %v3306_v49 = vpop.eup %3305  ;;  %3325 = vrcp.f32 %v1285_v26  ;;  %v2918_v56 = vmul.f32 -1.442695, %v1226_v9  ;;  %v1342_v37 = vmul.f32 %v3304_v10, %v1326_v11  ;;  %v1330_v24 = vsub.f32 %v3469_v53, %v4747_v40  ;;  %v3471_v11 = vld [vmem:[%s4050_s19 + $0x30] sm:$0xff] }
 0x34d   : > { %v3308_v39 = vpop.eup %3307  ;;  %3327 = vpow2.f32 %v2916_v4  ;;  %v2919_v2 = vmul.f32 -1.442695, %v1228_v6  ;;  %v1343_v18 = vmul.f32 %v3306_v49, %v1327_v51  ;;  %v1333_v51 = vsub.f32 %v3470_v50, %v4750_v14 }
 0x34e   : > { %v3310_v61 = vpop.eup %3309  ;;  %3329 = vpow2.f32 %v2917_v44  ;;  %v1344_v46 = vmul.f32 %v3308_v39, %v1328_v28  ;;  %v1332_v28 = vsub.f32 %v3471_v11, %v4753_v57 }
 0x34f   : > { %v3312_v23 = vpop.eup %3311  ;;  %3331 = vpow2.f32 %v2918_v56  ;;  %v3036_v63 = vpop.f32.mrb[32].mxu1  ;;  %v1345_v0 = vmul.f32 %v3310_v61, %v1329_v35  ;;  %v4769_v49 = vadd.f32 %v1343_v18, %v4726_v22  ;;  %v4772_v56 = vadd.f32 %v1342_v37, %v4723_v1 }
 0x350   : > { %v3314_v59 = vpop.eup %3313  ;;  %v1286_v19 = vadd.f32 1.0, %v3312_v23  ;;  %3333 = vpow2.f32 %v2919_v2  ;;  %v3037_v47 = vpop.f32.mrb[33].mxu1  ;;  %v4766_v44 = vadd.f32 %v1344_v46, %v4729_v58  ;;  %v4780_v23 = vld [vmem:[%s4058_s12 + $0x40] sm:$0xff] }
 0x351   : > { %v3316_v26 = vpop.eup %3315  ;;  %v1287_v4 = vadd.f32 1.0, %v3314_v59  ;;  %v3038_v9 = vadd.f32 %v3037_v47, %v3036_v63  ;;  %v3039_v8 = vpop.f32.mrb[34].mxu1  ;;  %v4763_v10 = vadd.f32 %v1345_v0, %v627_v20  ;;  %v4789_v63 = vld [vmem:[%s4058_s12 + $0x48] sm:$0xff]  ;;  %v4792_v0 = vld [vmem:[%s4058_s12 + $0x50] sm:$0xff] }
 0x352   : > { %5674 = vst [vmem:[#allocation19_spill] sm:$0xff] %v4766_v44  ;;  %v3318_v6 = vpop.eup %3317  ;;  %3335 = vrcp.f32 %v1286_v19  ;;  %v1288_v5 = vadd.f32 1.0, %v3316_v26  ;;  %v3040_v35 = vpop.f32.mrb[35].mxu1  ;;  %v1374_v37 = vpack.c.bf16 %v4766_v44, %v4772_v56  ;;  %v3489_v44 = vld [vmem:[#allocation10 + $0x40] ss:$8 sps:$4 sm:$0xff]  }
 0x353   : > { %5673 = vst [vmem:[#allocation24_spill] sm:$0xff] %v4763_v10  ;;  %v3320_v39 = vpop.eup %3319  ;;  %3337 = vrcp.f32 %v1287_v4  ;;  %v1289_v20 = vadd.f32 1.0, %v3318_v6  ;;  %v4775_v2 = vadd.f32 %v3038_v9, %v4485_v29  ;;  %v3041_v58 = vadd.f32 %v3040_v35, %v3039_v8  ;;  %v3472_v4 = vld [vmem:[%s4050_s19 + $0x40] sm:$0xff] }
 0x354   : > { %v3322_v61 = vpop.eup %3321  ;;  %3339 = vrcp.f32 %v1288_v5  ;;  %v1375_v46 = vpack.c.bf16 %v4763_v10, %v4769_v49  ;;  %v1346_v59 = vmul.f32 %v3320_v39, %v1330_v24  ;;  %v1334_v9 = vsub.f32 %v3472_v4, %v4780_v23 }
 0x355   : > { %v3324_v22 = vpop.eup %3323  ;;  %3341 = vrcp.f32 %v1289_v20  ;;  %v2161_v1 = vmul.f32 0.70710677, %v4775_v2  ;;  %v4784_v18 = vadd.f32 %v3041_v58, %v4485_v29  ;;  %v1347_v53 = vmul.f32 %v3322_v61, %v1331_v31  ;;  %v3473_v31 = vld [vmem:[%s4050_s19 + $0x48] sm:$0xff] }
 0x356   : > { %v3326_v13 = vpop.eup %3325  ;;  %1585 = vmatprep.mubr.bf16.mxu0 %v1375_v46  ;;  %v1348_v19 = vmul.f32 %v3324_v22, %v1332_v28  ;;  %v1335_v24 = vsub.f32 %v3473_v31, %v4789_v63  ;;  %v3474_v28 = vld [vmem:[%s4050_s19 + $0x50] sm:$0xff]  ;;  %v3475_v20 = vld [vmem:[#allocation10] ss:$8 sps:$4 sm:$0xff]   ;;  %v4812_v4 = vadd.f32 %v1346_v59, %v4747_v40 }
 0x357   : > { %v3328_v47 = vpop.eup %3327  ;;  %3343 = verf.f32 %v2161_v1  ;;  %v2162_v50 = vmul.f32 0.70710677, %v4784_v18  ;;  %1586 = vmatmul.mubr.bf16.vlgmr.msra.gmra.mrb[0].mxu0 %v1374_v37  ;;  %v3042_v11 = vpop.f32.mrb[36].mxu1  ;;  %v1349_v26 = vmul.f32 %v3326_v13, %v1333_v51  ;;  %v1336_v39 = vsub.f32 %v3474_v28, %v4792_v0  ;;  %v635_v1 = vld [vmem:[%s4058_s12 + $0x58] sm:$0xff]  ;;  %v4827_v28 = vld [vmem:[%s4058_s12 + $0x60] sm:$0xff] }
 0x358   : > { %v3330_v8 = vpop.eup %3329  ;;  %v1290_v6 = vadd.f32 1.0, %v3328_v47  ;;  %v3043_v5 = vpop.f32.mrb[37].mxu1  ;;  %v4798_v35 = vadd.f32 %v1348_v19, %v4753_v57  ;;  %2423 = vmatpush1.bf16.msra.mxu0 %v3475_v20  ;;  %v3476_v57 = vld [vmem:[#allocation10 + $0x14] ss:$8 sps:$4 sm:$0xff]   ;;  %v4809_v47 = vadd.f32 %v1347_v53, %v4744_v21  ;;  %5678 = vst [vmem:[#allocation23_spill] sm:$0xff] %v4812_v4 }
 0x359   : > { %v3332_v58 = vpop.eup %3331  ;;  %v1291_v51 = vadd.f32 1.0, %v3330_v8  ;;  %3345 = verf.f32 %v2162_v50  ;;  %v3044_v61 = vadd.f32 %v3043_v5, %v3042_v11  ;;  %v3045_v46 = vpop.f32.mrb[38].mxu1  ;;  %v4805_v22 = vadd.f32 %v1349_v26, %v4750_v14  ;;  %2424 = vmatprep.subr.bf16.mxu0 %v3476_v57  ;;  %v3478_v21 = vld [vmem:[#allocation10 + $0x10] ss:$8 sps:$4 sm:$0xff]   ;;  %v3479_v20 = vld [vmem:[#allocation10 + $0x24] ss:$8 sps:$4 sm:$0xff]  }
 0x35a   : > { %5675 = vst [vmem:[#allocation26_spill] sm:$0xff] %v4798_v35  ;;  %v3334_v37 = vpop.eup %3333  ;;  %3347 = vrcp.f32 %v1290_v6  ;;  %v1292_v13 = vadd.f32 1.0, %v3332_v58  ;;  %v3046_v19 = vpop.f32.mrb[39].mxu1  ;;  %5677 = vst [vmem:[#allocation21_spill] sm:$0xff] %v4809_v47  ;;  %v3477_v6 = vld [vmem:[%s4050_s19 + $0x58] sm:$0xff]  ;;  %v1376_v31 = vpack.c.bf16 %v4798_v35, %v4812_v4 }
 0x35b   : > { %5676 = vst [vmem:[#allocation20_spill] sm:$0xff] %v4805_v22  ;;  %3349 = vrcp.f32 %v1291_v51  ;;  %v1293_v50 = vadd.f32 1.0, %v3334_v37  ;;  %v4815_v14 = vadd.f32 %v3044_v61, %v4485_v29  ;;  %v3047_v11 = vadd.f32 %v3046_v19, %v3045_v46  ;;  %v4830_v61 = vld [vmem:[%s4058_s12 + $0x68] sm:$0xff]  ;;  %v4834_v19 = vld [vmem:[%s4058_s12 + $0x70] sm:$0xff] }
 0x35c   : > { %v3336_v26 = vpop.eup %3335  ;;  %3351 = vrcp.f32 %v1292_v13  ;;  %v1377_v8 = vpack.c.bf16 %v4805_v22, %v4809_v47  ;;  %v1337_v5 = vsub.f32 %v3477_v6, %v635_v1  ;;  %2425 = vmatpush1.bf16.msra.mxu0 %v3478_v21  ;;  %v4837_v6 = vld [vmem:[%s4058_s12 + $0x78] sm:$0xff]  ;;  %v3480_v21 = vld [vmem:[%s4050_s19 + $0x60] sm:$0xff] }
 0x35d   : > { %v3338_v53 = vpop.eup %3337  ;;  %3353 = vrcp.f32 %v1293_v50  ;;  %v2163_v40 = vmul.f32 0.70710677, %v4815_v14  ;;  %v4822_v59 = vadd.f32 %v3047_v11, %v4485_v29  ;;  %2426 = vmatprep.subr.bf16.mxu0 %v3479_v20  ;;  %v1350_v37 = vmul.f32 %v3336_v26, %v1334_v9  ;;  %v3482_v9 = vld [vmem:[%s4050_s19 + $0x68] sm:$0xff]  ;;  %v3483_v26 = vld [vmem:[#allocation10 + $0x34] ss:$8 sps:$4 sm:$0xff]  }
 0x35e   : > { %v3340_v58 = vpop.eup %3339  ;;  %1595 = vmatprep.mubr.bf16.mxu0 %v1377_v8  ;;  %v1351_v51 = vmul.f32 %v3338_v53, %v1335_v24  ;;  %v1338_v24 = vsub.f32 %v3480_v21, %v4827_v28  ;;  %v3481_v8 = vld [vmem:[#allocation10 + $0x20] ss:$8 sps:$4 sm:$0xff]   ;;  %v3487_v22 = vld [vmem:[#allocation10 + $0x30] ss:$8 sps:$4 sm:$0xff]  }
 0x35f   : > { %v3342_v46 = vpop.eup %3341  ;;  %3355 = verf.f32 %v2163_v40  ;;  %v2164_v29 = vmul.f32 0.70710677, %v4822_v59  ;;  %1596 = vmatmul.mubr.bf16.gmra.mrb[4].mxu0 %v1376_v31  ;;  %v3048_v57 = vpop.f32.mrb[40].mxu1  ;;  %v1352_v13 = vmul.f32 %v3340_v58, %v1336_v39  ;;  %v1339_v39 = vsub.f32 %v3482_v9, %v4830_v61 }
 0x360   : > { %v3049_v50 = vpop.f32.mrb[41].mxu1  ;;  %v1353_v11 = vmul.f32 %v3342_v46, %v1337_v5  ;;  %2427 = vmatpush1.bf16.msra.mxu0 %v3481_v8  ;;  %v4847_v46 = vadd.f32 %v1351_v51, %v4789_v63  ;;  %v3484_v8 = vld [vmem:[%s4050_s19 + $0x70] sm:$0xff]  ;;  %v4859_v9 = vadd.f32 %v1350_v37, %v4780_v23  ;;  %v3488_v37 = vld [vmem:[#allocation10 + $0x44] ss:$8 sps:$4 sm:$0xff]  }
 0x361   : > { %v3344_v53 = vpop.eup %3343  ;;  %3357 = verf.f32 %v2164_v29  ;;  %v3050_v40 = vadd.f32 %v3049_v50, %v3048_v57  ;;  %v3051_v31 = vpop.f32.mrb[42].mxu1  ;;  %v4842_v20 = vadd.f32 %v1352_v13, %v4792_v0  ;;  %2428 = vmatprep.subr.bf16.mxu0 %v3483_v26  ;;  %v1340_v29 = vsub.f32 %v3484_v8, %v4834_v19  ;;  %v3485_v0 = vld [vmem:[%s5534_s5] ss:$0 sm:$0xff] }
 0x362   : > { %v2177_v5 = vadd.f32 1.0, %v3344_v53  ;;  %v3052_v58 = vpop.f32.mrb[43].mxu1  ;;  %5680 = vst [vmem:[#allocation28_spill] sm:$0xff] %v4847_v46  ;;  %v4849_v21 = vadd.f32 %v1353_v11, %v635_v1  ;;  %v3486_v53 = vld [vmem:[%s4050_s19 + $0x78] sm:$0xff]  ;;  %v2153_v1 = vmul.f32 0.5, %v4775_v2  ;;  %v2154_v11 = vmul.f32 0.5, %v4784_v18 }
 0x363   : > { %5679 = vst [vmem:[#allocation25_spill] sm:$0xff] %v4842_v20  ;;  %v3346_v57 = vpop.eup %3345  ;;  %v4856_v13 = vadd.f32 %v3485_v0, %v3050_v40  ;;  %v3053_v50 = vadd.f32 %v3052_v58, %v3051_v31  ;;  %v1341_v63 = vsub.f32 %v3486_v53, %v4837_v6  ;;  %v1378_v23 = vpack.c.bf16 %v4842_v20, %v4859_v9 }
 0x364   : > { %5681 = vst [vmem:[#allocation22_spill] sm:$0xff] %v4849_v21  ;;  %v3348_v51 = vpop.eup %3347  ;;  %v2178_v26 = vadd.f32 1.0, %v3346_v57  ;;  %v1379_v8 = vpack.c.bf16 %v4849_v21, %v4847_v46  ;;  %2429 = vmatpush1.bf16.msra.mxu0 %v3487_v22  ;;  %v2185_v2 = vmul.f32 %v2177_v5, %v2153_v1 }
 0x365   : > { %v3350_v40 = vpop.eup %3349  ;;  %v2165_v31 = vmul.f32 0.70710677, %v4856_v13  ;;  %v4868_v58 = vadd.f32 %v3485_v0, %v3053_v50  ;;  %2430 = vmatprep.subr.bf16.mxu0 %v3488_v37  ;;  %v1354_v46 = vmul.f32 %v3348_v51, %v1338_v24 }
 0x366   : > { %v3352_v53 = vpop.eup %3351  ;;  %v2186_v35 = vmul.f32 %v2178_v26, %v2154_v11  ;;  %1605 = vmatprep.mubr.bf16.mxu0 %v1379_v8  ;;  %v1355_v18 = vmul.f32 %v3350_v40, %v1339_v39  ;;  %v3490_v39 = vld [vmem:[#allocation10 + $0x54] ss:$8 sps:$4 sm:$0xff]   ;;  %v3492_v8 = vld [vmem:[#allocation10 + $0x64] ss:$8 sps:$4 sm:$0xff]  }
 0x367   : > { %v3354_v57 = vpop.eup %3353  ;;  %3359 = verf.f32 %v2165_v31  ;;  %v2166_v21 = vmul.f32 0.70710677, %v4868_v58  ;;  %1606 = vmatmul.mubr.bf16.gmra.mrb[8].mxu0 %v1378_v23  ;;  %v3054_v22 = vpop.f32.mrb[44].mxu1  ;;  %v1356_v47 = vmul.f32 %v3352_v53, %v1340_v29  ;;  %v2157_v23 = vmul.f32 0.5, %v4856_v13 }
 0x368   : > { %v2193_v50 = vpack.c.bf16 %v2186_v35, %v2185_v2  ;;  %v3055_v4 = vpop.f32.mrb[45].mxu1  ;;  %v1357_v10 = vmul.f32 %v3354_v57, %v1341_v63  ;;  %2431 = vmatpush1.bf16.msra.mxu0 %v3489_v44  ;;  %v4877_v24 = vadd.f32 %v1355_v18, %v4830_v61  ;;  %v2158_v53 = vmul.f32 0.5, %v4868_v58 }
 0x369   : > { %v3356_v20 = vpop.eup %3355  ;;  %3361 = verf.f32 %v2166_v21  ;;  %v3056_v37 = vadd.f32 %v3055_v4, %v3054_v22  ;;  %v3057_v5 = vpop.f32.mrb[46].mxu1  ;;  %v4874_v1 = vadd.f32 %v1356_v47, %v4834_v19  ;;  %2432 = vmatprep.subr.bf16.mxu0 %v3490_v39  ;;  %v4883_v4 = vadd.f32 %v1354_v46, %v4827_v28  ;;  %v3491_v21 = vld [vmem:[#allocation10 + $0x50] ss:$8 sps:$4 sm:$0xff]  }
 0x36a   : > { %v2179_v11 = vadd.f32 1.0, %v3356_v20  ;;  %v3058_v26 = vpop.f32.mrb[47].mxu1  ;;  %2230 = vmatmul.mubr.bf16.vlgmr.msra.gmra.mrb[48].mxu1 %v2193_v50  ;;  %v4880_v35 = vadd.f32 %v1357_v10, %v4837_v6  ;;  %v2155_v47 = vmul.f32 0.5, %v4815_v14  ;;  %v2156_v19 = vmul.f32 0.5, %v4822_v59 }
 0x36b   : > { %v3358_v29 = vpop.eup %3357  ;;  %v2147_v44 = vadd.f32 %v3485_v0, %v3056_v37  ;;  %v3059_v63 = vadd.f32 %v3058_v26, %v3057_v5  ;;  %2239 = vmatprep.mubr.bf16.mxu1 %v5645_v36  ;;  %v1380_v51 = vpack.c.bf16 %v4874_v1, %v4883_v4 }
 0x36c   : > { %v2180_v20 = vadd.f32 1.0, %v3358_v29  ;;  %v1381_v61 = vpack.c.bf16 %v4880_v35, %v4877_v24  ;;  %2433 = vmatpush1.bf16.msra.mxu0 %v3491_v21  ;;  %v2187_v28 = vmul.f32 %v2179_v11, %v2155_v47 }
 0x36d   : > { %v2167_v10 = vmul.f32 0.70710677, %v2147_v44  ;;  %v2150_v6 = vadd.f32 %v3485_v0, %v3059_v63  ;;  %2434 = vmatprep.subr.bf16.mxu0 %v3492_v8  ;;  %v2159_v13 = vmul.f32 0.5, %v2147_v44 }
 0x36e   : > { %1615 = vmatprep.mubr.bf16.mxu0 %v1381_v61  ;;  %v2188_v46 = vmul.f32 %v2180_v20, %v2156_v19 }
 0x36f   : > { %3363 = verf.f32 %v2167_v10  ;;  %v2168_v14 = vmul.f32 0.70710677, %v2150_v6  ;;  %1616 = vmatmul.mubr.bf16.gmra.mrb[12].mxu0 %v1380_v51  ;;  %v2160_v58 = vmul.f32 0.5, %v2150_v6 }
 0x370   : > { %v2194_v59 = vpack.c.bf16 %v2188_v46, %v2187_v28  ;;  %2435 = vmatpush1.bf16.msra.mxu0 %v4643_v52 }
 0x371   : > { %v3360_v40 = vpop.eup %3359  ;;  %3365 = verf.f32 %v2168_v14  ;;  %2436 = vmatprep.subr.bf16.mxu0 %v4646_v62 }
 0x372   : > { %v2181_v31 = vadd.f32 1.0, %v3360_v40  ;;  %2240 = vmatmul.mubr.bf16.gmra.mrb[52].mxu1 %v2194_v59 }
 0x373   : > { %v3362_v0 = vpop.eup %3361  ;;  %2249 = vmatprep.mubr.bf16.mxu1 %v5645_v36 }
 0x374   : > { %v2182_v2 = vadd.f32 1.0, %v3362_v0  ;;  %2437 = vmatpush1.bf16.msra.mxu0 %v4648_v16  ;;  %v2189_v18 = vmul.f32 %v2181_v31, %v2157_v23 }
 0x375   : > { %2438 = vmatprep.subr.bf16.mxu0 %v4652_v30 }
 0x376   : > { %v2190_v52 = vmul.f32 %v2182_v2, %v2158_v53 }
 0x378   : > { %v2195_v57 = vpack.c.bf16 %v2190_v52, %v2189_v18  ;;  %2439 = vmatpush1.bf16.msra.mxu0 %v4654_v54 }
 0x379   : > { %v3364_v62 = vpop.eup %3363  ;;  %2440 = vmatprep.subr.bf16.mxu0 %v4658_v45 }
 0x37a   : > { %v2183_v22 = vadd.f32 1.0, %v3364_v62  ;;  %2250 = vmatmul.mubr.bf16.gmra.mrb[56].mxu1 %v2195_v57 }
 0x37b   : > { %v3366_v50 = vpop.eup %3365  ;;  %2259 = vmatprep.mubr.bf16.mxu1 %v5645_v36  ;;  %v527_v36 = vld [vmem:[%s5682_s0] sm:$0x3]  ;;  %s3659_s0 = scalar_lea.vmem %s3658_s13, 8192 }
 0x37c   : > { %v2184_v37 = vadd.f32 1.0, %v3366_v50  ;;  %2441 = vmatpush1.bf16.msra.mxu0 %v4660_v32  ;;  %v2191_v16 = vmul.f32 %v2183_v22, %v2159_v13  ;;  %v4919_v54 = vrot.slane %v527_v36, %v5671_v12  ;;  %v4922_v45 = vrot.slane %v527_v36, %v5672_v43  ;;  %p3661_p2 = scmp.lt.s32.totalorder %s3659_s0, %s3653_s15 }
 0x37d   : > { %2442 = vmatprep.subr.bf16.mxu0 %v4664_v34 }
 0x37e   : > { %v2192_v30 = vmul.f32 %v2184_v37, %v2160_v58  ;;  %p3662_p4 = por %p3661_p2, %p3660_p11 }
 0x380   : > { %v2196_v5 = vpack.c.bf16 %v2192_v30, %v2191_v16  ;;  %2443 = vmatpush1.bf16.msra.mxu0 %v4666_v3  ;;  %p3663_p6 = pnand %p3662_p4, %p3656_p5 }
 0x381   : > { %2444 = vmatprep.subr.bf16.mxu0 %v4670_v48 }
 0x382   : > { %2260 = vmatmul.mubr.bf16.gmra.mrb[60].mxu1 %v2196_v5 }
 0x384   : > { %2445 = vmatpush1.bf16.msra.mxu0 %v4672_v7 }
 0x385   : > { %2446 = vmatprep.subr.bf16.mxu0 %v4676_v60 }
 0x388   : > { %2447 = vmatpush1.bf16.msra.mxu0 %v4678_v38 }
 0x389   : > { %2448 = vmatprep.subr.bf16.mxu0 %v4682_v55 }
 0x38c   : > { %2449 = vmatpush1.bf16.msra.mxu0 %v4684_v17 }
 0x38d   : > { %2450 = vmatprep.subr.bf16.mxu0 %v4688_v25 }
 0x390   : > { %2451 = vmatpush1.bf16.msra.mxu0 %v4690_v33 }
 0x391   : > { %2452 = vmatprep.subr.bf16.mxu0 %v4694_v15 }
 0x394   : > { %2453 = vmatpush1.bf16.msra.mxu0 %v4696_v42 }
 0x42a   : > { %v1587_v32 = vpop.f32.mrb[0].mxu0 }
 0x42b   : > { %v4925_v34 = vadd.f32 %v1587_v32, %v4919_v54  ;;  %v1589_v3 = vpop.f32.mrb[1].mxu0 }
 0x42c   : > { %v4928_v48 = vadd.f32 %v1589_v3, %v4922_v45  ;;  %v1591_v7 = vpop.f32.mrb[2].mxu0 }
 0x42d   : > { %v4931_v60 = vadd.f32 %v1591_v7, %v4919_v54  ;;  %v1593_v38 = vpop.f32.mrb[3].mxu0  ;;  %v1658_v25 = vmul.f32 %v4925_v34, %v4925_v34 }
 0x42e   : > { %v4934_v55 = vadd.f32 %v1593_v38, %v4922_v45  ;;  %v1626_v17 = vadd.f32 %v4928_v48, %v4925_v34  ;;  %v1659_v33 = vmul.f32 %v4928_v48, %v4928_v48 }
 0x42f   : > { %v1660_v42 = vmul.f32 %v4931_v60, %v4931_v60 }
 0x430   : > { %1627 = vadd.xlane.f32.xlu0 %v1626_v17  ;;  %v1629_v15 = vadd.f32 %v4934_v55, %v4931_v60  ;;  %v1661_v39 = vmul.f32 %v4934_v55, %v4934_v55  ;;  %v1674_v26 = vadd.f32 %v1659_v33, %v1658_v25 }
 0x432   : > { %v1597_v11 = vpop.f32.mrb[4].mxu0  ;;  %1630 = vadd.xlane.f32.xlu1 %v1629_v15  ;;  %v1677_v19 = vadd.f32 %v1661_v39, %v1660_v42 }
 0x433   : > { %v4949_v29 = vadd.f32 %v1597_v11, %v4919_v54  ;;  %v1599_v44 = vpop.f32.mrb[5].mxu0 }
 0x434   : > { %v4952_v63 = vadd.f32 %v1599_v44, %v4922_v45  ;;  %v1601_v47 = vpop.f32.mrb[6].mxu0  ;;  %1675 = vadd.xlane.f32.xlu0 %v1674_v26 }
 0x435   : > { %v4955_v20 = vadd.f32 %v1601_v47, %v4919_v54  ;;  %v1603_v61 = vpop.f32.mrb[7].mxu0  ;;  %v1662_v6 = vmul.f32 %v4949_v29, %v4949_v29 }
 0x436   : > { %v4958_v21 = vadd.f32 %v1603_v61, %v4922_v45  ;;  %1678 = vadd.xlane.f32.xlu1 %v1677_v19  ;;  %v1632_v10 = vadd.f32 %v4952_v63, %v4949_v29  ;;  %v1663_v51 = vmul.f32 %v4952_v63, %v4952_v63 }
 0x437   : > { %v1664_v28 = vmul.f32 %v4955_v20, %v4955_v20 }
 0x438   : > { %1633 = vadd.xlane.f32.xlu0 %v1632_v10  ;;  %v1635_v8 = vadd.f32 %v4958_v21, %v4955_v20  ;;  %v1665_v46 = vmul.f32 %v4958_v21, %v4958_v21  ;;  %v1680_v59 = vadd.f32 %v1663_v51, %v1662_v6 }
 0x43a   : > { %v1607_v14 = vpop.f32.mrb[8].mxu0  ;;  %1636 = vadd.xlane.f32.xlu1 %v1635_v8  ;;  %v1683_v53 = vadd.f32 %v1665_v46, %v1664_v28 }
 0x43b   : > { %v4973_v40 = vadd.f32 %v1607_v14, %v4919_v54  ;;  %v1609_v31 = vpop.f32.mrb[9].mxu0 }
 0x43c   : > { %v4976_v0 = vadd.f32 %v1609_v31, %v4922_v45  ;;  %v1611_v23 = vpop.f32.mrb[10].mxu0  ;;  %1681 = vadd.xlane.f32.xlu0 %v1680_v59 }
 0x43d   : > { %v4979_v2 = vadd.f32 %v1611_v23, %v4919_v54  ;;  %v1613_v18 = vpop.f32.mrb[11].mxu0  ;;  %v2231_v52 = vpop.f32.mrb[48].mxu1  ;;  %v1666_v57 = vmul.f32 %v4973_v40, %v4973_v40 }
 0x43e   : > { %v4984_v62 = vadd.f32 %v1613_v18, %v4922_v45  ;;  %v2232_v22 = vadd.f32 %v2231_v52, %v4705_v27  ;;  %1684 = vadd.xlane.f32.xlu1 %v1683_v53  ;;  %v2233_v50 = vpop.f32.mrb[49].mxu1  ;;  %v1638_v13 = vadd.f32 %v4976_v0, %v4973_v40  ;;  %v1667_v58 = vmul.f32 %v4976_v0, %v4976_v0 }
 0x43f   : > { %v2234_v37 = vadd.f32 %v2233_v50, %v4708_v41  ;;  %v2235_v16 = vpop.f32.mrb[50].mxu1  ;;  %v1668_v3 = vmul.f32 %v4979_v2, %v4979_v2 }
 0x440   : > { %v2952_v30 = vmul.f32 -1.442695, %v2232_v22  ;;  %v2236_v5 = vadd.f32 %v2235_v16, %v4705_v27  ;;  %1639 = vadd.xlane.f32.xlu0 %v1638_v13  ;;  %v2237_v36 = vpop.f32.mrb[51].mxu1  ;;  %v1641_v32 = vadd.f32 %v4984_v62, %v4979_v2  ;;  %v1669_v17 = vmul.f32 %v4984_v62, %v4984_v62 }
 0x441   : > { %v2953_v7 = vmul.f32 -1.442695, %v2234_v37  ;;  %v2238_v38 = vadd.f32 %v2237_v36, %v4708_v41  ;;  %v1686_v15 = vadd.f32 %v1667_v58, %v1666_v57 }
 0x442   : > { %3367 = vpow2.f32 %v2952_v30  ;;  %v2954_v25 = vmul.f32 -1.442695, %v2236_v5  ;;  %v1617_v33 = vpop.f32.mrb[12].mxu0  ;;  %1642 = vadd.xlane.f32.xlu1 %v1641_v32  ;;  %v1689_v47 = vadd.f32 %v1669_v17, %v1668_v3 }
 0x443   : > { %3369 = vpow2.f32 %v2953_v7  ;;  %v2955_v42 = vmul.f32 -1.442695, %v2238_v38  ;;  %v5001_v39 = vadd.f32 %v1617_v33, %v4919_v54  ;;  %v1619_v11 = vpop.f32.mrb[13].mxu0 }
 0x444   : > { %3371 = vpow2.f32 %v2954_v25  ;;  %v5004_v26 = vadd.f32 %v1619_v11, %v4922_v45  ;;  %v1621_v44 = vpop.f32.mrb[14].mxu0  ;;  %1687 = vadd.xlane.f32.xlu0 %v1686_v15 }
 0x445   : > { %3373 = vpow2.f32 %v2955_v42  ;;  %v5007_v19 = vadd.f32 %v1621_v44, %v4919_v54  ;;  %v1623_v61 = vpop.f32.mrb[15].mxu0  ;;  %v2241_v10 = vpop.f32.mrb[52].mxu1  ;;  %v1670_v6 = vmul.f32 %v5001_v39, %v5001_v39 }
 0x446   : > { %v5012_v51 = vadd.f32 %v1623_v61, %v4922_v45  ;;  %v2242_v8 = vadd.f32 %v2241_v10, %v4705_v27  ;;  %1690 = vadd.xlane.f32.xlu1 %v1689_v47  ;;  %v2243_v28 = vpop.f32.mrb[53].mxu1  ;;  %v1644_v46 = vadd.f32 %v5004_v26, %v5001_v39  ;;  %v1671_v14 = vmul.f32 %v5004_v26, %v5004_v26 }
 0x447   : > { %v2244_v59 = vadd.f32 %v2243_v28, %v4708_v41  ;;  %v2245_v31 = vpop.f32.mrb[54].mxu1  ;;  %v1672_v57 = vmul.f32 %v5007_v19, %v5007_v19  ;;  %v1882_v28 = vld [vmem:[%s4058_s12 + $0x90] sm:$0xff] }
 0x448   : > { %v2956_v23 = vmul.f32 -1.442695, %v2242_v8  ;;  %v2246_v53 = vadd.f32 %v2245_v31, %v4705_v27  ;;  %1645 = vadd.xlane.f32.xlu0 %v1644_v46  ;;  %v2247_v18 = vpop.f32.mrb[55].mxu1  ;;  %v1647_v52 = vadd.f32 %v5012_v51, %v5007_v19  ;;  %v1673_v13 = vmul.f32 %v5012_v51, %v5012_v51 }
 0x449   : > { %v2957_v22 = vmul.f32 -1.442695, %v2244_v59  ;;  %v2248_v50 = vadd.f32 %v2247_v18, %v4708_v41  ;;  %v1692_v37 = vadd.f32 %v1671_v14, %v1670_v6  ;;  %v5034_v14 = vld [vmem:[%s4058_s12 + $0x80] sm:$0xff]  ;;  %v3493_v18 = vld [vmem:[%s4050_s19 + $0x90] sm:$0xff] }
 0x44a   : > { %3375 = vpow2.f32 %v2956_v23  ;;  %v2958_v58 = vmul.f32 -1.442695, %v2246_v53  ;;  %1648 = vadd.xlane.f32.xlu1 %v1647_v52  ;;  %v1695_v5 = vadd.f32 %v1673_v13, %v1672_v57  ;;  %v1881_v23 = vld [vmem:[%s4058_s12 + $0x88] sm:$0xff]  ;;  %v2368_v52 = vsub.f32 %v3493_v18, %v1882_v28  ;;  %v3494_v13 = vld [vmem:[%s4050_s19 + $0x80] sm:$0xff] }
 0x44b   : > { %3377 = vpow2.f32 %v2957_v22  ;;  %v2959_v16 = vmul.f32 -1.442695, %v2248_v50 }
 0x44c   : > { %v3368_v30 = vpop.eup %3367  ;;  %3379 = vpow2.f32 %v2958_v58  ;;  %1693 = vadd.xlane.f32.xlu0 %v1692_v37  ;;  %v2366_v58 = vsub.f32 %v3494_v13, %v5034_v14  ;;  %v1886_v13 = vld [vmem:[%s4058_s12 + $0xb0] sm:$0xff] }
 0x44d   : > { %v3370_v36 = vpop.eup %3369  ;;  %v2318_v32 = vadd.f32 1.0, %v3368_v30  ;;  %3381 = vpow2.f32 %v2959_v16  ;;  %v2251_v3 = vpop.f32.mrb[56].mxu1 }
 0x44e   : > { %v3372_v7 = vpop.eup %3371  ;;  %v2319_v38 = vadd.f32 1.0, %v3370_v36  ;;  %v2252_v17 = vadd.f32 %v2251_v3, %v4705_v27  ;;  %1696 = vadd.xlane.f32.xlu1 %v1695_v5  ;;  %v2253_v25 = vpop.f32.mrb[57].mxu1  ;;  %v1883_v5 = vld [vmem:[%s4058_s12 + $0x98] sm:$0xff] }
 0x44f   : > { %v3374_v33 = vpop.eup %3373  ;;  %3383 = vrcp.f32 %v2318_v32  ;;  %v2320_v15 = vadd.f32 1.0, %v3372_v7  ;;  %v2254_v42 = vadd.f32 %v2253_v25, %v4708_v41  ;;  %v2255_v11 = vpop.f32.mrb[58].mxu1 }
 0x450   : > { %3385 = vrcp.f32 %v2319_v38  ;;  %v2321_v44 = vadd.f32 1.0, %v3374_v33  ;;  %v2960_v47 = vmul.f32 -1.442695, %v2252_v17  ;;  %v2256_v61 = vadd.f32 %v2255_v11, %v4705_v27  ;;  %v2257_v10 = vpop.f32.mrb[59].mxu1  ;;  %v3495_v38 = vld [vmem:[%s4050_s19 + $0x88] sm:$0xff] }
 0x451   : > { %3387 = vrcp.f32 %v2320_v15  ;;  %v2961_v6 = vmul.f32 -1.442695, %v2254_v42  ;;  %v2258_v8 = vadd.f32 %v2257_v10, %v4708_v41  ;;  %v2367_v17 = vsub.f32 %v3495_v38, %v1881_v23 }
 0x452   : > { %3389 = vrcp.f32 %v2321_v44  ;;  %v2962_v46 = vmul.f32 -1.442695, %v2256_v61  ;;  %v3496_v61 = vld [vmem:[%s4050_s19 + $0x98] sm:$0xff] }
 0x453   : > { %3391 = vpow2.f32 %v2960_v47  ;;  %v2963_v59 = vmul.f32 -1.442695, %v2258_v8  ;;  %v2369_v10 = vsub.f32 %v3496_v61, %v1883_v5  ;;  %v3500_v61 = vld [vmem:[%s4050_s19 + $0xb8] sm:$0xff] }
 0x454   : > { %v3376_v31 = vpop.eup %3375  ;;  %3393 = vpow2.f32 %v2961_v6 }
 0x455   : > { %v3378_v53 = vpop.eup %3377  ;;  %v2322_v57 = vadd.f32 1.0, %v3376_v31  ;;  %3395 = vpow2.f32 %v2962_v46  ;;  %v2261_v22 = vpop.f32.mrb[60].mxu1 }
 0x456   : > { %v3380_v50 = vpop.eup %3379  ;;  %v2323_v37 = vadd.f32 1.0, %v3378_v53  ;;  %3397 = vpow2.f32 %v2963_v59  ;;  %v2262_v16 = vadd.f32 %v2261_v22, %v4705_v27  ;;  %v2263_v30 = vpop.f32.mrb[61].mxu1  ;;  %v1885_v22 = vld [vmem:[%s4058_s12 + $0xa8] sm:$0xff] }
 0x457   : > { %v3382_v36 = vpop.eup %3381  ;;  %3399 = vrcp.f32 %v2322_v57  ;;  %v2324_v32 = vadd.f32 1.0, %v3380_v50  ;;  %v2264_v3 = vadd.f32 %v2263_v30, %v4708_v41  ;;  %v2265_v7 = vpop.f32.mrb[62].mxu1 }
 0x458   : > { %3401 = vrcp.f32 %v2323_v37  ;;  %v2325_v25 = vadd.f32 1.0, %v3382_v36  ;;  %v2964_v33 = vmul.f32 -1.442695, %v2262_v16  ;;  %v2266_v15 = vadd.f32 %v2265_v7, %v4705_v27  ;;  %v2267_v42 = vpop.f32.mrb[63].mxu1  ;;  %v5048_v27 = vld [vmem:[%s4058_s12 + $0xa0] sm:$0xff]  ;;  %v1887_v36 = vld [vmem:[%s4058_s12 + $0xb8] sm:$0xff] }
 0x459   : > { %v3384_v11 = vpop.eup %3383  ;;  %3403 = vrcp.f32 %v2324_v32  ;;  %v2965_v44 = vmul.f32 -1.442695, %v2264_v3  ;;  %v2268_v47 = vadd.f32 %v2267_v42, %v4708_v41  ;;  %v3497_v32 = vld [vmem:[%s4050_s19 + $0xa0] sm:$0xff] }
 0x45a   : > { %v3386_v6 = vpop.eup %3385  ;;  %3405 = vrcp.f32 %v2325_v25  ;;  %v2966_v8 = vmul.f32 -1.442695, %v2266_v15  ;;  %v2382_v18 = vmul.f32 %v3384_v11, %v2366_v58  ;;  %v2370_v3 = vsub.f32 %v3497_v32, %v5048_v27  ;;  %v1890_v32 = vld [vmem:[%s4058_s12 + $0xd0] sm:$0xff] }
 0x45b   : > { %v3388_v46 = vpop.eup %3387  ;;  %3407 = vpow2.f32 %v2964_v33  ;;  %v2967_v59 = vmul.f32 -1.442695, %v2268_v47  ;;  %v2383_v31 = vmul.f32 %v3386_v6, %v2367_v17  ;;  %v3498_v17 = vld [vmem:[%s4050_s19 + $0xa8] sm:$0xff] }
 0x45c   : > { %v3390_v53 = vpop.eup %3389  ;;  %v2384_v57 = vmul.f32 %v3388_v46, %v2368_v52  ;;  %3409 = vpow2.f32 %v2965_v44  ;;  %v2371_v25 = vsub.f32 %v3498_v17, %v1885_v22  ;;  %v5063_v42 = vadd.f32 %v2382_v18, %v5034_v14 }
 0x45d   : > { %v3392_v41 = vpop.eup %3391  ;;  %3411 = vpow2.f32 %v2966_v8  ;;  %v2385_v50 = vmul.f32 %v3390_v53, %v2369_v10  ;;  %v5057_v58 = vadd.f32 %v2383_v31, %v1881_v23  ;;  %v1888_v53 = vld [vmem:[%s4058_s12 + $0xc0] sm:$0xff] }
 0x45e   : > { %v3394_v37 = vpop.eup %3393  ;;  %v2326_v16 = vadd.f32 1.0, %v3392_v41  ;;  %3413 = vpow2.f32 %v2967_v59  ;;  %v5052_v30 = vadd.f32 %v2384_v57, %v1882_v28  ;;  %v3499_v28 = vld [vmem:[%s4050_s19 + $0xb0] sm:$0xff]  ;;  %v1889_v41 = vld [vmem:[%s4058_s12 + $0xc8] sm:$0xff] }
 0x45f   : > { %v3396_v7 = vpop.eup %3395  ;;  %v2327_v52 = vadd.f32 1.0, %v3394_v37  ;;  %v5059_v38 = vadd.f32 %v2385_v50, %v1883_v5  ;;  %v2372_v11 = vsub.f32 %v3499_v28, %v1886_v13  ;;  %v2373_v5 = vsub.f32 %v3500_v61, %v1887_v36  ;;  %v3503_v61 = vld [vmem:[%s4050_s19 + $0xd0] sm:$0xff] }
 0x460   : > { %v3398_v33 = vpop.eup %3397  ;;  %3415 = vrcp.f32 %v2326_v16  ;;  %v2328_v15 = vadd.f32 1.0, %v3396_v7  ;;  %v2414_v6 = vpack.c.bf16 %v5052_v30, %v5063_v42 }
 0x461   : > { %v3400_v44 = vpop.eup %3399  ;;  %3417 = vrcp.f32 %v2327_v52  ;;  %v2329_v47 = vadd.f32 1.0, %v3398_v33  ;;  %v2415_v23 = vpack.c.bf16 %v5059_v38, %v5057_v58  ;;  %v1891_v33 = vld [vmem:[%s4058_s12 + $0xd8] sm:$0xff] }
 0x462   : > { %v3402_v10 = vpop.eup %3401  ;;  %3419 = vrcp.f32 %v2328_v15  ;;  %v2386_v59 = vmul.f32 %v3400_v44, %v2370_v3  ;;  %v3501_v3 = vld [vmem:[%s4050_s19 + $0xc0] sm:$0xff] }
 0x463   : > { %v3404_v14 = vpop.eup %3403  ;;  %3421 = vrcp.f32 %v2329_v47  ;;  %2454 = vmatprep.mubr.bf16.mxu0 %v2415_v23  ;;  %v2387_v8 = vmul.f32 %v3402_v10, %v2371_v25  ;;  %v2374_v15 = vsub.f32 %v3501_v3, %v1888_v53  ;;  %v1895_v3 = vld [vmem:[%s4058_s12 + $0xf8] sm:$0xff] }
 0x464   : > { %v3406_v46 = vpop.eup %3405  ;;  %2455 = vmatmul.mubr.bf16.vlgmr.msra.gmra.mrb[16].mxu0 %v2414_v6  ;;  %v2388_v31 = vmul.f32 %v3404_v14, %v2372_v11  ;;  %v5083_v44 = vadd.f32 %v2386_v59, %v5048_v27  ;;  %v3504_v6 = vld [vmem:[%s4050_s19 + $0xd8] sm:$0xff] }
 0x465   : > { %v3408_v18 = vpop.eup %3407  ;;  %v2389_v57 = vmul.f32 %v3406_v46, %v2373_v5  ;;  %v5076_v17 = vadd.f32 %v2387_v8, %v1885_v22  ;;  %v2377_v27 = vsub.f32 %v3504_v6, %v1891_v33  ;;  %v3508_v6 = vld [vmem:[%s4050_s19 + $0xf8] sm:$0xff] }
 0x466   : > { %v3410_v50 = vpop.eup %3409  ;;  %v2330_v37 = vadd.f32 1.0, %v3408_v18  ;;  %v5073_v16 = vadd.f32 %v2388_v31, %v1886_v13  ;;  %v3502_v13 = vld [vmem:[%s4050_s19 + $0xc8] sm:$0xff] }
 0x467   : > { %v3412_v7 = vpop.eup %3411  ;;  %v2331_v52 = vadd.f32 1.0, %v3410_v50  ;;  %v5078_v25 = vadd.f32 %v2389_v57, %v1887_v36  ;;  %v2375_v47 = vsub.f32 %v3502_v13, %v1889_v41  ;;  %v2376_v36 = vsub.f32 %v3503_v61, %v1890_v32  ;;  %v1893_v57 = vld [vmem:[%s4058_s12 + $0xe8] sm:$0xff] }
 0x468   : > { %v3414_v28 = vpop.eup %3413  ;;  %3423 = vrcp.f32 %v2330_v37  ;;  %v2332_v11 = vadd.f32 1.0, %v3412_v7  ;;  %v2416_v10 = vpack.c.bf16 %v5073_v16, %v5083_v44  ;;  %v1892_v37 = vld [vmem:[%s4058_s12 + $0xe0] sm:$0xff]  ;;  %v1894_v7 = vld [vmem:[%s4058_s12 + $0xf0] sm:$0xff]  ;;  %v3505_v13 = vld [vmem:[%s4050_s19 + $0xe8] sm:$0xff]  ;;  %s5687_s12 = sld [smem:[#allocation50_spill]] }
 0x469   : > { %3425 = vrcp.f32 %v2331_v52  ;;  %v2333_v23 = vadd.f32 1.0, %v3414_v28  ;;  %v2417_v22 = vpack.c.bf16 %v5078_v25, %v5076_v17 }
 0x46a   : > { %v3416_v5 = vpop.eup %3415  ;;  %3427 = vrcp.f32 %v2332_v11 }
 0x46b   : > { %v3418_v14 = vpop.eup %3417  ;;  %3429 = vrcp.f32 %v2333_v23  ;;  %2464 = vmatprep.mubr.bf16.mxu0 %v2417_v22  ;;  %v2390_v31 = vmul.f32 %v3416_v5, %v2374_v15  ;;  %v2379_v23 = vsub.f32 %v3505_v13, %v1893_v57  ;;  %v3507_v15 = vld [vmem:[%s4050_s19 + $0xf0] sm:$0xff] }
 0x46c   : > { %v3420_v8 = vpop.eup %3419  ;;  %2465 = vmatmul.mubr.bf16.gmra.mrb[20].mxu0 %v2416_v10  ;;  %v2391_v46 = vmul.f32 %v3418_v14, %v2375_v47  ;;  %v3506_v47 = vld [vmem:[%s4050_s19 + $0xe0] sm:$0xff] }
 0x46d   : > { %v3422_v59 = vpop.eup %3421  ;;  %v2392_v18 = vmul.f32 %v3420_v8, %v2376_v36  ;;  %v5103_v22 = vadd.f32 %v2390_v31, %v1888_v53  ;;  %v2378_v61 = vsub.f32 %v3506_v47, %v1892_v37  ;;  %v2380_v36 = vsub.f32 %v3507_v15, %v1894_v7 }
 0x46e   : > { %v2393_v50 = vmul.f32 %v3422_v59, %v2377_v27  ;;  %v5098_v28 = vadd.f32 %v2391_v46, %v1889_v41 }
 0x46f   : > { %v5095_v52 = vadd.f32 %v2392_v18, %v1890_v32  ;;  %v2381_v32 = vsub.f32 %v3508_v6, %v1895_v3 }
 0x470   : > { %v5100_v11 = vadd.f32 %v2393_v50, %v1891_v33 }
 0x471   : > { %v2418_v41 = vpack.c.bf16 %v5095_v52, %v5103_v22 }
 0x472   : > { %v3424_v5 = vpop.eup %3423  ;;  %v2419_v10 = vpack.c.bf16 %v5100_v11, %v5098_v28 }
 0x473   : > { %v3426_v27 = vpop.eup %3425  ;;  %v2394_v53 = vmul.f32 %v3424_v5, %v2378_v61 }
 0x474   : > { %v3428_v33 = vpop.eup %3427  ;;  %2474 = vmatprep.mubr.bf16.mxu0 %v2419_v10  ;;  %v2395_v14 = vmul.f32 %v3426_v27, %v2379_v23 }
 0x475   : > { %v3430_v8 = vpop.eup %3429  ;;  %2475 = vmatmul.mubr.bf16.gmra.mrb[24].mxu0 %v2418_v41  ;;  %v2396_v46 = vmul.f32 %v3428_v33, %v2380_v36  ;;  %v5118_v13 = vadd.f32 %v2394_v53, %v1892_v37 }
 0x476   : > { %v2397_v59 = vmul.f32 %v3430_v8, %v2381_v32  ;;  %v5114_v18 = vadd.f32 %v2395_v14, %v1893_v57 }
 0x477   : > { %v5112_v31 = vadd.f32 %v2396_v46, %v1894_v7  ;;  %5686 = vst [vmem:[#allocation33_spill] sm:$0xff] %v5118_v13 }
 0x478   : > { %5684 = vst [vmem:[#allocation27_spill] sm:$0xff] %v5114_v18  ;;  %v5116_v50 = vadd.f32 %v2397_v59, %v1895_v3 }
 0x479   : > { %5683 = vst [vmem:[#allocation30_spill] sm:$0xff] %v5112_v31  ;;  %v2420_v15 = vpack.c.bf16 %v5112_v31, %v5118_v13 }
 0x47a   : > { %5685 = vst [vmem:[#allocation29_spill] sm:$0xff] %v5116_v50  ;;  %v2421_v47 = vpack.c.bf16 %v5116_v50, %v5114_v18 }
 0x47c   : > { %2484 = vmatprep.mubr.bf16.mxu0 %v2421_v47 }
 0x47d   : > { %2485 = vmatmul.mubr.bf16.gmra.mrb[28].mxu0 %v2420_v15 }
 0x4bd   : > { %v1628_v23 = vpop.xlane.xlu0 %1627 }
 0x4be   : > { %v1650_v61 = vmul.f32 0.00390625, %v1628_v23 }
 0x4bf   : > { %v1631_v36 = vpop.xlane.xlu1 %1630 }
 0x4c0   : > { %v5124_v5 = vmul.f32 0.00390625, %v1631_v36  ;;  %v1706_v57 = vmul.f32 %v1650_v61, %v1650_v61 }
 0x4c1   : > { %v1676_v7 = vpop.xlane.xlu0 %1675 }
 0x4c2   : > { %v1698_v10 = vmul.f32 0.00390625, %v1676_v7  ;;  %v1707_v37 = vmul.f32 %v5124_v5, %v5124_v5 }
 0x4c3   : > { %v1679_v3 = vpop.xlane.xlu1 %1678 }
 0x4c4   : > { %v1714_v6 = vsub.f32 %v1698_v10, %v1706_v57  ;;  %v1699_v32 = vmul.f32 0.00390625, %v1679_v3 }
 0x4c5   : > { %v1634_v27 = vpop.xlane.xlu0 %1633 }
 0x4c6   : > { %v1722_v41 = vmax.f32 %v1714_v6, 0.0  ;;  %v1715_v33 = vsub.f32 %v1699_v32, %v1707_v37  ;;  %v5128_v14 = vmul.f32 0.00390625, %v1634_v27  ;;  %v523_v37 = vld [vmem:[%s5687_s12] sm:$0x3] }
 0x4c7   : > { %v1637_v8 = vpop.xlane.xlu1 %1636 }
 0x4c8   : > { %v1746_v53 = vadd.f32 1e-05, %v1722_v41  ;;  %v1723_v46 = vmax.f32 %v1715_v33, 0.0  ;;  %v5130_v59 = vmul.f32 0.00390625, %v1637_v8  ;;  %v1708_v23 = vmul.f32 %v5128_v14, %v5128_v14  ;;  %v524_v8 = vld [vmem:[%s5688_s18] sm:$0x3] }
 0x4c9   : > { %v1682_v47 = vpop.xlane.xlu0 %1681 }
 0x4ca   : > { %3431 = vrsqrt.f32 %v1746_v53  ;;  %v1747_v15 = vadd.f32 1e-05, %v1723_v46  ;;  %v1700_v36 = vmul.f32 0.00390625, %v1682_v47  ;;  %v1709_v10 = vmul.f32 %v5130_v59, %v5130_v59 }
 0x4cb   : > { %v1685_v7 = vpop.xlane.xlu1 %1684  ;;  %v5145_v47 = vrot.slane %v523_v37, %v5671_v12 }
 0x4cc   : > { %3433 = vrsqrt.f32 %v1747_v15  ;;  %v1716_v57 = vsub.f32 %v1700_v36, %v1708_v23  ;;  %v1701_v3 = vmul.f32 0.00390625, %v1685_v7  ;;  %v5148_v15 = vrot.slane %v523_v37, %v5672_v43 }
 0x4cd   : > { %v1640_v6 = vpop.xlane.xlu0 %1639 }
 0x4ce   : > { %v1724_v32 = vmax.f32 %v1716_v57, 0.0  ;;  %v1717_v27 = vsub.f32 %v1701_v3, %v1709_v10  ;;  %v5139_v41 = vmul.f32 0.00390625, %v1640_v6  ;;  %v1730_v3 = vsub.f32 %v4925_v34, %v1650_v61 }
 0x4cf   : > { %v1643_v33 = vpop.xlane.xlu1 %1642  ;;  %v1731_v6 = vsub.f32 %v4928_v48, %v1650_v61  ;;  %v1733_v34 = vsub.f32 %v4934_v55, %v5124_v5 }
 0x4d0   : > { %v1748_v53 = vadd.f32 1e-05, %v1724_v32  ;;  %v1725_v46 = vmax.f32 %v1717_v27, 0.0  ;;  %v5150_v23 = vmul.f32 0.00390625, %v1643_v33  ;;  %v1710_v57 = vmul.f32 %v5139_v41, %v5139_v41 }
 0x4d1   : > { %v1688_v36 = vpop.xlane.xlu0 %1687  ;;  %v5157_v32 = vrot.slane %v524_v8, %v5671_v12  ;;  %v5160_v27 = vrot.slane %v524_v8, %v5672_v43  ;;  %v1734_v43 = vsub.f32 %v4949_v29, %v5128_v14 }
 0x4d2   : > { %3435 = vrsqrt.f32 %v1748_v53  ;;  %v1749_v7 = vadd.f32 1e-05, %v1725_v46  ;;  %v1702_v10 = vmul.f32 0.00390625, %v1688_v36  ;;  %v1711_v53 = vmul.f32 %v5150_v23, %v5150_v23 }
 0x4d3   : > { %v1691_v37 = vpop.xlane.xlu1 %1690  ;;  %v1732_v36 = vsub.f32 %v4931_v60, %v5124_v5  ;;  %v1735_v60 = vsub.f32 %v4952_v63, %v5128_v14 }
 0x4d4   : > { %v3432_v33 = vpop.eup %3431  ;;  %3437 = vrsqrt.f32 %v1749_v7  ;;  %v1718_v50 = vsub.f32 %v1702_v10, %v1710_v57  ;;  %v1703_v46 = vmul.f32 0.00390625, %v1691_v37 }
 0x4d5   : > { %v1762_v48 = vmul.f32 %v3432_v33, %v1730_v3  ;;  %v1763_v12 = vmul.f32 %v3432_v33, %v1731_v6  ;;  %v1646_v61 = vpop.xlane.xlu0 %1645 }
 0x4d6   : > { %v3434_v31 = vpop.eup %3433  ;;  %v1726_v8 = vmax.f32 %v1718_v50, 0.0  ;;  %v1719_v7 = vsub.f32 %v1703_v46, %v1711_v53  ;;  %v5174_v3 = vmul.f32 0.00390625, %v1646_v61 }
 0x4d7   : > { %v1789_v57 = vmul.f32 %v5145_v47, %v1762_v48  ;;  %v1790_v10 = vmul.f32 %v5148_v15, %v1763_v12  ;;  %v1764_v37 = vmul.f32 %v3434_v31, %v1732_v36  ;;  %v1765_v18 = vmul.f32 %v3434_v31, %v1733_v34  ;;  %v1649_v13 = vpop.xlane.xlu1 %1648 }
 0x4d8   : > { %v1750_v55 = vadd.f32 1e-05, %v1726_v8  ;;  %v1727_v5 = vmax.f32 %v1719_v7, 0.0  ;;  %v1736_v31 = vsub.f32 %v4955_v20, %v5130_v59  ;;  %v5182_v63 = vmul.f32 0.00390625, %v1649_v13  ;;  %v5690_v13 = vld [vmem:[#allocation24_spill] sm:$0xff] }
 0x4d9   : > { %v1816_v6 = vadd.f32 %v5157_v32, %v1789_v57  ;;  %v1817_v29 = vadd.f32 %v5160_v27, %v1790_v10  ;;  %v1791_v50 = vmul.f32 %v5145_v47, %v1764_v37  ;;  %v1792_v33 = vmul.f32 %v5148_v15, %v1765_v18  ;;  %v1694_v53 = vpop.xlane.xlu0 %1693 }
 0x4da   : > { %3439 = vrsqrt.f32 %v1750_v55  ;;  %v1751_v46 = vadd.f32 1e-05, %v1727_v5  ;;  %v1737_v18 = vsub.f32 %v4958_v21, %v5130_v59  ;;  %v1712_v20 = vmul.f32 %v5174_v3, %v5174_v3 }
 0x4db   : > { %v1832_v14 = vadd.f32 %v1816_v6, %v4772_v56  ;;  %v1833_v36 = vadd.f32 %v1817_v29, %v4769_v49  ;;  %v1818_v34 = vadd.f32 %v5157_v32, %v1791_v50  ;;  %v1819_v48 = vadd.f32 %v5160_v27, %v1792_v33  ;;  %v1697_v12 = vpop.xlane.xlu1 %1696  ;;  %v5689_v49 = vld [vmem:[#allocation19_spill] sm:$0xff] }
 0x4dc   : > { %v3436_v61 = vpop.eup %3435  ;;  %3441 = vrsqrt.f32 %v1751_v46  ;;  %v1704_v8 = vmul.f32 0.00390625, %v1694_v53  ;;  %v1713_v37 = vmul.f32 %v5182_v63, %v5182_v63  ;;  %v1705_v55 = vmul.f32 0.00390625, %v1697_v12  ;;  %v5691_v12 = vld [vmem:[#allocation23_spill] sm:$0xff] }
 0x4dd   : > { %1848 = vst [vmem:[%s5193_s21] sm:$0xff] %v1832_v14  ;;  %1849 = vst [vmem:[%s5193_s21 + $0x8] sm:$0xff] %v1833_v36  ;;  %v1834_v56 = vadd.f32 %v1818_v34, %v5689_v49  ;;  %v1835_v7 = vadd.f32 %v1819_v48, %v5690_v13  ;;  %v1766_v57 = vmul.f32 %v3436_v61, %v1734_v43 }
 0x4de   : > { %v1767_v10 = vmul.f32 %v3436_v61, %v1735_v60  ;;  %v3438_v21 = vpop.eup %3437  ;;  %v1720_v59 = vsub.f32 %v1704_v8, %v1712_v20  ;;  %v1721_v53 = vsub.f32 %v1705_v55, %v1713_v37  ;;  %v1738_v36 = vsub.f32 %v4973_v40, %v5139_v41 }
 0x4df   : > { %1850 = vst [vmem:[%s5193_s21 + $0x10] sm:$0xff] %v1834_v56  ;;  %1851 = vst [vmem:[%s5193_s21 + $0x18] sm:$0xff] %v1835_v7  ;;  %v1793_v5 = vmul.f32 %v5145_v47, %v1766_v57  ;;  %v1768_v29 = vmul.f32 %v3438_v21, %v1736_v31  ;;  %v1769_v50 = vmul.f32 %v3438_v21, %v1737_v18  ;;  %v5692_v18 = vld [vmem:[#allocation21_spill] sm:$0xff]  ;;  %v5694_v57 = vld [vmem:[#allocation20_spill] sm:$0xff] }
 0x4e0   : > { %v1794_v6 = vmul.f32 %v5148_v15, %v1767_v10  ;;  %v1728_v33 = vmax.f32 %v1720_v59, 0.0  ;;  %v1739_v34 = vsub.f32 %v4976_v0, %v5139_v41  ;;  %v1729_v48 = vmax.f32 %v1721_v53, 0.0  ;;  %v5693_v41 = vld [vmem:[#allocation26_spill] sm:$0xff]  ;;  %v5695_v53 = vld [vmem:[#allocation28_spill] sm:$0xff] }
 0x4e1   : > { %v1820_v46 = vadd.f32 %v5157_v32, %v1793_v5  ;;  %v1795_v60 = vmul.f32 %v5145_v47, %v1768_v29  ;;  %v1796_v14 = vmul.f32 %v5148_v15, %v1769_v50  ;;  %v1740_v13 = vsub.f32 %v4979_v2, %v5150_v23 }
 0x4e2   : > { %v1821_v43 = vadd.f32 %v5160_v27, %v1794_v6  ;;  %v1752_v31 = vadd.f32 1e-05, %v1728_v33  ;;  %v1741_v40 = vsub.f32 %v4984_v62, %v5150_v23  ;;  %v1753_v0 = vadd.f32 1e-05, %v1729_v48 }
 0x4e3   : > { %v1836_v61 = vadd.f32 %v1820_v46, %v5691_v12  ;;  %v1822_v8 = vadd.f32 %v5157_v32, %v1795_v60  ;;  %v1823_v49 = vadd.f32 %v5160_v27, %v1796_v14  ;;  %v5696_v14 = vld [vmem:[#allocation25_spill] sm:$0xff]  ;;  %v1742_v48 = vsub.f32 %v5001_v39, %v5174_v3 }
 0x4e4   : > { %v1837_v20 = vadd.f32 %v1821_v43, %v5692_v18  ;;  %v3440_v56 = vpop.eup %3439  ;;  %3443 = vrsqrt.f32 %v1752_v31  ;;  %v1743_v12 = vsub.f32 %v5004_v26, %v5174_v3  ;;  %v1745_v18 = vsub.f32 %v5012_v51, %v5182_v63 }
 0x4e5   : > { %1852 = vst [vmem:[%s5193_s21 + $0x20] sm:$0xff] %v1836_v61  ;;  %v1838_v7 = vadd.f32 %v1822_v8, %v5693_v41  ;;  %v1839_v10 = vadd.f32 %v1823_v49, %v5694_v57  ;;  %v1770_v21 = vmul.f32 %v3440_v56, %v1738_v36  ;;  %v1771_v59 = vmul.f32 %v3440_v56, %v1739_v34  ;;  %v5697_v34 = vld [vmem:[#allocation22_spill] sm:$0xff] }
 0x4e6   : > { %1853 = vst [vmem:[%s5193_s21 + $0x28] sm:$0xff] %v1837_v20  ;;  %v3442_v37 = vpop.eup %3441  ;;  %3445 = vrsqrt.f32 %v1753_v0 }
 0x4e7   : > { %1854 = vst [vmem:[%s5193_s21 + $0x30] sm:$0xff] %v1838_v7  ;;  %1855 = vst [vmem:[%s5193_s21 + $0x38] sm:$0xff] %v1839_v10  ;;  %v1797_v2 = vmul.f32 %v5145_v47, %v1770_v21  ;;  %v1798_v62 = vmul.f32 %v5148_v15, %v1771_v59  ;;  %v1772_v23 = vmul.f32 %v3442_v37, %v1740_v13 }
 0x4e8   : > { %v1773_v55 = vmul.f32 %v3442_v37, %v1741_v40 }
 0x4e9   : > { %v1824_v5 = vadd.f32 %v5157_v32, %v1797_v2  ;;  %v1825_v6 = vadd.f32 %v5160_v27, %v1798_v62  ;;  %v1799_v29 = vmul.f32 %v5145_v47, %v1772_v23 }
 0x4ea   : > { %v1800_v50 = vmul.f32 %v5148_v15, %v1773_v55 }
 0x4eb   : > { %v1840_v33 = vadd.f32 %v1824_v5, %v4859_v9  ;;  %v1841_v46 = vadd.f32 %v1825_v6, %v5695_v53  ;;  %v1826_v43 = vadd.f32 %v5157_v32, %v1799_v29  ;;  %v1744_v9 = vsub.f32 %v5007_v19, %v5182_v63 }
 0x4ec   : > { %v1827_v60 = vadd.f32 %v5160_v27, %v1800_v50 }
 0x4ed   : > { %1856 = vst [vmem:[%s5193_s21 + $0x40] sm:$0xff] %v1840_v33  ;;  %1857 = vst [vmem:[%s5193_s21 + $0x48] sm:$0xff] %v1841_v46  ;;  %v1842_v36 = vadd.f32 %v1826_v43, %v5696_v14 }
 0x4ee   : > { %v1843_v31 = vadd.f32 %v1827_v60, %v5697_v34  ;;  %v3444_v61 = vpop.eup %3443 }
 0x4ef   : > { %1858 = vst [vmem:[%s5193_s21 + $0x50] sm:$0xff] %v1842_v36  ;;  %v1774_v20 = vmul.f32 %v3444_v61, %v1742_v48  ;;  %v1775_v8 = vmul.f32 %v3444_v61, %v1743_v12 }
 0x4f0   : > { %1859 = vst [vmem:[%s5193_s21 + $0x58] sm:$0xff] %v1843_v31  ;;  %v3446_v49 = vpop.eup %3445 }
 0x4f1   : > { %v1801_v56 = vmul.f32 %v5145_v47, %v1774_v20  ;;  %v1802_v39 = vmul.f32 %v5148_v15, %v1775_v8  ;;  %v1776_v26 = vmul.f32 %v3446_v49, %v1744_v9  ;;  %v1777_v3 = vmul.f32 %v3446_v49, %v1745_v18 }
 0x4f3   : > { %v1828_v13 = vadd.f32 %v5157_v32, %v1801_v56  ;;  %v1829_v19 = vadd.f32 %v5160_v27, %v1802_v39  ;;  %v1803_v40 = vmul.f32 %v5145_v47, %v1776_v26  ;;  %v1804_v51 = vmul.f32 %v5148_v15, %v1777_v3 }
 0x4f5   : > { %v1844_v63 = vadd.f32 %v1828_v13, %v4883_v4  ;;  %v1845_v0 = vadd.f32 %v1829_v19, %v4877_v24  ;;  %v1830_v41 = vadd.f32 %v5157_v32, %v1803_v40  ;;  %v1831_v7 = vadd.f32 %v5160_v27, %v1804_v51 }
 0x4f7   : > { %1860 = vst [vmem:[%s5193_s21 + $0x60] sm:$0xff] %v1844_v63  ;;  %1861 = vst [vmem:[%s5193_s21 + $0x68] sm:$0xff] %v1845_v0  ;;  %v1846_v57 = vadd.f32 %v1830_v41, %v4874_v1  ;;  %v1847_v10 = vadd.f32 %v1831_v7, %v4880_v35 }
 0x4f9   : > { %1862 = vst [vmem:[%s5193_s21 + $0x70] sm:$0xff] %v1846_v57  ;;  %1863 = vst [vmem:[%s5193_s21 + $0x78] sm:$0xff] %v1847_v10 }
 0x537   : > { %v2456_v21 = vpop.f32.mrb[16].mxu0 }
 0x538   : > { %v5268_v59 = vadd.f32 %v2456_v21, %v4919_v54  ;;  %v2458_v37 = vpop.f32.mrb[17].mxu0 }
 0x539   : > { %v5271_v4 = vadd.f32 %v2458_v37, %v4922_v45  ;;  %v2460_v24 = vpop.f32.mrb[18].mxu0 }
 0x53a   : > { %v5274_v2 = vadd.f32 %v2460_v24, %v4919_v54  ;;  %v2462_v62 = vpop.f32.mrb[19].mxu0  ;;  %v2527_v35 = vmul.f32 %v5268_v59, %v5268_v59 }
 0x53b   : > { %v5277_v23 = vadd.f32 %v2462_v62, %v4922_v45  ;;  %v2495_v1 = vadd.f32 %v5271_v4, %v5268_v59  ;;  %v2528_v55 = vmul.f32 %v5271_v4, %v5271_v4 }
 0x53c   : > { %v2529_v6 = vmul.f32 %v5274_v2, %v5274_v2 }
 0x53d   : > { %2496 = vadd.xlane.f32.xlu0 %v2495_v1  ;;  %v2498_v5 = vadd.f32 %v5277_v23, %v5274_v2  ;;  %v2530_v29 = vmul.f32 %v5277_v23, %v5277_v23  ;;  %v2543_v33 = vadd.f32 %v2528_v55, %v2527_v35 }
 0x53f   : > { %v2466_v50 = vpop.f32.mrb[20].mxu0  ;;  %2499 = vadd.xlane.f32.xlu1 %v2498_v5  ;;  %v2546_v14 = vadd.f32 %v2530_v29, %v2529_v6 }
 0x540   : > { %v5292_v53 = vadd.f32 %v2466_v50, %v4919_v54  ;;  %v2468_v46 = vpop.f32.mrb[21].mxu0 }
 0x541   : > { %v5295_v43 = vadd.f32 %v2468_v46, %v4922_v45  ;;  %v2470_v60 = vpop.f32.mrb[22].mxu0  ;;  %2544 = vadd.xlane.f32.xlu0 %v2543_v33 }
 0x542   : > { %v5298_v36 = vadd.f32 %v2470_v60, %v4919_v54  ;;  %v2472_v34 = vpop.f32.mrb[23].mxu0  ;;  %v2531_v12 = vmul.f32 %v5292_v53, %v5292_v53 }
 0x543   : > { %v5301_v31 = vadd.f32 %v2472_v34, %v4922_v45  ;;  %2547 = vadd.xlane.f32.xlu1 %v2546_v14  ;;  %v2501_v48 = vadd.f32 %v5295_v43, %v5292_v53  ;;  %v2532_v61 = vmul.f32 %v5295_v43, %v5295_v43 }
 0x544   : > { %v2533_v18 = vmul.f32 %v5298_v36, %v5298_v36 }
 0x545   : > { %2502 = vadd.xlane.f32.xlu0 %v2501_v48  ;;  %v2504_v9 = vadd.f32 %v5301_v31, %v5298_v36  ;;  %v2534_v20 = vmul.f32 %v5301_v31, %v5301_v31  ;;  %v2549_v8 = vadd.f32 %v2532_v61, %v2531_v12 }
 0x547   : > { %2505 = vadd.xlane.f32.xlu1 %v2504_v9  ;;  %v2552_v26 = vadd.f32 %v2534_v20, %v2533_v18 }
 0x548   : > { %v2476_v49 = vpop.f32.mrb[24].mxu0 }
 0x549   : > { %v5316_v56 = vadd.f32 %v2476_v49, %v4919_v54  ;;  %v2478_v39 = vpop.f32.mrb[25].mxu0  ;;  %2550 = vadd.xlane.f32.xlu0 %v2549_v8 }
 0x54a   : > { %v5319_v3 = vadd.f32 %v2478_v39, %v4922_v45  ;;  %v2480_v13 = vpop.f32.mrb[26].mxu0 }
 0x54b   : > { %v5322_v19 = vadd.f32 %v2480_v13, %v4919_v54  ;;  %v2482_v40 = vpop.f32.mrb[27].mxu0  ;;  %2553 = vadd.xlane.f32.xlu1 %v2552_v26  ;;  %v2535_v0 = vmul.f32 %v5316_v56, %v5316_v56 }
 0x54c   : > { %v5325_v51 = vadd.f32 %v2482_v40, %v4922_v45  ;;  %v2507_v63 = vadd.f32 %v5319_v3, %v5316_v56  ;;  %v2536_v41 = vmul.f32 %v5319_v3, %v5319_v3 }
 0x54d   : > { %v2537_v57 = vmul.f32 %v5322_v19, %v5322_v19 }
 0x54e   : > { %2508 = vadd.xlane.f32.xlu0 %v2507_v63  ;;  %v2510_v7 = vadd.f32 %v5325_v51, %v5322_v19  ;;  %v2538_v10 = vmul.f32 %v5325_v51, %v5325_v51  ;;  %v2555_v37 = vadd.f32 %v2536_v41, %v2535_v0 }
 0x550   : > { %v2486_v21 = vpop.f32.mrb[28].mxu0  ;;  %2511 = vadd.xlane.f32.xlu1 %v2510_v7  ;;  %v2558_v55 = vadd.f32 %v2538_v10, %v2537_v57 }
 0x551   : > { %v5340_v24 = vadd.f32 %v2486_v21, %v4919_v54  ;;  %v2488_v62 = vpop.f32.mrb[29].mxu0 }
 0x552   : > { %v5343_v1 = vadd.f32 %v2488_v62, %v4922_v45  ;;  %v2490_v35 = vpop.f32.mrb[30].mxu0  ;;  %2556 = vadd.xlane.f32.xlu0 %v2555_v37 }
 0x553   : > { %v5346_v5 = vadd.f32 %v2490_v35, %v4919_v54  ;;  %v2492_v6 = vpop.f32.mrb[31].mxu0  ;;  %v2539_v33 = vmul.f32 %v5340_v24, %v5340_v24 }
 0x554   : > { %v5349_v29 = vadd.f32 %v2492_v6, %v4922_v45  ;;  %2559 = vadd.xlane.f32.xlu1 %v2558_v55  ;;  %v2513_v50 = vadd.f32 %v5343_v1, %v5340_v24  ;;  %v2540_v46 = vmul.f32 %v5343_v1, %v5343_v1 }
 0x555   : > { %v2541_v54 = vmul.f32 %v5346_v5, %v5346_v5 }
 0x556   : > { %2514 = vadd.xlane.f32.xlu0 %v2513_v50  ;;  %v2516_v60 = vadd.f32 %v5349_v29, %v5346_v5  ;;  %v2542_v45 = vmul.f32 %v5349_v29, %v5349_v29  ;;  %v2561_v14 = vadd.f32 %v2540_v46, %v2539_v33 }
 0x558   : > { %2517 = vadd.xlane.f32.xlu1 %v2516_v60  ;;  %v2564_v34 = vadd.f32 %v2542_v45, %v2541_v54 }
 0x55a   : > { %2562 = vadd.xlane.f32.xlu0 %v2561_v14 }
 0x55c   : > { %2565 = vadd.xlane.f32.xlu1 %v2564_v34 }
 0x5ca   : > { %v2497_v48 = vpop.xlane.xlu0 %2496 }
 0x5cb   : > { %v2519_v12 = vmul.f32 0.00390625, %v2497_v48 }
 0x5cc   : > { %v2500_v61 = vpop.xlane.xlu1 %2499 }
 0x5cd   : > { %v2520_v9 = vmul.f32 0.00390625, %v2500_v61  ;;  %v2575_v20 = vmul.f32 %v2519_v12, %v2519_v12 }
 0x5ce   : > { %v2545_v18 = vpop.xlane.xlu0 %2544 }
 0x5cf   : > { %v2567_v8 = vmul.f32 0.00390625, %v2545_v18  ;;  %v2576_v26 = vmul.f32 %v2520_v9, %v2520_v9 }
 0x5d0   : > { %v2548_v49 = vpop.xlane.xlu1 %2547 }
 0x5d1   : > { %v2583_v39 = vsub.f32 %v2567_v8, %v2575_v20  ;;  %v2568_v13 = vmul.f32 0.00390625, %v2548_v49  ;;  %v2599_v49 = vsub.f32 %v5268_v59, %v2519_v12 }
 0x5d2   : > { %v2503_v40 = vpop.xlane.xlu0 %2502 }
 0x5d3   : > { %v2591_v63 = vmax.f32 %v2583_v39, 0.0  ;;  %v2584_v0 = vsub.f32 %v2568_v13, %v2576_v26  ;;  %v5363_v41 = vmul.f32 0.00390625, %v2503_v40  ;;  %v2600_v39 = vsub.f32 %v5271_v4, %v2519_v12 }
 0x5d4   : > { %v2506_v7 = vpop.xlane.xlu1 %2505 }
 0x5d5   : > { %v2615_v57 = vadd.f32 1e-05, %v2591_v63  ;;  %v2592_v10 = vmax.f32 %v2584_v0, 0.0  ;;  %v5365_v21 = vmul.f32 0.00390625, %v2506_v7  ;;  %v2577_v35 = vmul.f32 %v5363_v41, %v5363_v41 }
 0x5d6   : > { %v2551_v37 = vpop.xlane.xlu0 %2550  ;;  %v2601_v63 = vsub.f32 %v5274_v2, %v2520_v9  ;;  %v2602_v0 = vsub.f32 %v5277_v23, %v2520_v9  ;;  %v2603_v2 = vsub.f32 %v5292_v53, %v5363_v41  ;;  %v2604_v23 = vsub.f32 %v5295_v43, %v5363_v41 }
 0x5d7   : > { %3447 = vrsqrt.f32 %v2615_v57  ;;  %v2616_v62 = vadd.f32 1e-05, %v2592_v10  ;;  %v2569_v55 = vmul.f32 0.00390625, %v2551_v37  ;;  %v2578_v33 = vmul.f32 %v5365_v21, %v5365_v21 }
 0x5d8   : > { %v2554_v6 = vpop.xlane.xlu1 %2553 }
 0x5d9   : > { %3449 = vrsqrt.f32 %v2616_v62  ;;  %v2585_v50 = vsub.f32 %v2569_v55, %v2577_v35  ;;  %v2570_v46 = vmul.f32 0.00390625, %v2554_v6 }
 0x5db   : > { %v2593_v60 = vmax.f32 %v2585_v50, 0.0  ;;  %v2586_v54 = vsub.f32 %v2570_v46, %v2578_v33  ;;  %v2509_v45 = vpop.xlane.xlu0 %2508 }
 0x5dc   : > { %v5371_v14 = vmul.f32 0.00390625, %v2509_v45 }
 0x5dd   : > { %v2617_v34 = vadd.f32 1e-05, %v2593_v60  ;;  %v2594_v48 = vmax.f32 %v2586_v54, 0.0  ;;  %v2512_v61 = vpop.xlane.xlu1 %2511 }
 0x5de   : > { %v5373_v20 = vmul.f32 0.00390625, %v2512_v61  ;;  %v2579_v26 = vmul.f32 %v5371_v14, %v5371_v14 }
 0x5df   : > { %3451 = vrsqrt.f32 %v2617_v34  ;;  %v2618_v18 = vadd.f32 1e-05, %v2594_v48  ;;  %v2557_v8 = vpop.xlane.xlu0 %2556  ;;  %v2605_v48 = vsub.f32 %v5298_v36, %v5365_v21 }
 0x5e0   : > { %v2571_v13 = vmul.f32 0.00390625, %v2557_v8  ;;  %v2580_v59 = vmul.f32 %v5373_v20, %v5373_v20 }
 0x5e1   : > { %v3448_v40 = vpop.eup %3447  ;;  %3453 = vrsqrt.f32 %v2618_v18  ;;  %v2560_v7 = vpop.xlane.xlu1 %2559 }
 0x5e2   : > { %v2631_v57 = vmul.f32 %v3448_v40, %v2599_v49  ;;  %v2632_v10 = vmul.f32 %v3448_v40, %v2600_v39  ;;  %v2587_v37 = vsub.f32 %v2571_v13, %v2579_v26  ;;  %v2572_v62 = vmul.f32 0.00390625, %v2560_v7 }
 0x5e3   : > { %v3450_v35 = vpop.eup %3449  ;;  %v2515_v4 = vpop.xlane.xlu0 %2514  ;;  %v2606_v13 = vsub.f32 %v5301_v31, %v5365_v21 }
 0x5e4   : > { %v2647_v12 = vmul.f32 %v2631_v57, %v5145_v47  ;;  %v2648_v55 = vmul.f32 %v2632_v10, %v5148_v15  ;;  %v2633_v6 = vmul.f32 %v3450_v35, %v2601_v63  ;;  %v2634_v50 = vmul.f32 %v3450_v35, %v2602_v0 }
 0x5e5   : > { %v2595_v9 = vmax.f32 %v2587_v37, 0.0  ;;  %v2588_v33 = vsub.f32 %v2572_v62, %v2580_v59  ;;  %v2518_v46 = vpop.xlane.xlu1 %2517  ;;  %v5395_v18 = vmul.f32 0.00390625, %v2515_v4 }
 0x5e6   : > { %v2663_v60 = vadd.f32 %v2647_v12, %v5157_v32  ;;  %v2664_v54 = vadd.f32 %v2648_v55, %v5160_v27  ;;  %v2649_v45 = vmul.f32 %v2633_v6, %v5145_v47  ;;  %v2650_v34 = vmul.f32 %v2634_v50, %v5148_v15 }
 0x5e7   : > { %v2619_v53 = vadd.f32 1e-05, %v2595_v9  ;;  %v2596_v61 = vmax.f32 %v2588_v33, 0.0  ;;  %v2563_v39 = vpop.xlane.xlu0 %2562  ;;  %v5403_v40 = vmul.f32 0.00390625, %v2518_v46  ;;  %v2581_v10 = vmul.f32 %v5395_v18, %v5395_v18 }
 0x5e8   : > { %v2679_v43 = vadd.f32 %v2663_v60, %v5063_v42  ;;  %v2680_v41 = vadd.f32 %v2664_v54, %v5057_v58  ;;  %v2665_v8 = vadd.f32 %v2649_v45, %v5157_v32  ;;  %v2666_v49 = vadd.f32 %v2650_v34, %v5160_v27 }
 0x5e9   : > { %v3452_v26 = vpop.eup %3451  ;;  %3455 = vrsqrt.f32 %v2619_v53  ;;  %v2620_v36 = vadd.f32 1e-05, %v2596_v61  ;;  %v2566_v7 = vpop.xlane.xlu1 %2565  ;;  %v2573_v31 = vmul.f32 0.00390625, %v2563_v39  ;;  %v2609_v61 = vsub.f32 %v5322_v19, %v5373_v20 }
 0x5ea   : > { %2695 = vst [vmem:[%s5193_s21 + $0x80] sm:$0xff] %v2679_v43  ;;  %2696 = vst [vmem:[%s5193_s21 + $0x88] sm:$0xff] %v2680_v41  ;;  %v2681_v42 = vadd.f32 %v2665_v8, %v5052_v30  ;;  %v2682_v58 = vadd.f32 %v2666_v49, %v5059_v38  ;;  %v2635_v63 = vmul.f32 %v3452_v26, %v2603_v2  ;;  %v2574_v59 = vmul.f32 0.00390625, %v2566_v7 }
 0x5eb   : > { %v2636_v0 = vmul.f32 %v3452_v26, %v2604_v23  ;;  %v3454_v57 = vpop.eup %3453  ;;  %3457 = vrsqrt.f32 %v2620_v36  ;;  %v2589_v30 = vsub.f32 %v2573_v31, %v2581_v10  ;;  %v2582_v38 = vmul.f32 %v5403_v40, %v5403_v40 }
 0x5ec   : > { %2697 = vst [vmem:[%s5193_s21 + $0x90] sm:$0xff] %v2681_v42  ;;  %2698 = vst [vmem:[%s5193_s21 + $0x98] sm:$0xff] %v2682_v58  ;;  %v2651_v21 = vmul.f32 %v2635_v63, %v5145_v47  ;;  %v2637_v62 = vmul.f32 %v3454_v57, %v2605_v48  ;;  %v2638_v35 = vmul.f32 %v3454_v57, %v2606_v13 }
 0x5ed   : > { %v2652_v37 = vmul.f32 %v2636_v0, %v5148_v15  ;;  %v2597_v50 = vmax.f32 %v2589_v30, 0.0  ;;  %v2590_v2 = vsub.f32 %v2574_v59, %v2582_v38  ;;  %v2607_v48 = vsub.f32 %v5316_v56, %v5371_v14  ;;  %v5702_v59 = vld [vmem:[#allocation29_spill] sm:$0xff] }
 0x5ee   : > { %v2667_v4 = vadd.f32 %v2651_v21, %v5157_v32  ;;  %v2653_v55 = vmul.f32 %v2637_v62, %v5145_v47  ;;  %v2654_v6 = vmul.f32 %v2638_v35, %v5148_v15  ;;  %v2610_v43 = vsub.f32 %v5325_v51, %v5373_v20  ;;  %v5699_v62 = vld [vmem:[#allocation27_spill] sm:$0xff] }
 0x5ef   : > { %v2668_v12 = vadd.f32 %v2652_v37, %v5160_v27  ;;  %v2621_v60 = vadd.f32 1e-05, %v2597_v50  ;;  %v2598_v54 = vmax.f32 %v2590_v2, 0.0  ;;  %v2611_v63 = vsub.f32 %v5340_v24, %v5395_v18 }
 0x5f0   : > { %v2683_v23 = vadd.f32 %v2667_v4, %v5083_v44  ;;  %v2669_v33 = vadd.f32 %v2653_v55, %v5157_v32  ;;  %v2670_v46 = vadd.f32 %v2654_v6, %v5160_v27  ;;  %v2608_v44 = vsub.f32 %v5319_v3, %v5371_v14 }
 0x5f1   : > { %v2684_v9 = vadd.f32 %v2668_v12, %v5076_v17  ;;  %3459 = vrsqrt.f32 %v2621_v60  ;;  %v2622_v17 = vadd.f32 1e-05, %v2598_v54  ;;  %v2612_v0 = vsub.f32 %v5343_v1, %v5395_v18 }
 0x5f2   : > { %2699 = vst [vmem:[%s5193_s21 + $0xa0] sm:$0xff] %v2683_v23  ;;  %v2685_v45 = vadd.f32 %v2669_v33, %v5073_v16  ;;  %v2686_v34 = vadd.f32 %v2670_v46, %v5078_v25 }
 0x5f3   : > { %2700 = vst [vmem:[%s5193_s21 + $0xa8] sm:$0xff] %v2684_v9  ;;  %v3456_v53 = vpop.eup %3455  ;;  %3461 = vrsqrt.f32 %v2622_v17 }
 0x5f4   : > { %2701 = vst [vmem:[%s5193_s21 + $0xb0] sm:$0xff] %v2685_v45  ;;  %2702 = vst [vmem:[%s5193_s21 + $0xb8] sm:$0xff] %v2686_v34  ;;  %v2639_v16 = vmul.f32 %v3456_v53, %v2607_v48  ;;  %v2640_v25 = vmul.f32 %v3456_v53, %v2608_v44 }
 0x5f5   : > { %v3458_v41 = vpop.eup %3457 }
 0x5f6   : > { %v2655_v56 = vmul.f32 %v2639_v16, %v5145_v47  ;;  %v2656_v3 = vmul.f32 %v2640_v25, %v5148_v15  ;;  %v2641_v14 = vmul.f32 %v3458_v41, %v2609_v61  ;;  %v2642_v8 = vmul.f32 %v3458_v41, %v2610_v43 }
 0x5f8   : > { %v2671_v49 = vadd.f32 %v2655_v56, %v5157_v32  ;;  %v2672_v19 = vadd.f32 %v2656_v3, %v5160_v27  ;;  %v2657_v51 = vmul.f32 %v2641_v14, %v5145_v47  ;;  %v2658_v20 = vmul.f32 %v2642_v8, %v5148_v15 }
 0x5fa   : > { %v2687_v39 = vadd.f32 %v2671_v49, %v5103_v22  ;;  %v2688_v26 = vadd.f32 %v2672_v19, %v5098_v28  ;;  %v2673_v13 = vadd.f32 %v2657_v51, %v5157_v32  ;;  %v2674_v36 = vadd.f32 %v2658_v20, %v5160_v27 }
 0x5fb   : > { %v3460_v7 = vpop.eup %3459  ;;  %v2613_v28 = vsub.f32 %v5346_v5, %v5403_v40  ;;  %v2614_v22 = vsub.f32 %v5349_v29, %v5403_v40  ;;  %v5698_v40 = vld [vmem:[#allocation33_spill] sm:$0xff] }
 0x5fc   : > { %2703 = vst [vmem:[%s5193_s21 + $0xc0] sm:$0xff] %v2687_v39  ;;  %2704 = vst [vmem:[%s5193_s21 + $0xc8] sm:$0xff] %v2688_v26  ;;  %v2689_v42 = vadd.f32 %v2673_v13, %v5095_v52  ;;  %v2690_v58 = vadd.f32 %v2674_v36, %v5100_v11  ;;  %v2643_v52 = vmul.f32 %v3460_v7, %v2611_v63 }
 0x5fd   : > { %v2644_v57 = vmul.f32 %v3460_v7, %v2612_v0  ;;  %v3462_v11 = vpop.eup %3461 }
 0x5fe   : > { %2705 = vst [vmem:[%s5193_s21 + $0xd0] sm:$0xff] %v2689_v42  ;;  %2706 = vst [vmem:[%s5193_s21 + $0xd8] sm:$0xff] %v2690_v58  ;;  %v2659_v10 = vmul.f32 %v2643_v52, %v5145_v47  ;;  %v2645_v1 = vmul.f32 %v3462_v11, %v2613_v28  ;;  %v2646_v18 = vmul.f32 %v3462_v11, %v2614_v22 }
 0x5ff   : > { %v2660_v24 = vmul.f32 %v2644_v57, %v5148_v15 }
 0x600   : > { %v2675_v31 = vadd.f32 %v2659_v10, %v5157_v32  ;;  %v2661_v5 = vmul.f32 %v2645_v1, %v5145_v47  ;;  %v2662_v29 = vmul.f32 %v2646_v18, %v5148_v15  ;;  %v5701_v47 = vld [vmem:[#allocation30_spill] sm:$0xff] }
 0x601   : > { %v2676_v21 = vadd.f32 %v2660_v24, %v5160_v27 }
 0x602   : > { %v2691_v37 = vadd.f32 %v2675_v31, %v5698_v40  ;;  %v2677_v30 = vadd.f32 %v2661_v5, %v5157_v32  ;;  %v2678_v38 = vadd.f32 %v2662_v29, %v5160_v27 }
 0x603   : > { %v2692_v35 = vadd.f32 %v2676_v21, %v5699_v62 }
 0x604   : > { %2707 = vst [vmem:[%s5193_s21 + $0xe0] sm:$0xff] %v2691_v37  ;;  %v2693_v15 = vadd.f32 %v2677_v30, %v5701_v47  ;;  %v2694_v4 = vadd.f32 %v2678_v38, %v5702_v59 }
 0x605   : > { %2708 = vst [vmem:[%s5193_s21 + $0xe8] sm:$0xff] %v2692_v35 }
 0x606   : > { %2709 = vst [vmem:[%s5193_s21 + $0xf0] sm:$0xff] %v2693_v15  ;;  %2710 = vst [vmem:[%s5193_s21 + $0xf8] sm:$0xff] %v2694_v4 }
 0x607   : > { %3666 = shalt.err (!%p3663_p6)
}
 0x608   : > { %s3667_s19 = scalar_lea.hbm %s5478_s10, 4096  ;;  %s3671_s27 = scalar_lea.hbm %s5700_s26, 12288 }
 0x609   : > { %p3668_p0 = scmp.ne.s32.totalorder %s5478_s10, %s3667_s19  ;;  %p3672_p13 = scmp.lt.u32.totalorder %s5478_s10, %s5700_s26 }
 0x60a   : > { %p3673_p3 = scmp.lt.u32.totalorder %s3671_s27, %s3667_s19  ;;  %p3675_p9 = scmp.lt.u32.totalorder %s3667_s19, %s5478_s10 }
 0x60b   : > { %p3669_p1 = pnand %p3668_p0, %p3947_p8 }
 0x60c   : > { %p3674_p7 = por %p3673_p3, %p3672_p13 }
 0x60d   : > { %p3670_p10 = pneg %p3669_p1 }
 0x60e   : > { %p3676_p12 = por %p3675_p9, %p3674_p7 }
 0x610   : > { %p3677_p5 = pnand %p3676_p12, %p3670_p10 }
 0x612   : > { %3680 = shalt.err (!%p3677_p5)
}
 0x613   : > { %s3746_s21 = smov 256   ;;  %s3747_s20 = smov 16  }
 0x614   : > { %3076 = dma.vmem_to_hbm [thread:$0]  (%p3947_p8), %s5480_s17, 4096, %s5478_s10, %s2712_s25, %s3746_s21, %s3746_s21, %s3747_s20  }
 0x615 PF: > { %s5703_s16 = sld [smem:[#allocation17_spill]]  ;;  %s5704_s11 = sld [smem:[#allocation18_spill]] }
 0x616   : > { %p3106_p11 = scmp.ge.s32.totalorder %s3731_s24, 2 }
 0x61b   : > { %s2741_s15 = sand.u32 1, %s5703_s16   ;;  %p5705_p2 = scmp.ne.s32.totalorder %s5704_s11, 0 }
 0x61c   : > { %s2742_s4 = scalar_lea.sflag [#allocation4], %s2741_s15 }
 0x61d   : > { %p3096_p4 = pnand %p3106_p11, %p5705_p2 }
 0x61f   : > { %3714 = dma.done.wait (!%p3096_p4), %s2742_s4, 4096  }
 0x620   : > { %3716 = vsyncadd (!%p3096_p4), %s2742_s4, 4294963200  ;;  %p29_p6 = scmp.ge.s32.totalorder %s3915_s28, 5   ;;  %s5706_s21 = smov %s3723_s22 }
 0x621   : > { %s5707_s22 = smov %s3727_s23  ;;  %s5708_s23 = smov %s3943_s14 }
 0x622   : > { %s5709_s24 = smov %s3915_s28  ;;  %31 = sbr.rel (!%p29_p6) target bundleno = 16 (0x10), region = 138 }
 0x629   :  { %2747 = vsyncpa [#allocation3], 1 }
 0x62a   :  { %2749 = vsyncpa [#allocation3 + $0x1], 1 }
 0x62b   :  { %2750 = vsyncpa [#allocation6], 1 }
 0x62c   :  { %2752 = vsyncpa [#allocation6 + $0x1], 1 }
 0x62d   :  { %2753 = vsyncpa [#allocation9], 1 }
 0x62e   :  { %2754 = vsyncpa [#allocation4], 1 }
 0x62f   :  { %2756 = vsyncpa [#allocation4 + $0x1], 1 }

</bundles_post_ra>
